<compile_context>
chip_gen: v6e
topology: v6e:2x2x1
jax: 0.10.0
libtpu: 0.0.40
codegen_flags: <defaults>
</compile_context>

<pallas_src>
import functools

import jax
import jax.numpy as jnp
from jax.experimental import pallas as pl
from jax.experimental.pallas import tpu as pltpu


# ----------------------------------------------------------------------------
# helpers
# ----------------------------------------------------------------------------
def _round_up(x, m):
    return (x + m - 1) // m * m


def _cdiv(a, b):
    return (a + b - 1) // b


# ----------------------------------------------------------------------------
# Pallas kernel 1: conv + bias + ReLU with in-kernel im2col
#   (k*k shifted matmuls over a stride-phase-split, spatially padded input)
# ----------------------------------------------------------------------------
def _conv2d_relu_kernel(x_ref, w_ref, b_ref, o_ref, *, k, s, Ho, Wo):
    """One (batch item, cout block) tile of a conv+bias+ReLU layer.

    x_ref: [1, s*s, Hq, Wq, Cp]  stride-phase-split, spatially padded input
    w_ref: [k*k, Cp, tn]         (ki, kj)-major weight, zero-padded channels
    b_ref: [1, tn]               f32 bias (zero in padded columns)
    o_ref: [1, Ho, Wo, tn]       bf16 output
    """
    tn = o_ref.shape[-1]
    accs = [jnp.zeros((Wo, tn), jnp.float32) for _ in range(Ho)]
    for i in range(k):
        for j in range(k):
            w_ij = w_ref[i * k + j]                     # [Cp, tn]
            ph = (i % s) * s + (j % s)                  # stride phase index
            oi, oj = i // s, j // s                     # offset inside phase
            for ho in range(Ho):
                x_row = x_ref[0, ph, oi + ho, oj:oj + Wo, :]   # [Wo, Cp]
                accs[ho] = accs[ho] + jnp.dot(
                    x_row, w_ij, preferred_element_type=jnp.float32)
    bias = b_ref[...]                                   # [1, tn] (broadcasts)
    for ho in range(Ho):
        o_ref[0, ho] = jnp.maximum(accs[ho] + bias, 0.0).astype(o_ref.dtype)


def conv2d_relu(x, w, b, *, k, s, p):
    """x: bf16 NHWC [B, H, W, C] (C <= Cp; any padded channels are zero)
       w: bf16 [k*k, Cp, Np]; b: f32 [1, Np]. Returns bf16 [B, Ho, Wo, Np]."""
    B, H, W, C = x.shape
    kk, Cp, Np = w.shape
    assert kk == k * k and C <= Cp and Np % 128 == 0
    Ho = (H + 2 * p - k) // s + 1
    Wo = (W + 2 * p - k) // s + 1
    Hq = _cdiv(H + 2 * p, s)
    Wq = _cdiv(W + 2 * p, s)

    # Single pad: conv zero-padding + stride-phase round-up + lane channel pad.
    xp = jnp.pad(x, ((0, 0), (p, s * Hq - H - p), (p, s * Wq - W - p),
                     (0, Cp - C)))
    # Stride-phase split: phases[b, a*s + c, hq, wq, :] = xp[b, hq*s+a, wq*s+c, :]
    phases = xp.reshape(B, Hq, s, Wq, s, Cp).transpose(0, 2, 4, 1, 3, 5)
    phases = phases.reshape(B, s * s, Hq, Wq, Cp)

    tn = 128
    grid = (B, Np // tn)
    kern = functools.partial(_conv2d_relu_kernel, k=k, s=s, Ho=Ho, Wo=Wo)
    flops = 2 * B * Ho * Wo * kk * Cp * Np
    bytes_accessed = int(phases.size * 2 + w.size * 2 + b.size * 4
                         + B * Ho * Wo * Np * 2)
    return pl.pallas_call(
        kern,
        out_shape=jax.ShapeDtypeStruct((B, Ho, Wo, Np), jnp.bfloat16),
        grid_spec=pltpu.PrefetchScalarGridSpec(
            num_scalar_prefetch=0,
            grid=grid,
            in_specs=[
                pl.BlockSpec((1, s * s, Hq, Wq, Cp),
                             lambda bi, ni: (bi, 0, 0, 0, 0)),
                pl.BlockSpec((kk, Cp, tn), lambda bi, ni: (0, 0, ni)),
                pl.BlockSpec((1, tn), lambda bi, ni: (0, ni)),
            ],
            out_specs=pl.BlockSpec((1, Ho, Wo, tn),
                                   lambda bi, ni: (bi, 0, 0, ni)),
        ),
        compiler_params=pltpu.CompilerParams(
            dimension_semantics=("parallel", "parallel")),
        cost_estimate=pl.CostEstimate(flops=flops, transcendentals=0,
                                      bytes_accessed=bytes_accessed),
    )(phases, w, b)


# ----------------------------------------------------------------------------
# Pallas kernel 2: fused MLP (hidden FC+ReLU stack, then last FC + Tanh)
# All (padded, f32) weights stay resident in VMEM; a single pallas_call.
# ----------------------------------------------------------------------------
def _fused_mlp_kernel(x_ref, *refs):
    o_ref = refs[-1]
    wb = refs[:-1]                      # (w0, b0, w1, b1, ..., w_last, b_last)
    n_layers = len(wb) // 2
    h = x_ref[...].astype(jnp.float32)
    for layer in range(n_layers):
        w = wb[2 * layer][...]
        bias = wb[2 * layer + 1][...]
        h = jnp.dot(h, w, preferred_element_type=jnp.float32) + bias
        h = jnp.maximum(h, 0.0) if layer < n_layers - 1 else jnp.tanh(h)
    o_ref[...] = h.astype(o_ref.dtype)


def fused_mlp(x, weights, biases, *, out_dtype=jnp.float32):
    """x: bf16 [B, K0] (K0 multiple of 128); weights[i]: f32 [K_i, N_i] padded."""
    B, K0 = x.shape
    assert K0 == weights[0].shape[0] and K0 % 128 == 0
    Np_out = weights[-1].shape[1]

    in_specs = [pl.BlockSpec((B, K0), lambda i: (0, 0))]
    args = [x]
    for w, b in zip(weights, biases):
        in_specs.append(pl.BlockSpec(w.shape, lambda i: (0, 0)))
        in_specs.append(pl.BlockSpec(b.shape, lambda i: (0, 0)))
        args.extend([w, b])

    flops = sum(2 * B * w.shape[0] * w.shape[1] for w in weights)
    bytes_accessed = int(x.size * x.dtype.itemsize
                         + sum(w.size * 4 + b.size * 4
                               for w, b in zip(weights, biases))
                         + B * Np_out * jnp.dtype(out_dtype).itemsize)
    return pl.pallas_call(
        _fused_mlp_kernel,
        out_shape=jax.ShapeDtypeStruct((B, Np_out), out_dtype),
        grid_spec=pltpu.PrefetchScalarGridSpec(
            num_scalar_prefetch=0,
            grid=(1,),
            in_specs=in_specs,
            out_specs=pl.BlockSpec((B, Np_out), lambda i: (0, 0)),
        ),
        compiler_params=pltpu.CompilerParams(dimension_semantics=("arbitrary",)),
        cost_estimate=pl.CostEstimate(flops=flops, transcendentals=B * Np_out,
                                      bytes_accessed=bytes_accessed),
    )(*args)


# ----------------------------------------------------------------------------
# Pallas kernel 3: tiled  out = act(x @ w + b)  -- fallback for MLPs whose
# weights are too large to keep VMEM-resident (e.g. big hidden_sizes on v7x).
# ----------------------------------------------------------------------------
def _matmul_bias_act_kernel(x_ref, w_ref, b_ref, o_ref, acc_ref, *, act):
    @pl.when(pl.program_id(2) == 0)
    def _init():
        acc_ref[...] = jnp.zeros_like(acc_ref)

    acc_ref[...] += jnp.dot(x_ref[...], w_ref[...],
                            preferred_element_type=jnp.float32)

    @pl.when(pl.program_id(2) == pl.num_programs(2) - 1)
    def _finalize():
        y = acc_ref[...] + b_ref[...]
        if act == "relu":
            y = jnp.maximum(y, 0.0)
        elif act == "tanh":
            y = jnp.tanh(y)
        o_ref[...] = y.astype(o_ref.dtype)


def matmul_bias_act(x, w, b, *, act, out_dtype=jnp.float32):
    M, K = x.shape
    _, N = w.shape
    assert K % 128 == 0 and N % 128 == 0
    Mp = _round_up(M, 16) if M <= 256 else _round_up(M, 256)
    if Mp != M:
        x = jnp.pad(x, ((0, Mp - M), (0, 0)))
    # 256-wide tiles feed v6e/v7x's 256x256 MXU; 128 otherwise (v5e-native).
    tm = min(Mp, 256)
    tn = 256 if N % 256 == 0 else 128
    tk = next(c for c in (512, 256, 128) if K % c == 0)
    grid = (Mp // tm, N // tn, K // tk)
    kern = functools.partial(_matmul_bias_act_kernel, act=act)
    y = pl.pallas_call(
        kern,
        out_shape=jax.ShapeDtypeStruct((Mp, N), out_dtype),
        grid_spec=pltpu.PrefetchScalarGridSpec(
            num_scalar_prefetch=0,
            grid=grid,
            in_specs=[
                pl.BlockSpec((tm, tk), lambda i, j, kk: (i, kk)),
                pl.BlockSpec((tk, tn), lambda i, j, kk: (kk, j)),
                pl.BlockSpec((1, tn), lambda i, j, kk: (0, j)),
            ],
            out_specs=pl.BlockSpec((tm, tn), lambda i, j, kk: (i, j)),
            scratch_shapes=[pltpu.VMEM((tm, tn), jnp.float32)],
        ),
        compiler_params=pltpu.CompilerParams(
            dimension_semantics=("parallel", "parallel", "arbitrary")),
    )(x, w, b)
    return y[:M]


def mlp_forward(x, weights, biases):
    """Hidden FCs (ReLU) + last FC (Tanh). Fused single kernel when the f32
    weights comfortably fit VMEM (safe on v5e/v6e/v7x); tiled fallback else."""
    resident = sum(w.size * 4 + b.size * 4 for w, b in zip(weights, biases))
    resident += 4 * x.shape[0] * x.shape[1] * 4          # activations + slack
    if resident <= 12 * 1024 * 1024:
        return fused_mlp(x, weights, biases)
    h = x
    for idx, (w, b) in enumerate(zip(weights, biases)):
        act = "relu" if idx < len(weights) - 1 else "tanh"
        h = matmul_bias_act(
            h, w, b, act=act,
            out_dtype=jnp.bfloat16 if act == "relu" else jnp.float32)
    return h


# ----------------------------------------------------------------------------
# Deterministic parameter init (mirrors the PyTorch __init__)
# ----------------------------------------------------------------------------
def xavier_uniform(key, shape):
    cout, cin, kh, kw = shape
    fan_in = cin * kh * kw
    fan_out = cout * kh * kw
    bound = (6.0 / (fan_in + fan_out)) ** 0.5
    return jax.random.uniform(key, shape, jnp.float32, -bound, bound)


def init_cnn_params(key, input_width, input_height, input_channels, output_size,
                    kernel_sizes, n_channels, strides, paddings,
                    hidden_sizes, init_w=1e-4):
    params = {"conv": [], "fc": [], "last_fc": None}
    cin, h, w = input_channels, input_width, input_height
    for cout, k, s, p in zip(n_channels, kernel_sizes, strides, paddings):
        key, kw_ = jax.random.split(key)
        W = xavier_uniform(kw_, (cout, cin, k, k))
        b = jnp.zeros((cout,), jnp.float32)               # conv.bias.data.fill_(0)
        params["conv"].append((W, b, s, p))
        h = (h + 2 * p - k) // s + 1
        w = (w + 2 * p - k) // s + 1
        cin = cout
    fc_in = cin * h * w
    for hs in hidden_sizes:
        key, k1, k2 = jax.random.split(key, 3)
        W = jax.random.uniform(k1, (hs, fc_in), jnp.float32, -init_w, init_w)
        b = jax.random.uniform(k2, (hs,), jnp.float32, -init_w, init_w)
        params["fc"].append((W, b))
        fc_in = hs
    key, k1, k2 = jax.random.split(key, 3)
    W = jax.random.uniform(k1, (output_size, fc_in), jnp.float32, -init_w, init_w)
    b = jax.random.uniform(k2, (output_size,), jnp.float32, -init_w, init_w)
    params["last_fc"] = (W, b)
    return params


def prepare_kernel_params(params, input_width, input_height):
    """One-time host-side reshape/pad/cast of all weights for the kernels.
    Returns (array-only pytree, static conv metadata (k, s, p) per layer)."""
    arrays = {"conv_w": [], "conv_b": [], "mlp_w": [], "mlp_b": []}
    conv_meta = []
    h, w = input_width, input_height
    cout = None
    for (W, b, s, p) in params["conv"]:
        cout, cin_l, k, _ = W.shape
        cin_p = _round_up(cin_l, 128)
        cout_p = _round_up(cout, 128)
        # (ki, kj, cin)-major rows to match the in-kernel shifted-matmul order.
        wt = jnp.transpose(W, (2, 3, 1, 0)).astype(jnp.bfloat16)   # [k,k,ci,co]
        wt = jnp.pad(wt, ((0, 0), (0, 0), (0, cin_p - cin_l), (0, cout_p - cout)))
        arrays["conv_w"].append(wt.reshape(k * k, cin_p, cout_p))
        arrays["conv_b"].append(
            jnp.pad(b, (0, cout_p - cout)).reshape(1, cout_p).astype(jnp.float32))
        conv_meta.append((k, s, p))
        h = (h + 2 * p - k) // s + 1
        w = (w + 2 * p - k) // s + 1
    C2, H2, W2 = cout, h, w
    C2p = _round_up(C2, 128)

    fcs = list(params["fc"]) + [params["last_fc"]]
    for idx, (W, b) in enumerate(fcs):
        out_d, in_d = W.shape
        out_p = _round_up(out_d, 128)
        if idx == 0:
            # Fold the NCHW-flatten -> NHWC(+channel-pad)-flatten permutation
            # into the first FC weight (no runtime transpose / channel slice).
            assert in_d == C2 * H2 * W2
            wt = W.T.reshape(C2, H2, W2, out_d).transpose(1, 2, 0, 3)
            wt = jnp.pad(wt, ((0, 0), (0, 0), (0, C2p - C2), (0, out_p - out_d)))
            wp = wt.reshape(H2 * W2 * C2p, out_p)
        else:
            in_p = _round_up(in_d, 128)
            wp = jnp.pad(W.T, ((0, in_p - in_d), (0, out_p - out_d)))
        arrays["mlp_w"].append(wp.astype(jnp.float32))
        arrays["mlp_b"].append(
            jnp.pad(b, (0, out_p - out_d)).reshape(1, out_p).astype(jnp.float32))
    return arrays, tuple(conv_meta)


# ----------------------------------------------------------------------------
# Forward pass (batch_norm_conv=False, batch_norm_fc=False -> BN layers unused)
# ----------------------------------------------------------------------------
def cnn_forward(arrays, x, *, conv_meta, out_dim):
    B = x.shape[0]
    # NCHW -> NHWC once at the input; channels-last (lane dim) after this.
    h = jnp.transpose(x, (0, 2, 3, 1)).astype(jnp.bfloat16)
    for wk, bk, (k, s, p) in zip(arrays["conv_w"], arrays["conv_b"], conv_meta):
        h = conv2d_relu(h, wk, bk, k=k, s=s, p=p)
    # Flatten NHWC including padded channels; the permutation back to
    # PyTorch's NCHW flatten order is baked into arrays["mlp_w"][0].
    h = h.reshape(B, -1)
    out = mlp_forward(h, arrays["mlp_w"], arrays["mlp_b"])
    return out[:, :out_dim]


# ----------------------------------------------------------------------------
# Pure-JAX f32 reference (lightweight sanity check)
# ----------------------------------------------------------------------------
def cnn_forward_ref(params, x):
    h = x
    for W, b, s, p in params["conv"]:
        h = jax.lax.conv_general_dilated(
            h, W, window_strides=(s, s), padding=[(p, p), (p, p)],
            dimension_numbers=("NCHW", "OIHW", "NCHW"))
        h = jnp.maximum(h + b[None, :, None, None], 0.0)
    B = h.shape[0]
    h = h.reshape(B, -1)
    for W, b in params["fc"]:
        h = jnp.maximum(h @ W.T + b, 0.0)
    Wl, bl = params["last_fc"]
    return jnp.tanh(h @ Wl.T + bl)


if __name__ == "__main__":
    # Small config consistent with the module's constructor.
    input_width = 16
    input_height = 16
    input_channels = 4
    output_size = 8
    kernel_sizes = [3, 3]
    n_channels = [8, 16]
    strides = [2, 2]
    paddings = [1, 1]
    hidden_sizes = [32]
    batch = 2

    key = jax.random.PRNGKey(0)
    kparam, kx = jax.random.split(key)
    params = init_cnn_params(kparam, input_width, input_height, input_channels,
                             output_size, kernel_sizes, n_channels, strides,
                             paddings, hidden_sizes)
    x = jax.random.normal(kx, (batch, input_channels, input_width, input_height),
                          jnp.float32)

    arrays, conv_meta = prepare_kernel_params(params, input_width, input_height)
    forward = jax.jit(functools.partial(cnn_forward, conv_meta=conv_meta,
                                        out_dim=output_size))

    out = jax.block_until_ready(forward(arrays, x))
    assert out.shape == (batch, output_size)

    ref = jax.block_until_ready(cnn_forward_ref(params, x))
    # bf16 conv activations/weights in the kernel path -> relaxed tolerance.
    assert jnp.allclose(out, ref, atol=1e-3, rtol=1e-2), \
        float(jnp.max(jnp.abs(out - ref)))

    print("KERNEL_OK")
</pallas_src>

<mosaic_0001>
module attributes {stable_mosaic.version = 11 : i64} {
  func.func @_conv2d_relu_kernel(%arg0: i32, %arg1: i32, %arg2: memref<1x4x9x9x128xbf16, #tpu.memory_space<vmem>>, %arg3: memref<9x128x128xbf16, #tpu.memory_space<vmem>>, %arg4: memref<1x128xf32, #tpu.memory_space<vmem>>, %arg5: memref<1x8x8x128xbf16, #tpu.memory_space<vmem>>) attributes {dimension_semantics = [#tpu.dimension_semantics<parallel>, #tpu.dimension_semantics<parallel>], iteration_bounds = array<i64: 2, 1>, scalar_prefetch = 0 : i64, scratch_operands = 0 : i64, tpu.core_type = #tpu.core_type<tc>, window_params = [{transform_indices = @transform_0, window_bounds = array<i64: 1, 4, 9, 9, 128>}, {transform_indices = @transform_1, window_bounds = array<i64: 9, 128, 128>}, {transform_indices = @transform_2, window_bounds = array<i64: 1, 128>}, {transform_indices = @transform_3, window_bounds = array<i64: 1, 8, 8, 128>}]} {
    %cst = arith.constant 0.000000e+00 : f32
    %0 = vector.broadcast %cst : f32 to vector<8x128xf32>
    %cst_0 = arith.constant 0.000000e+00 : f32
    %1 = vector.broadcast %cst_0 : f32 to vector<8x128xf32>
    %cst_1 = arith.constant 0.000000e+00 : f32
    %2 = vector.broadcast %cst_1 : f32 to vector<8x128xf32>
    %cst_2 = arith.constant 0.000000e+00 : f32
    %3 = vector.broadcast %cst_2 : f32 to vector<8x128xf32>
    %cst_3 = arith.constant 0.000000e+00 : f32
    %4 = vector.broadcast %cst_3 : f32 to vector<8x128xf32>
    %cst_4 = arith.constant 0.000000e+00 : f32
    %5 = vector.broadcast %cst_4 : f32 to vector<8x128xf32>
    %cst_5 = arith.constant 0.000000e+00 : f32
    %6 = vector.broadcast %cst_5 : f32 to vector<8x128xf32>
    %cst_6 = arith.constant 0.000000e+00 : f32
    %7 = vector.broadcast %cst_6 : f32 to vector<8x128xf32>
    %c0 = arith.constant 0 : index
    %c0_7 = arith.constant 0 : index
    %c0_8 = arith.constant 0 : index
    %8 = vector.load %arg3[%c0, %c0_7, %c0_8] : memref<9x128x128xbf16, #tpu.memory_space<vmem>>, vector<1x128x128xbf16>
    %9 = vector.shape_cast %8 : vector<1x128x128xbf16> to vector<128x128xbf16>
    %c0_9 = arith.constant 0 : index
    %c0_10 = arith.constant 0 : index
    %c0_11 = arith.constant 0 : index
    %c0_12 = arith.constant 0 : index
    %c0_13 = arith.constant 0 : index
    %10 = vector.load %arg2[%c0_9, %c0_10, %c0_11, %c0_12, %c0_13] : memref<1x4x9x9x128xbf16, #tpu.memory_space<vmem>>, vector<1x1x1x8x128xbf16>
    %11 = vector.shape_cast %10 : vector<1x1x1x8x128xbf16> to vector<8x128xbf16>
    %cst_14 = arith.constant dense<0.000000e+00> : vector<8x128xf32>
    %12 = tpu.matmul %11, %9, %cst_14 {dimension_numbers = #tpu.dot_dimension_numbers<[1], [0], [0], [1], [0, 0, 1, 1], [], []>} : vector<8x128xbf16>, vector<128x128xbf16>, vector<8x128xf32> -> vector<8x128xf32>
    %13 = arith.addf %0, %12 : vector<8x128xf32>
    %c0_15 = arith.constant 0 : index
    %c0_16 = arith.constant 0 : index
    %c1 = arith.constant 1 : index
    %c0_17 = arith.constant 0 : index
    %c0_18 = arith.constant 0 : index
    %14 = vector.load %arg2[%c0_15, %c0_16, %c1, %c0_17, %c0_18] : memref<1x4x9x9x128xbf16, #tpu.memory_space<vmem>>, vector<1x1x1x8x128xbf16>
    %15 = vector.shape_cast %14 : vector<1x1x1x8x128xbf16> to vector<8x128xbf16>
    %cst_19 = arith.constant dense<0.000000e+00> : vector<8x128xf32>
    %16 = tpu.matmul %15, %9, %cst_19 {dimension_numbers = #tpu.dot_dimension_numbers<[1], [0], [0], [1], [0, 0, 1, 1], [], []>} : vector<8x128xbf16>, vector<128x128xbf16>, vector<8x128xf32> -> vector<8x128xf32>
    %17 = arith.addf %1, %16 : vector<8x128xf32>
    %c0_20 = arith.constant 0 : index
    %c0_21 = arith.constant 0 : index
    %c2 = arith.constant 2 : index
    %c0_22 = arith.constant 0 : index
    %c0_23 = arith.constant 0 : index
    %18 = vector.load %arg2[%c0_20, %c0_21, %c2, %c0_22, %c0_23] : memref<1x4x9x9x128xbf16, #tpu.memory_space<vmem>>, vector<1x1x1x8x128xbf16>
    %19 = vector.shape_cast %18 : vector<1x1x1x8x128xbf16> to vector<8x128xbf16>
    %cst_24 = arith.constant dense<0.000000e+00> : vector<8x128xf32>
    %20 = tpu.matmul %19, %9, %cst_24 {dimension_numbers = #tpu.dot_dimension_numbers<[1], [0], [0], [1], [0, 0, 1, 1], [], []>} : vector<8x128xbf16>, vector<128x128xbf16>, vector<8x128xf32> -> vector<8x128xf32>
    %21 = arith.addf %2, %20 : vector<8x128xf32>
    %c0_25 = arith.constant 0 : index
    %c0_26 = arith.constant 0 : index
    %c3 = arith.constant 3 : index
    %c0_27 = arith.constant 0 : index
    %c0_28 = arith.constant 0 : index
    %22 = vector.load %arg2[%c0_25, %c0_26, %c3, %c0_27, %c0_28] : memref<1x4x9x9x128xbf16, #tpu.memory_space<vmem>>, vector<1x1x1x8x128xbf16>
    %23 = vector.shape_cast %22 : vector<1x1x1x8x128xbf16> to vector<8x128xbf16>
    %cst_29 = arith.constant dense<0.000000e+00> : vector<8x128xf32>
    %24 = tpu.matmul %23, %9, %cst_29 {dimension_numbers = #tpu.dot_dimension_numbers<[1], [0], [0], [1], [0, 0, 1, 1], [], []>} : vector<8x128xbf16>, vector<128x128xbf16>, vector<8x128xf32> -> vector<8x128xf32>
    %25 = arith.addf %3, %24 : vector<8x128xf32>
    %c0_30 = arith.constant 0 : index
    %c0_31 = arith.constant 0 : index
    %c4 = arith.constant 4 : index
    %c0_32 = arith.constant 0 : index
    %c0_33 = arith.constant 0 : index
    %26 = vector.load %arg2[%c0_30, %c0_31, %c4, %c0_32, %c0_33] : memref<1x4x9x9x128xbf16, #tpu.memory_space<vmem>>, vector<1x1x1x8x128xbf16>
    %27 = vector.shape_cast %26 : vector<1x1x1x8x128xbf16> to vector<8x128xbf16>
    %cst_34 = arith.constant dense<0.000000e+00> : vector<8x128xf32>
    %28 = tpu.matmul %27, %9, %cst_34 {dimension_numbers = #tpu.dot_dimension_numbers<[1], [0], [0], [1], [0, 0, 1, 1], [], []>} : vector<8x128xbf16>, vector<128x128xbf16>, vector<8x128xf32> -> vector<8x128xf32>
    %29 = arith.addf %4, %28 : vector<8x128xf32>
    %c0_35 = arith.constant 0 : index
    %c0_36 = arith.constant 0 : index
    %c5 = arith.constant 5 : index
    %c0_37 = arith.constant 0 : index
    %c0_38 = arith.constant 0 : index
    %30 = vector.load %arg2[%c0_35, %c0_36, %c5, %c0_37, %c0_38] : memref<1x4x9x9x128xbf16, #tpu.memory_space<vmem>>, vector<1x1x1x8x128xbf16>
    %31 = vector.shape_cast %30 : vector<1x1x1x8x128xbf16> to vector<8x128xbf16>
    %cst_39 = arith.constant dense<0.000000e+00> : vector<8x128xf32>
    %32 = tpu.matmul %31, %9, %cst_39 {dimension_numbers = #tpu.dot_dimension_numbers<[1], [0], [0], [1], [0, 0, 1, 1], [], []>} : vector<8x128xbf16>, vector<128x128xbf16>, vector<8x128xf32> -> vector<8x128xf32>
    %33 = arith.addf %5, %32 : vector<8x128xf32>
    %c0_40 = arith.constant 0 : index
    %c0_41 = arith.constant 0 : index
    %c6 = arith.constant 6 : index
    %c0_42 = arith.constant 0 : index
    %c0_43 = arith.constant 0 : index
    %34 = vector.load %arg2[%c0_40, %c0_41, %c6, %c0_42, %c0_43] : memref<1x4x9x9x128xbf16, #tpu.memory_space<vmem>>, vector<1x1x1x8x128xbf16>
    %35 = vector.shape_cast %34 : vector<1x1x1x8x128xbf16> to vector<8x128xbf16>
    %cst_44 = arith.constant dense<0.000000e+00> : vector<8x128xf32>
    %36 = tpu.matmul %35, %9, %cst_44 {dimension_numbers = #tpu.dot_dimension_numbers<[1], [0], [0], [1], [0, 0, 1, 1], [], []>} : vector<8x128xbf16>, vector<128x128xbf16>, vector<8x128xf32> -> vector<8x128xf32>
    %37 = arith.addf %6, %36 : vector<8x128xf32>
    %c0_45 = arith.constant 0 : index
    %c0_46 = arith.constant 0 : index
    %c7 = arith.constant 7 : index
    %c0_47 = arith.constant 0 : index
    %c0_48 = arith.constant 0 : index
    %38 = vector.load %arg2[%c0_45, %c0_46, %c7, %c0_47, %c0_48] : memref<1x4x9x9x128xbf16, #tpu.memory_space<vmem>>, vector<1x1x1x8x128xbf16>
    %39 = vector.shape_cast %38 : vector<1x1x1x8x128xbf16> to vector<8x128xbf16>
    %cst_49 = arith.constant dense<0.000000e+00> : vector<8x128xf32>
    %40 = tpu.matmul %39, %9, %cst_49 {dimension_numbers = #tpu.dot_dimension_numbers<[1], [0], [0], [1], [0, 0, 1, 1], [], []>} : vector<8x128xbf16>, vector<128x128xbf16>, vector<8x128xf32> -> vector<8x128xf32>
    %41 = arith.addf %7, %40 : vector<8x128xf32>
    %c1_50 = arith.constant 1 : index
    %c0_51 = arith.constant 0 : index
    %c0_52 = arith.constant 0 : index
    %42 = vector.load %arg3[%c1_50, %c0_51, %c0_52] : memref<9x128x128xbf16, #tpu.memory_space<vmem>>, vector<1x128x128xbf16>
    %43 = vector.shape_cast %42 : vector<1x128x128xbf16> to vector<128x128xbf16>
    %c0_53 = arith.constant 0 : index
    %c1_54 = arith.constant 1 : index
    %c0_55 = arith.constant 0 : index
    %c0_56 = arith.constant 0 : index
    %c0_57 = arith.constant 0 : index
    %44 = vector.load %arg2[%c0_53, %c1_54, %c0_55, %c0_56, %c0_57] : memref<1x4x9x9x128xbf16, #tpu.memory_space<vmem>>, vector<1x1x1x8x128xbf16>
    %45 = vector.shape_cast %44 : vector<1x1x1x8x128xbf16> to vector<8x128xbf16>
    %cst_58 = arith.constant dense<0.000000e+00> : vector<8x128xf32>
    %46 = tpu.matmul %45, %43, %cst_58 {dimension_numbers = #tpu.dot_dimension_numbers<[1], [0], [0], [1], [0, 0, 1, 1], [], []>} : vector<8x128xbf16>, vector<128x128xbf16>, vector<8x128xf32> -> vector<8x128xf32>
    %47 = arith.addf %13, %46 : vector<8x128xf32>
    %c0_59 = arith.constant 0 : index
    %c1_60 = arith.constant 1 : index
    %c1_61 = arith.constant 1 : index
    %c0_62 = arith.constant 0 : index
    %c0_63 = arith.constant 0 : index
    %48 = vector.load %arg2[%c0_59, %c1_60, %c1_61, %c0_62, %c0_63] : memref<1x4x9x9x128xbf16, #tpu.memory_space<vmem>>, vector<1x1x1x8x128xbf16>
    %49 = vector.shape_cast %48 : vector<1x1x1x8x128xbf16> to vector<8x128xbf16>
    %cst_64 = arith.constant dense<0.000000e+00> : vector<8x128xf32>
    %50 = tpu.matmul %49, %43, %cst_64 {dimension_numbers = #tpu.dot_dimension_numbers<[1], [0], [0], [1], [0, 0, 1, 1], [], []>} : vector<8x128xbf16>, vector<128x128xbf16>, vector<8x128xf32> -> vector<8x128xf32>
    %51 = arith.addf %17, %50 : vector<8x128xf32>
    %c0_65 = arith.constant 0 : index
    %c1_66 = arith.constant 1 : index
    %c2_67 = arith.constant 2 : index
    %c0_68 = arith.constant 0 : index
    %c0_69 = arith.constant 0 : index
    %52 = vector.load %arg2[%c0_65, %c1_66, %c2_67, %c0_68, %c0_69] : memref<1x4x9x9x128xbf16, #tpu.memory_space<vmem>>, vector<1x1x1x8x128xbf16>
    %53 = vector.shape_cast %52 : vector<1x1x1x8x128xbf16> to vector<8x128xbf16>
    %cst_70 = arith.constant dense<0.000000e+00> : vector<8x128xf32>
    %54 = tpu.matmul %53, %43, %cst_70 {dimension_numbers = #tpu.dot_dimension_numbers<[1], [0], [0], [1], [0, 0, 1, 1], [], []>} : vector<8x128xbf16>, vector<128x128xbf16>, vector<8x128xf32> -> vector<8x128xf32>
    %55 = arith.addf %21, %54 : vector<8x128xf32>
    %c0_71 = arith.constant 0 : index
    %c1_72 = arith.constant 1 : index
    %c3_73 = arith.constant 3 : index
    %c0_74 = arith.constant 0 : index
    %c0_75 = arith.constant 0 : index
    %56 = vector.load %arg2[%c0_71, %c1_72, %c3_73, %c0_74, %c0_75] : memref<1x4x9x9x128xbf16, #tpu.memory_space<vmem>>, vector<1x1x1x8x128xbf16>
    %57 = vector.shape_cast %56 : vector<1x1x1x8x128xbf16> to vector<8x128xbf16>
    %cst_76 = arith.constant dense<0.000000e+00> : vector<8x128xf32>
    %58 = tpu.matmul %57, %43, %cst_76 {dimension_numbers = #tpu.dot_dimension_numbers<[1], [0], [0], [1], [0, 0, 1, 1], [], []>} : vector<8x128xbf16>, vector<128x128xbf16>, vector<8x128xf32> -> vector<8x128xf32>
    %59 = arith.addf %25, %58 : vector<8x128xf32>
    %c0_77 = arith.constant 0 : index
    %c1_78 = arith.constant 1 : index
    %c4_79 = arith.constant 4 : index
    %c0_80 = arith.constant 0 : index
    %c0_81 = arith.constant 0 : index
    %60 = vector.load %arg2[%c0_77, %c1_78, %c4_79, %c0_80, %c0_81] : memref<1x4x9x9x128xbf16, #tpu.memory_space<vmem>>, vector<1x1x1x8x128xbf16>
    %61 = vector.shape_cast %60 : vector<1x1x1x8x128xbf16> to vector<8x128xbf16>
    %cst_82 = arith.constant dense<0.000000e+00> : vector<8x128xf32>
    %62 = tpu.matmul %61, %43, %cst_82 {dimension_numbers = #tpu.dot_dimension_numbers<[1], [0], [0], [1], [0, 0, 1, 1], [], []>} : vector<8x128xbf16>, vector<128x128xbf16>, vector<8x128xf32> -> vector<8x128xf32>
    %63 = arith.addf %29, %62 : vector<8x128xf32>
    %c0_83 = arith.constant 0 : index
    %c1_84 = arith.constant 1 : index
    %c5_85 = arith.constant 5 : index
    %c0_86 = arith.constant 0 : index
    %c0_87 = arith.constant 0 : index
    %64 = vector.load %arg2[%c0_83, %c1_84, %c5_85, %c0_86, %c0_87] : memref<1x4x9x9x128xbf16, #tpu.memory_space<vmem>>, vector<1x1x1x8x128xbf16>
    %65 = vector.shape_cast %64 : vector<1x1x1x8x128xbf16> to vector<8x128xbf16>
    %cst_88 = arith.constant dense<0.000000e+00> : vector<8x128xf32>
    %66 = tpu.matmul %65, %43, %cst_88 {dimension_numbers = #tpu.dot_dimension_numbers<[1], [0], [0], [1], [0, 0, 1, 1], [], []>} : vector<8x128xbf16>, vector<128x128xbf16>, vector<8x128xf32> -> vector<8x128xf32>
    %67 = arith.addf %33, %66 : vector<8x128xf32>
    %c0_89 = arith.constant 0 : index
    %c1_90 = arith.constant 1 : index
    %c6_91 = arith.constant 6 : index
    %c0_92 = arith.constant 0 : index
    %c0_93 = arith.constant 0 : index
    %68 = vector.load %arg2[%c0_89, %c1_90, %c6_91, %c0_92, %c0_93] : memref<1x4x9x9x128xbf16, #tpu.memory_space<vmem>>, vector<1x1x1x8x128xbf16>
    %69 = vector.shape_cast %68 : vector<1x1x1x8x128xbf16> to vector<8x128xbf16>
    %cst_94 = arith.constant dense<0.000000e+00> : vector<8x128xf32>
    %70 = tpu.matmul %69, %43, %cst_94 {dimension_numbers = #tpu.dot_dimension_numbers<[1], [0], [0], [1], [0, 0, 1, 1], [], []>} : vector<8x128xbf16>, vector<128x128xbf16>, vector<8x128xf32> -> vector<8x128xf32>
    %71 = arith.addf %37, %70 : vector<8x128xf32>
    %c0_95 = arith.constant 0 : index
    %c1_96 = arith.constant 1 : index
    %c7_97 = arith.constant 7 : index
    %c0_98 = arith.constant 0 : index
    %c0_99 = arith.constant 0 : index
    %72 = vector.load %arg2[%c0_95, %c1_96, %c7_97, %c0_98, %c0_99] : memref<1x4x9x9x128xbf16, #tpu.memory_space<vmem>>, vector<1x1x1x8x128xbf16>
    %73 = vector.shape_cast %72 : vector<1x1x1x8x128xbf16> to vector<8x128xbf16>
    %cst_100 = arith.constant dense<0.000000e+00> : vector<8x128xf32>
    %74 = tpu.matmul %73, %43, %cst_100 {dimension_numbers = #tpu.dot_dimension_numbers<[1], [0], [0], [1], [0, 0, 1, 1], [], []>} : vector<8x128xbf16>, vector<128x128xbf16>, vector<8x128xf32> -> vector<8x128xf32>
    %75 = arith.addf %41, %74 : vector<8x128xf32>
    %c2_101 = arith.constant 2 : index
    %c0_102 = arith.constant 0 : index
    %c0_103 = arith.constant 0 : index
    %76 = vector.load %arg3[%c2_101, %c0_102, %c0_103] : memref<9x128x128xbf16, #tpu.memory_space<vmem>>, vector<1x128x128xbf16>
    %77 = vector.shape_cast %76 : vector<1x128x128xbf16> to vector<128x128xbf16>
    %c0_104 = arith.constant 0 : index
    %c0_105 = arith.constant 0 : index
    %c0_106 = arith.constant 0 : index
    %c1_107 = arith.constant 1 : index
    %c0_108 = arith.constant 0 : index
    %78 = vector.load %arg2[%c0_104, %c0_105, %c0_106, %c1_107, %c0_108] : memref<1x4x9x9x128xbf16, #tpu.memory_space<vmem>>, vector<1x1x1x8x128xbf16>
    %79 = vector.shape_cast %78 : vector<1x1x1x8x128xbf16> to vector<8x128xbf16>
    %cst_109 = arith.constant dense<0.000000e+00> : vector<8x128xf32>
    %80 = tpu.matmul %79, %77, %cst_109 {dimension_numbers = #tpu.dot_dimension_numbers<[1], [0], [0], [1], [0, 0, 1, 1], [], []>} : vector<8x128xbf16>, vector<128x128xbf16>, vector<8x128xf32> -> vector<8x128xf32>
    %81 = arith.addf %47, %80 : vector<8x128xf32>
    %c0_110 = arith.constant 0 : index
    %c0_111 = arith.constant 0 : index
    %c1_112 = arith.constant 1 : index
    %c1_113 = arith.constant 1 : index
    %c0_114 = arith.constant 0 : index
    %82 = vector.load %arg2[%c0_110, %c0_111, %c1_112, %c1_113, %c0_114] : memref<1x4x9x9x128xbf16, #tpu.memory_space<vmem>>, vector<1x1x1x8x128xbf16>
    %83 = vector.shape_cast %82 : vector<1x1x1x8x128xbf16> to vector<8x128xbf16>
    %cst_115 = arith.constant dense<0.000000e+00> : vector<8x128xf32>
    %84 = tpu.matmul %83, %77, %cst_115 {dimension_numbers = #tpu.dot_dimension_numbers<[1], [0], [0], [1], [0, 0, 1, 1], [], []>} : vector<8x128xbf16>, vector<128x128xbf16>, vector<8x128xf32> -> vector<8x128xf32>
    %85 = arith.addf %51, %84 : vector<8x128xf32>
    %c0_116 = arith.constant 0 : index
    %c0_117 = arith.constant 0 : index
    %c2_118 = arith.constant 2 : index
    %c1_119 = arith.constant 1 : index
    %c0_120 = arith.constant 0 : index
    %86 = vector.load %arg2[%c0_116, %c0_117, %c2_118, %c1_119, %c0_120] : memref<1x4x9x9x128xbf16, #tpu.memory_space<vmem>>, vector<1x1x1x8x128xbf16>
    %87 = vector.shape_cast %86 : vector<1x1x1x8x128xbf16> to vector<8x128xbf16>
    %cst_121 = arith.constant dense<0.000000e+00> : vector<8x128xf32>
    %88 = tpu.matmul %87, %77, %cst_121 {dimension_numbers = #tpu.dot_dimension_numbers<[1], [0], [0], [1], [0, 0, 1, 1], [], []>} : vector<8x128xbf16>, vector<128x128xbf16>, vector<8x128xf32> -> vector<8x128xf32>
    %89 = arith.addf %55, %88 : vector<8x128xf32>
    %c0_122 = arith.constant 0 : index
    %c0_123 = arith.constant 0 : index
    %c3_124 = arith.constant 3 : index
    %c1_125 = arith.constant 1 : index
    %c0_126 = arith.constant 0 : index
    %90 = vector.load %arg2[%c0_122, %c0_123, %c3_124, %c1_125, %c0_126] : memref<1x4x9x9x128xbf16, #tpu.memory_space<vmem>>, vector<1x1x1x8x128xbf16>
    %91 = vector.shape_cast %90 : vector<1x1x1x8x128xbf16> to vector<8x128xbf16>
    %cst_127 = arith.constant dense<0.000000e+00> : vector<8x128xf32>
    %92 = tpu.matmul %91, %77, %cst_127 {dimension_numbers = #tpu.dot_dimension_numbers<[1], [0], [0], [1], [0, 0, 1, 1], [], []>} : vector<8x128xbf16>, vector<128x128xbf16>, vector<8x128xf32> -> vector<8x128xf32>
    %93 = arith.addf %59, %92 : vector<8x128xf32>
    %c0_128 = arith.constant 0 : index
    %c0_129 = arith.constant 0 : index
    %c4_130 = arith.constant 4 : index
    %c1_131 = arith.constant 1 : index
    %c0_132 = arith.constant 0 : index
    %94 = vector.load %arg2[%c0_128, %c0_129, %c4_130, %c1_131, %c0_132] : memref<1x4x9x9x128xbf16, #tpu.memory_space<vmem>>, vector<1x1x1x8x128xbf16>
    %95 = vector.shape_cast %94 : vector<1x1x1x8x128xbf16> to vector<8x128xbf16>
    %cst_133 = arith.constant dense<0.000000e+00> : vector<8x128xf32>
    %96 = tpu.matmul %95, %77, %cst_133 {dimension_numbers = #tpu.dot_dimension_numbers<[1], [0], [0], [1], [0, 0, 1, 1], [], []>} : vector<8x128xbf16>, vector<128x128xbf16>, vector<8x128xf32> -> vector<8x128xf32>
    %97 = arith.addf %63, %96 : vector<8x128xf32>
    %c0_134 = arith.constant 0 : index
    %c0_135 = arith.constant 0 : index
    %c5_136 = arith.constant 5 : index
    %c1_137 = arith.constant 1 : index
    %c0_138 = arith.constant 0 : index
    %98 = vector.load %arg2[%c0_134, %c0_135, %c5_136, %c1_137, %c0_138] : memref<1x4x9x9x128xbf16, #tpu.memory_space<vmem>>, vector<1x1x1x8x128xbf16>
    %99 = vector.shape_cast %98 : vector<1x1x1x8x128xbf16> to vector<8x128xbf16>
    %cst_139 = arith.constant dense<0.000000e+00> : vector<8x128xf32>
    %100 = tpu.matmul %99, %77, %cst_139 {dimension_numbers = #tpu.dot_dimension_numbers<[1], [0], [0], [1], [0, 0, 1, 1], [], []>} : vector<8x128xbf16>, vector<128x128xbf16>, vector<8x128xf32> -> vector<8x128xf32>
    %101 = arith.addf %67, %100 : vector<8x128xf32>
    %c0_140 = arith.constant 0 : index
    %c0_141 = arith.constant 0 : index
    %c6_142 = arith.constant 6 : index
    %c1_143 = arith.constant 1 : index
    %c0_144 = arith.constant 0 : index
    %102 = vector.load %arg2[%c0_140, %c0_141, %c6_142, %c1_143, %c0_144] : memref<1x4x9x9x128xbf16, #tpu.memory_space<vmem>>, vector<1x1x1x8x128xbf16>
    %103 = vector.shape_cast %102 : vector<1x1x1x8x128xbf16> to vector<8x128xbf16>
    %cst_145 = arith.constant dense<0.000000e+00> : vector<8x128xf32>
    %104 = tpu.matmul %103, %77, %cst_145 {dimension_numbers = #tpu.dot_dimension_numbers<[1], [0], [0], [1], [0, 0, 1, 1], [], []>} : vector<8x128xbf16>, vector<128x128xbf16>, vector<8x128xf32> -> vector<8x128xf32>
    %105 = arith.addf %71, %104 : vector<8x128xf32>
    %c0_146 = arith.constant 0 : index
    %c0_147 = arith.constant 0 : index
    %c7_148 = arith.constant 7 : index
    %c1_149 = arith.constant 1 : index
    %c0_150 = arith.constant 0 : index
    %106 = vector.load %arg2[%c0_146, %c0_147, %c7_148, %c1_149, %c0_150] : memref<1x4x9x9x128xbf16, #tpu.memory_space<vmem>>, vector<1x1x1x8x128xbf16>
    %107 = vector.shape_cast %106 : vector<1x1x1x8x128xbf16> to vector<8x128xbf16>
    %cst_151 = arith.constant dense<0.000000e+00> : vector<8x128xf32>
    %108 = tpu.matmul %107, %77, %cst_151 {dimension_numbers = #tpu.dot_dimension_numbers<[1], [0], [0], [1], [0, 0, 1, 1], [], []>} : vector<8x128xbf16>, vector<128x128xbf16>, vector<8x128xf32> -> vector<8x128xf32>
    %109 = arith.addf %75, %108 : vector<8x128xf32>
    %c3_152 = arith.constant 3 : index
    %c0_153 = arith.constant 0 : index
    %c0_154 = arith.constant 0 : index
    %110 = vector.load %arg3[%c3_152, %c0_153, %c0_154] : memref<9x128x128xbf16, #tpu.memory_space<vmem>>, vector<1x128x128xbf16>
    %111 = vector.shape_cast %110 : vector<1x128x128xbf16> to vector<128x128xbf16>
    %c0_155 = arith.constant 0 : index
    %c2_156 = arith.constant 2 : index
    %c0_157 = arith.constant 0 : index
    %c0_158 = arith.constant 0 : index
    %c0_159 = arith.constant 0 : index
    %112 = vector.load %arg2[%c0_155, %c2_156, %c0_157, %c0_158, %c0_159] : memref<1x4x9x9x128xbf16, #tpu.memory_space<vmem>>, vector<1x1x1x8x128xbf16>
    %113 = vector.shape_cast %112 : vector<1x1x1x8x128xbf16> to vector<8x128xbf16>
    %cst_160 = arith.constant dense<0.000000e+00> : vector<8x128xf32>
    %114 = tpu.matmul %113, %111, %cst_160 {dimension_numbers = #tpu.dot_dimension_numbers<[1], [0], [0], [1], [0, 0, 1, 1], [], []>} : vector<8x128xbf16>, vector<128x128xbf16>, vector<8x128xf32> -> vector<8x128xf32>
    %115 = arith.addf %81, %114 : vector<8x128xf32>
    %c0_161 = arith.constant 0 : index
    %c2_162 = arith.constant 2 : index
    %c1_163 = arith.constant 1 : index
    %c0_164 = arith.constant 0 : index
    %c0_165 = arith.constant 0 : index
    %116 = vector.load %arg2[%c0_161, %c2_162, %c1_163, %c0_164, %c0_165] : memref<1x4x9x9x128xbf16, #tpu.memory_space<vmem>>, vector<1x1x1x8x128xbf16>
    %117 = vector.shape_cast %116 : vector<1x1x1x8x128xbf16> to vector<8x128xbf16>
    %cst_166 = arith.constant dense<0.000000e+00> : vector<8x128xf32>
    %118 = tpu.matmul %117, %111, %cst_166 {dimension_numbers = #tpu.dot_dimension_numbers<[1], [0], [0], [1], [0, 0, 1, 1], [], []>} : vector<8x128xbf16>, vector<128x128xbf16>, vector<8x128xf32> -> vector<8x128xf32>
    %119 = arith.addf %85, %118 : vector<8x128xf32>
    %c0_167 = arith.constant 0 : index
    %c2_168 = arith.constant 2 : index
    %c2_169 = arith.constant 2 : index
    %c0_170 = arith.constant 0 : index
    %c0_171 = arith.constant 0 : index
    %120 = vector.load %arg2[%c0_167, %c2_168, %c2_169, %c0_170, %c0_171] : memref<1x4x9x9x128xbf16, #tpu.memory_space<vmem>>, vector<1x1x1x8x128xbf16>
    %121 = vector.shape_cast %120 : vector<1x1x1x8x128xbf16> to vector<8x128xbf16>
    %cst_172 = arith.constant dense<0.000000e+00> : vector<8x128xf32>
    %122 = tpu.matmul %121, %111, %cst_172 {dimension_numbers = #tpu.dot_dimension_numbers<[1], [0], [0], [1], [0, 0, 1, 1], [], []>} : vector<8x128xbf16>, vector<128x128xbf16>, vector<8x128xf32> -> vector<8x128xf32>
    %123 = arith.addf %89, %122 : vector<8x128xf32>
    %c0_173 = arith.constant 0 : index
    %c2_174 = arith.constant 2 : index
    %c3_175 = arith.constant 3 : index
    %c0_176 = arith.constant 0 : index
    %c0_177 = arith.constant 0 : index
    %124 = vector.load %arg2[%c0_173, %c2_174, %c3_175, %c0_176, %c0_177] : memref<1x4x9x9x128xbf16, #tpu.memory_space<vmem>>, vector<1x1x1x8x128xbf16>
    %125 = vector.shape_cast %124 : vector<1x1x1x8x128xbf16> to vector<8x128xbf16>
    %cst_178 = arith.constant dense<0.000000e+00> : vector<8x128xf32>
    %126 = tpu.matmul %125, %111, %cst_178 {dimension_numbers = #tpu.dot_dimension_numbers<[1], [0], [0], [1], [0, 0, 1, 1], [], []>} : vector<8x128xbf16>, vector<128x128xbf16>, vector<8x128xf32> -> vector<8x128xf32>
    %127 = arith.addf %93, %126 : vector<8x128xf32>
    %c0_179 = arith.constant 0 : index
    %c2_180 = arith.constant 2 : index
    %c4_181 = arith.constant 4 : index
    %c0_182 = arith.constant 0 : index
    %c0_183 = arith.constant 0 : index
    %128 = vector.load %arg2[%c0_179, %c2_180, %c4_181, %c0_182, %c0_183] : memref<1x4x9x9x128xbf16, #tpu.memory_space<vmem>>, vector<1x1x1x8x128xbf16>
    %129 = vector.shape_cast %128 : vector<1x1x1x8x128xbf16> to vector<8x128xbf16>
    %cst_184 = arith.constant dense<0.000000e+00> : vector<8x128xf32>
    %130 = tpu.matmul %129, %111, %cst_184 {dimension_numbers = #tpu.dot_dimension_numbers<[1], [0], [0], [1], [0, 0, 1, 1], [], []>} : vector<8x128xbf16>, vector<128x128xbf16>, vector<8x128xf32> -> vector<8x128xf32>
    %131 = arith.addf %97, %130 : vector<8x128xf32>
    %c0_185 = arith.constant 0 : index
    %c2_186 = arith.constant 2 : index
    %c5_187 = arith.constant 5 : index
    %c0_188 = arith.constant 0 : index
    %c0_189 = arith.constant 0 : index
    %132 = vector.load %arg2[%c0_185, %c2_186, %c5_187, %c0_188, %c0_189] : memref<1x4x9x9x128xbf16, #tpu.memory_space<vmem>>, vector<1x1x1x8x128xbf16>
    %133 = vector.shape_cast %132 : vector<1x1x1x8x128xbf16> to vector<8x128xbf16>
    %cst_190 = arith.constant dense<0.000000e+00> : vector<8x128xf32>
    %134 = tpu.matmul %133, %111, %cst_190 {dimension_numbers = #tpu.dot_dimension_numbers<[1], [0], [0], [1], [0, 0, 1, 1], [], []>} : vector<8x128xbf16>, vector<128x128xbf16>, vector<8x128xf32> -> vector<8x128xf32>
    %135 = arith.addf %101, %134 : vector<8x128xf32>
    %c0_191 = arith.constant 0 : index
    %c2_192 = arith.constant 2 : index
    %c6_193 = arith.constant 6 : index
    %c0_194 = arith.constant 0 : index
    %c0_195 = arith.constant 0 : index
    %136 = vector.load %arg2[%c0_191, %c2_192, %c6_193, %c0_194, %c0_195] : memref<1x4x9x9x128xbf16, #tpu.memory_space<vmem>>, vector<1x1x1x8x128xbf16>
    %137 = vector.shape_cast %136 : vector<1x1x1x8x128xbf16> to vector<8x128xbf16>
    %cst_196 = arith.constant dense<0.000000e+00> : vector<8x128xf32>
    %138 = tpu.matmul %137, %111, %cst_196 {dimension_numbers = #tpu.dot_dimension_numbers<[1], [0], [0], [1], [0, 0, 1, 1], [], []>} : vector<8x128xbf16>, vector<128x128xbf16>, vector<8x128xf32> -> vector<8x128xf32>
    %139 = arith.addf %105, %138 : vector<8x128xf32>
    %c0_197 = arith.constant 0 : index
    %c2_198 = arith.constant 2 : index
    %c7_199 = arith.constant 7 : index
    %c0_200 = arith.constant 0 : index
    %c0_201 = arith.constant 0 : index
    %140 = vector.load %arg2[%c0_197, %c2_198, %c7_199, %c0_200, %c0_201] : memref<1x4x9x9x128xbf16, #tpu.memory_space<vmem>>, vector<1x1x1x8x128xbf16>
    %141 = vector.shape_cast %140 : vector<1x1x1x8x128xbf16> to vector<8x128xbf16>
    %cst_202 = arith.constant dense<0.000000e+00> : vector<8x128xf32>
    %142 = tpu.matmul %141, %111, %cst_202 {dimension_numbers = #tpu.dot_dimension_numbers<[1], [0], [0], [1], [0, 0, 1, 1], [], []>} : vector<8x128xbf16>, vector<128x128xbf16>, vector<8x128xf32> -> vector<8x128xf32>
    %143 = arith.addf %109, %142 : vector<8x128xf32>
    %c4_203 = arith.constant 4 : index
    %c0_204 = arith.constant 0 : index
    %c0_205 = arith.constant 0 : index
    %144 = vector.load %arg3[%c4_203, %c0_204, %c0_205] : memref<9x128x128xbf16, #tpu.memory_space<vmem>>, vector<1x128x128xbf16>
    %145 = vector.shape_cast %144 : vector<1x128x128xbf16> to vector<128x128xbf16>
    %c0_206 = arith.constant 0 : index
    %c3_207 = arith.constant 3 : index
    %c0_208 = arith.constant 0 : index
    %c0_209 = arith.constant 0 : index
    %c0_210 = arith.constant 0 : index
    %146 = vector.load %arg2[%c0_206, %c3_207, %c0_208, %c0_209, %c0_210] : memref<1x4x9x9x128xbf16, #tpu.memory_space<vmem>>, vector<1x1x1x8x128xbf16>
    %147 = vector.shape_cast %146 : vector<1x1x1x8x128xbf16> to vector<8x128xbf16>
    %cst_211 = arith.constant dense<0.000000e+00> : vector<8x128xf32>
    %148 = tpu.matmul %147, %145, %cst_211 {dimension_numbers = #tpu.dot_dimension_numbers<[1], [0], [0], [1], [0, 0, 1, 1], [], []>} : vector<8x128xbf16>, vector<128x128xbf16>, vector<8x128xf32> -> vector<8x128xf32>
    %149 = arith.addf %115, %148 : vector<8x128xf32>
    %c0_212 = arith.constant 0 : index
    %c3_213 = arith.constant 3 : index
    %c1_214 = arith.constant 1 : index
    %c0_215 = arith.constant 0 : index
    %c0_216 = arith.constant 0 : index
    %150 = vector.load %arg2[%c0_212, %c3_213, %c1_214, %c0_215, %c0_216] : memref<1x4x9x9x128xbf16, #tpu.memory_space<vmem>>, vector<1x1x1x8x128xbf16>
    %151 = vector.shape_cast %150 : vector<1x1x1x8x128xbf16> to vector<8x128xbf16>
    %cst_217 = arith.constant dense<0.000000e+00> : vector<8x128xf32>
    %152 = tpu.matmul %151, %145, %cst_217 {dimension_numbers = #tpu.dot_dimension_numbers<[1], [0], [0], [1], [0, 0, 1, 1], [], []>} : vector<8x128xbf16>, vector<128x128xbf16>, vector<8x128xf32> -> vector<8x128xf32>
    %153 = arith.addf %119, %152 : vector<8x128xf32>
    %c0_218 = arith.constant 0 : index
    %c3_219 = arith.constant 3 : index
    %c2_220 = arith.constant 2 : index
    %c0_221 = arith.constant 0 : index
    %c0_222 = arith.constant 0 : index
    %154 = vector.load %arg2[%c0_218, %c3_219, %c2_220, %c0_221, %c0_222] : memref<1x4x9x9x128xbf16, #tpu.memory_space<vmem>>, vector<1x1x1x8x128xbf16>
    %155 = vector.shape_cast %154 : vector<1x1x1x8x128xbf16> to vector<8x128xbf16>
    %cst_223 = arith.constant dense<0.000000e+00> : vector<8x128xf32>
    %156 = tpu.matmul %155, %145, %cst_223 {dimension_numbers = #tpu.dot_dimension_numbers<[1], [0], [0], [1], [0, 0, 1, 1], [], []>} : vector<8x128xbf16>, vector<128x128xbf16>, vector<8x128xf32> -> vector<8x128xf32>
    %157 = arith.addf %123, %156 : vector<8x128xf32>
    %c0_224 = arith.constant 0 : index
    %c3_225 = arith.constant 3 : index
    %c3_226 = arith.constant 3 : index
    %c0_227 = arith.constant 0 : index
    %c0_228 = arith.constant 0 : index
    %158 = vector.load %arg2[%c0_224, %c3_225, %c3_226, %c0_227, %c0_228] : memref<1x4x9x9x128xbf16, #tpu.memory_space<vmem>>, vector<1x1x1x8x128xbf16>
    %159 = vector.shape_cast %158 : vector<1x1x1x8x128xbf16> to vector<8x128xbf16>
    %cst_229 = arith.constant dense<0.000000e+00> : vector<8x128xf32>
    %160 = tpu.matmul %159, %145, %cst_229 {dimension_numbers = #tpu.dot_dimension_numbers<[1], [0], [0], [1], [0, 0, 1, 1], [], []>} : vector<8x128xbf16>, vector<128x128xbf16>, vector<8x128xf32> -> vector<8x128xf32>
    %161 = arith.addf %127, %160 : vector<8x128xf32>
    %c0_230 = arith.constant 0 : index
    %c3_231 = arith.constant 3 : index
    %c4_232 = arith.constant 4 : index
    %c0_233 = arith.constant 0 : index
    %c0_234 = arith.constant 0 : index
    %162 = vector.load %arg2[%c0_230, %c3_231, %c4_232, %c0_233, %c0_234] : memref<1x4x9x9x128xbf16, #tpu.memory_space<vmem>>, vector<1x1x1x8x128xbf16>
    %163 = vector.shape_cast %162 : vector<1x1x1x8x128xbf16> to vector<8x128xbf16>
    %cst_235 = arith.constant dense<0.000000e+00> : vector<8x128xf32>
    %164 = tpu.matmul %163, %145, %cst_235 {dimension_numbers = #tpu.dot_dimension_numbers<[1], [0], [0], [1], [0, 0, 1, 1], [], []>} : vector<8x128xbf16>, vector<128x128xbf16>, vector<8x128xf32> -> vector<8x128xf32>
    %165 = arith.addf %131, %164 : vector<8x128xf32>
    %c0_236 = arith.constant 0 : index
    %c3_237 = arith.constant 3 : index
    %c5_238 = arith.constant 5 : index
    %c0_239 = arith.constant 0 : index
    %c0_240 = arith.constant 0 : index
    %166 = vector.load %arg2[%c0_236, %c3_237, %c5_238, %c0_239, %c0_240] : memref<1x4x9x9x128xbf16, #tpu.memory_space<vmem>>, vector<1x1x1x8x128xbf16>
    %167 = vector.shape_cast %166 : vector<1x1x1x8x128xbf16> to vector<8x128xbf16>
    %cst_241 = arith.constant dense<0.000000e+00> : vector<8x128xf32>
    %168 = tpu.matmul %167, %145, %cst_241 {dimension_numbers = #tpu.dot_dimension_numbers<[1], [0], [0], [1], [0, 0, 1, 1], [], []>} : vector<8x128xbf16>, vector<128x128xbf16>, vector<8x128xf32> -> vector<8x128xf32>
    %169 = arith.addf %135, %168 : vector<8x128xf32>
    %c0_242 = arith.constant 0 : index
    %c3_243 = arith.constant 3 : index
    %c6_244 = arith.constant 6 : index
    %c0_245 = arith.constant 0 : index
    %c0_246 = arith.constant 0 : index
    %170 = vector.load %arg2[%c0_242, %c3_243, %c6_244, %c0_245, %c0_246] : memref<1x4x9x9x128xbf16, #tpu.memory_space<vmem>>, vector<1x1x1x8x128xbf16>
    %171 = vector.shape_cast %170 : vector<1x1x1x8x128xbf16> to vector<8x128xbf16>
    %cst_247 = arith.constant dense<0.000000e+00> : vector<8x128xf32>
    %172 = tpu.matmul %171, %145, %cst_247 {dimension_numbers = #tpu.dot_dimension_numbers<[1], [0], [0], [1], [0, 0, 1, 1], [], []>} : vector<8x128xbf16>, vector<128x128xbf16>, vector<8x128xf32> -> vector<8x128xf32>
    %173 = arith.addf %139, %172 : vector<8x128xf32>
    %c0_248 = arith.constant 0 : index
    %c3_249 = arith.constant 3 : index
    %c7_250 = arith.constant 7 : index
    %c0_251 = arith.constant 0 : index
    %c0_252 = arith.constant 0 : index
    %174 = vector.load %arg2[%c0_248, %c3_249, %c7_250, %c0_251, %c0_252] : memref<1x4x9x9x128xbf16, #tpu.memory_space<vmem>>, vector<1x1x1x8x128xbf16>
    %175 = vector.shape_cast %174 : vector<1x1x1x8x128xbf16> to vector<8x128xbf16>
    %cst_253 = arith.constant dense<0.000000e+00> : vector<8x128xf32>
    %176 = tpu.matmul %175, %145, %cst_253 {dimension_numbers = #tpu.dot_dimension_numbers<[1], [0], [0], [1], [0, 0, 1, 1], [], []>} : vector<8x128xbf16>, vector<128x128xbf16>, vector<8x128xf32> -> vector<8x128xf32>
    %177 = arith.addf %143, %176 : vector<8x128xf32>
    %c5_254 = arith.constant 5 : index
    %c0_255 = arith.constant 0 : index
    %c0_256 = arith.constant 0 : index
    %178 = vector.load %arg3[%c5_254, %c0_255, %c0_256] : memref<9x128x128xbf16, #tpu.memory_space<vmem>>, vector<1x128x128xbf16>
    %179 = vector.shape_cast %178 : vector<1x128x128xbf16> to vector<128x128xbf16>
    %c0_257 = arith.constant 0 : index
    %c2_258 = arith.constant 2 : index
    %c0_259 = arith.constant 0 : index
    %c1_260 = arith.constant 1 : index
    %c0_261 = arith.constant 0 : index
    %180 = vector.load %arg2[%c0_257, %c2_258, %c0_259, %c1_260, %c0_261] : memref<1x4x9x9x128xbf16, #tpu.memory_space<vmem>>, vector<1x1x1x8x128xbf16>
    %181 = vector.shape_cast %180 : vector<1x1x1x8x128xbf16> to vector<8x128xbf16>
    %cst_262 = arith.constant dense<0.000000e+00> : vector<8x128xf32>
    %182 = tpu.matmul %181, %179, %cst_262 {dimension_numbers = #tpu.dot_dimension_numbers<[1], [0], [0], [1], [0, 0, 1, 1], [], []>} : vector<8x128xbf16>, vector<128x128xbf16>, vector<8x128xf32> -> vector<8x128xf32>
    %183 = arith.addf %149, %182 : vector<8x128xf32>
    %c0_263 = arith.constant 0 : index
    %c2_264 = arith.constant 2 : index
    %c1_265 = arith.constant 1 : index
    %c1_266 = arith.constant 1 : index
    %c0_267 = arith.constant 0 : index
    %184 = vector.load %arg2[%c0_263, %c2_264, %c1_265, %c1_266, %c0_267] : memref<1x4x9x9x128xbf16, #tpu.memory_space<vmem>>, vector<1x1x1x8x128xbf16>
    %185 = vector.shape_cast %184 : vector<1x1x1x8x128xbf16> to vector<8x128xbf16>
    %cst_268 = arith.constant dense<0.000000e+00> : vector<8x128xf32>
    %186 = tpu.matmul %185, %179, %cst_268 {dimension_numbers = #tpu.dot_dimension_numbers<[1], [0], [0], [1], [0, 0, 1, 1], [], []>} : vector<8x128xbf16>, vector<128x128xbf16>, vector<8x128xf32> -> vector<8x128xf32>
    %187 = arith.addf %153, %186 : vector<8x128xf32>
    %c0_269 = arith.constant 0 : index
    %c2_270 = arith.constant 2 : index
    %c2_271 = arith.constant 2 : index
    %c1_272 = arith.constant 1 : index
    %c0_273 = arith.constant 0 : index
    %188 = vector.load %arg2[%c0_269, %c2_270, %c2_271, %c1_272, %c0_273] : memref<1x4x9x9x128xbf16, #tpu.memory_space<vmem>>, vector<1x1x1x8x128xbf16>
    %189 = vector.shape_cast %188 : vector<1x1x1x8x128xbf16> to vector<8x128xbf16>
    %cst_274 = arith.constant dense<0.000000e+00> : vector<8x128xf32>
    %190 = tpu.matmul %189, %179, %cst_274 {dimension_numbers = #tpu.dot_dimension_numbers<[1], [0], [0], [1], [0, 0, 1, 1], [], []>} : vector<8x128xbf16>, vector<128x128xbf16>, vector<8x128xf32> -> vector<8x128xf32>
    %191 = arith.addf %157, %190 : vector<8x128xf32>
    %c0_275 = arith.constant 0 : index
    %c2_276 = arith.constant 2 : index
    %c3_277 = arith.constant 3 : index
    %c1_278 = arith.constant 1 : index
    %c0_279 = arith.constant 0 : index
    %192 = vector.load %arg2[%c0_275, %c2_276, %c3_277, %c1_278, %c0_279] : memref<1x4x9x9x128xbf16, #tpu.memory_space<vmem>>, vector<1x1x1x8x128xbf16>
    %193 = vector.shape_cast %192 : vector<1x1x1x8x128xbf16> to vector<8x128xbf16>
    %cst_280 = arith.constant dense<0.000000e+00> : vector<8x128xf32>
    %194 = tpu.matmul %193, %179, %cst_280 {dimension_numbers = #tpu.dot_dimension_numbers<[1], [0], [0], [1], [0, 0, 1, 1], [], []>} : vector<8x128xbf16>, vector<128x128xbf16>, vector<8x128xf32> -> vector<8x128xf32>
    %195 = arith.addf %161, %194 : vector<8x128xf32>
    %c0_281 = arith.constant 0 : index
    %c2_282 = arith.constant 2 : index
    %c4_283 = arith.constant 4 : index
    %c1_284 = arith.constant 1 : index
    %c0_285 = arith.constant 0 : index
    %196 = vector.load %arg2[%c0_281, %c2_282, %c4_283, %c1_284, %c0_285] : memref<1x4x9x9x128xbf16, #tpu.memory_space<vmem>>, vector<1x1x1x8x128xbf16>
    %197 = vector.shape_cast %196 : vector<1x1x1x8x128xbf16> to vector<8x128xbf16>
    %cst_286 = arith.constant dense<0.000000e+00> : vector<8x128xf32>
    %198 = tpu.matmul %197, %179, %cst_286 {dimension_numbers = #tpu.dot_dimension_numbers<[1], [0], [0], [1], [0, 0, 1, 1], [], []>} : vector<8x128xbf16>, vector<128x128xbf16>, vector<8x128xf32> -> vector<8x128xf32>
    %199 = arith.addf %165, %198 : vector<8x128xf32>
    %c0_287 = arith.constant 0 : index
    %c2_288 = arith.constant 2 : index
    %c5_289 = arith.constant 5 : index
    %c1_290 = arith.constant 1 : index
    %c0_291 = arith.constant 0 : index
    %200 = vector.load %arg2[%c0_287, %c2_288, %c5_289, %c1_290, %c0_291] : memref<1x4x9x9x128xbf16, #tpu.memory_space<vmem>>, vector<1x1x1x8x128xbf16>
    %201 = vector.shape_cast %200 : vector<1x1x1x8x128xbf16> to vector<8x128xbf16>
    %cst_292 = arith.constant dense<0.000000e+00> : vector<8x128xf32>
    %202 = tpu.matmul %201, %179, %cst_292 {dimension_numbers = #tpu.dot_dimension_numbers<[1], [0], [0], [1], [0, 0, 1, 1], [], []>} : vector<8x128xbf16>, vector<128x128xbf16>, vector<8x128xf32> -> vector<8x128xf32>
    %203 = arith.addf %169, %202 : vector<8x128xf32>
    %c0_293 = arith.constant 0 : index
    %c2_294 = arith.constant 2 : index
    %c6_295 = arith.constant 6 : index
    %c1_296 = arith.constant 1 : index
    %c0_297 = arith.constant 0 : index
    %204 = vector.load %arg2[%c0_293, %c2_294, %c6_295, %c1_296, %c0_297] : memref<1x4x9x9x128xbf16, #tpu.memory_space<vmem>>, vector<1x1x1x8x128xbf16>
    %205 = vector.shape_cast %204 : vector<1x1x1x8x128xbf16> to vector<8x128xbf16>
    %cst_298 = arith.constant dense<0.000000e+00> : vector<8x128xf32>
    %206 = tpu.matmul %205, %179, %cst_298 {dimension_numbers = #tpu.dot_dimension_numbers<[1], [0], [0], [1], [0, 0, 1, 1], [], []>} : vector<8x128xbf16>, vector<128x128xbf16>, vector<8x128xf32> -> vector<8x128xf32>
    %207 = arith.addf %173, %206 : vector<8x128xf32>
    %c0_299 = arith.constant 0 : index
    %c2_300 = arith.constant 2 : index
    %c7_301 = arith.constant 7 : index
    %c1_302 = arith.constant 1 : index
    %c0_303 = arith.constant 0 : index
    %208 = vector.load %arg2[%c0_299, %c2_300, %c7_301, %c1_302, %c0_303] : memref<1x4x9x9x128xbf16, #tpu.memory_space<vmem>>, vector<1x1x1x8x128xbf16>
    %209 = vector.shape_cast %208 : vector<1x1x1x8x128xbf16> to vector<8x128xbf16>
    %cst_304 = arith.constant dense<0.000000e+00> : vector<8x128xf32>
    %210 = tpu.matmul %209, %179, %cst_304 {dimension_numbers = #tpu.dot_dimension_numbers<[1], [0], [0], [1], [0, 0, 1, 1], [], []>} : vector<8x128xbf16>, vector<128x128xbf16>, vector<8x128xf32> -> vector<8x128xf32>
    %211 = arith.addf %177, %210 : vector<8x128xf32>
    %c6_305 = arith.constant 6 : index
    %c0_306 = arith.constant 0 : index
    %c0_307 = arith.constant 0 : index
    %212 = vector.load %arg3[%c6_305, %c0_306, %c0_307] : memref<9x128x128xbf16, #tpu.memory_space<vmem>>, vector<1x128x128xbf16>
    %213 = vector.shape_cast %212 : vector<1x128x128xbf16> to vector<128x128xbf16>
    %c0_308 = arith.constant 0 : index
    %c0_309 = arith.constant 0 : index
    %c1_310 = arith.constant 1 : index
    %c0_311 = arith.constant 0 : index
    %c0_312 = arith.constant 0 : index
    %214 = vector.load %arg2[%c0_308, %c0_309, %c1_310, %c0_311, %c0_312] : memref<1x4x9x9x128xbf16, #tpu.memory_space<vmem>>, vector<1x1x1x8x128xbf16>
    %215 = vector.shape_cast %214 : vector<1x1x1x8x128xbf16> to vector<8x128xbf16>
    %cst_313 = arith.constant dense<0.000000e+00> : vector<8x128xf32>
    %216 = tpu.matmul %215, %213, %cst_313 {dimension_numbers = #tpu.dot_dimension_numbers<[1], [0], [0], [1], [0, 0, 1, 1], [], []>} : vector<8x128xbf16>, vector<128x128xbf16>, vector<8x128xf32> -> vector<8x128xf32>
    %217 = arith.addf %183, %216 : vector<8x128xf32>
    %c0_314 = arith.constant 0 : index
    %c0_315 = arith.constant 0 : index
    %c2_316 = arith.constant 2 : index
    %c0_317 = arith.constant 0 : index
    %c0_318 = arith.constant 0 : index
    %218 = vector.load %arg2[%c0_314, %c0_315, %c2_316, %c0_317, %c0_318] : memref<1x4x9x9x128xbf16, #tpu.memory_space<vmem>>, vector<1x1x1x8x128xbf16>
    %219 = vector.shape_cast %218 : vector<1x1x1x8x128xbf16> to vector<8x128xbf16>
    %cst_319 = arith.constant dense<0.000000e+00> : vector<8x128xf32>
    %220 = tpu.matmul %219, %213, %cst_319 {dimension_numbers = #tpu.dot_dimension_numbers<[1], [0], [0], [1], [0, 0, 1, 1], [], []>} : vector<8x128xbf16>, vector<128x128xbf16>, vector<8x128xf32> -> vector<8x128xf32>
    %221 = arith.addf %187, %220 : vector<8x128xf32>
    %c0_320 = arith.constant 0 : index
    %c0_321 = arith.constant 0 : index
    %c3_322 = arith.constant 3 : index
    %c0_323 = arith.constant 0 : index
    %c0_324 = arith.constant 0 : index
    %222 = vector.load %arg2[%c0_320, %c0_321, %c3_322, %c0_323, %c0_324] : memref<1x4x9x9x128xbf16, #tpu.memory_space<vmem>>, vector<1x1x1x8x128xbf16>
    %223 = vector.shape_cast %222 : vector<1x1x1x8x128xbf16> to vector<8x128xbf16>
    %cst_325 = arith.constant dense<0.000000e+00> : vector<8x128xf32>
    %224 = tpu.matmul %223, %213, %cst_325 {dimension_numbers = #tpu.dot_dimension_numbers<[1], [0], [0], [1], [0, 0, 1, 1], [], []>} : vector<8x128xbf16>, vector<128x128xbf16>, vector<8x128xf32> -> vector<8x128xf32>
    %225 = arith.addf %191, %224 : vector<8x128xf32>
    %c0_326 = arith.constant 0 : index
    %c0_327 = arith.constant 0 : index
    %c4_328 = arith.constant 4 : index
    %c0_329 = arith.constant 0 : index
    %c0_330 = arith.constant 0 : index
    %226 = vector.load %arg2[%c0_326, %c0_327, %c4_328, %c0_329, %c0_330] : memref<1x4x9x9x128xbf16, #tpu.memory_space<vmem>>, vector<1x1x1x8x128xbf16>
    %227 = vector.shape_cast %226 : vector<1x1x1x8x128xbf16> to vector<8x128xbf16>
    %cst_331 = arith.constant dense<0.000000e+00> : vector<8x128xf32>
    %228 = tpu.matmul %227, %213, %cst_331 {dimension_numbers = #tpu.dot_dimension_numbers<[1], [0], [0], [1], [0, 0, 1, 1], [], []>} : vector<8x128xbf16>, vector<128x128xbf16>, vector<8x128xf32> -> vector<8x128xf32>
    %229 = arith.addf %195, %228 : vector<8x128xf32>
    %c0_332 = arith.constant 0 : index
    %c0_333 = arith.constant 0 : index
    %c5_334 = arith.constant 5 : index
    %c0_335 = arith.constant 0 : index
    %c0_336 = arith.constant 0 : index
    %230 = vector.load %arg2[%c0_332, %c0_333, %c5_334, %c0_335, %c0_336] : memref<1x4x9x9x128xbf16, #tpu.memory_space<vmem>>, vector<1x1x1x8x128xbf16>
    %231 = vector.shape_cast %230 : vector<1x1x1x8x128xbf16> to vector<8x128xbf16>
    %cst_337 = arith.constant dense<0.000000e+00> : vector<8x128xf32>
    %232 = tpu.matmul %231, %213, %cst_337 {dimension_numbers = #tpu.dot_dimension_numbers<[1], [0], [0], [1], [0, 0, 1, 1], [], []>} : vector<8x128xbf16>, vector<128x128xbf16>, vector<8x128xf32> -> vector<8x128xf32>
    %233 = arith.addf %199, %232 : vector<8x128xf32>
    %c0_338 = arith.constant 0 : index
    %c0_339 = arith.constant 0 : index
    %c6_340 = arith.constant 6 : index
    %c0_341 = arith.constant 0 : index
    %c0_342 = arith.constant 0 : index
    %234 = vector.load %arg2[%c0_338, %c0_339, %c6_340, %c0_341, %c0_342] : memref<1x4x9x9x128xbf16, #tpu.memory_space<vmem>>, vector<1x1x1x8x128xbf16>
    %235 = vector.shape_cast %234 : vector<1x1x1x8x128xbf16> to vector<8x128xbf16>
    %cst_343 = arith.constant dense<0.000000e+00> : vector<8x128xf32>
    %236 = tpu.matmul %235, %213, %cst_343 {dimension_numbers = #tpu.dot_dimension_numbers<[1], [0], [0], [1], [0, 0, 1, 1], [], []>} : vector<8x128xbf16>, vector<128x128xbf16>, vector<8x128xf32> -> vector<8x128xf32>
    %237 = arith.addf %203, %236 : vector<8x128xf32>
    %c0_344 = arith.constant 0 : index
    %c0_345 = arith.constant 0 : index
    %c7_346 = arith.constant 7 : index
    %c0_347 = arith.constant 0 : index
    %c0_348 = arith.constant 0 : index
    %238 = vector.load %arg2[%c0_344, %c0_345, %c7_346, %c0_347, %c0_348] : memref<1x4x9x9x128xbf16, #tpu.memory_space<vmem>>, vector<1x1x1x8x128xbf16>
    %239 = vector.shape_cast %238 : vector<1x1x1x8x128xbf16> to vector<8x128xbf16>
    %cst_349 = arith.constant dense<0.000000e+00> : vector<8x128xf32>
    %240 = tpu.matmul %239, %213, %cst_349 {dimension_numbers = #tpu.dot_dimension_numbers<[1], [0], [0], [1], [0, 0, 1, 1], [], []>} : vector<8x128xbf16>, vector<128x128xbf16>, vector<8x128xf32> -> vector<8x128xf32>
    %241 = arith.addf %207, %240 : vector<8x128xf32>
    %c0_350 = arith.constant 0 : index
    %c0_351 = arith.constant 0 : index
    %c8 = arith.constant 8 : index
    %c0_352 = arith.constant 0 : index
    %c0_353 = arith.constant 0 : index
    %242 = vector.load %arg2[%c0_350, %c0_351, %c8, %c0_352, %c0_353] : memref<1x4x9x9x128xbf16, #tpu.memory_space<vmem>>, vector<1x1x1x8x128xbf16>
    %243 = vector.shape_cast %242 : vector<1x1x1x8x128xbf16> to vector<8x128xbf16>
    %cst_354 = arith.constant dense<0.000000e+00> : vector<8x128xf32>
    %244 = tpu.matmul %243, %213, %cst_354 {dimension_numbers = #tpu.dot_dimension_numbers<[1], [0], [0], [1], [0, 0, 1, 1], [], []>} : vector<8x128xbf16>, vector<128x128xbf16>, vector<8x128xf32> -> vector<8x128xf32>
    %245 = arith.addf %211, %244 : vector<8x128xf32>
    %c7_355 = arith.constant 7 : index
    %c0_356 = arith.constant 0 : index
    %c0_357 = arith.constant 0 : index
    %246 = vector.load %arg3[%c7_355, %c0_356, %c0_357] : memref<9x128x128xbf16, #tpu.memory_space<vmem>>, vector<1x128x128xbf16>
    %247 = vector.shape_cast %246 : vector<1x128x128xbf16> to vector<128x128xbf16>
    %c0_358 = arith.constant 0 : index
    %c1_359 = arith.constant 1 : index
    %c1_360 = arith.constant 1 : index
    %c0_361 = arith.constant 0 : index
    %c0_362 = arith.constant 0 : index
    %248 = vector.load %arg2[%c0_358, %c1_359, %c1_360, %c0_361, %c0_362] : memref<1x4x9x9x128xbf16, #tpu.memory_space<vmem>>, vector<1x1x1x8x128xbf16>
    %249 = vector.shape_cast %248 : vector<1x1x1x8x128xbf16> to vector<8x128xbf16>
    %cst_363 = arith.constant dense<0.000000e+00> : vector<8x128xf32>
    %250 = tpu.matmul %249, %247, %cst_363 {dimension_numbers = #tpu.dot_dimension_numbers<[1], [0], [0], [1], [0, 0, 1, 1], [], []>} : vector<8x128xbf16>, vector<128x128xbf16>, vector<8x128xf32> -> vector<8x128xf32>
    %251 = arith.addf %217, %250 : vector<8x128xf32>
    %c0_364 = arith.constant 0 : index
    %c1_365 = arith.constant 1 : index
    %c2_366 = arith.constant 2 : index
    %c0_367 = arith.constant 0 : index
    %c0_368 = arith.constant 0 : index
    %252 = vector.load %arg2[%c0_364, %c1_365, %c2_366, %c0_367, %c0_368] : memref<1x4x9x9x128xbf16, #tpu.memory_space<vmem>>, vector<1x1x1x8x128xbf16>
    %253 = vector.shape_cast %252 : vector<1x1x1x8x128xbf16> to vector<8x128xbf16>
    %cst_369 = arith.constant dense<0.000000e+00> : vector<8x128xf32>
    %254 = tpu.matmul %253, %247, %cst_369 {dimension_numbers = #tpu.dot_dimension_numbers<[1], [0], [0], [1], [0, 0, 1, 1], [], []>} : vector<8x128xbf16>, vector<128x128xbf16>, vector<8x128xf32> -> vector<8x128xf32>
    %255 = arith.addf %221, %254 : vector<8x128xf32>
    %c0_370 = arith.constant 0 : index
    %c1_371 = arith.constant 1 : index
    %c3_372 = arith.constant 3 : index
    %c0_373 = arith.constant 0 : index
    %c0_374 = arith.constant 0 : index
    %256 = vector.load %arg2[%c0_370, %c1_371, %c3_372, %c0_373, %c0_374] : memref<1x4x9x9x128xbf16, #tpu.memory_space<vmem>>, vector<1x1x1x8x128xbf16>
    %257 = vector.shape_cast %256 : vector<1x1x1x8x128xbf16> to vector<8x128xbf16>
    %cst_375 = arith.constant dense<0.000000e+00> : vector<8x128xf32>
    %258 = tpu.matmul %257, %247, %cst_375 {dimension_numbers = #tpu.dot_dimension_numbers<[1], [0], [0], [1], [0, 0, 1, 1], [], []>} : vector<8x128xbf16>, vector<128x128xbf16>, vector<8x128xf32> -> vector<8x128xf32>
    %259 = arith.addf %225, %258 : vector<8x128xf32>
    %c0_376 = arith.constant 0 : index
    %c1_377 = arith.constant 1 : index
    %c4_378 = arith.constant 4 : index
    %c0_379 = arith.constant 0 : index
    %c0_380 = arith.constant 0 : index
    %260 = vector.load %arg2[%c0_376, %c1_377, %c4_378, %c0_379, %c0_380] : memref<1x4x9x9x128xbf16, #tpu.memory_space<vmem>>, vector<1x1x1x8x128xbf16>
    %261 = vector.shape_cast %260 : vector<1x1x1x8x128xbf16> to vector<8x128xbf16>
    %cst_381 = arith.constant dense<0.000000e+00> : vector<8x128xf32>
    %262 = tpu.matmul %261, %247, %cst_381 {dimension_numbers = #tpu.dot_dimension_numbers<[1], [0], [0], [1], [0, 0, 1, 1], [], []>} : vector<8x128xbf16>, vector<128x128xbf16>, vector<8x128xf32> -> vector<8x128xf32>
    %263 = arith.addf %229, %262 : vector<8x128xf32>
    %c0_382 = arith.constant 0 : index
    %c1_383 = arith.constant 1 : index
    %c5_384 = arith.constant 5 : index
    %c0_385 = arith.constant 0 : index
    %c0_386 = arith.constant 0 : index
    %264 = vector.load %arg2[%c0_382, %c1_383, %c5_384, %c0_385, %c0_386] : memref<1x4x9x9x128xbf16, #tpu.memory_space<vmem>>, vector<1x1x1x8x128xbf16>
    %265 = vector.shape_cast %264 : vector<1x1x1x8x128xbf16> to vector<8x128xbf16>
    %cst_387 = arith.constant dense<0.000000e+00> : vector<8x128xf32>
    %266 = tpu.matmul %265, %247, %cst_387 {dimension_numbers = #tpu.dot_dimension_numbers<[1], [0], [0], [1], [0, 0, 1, 1], [], []>} : vector<8x128xbf16>, vector<128x128xbf16>, vector<8x128xf32> -> vector<8x128xf32>
    %267 = arith.addf %233, %266 : vector<8x128xf32>
    %c0_388 = arith.constant 0 : index
    %c1_389 = arith.constant 1 : index
    %c6_390 = arith.constant 6 : index
    %c0_391 = arith.constant 0 : index
    %c0_392 = arith.constant 0 : index
    %268 = vector.load %arg2[%c0_388, %c1_389, %c6_390, %c0_391, %c0_392] : memref<1x4x9x9x128xbf16, #tpu.memory_space<vmem>>, vector<1x1x1x8x128xbf16>
    %269 = vector.shape_cast %268 : vector<1x1x1x8x128xbf16> to vector<8x128xbf16>
    %cst_393 = arith.constant dense<0.000000e+00> : vector<8x128xf32>
    %270 = tpu.matmul %269, %247, %cst_393 {dimension_numbers = #tpu.dot_dimension_numbers<[1], [0], [0], [1], [0, 0, 1, 1], [], []>} : vector<8x128xbf16>, vector<128x128xbf16>, vector<8x128xf32> -> vector<8x128xf32>
    %271 = arith.addf %237, %270 : vector<8x128xf32>
    %c0_394 = arith.constant 0 : index
    %c1_395 = arith.constant 1 : index
    %c7_396 = arith.constant 7 : index
    %c0_397 = arith.constant 0 : index
    %c0_398 = arith.constant 0 : index
    %272 = vector.load %arg2[%c0_394, %c1_395, %c7_396, %c0_397, %c0_398] : memref<1x4x9x9x128xbf16, #tpu.memory_space<vmem>>, vector<1x1x1x8x128xbf16>
    %273 = vector.shape_cast %272 : vector<1x1x1x8x128xbf16> to vector<8x128xbf16>
    %cst_399 = arith.constant dense<0.000000e+00> : vector<8x128xf32>
    %274 = tpu.matmul %273, %247, %cst_399 {dimension_numbers = #tpu.dot_dimension_numbers<[1], [0], [0], [1], [0, 0, 1, 1], [], []>} : vector<8x128xbf16>, vector<128x128xbf16>, vector<8x128xf32> -> vector<8x128xf32>
    %275 = arith.addf %241, %274 : vector<8x128xf32>
    %c0_400 = arith.constant 0 : index
    %c1_401 = arith.constant 1 : index
    %c8_402 = arith.constant 8 : index
    %c0_403 = arith.constant 0 : index
    %c0_404 = arith.constant 0 : index
    %276 = vector.load %arg2[%c0_400, %c1_401, %c8_402, %c0_403, %c0_404] : memref<1x4x9x9x128xbf16, #tpu.memory_space<vmem>>, vector<1x1x1x8x128xbf16>
    %277 = vector.shape_cast %276 : vector<1x1x1x8x128xbf16> to vector<8x128xbf16>
    %cst_405 = arith.constant dense<0.000000e+00> : vector<8x128xf32>
    %278 = tpu.matmul %277, %247, %cst_405 {dimension_numbers = #tpu.dot_dimension_numbers<[1], [0], [0], [1], [0, 0, 1, 1], [], []>} : vector<8x128xbf16>, vector<128x128xbf16>, vector<8x128xf32> -> vector<8x128xf32>
    %279 = arith.addf %245, %278 : vector<8x128xf32>
    %c8_406 = arith.constant 8 : index
    %c0_407 = arith.constant 0 : index
    %c0_408 = arith.constant 0 : index
    %280 = vector.load %arg3[%c8_406, %c0_407, %c0_408] : memref<9x128x128xbf16, #tpu.memory_space<vmem>>, vector<1x128x128xbf16>
    %281 = vector.shape_cast %280 : vector<1x128x128xbf16> to vector<128x128xbf16>
    %c0_409 = arith.constant 0 : index
    %c0_410 = arith.constant 0 : index
    %c1_411 = arith.constant 1 : index
    %c1_412 = arith.constant 1 : index
    %c0_413 = arith.constant 0 : index
    %282 = vector.load %arg2[%c0_409, %c0_410, %c1_411, %c1_412, %c0_413] : memref<1x4x9x9x128xbf16, #tpu.memory_space<vmem>>, vector<1x1x1x8x128xbf16>
    %283 = vector.shape_cast %282 : vector<1x1x1x8x128xbf16> to vector<8x128xbf16>
    %cst_414 = arith.constant dense<0.000000e+00> : vector<8x128xf32>
    %284 = tpu.matmul %283, %281, %cst_414 {dimension_numbers = #tpu.dot_dimension_numbers<[1], [0], [0], [1], [0, 0, 1, 1], [], []>} : vector<8x128xbf16>, vector<128x128xbf16>, vector<8x128xf32> -> vector<8x128xf32>
    %285 = arith.addf %251, %284 : vector<8x128xf32>
    %c0_415 = arith.constant 0 : index
    %c0_416 = arith.constant 0 : index
    %c2_417 = arith.constant 2 : index
    %c1_418 = arith.constant 1 : index
    %c0_419 = arith.constant 0 : index
    %286 = vector.load %arg2[%c0_415, %c0_416, %c2_417, %c1_418, %c0_419] : memref<1x4x9x9x128xbf16, #tpu.memory_space<vmem>>, vector<1x1x1x8x128xbf16>
    %287 = vector.shape_cast %286 : vector<1x1x1x8x128xbf16> to vector<8x128xbf16>
    %cst_420 = arith.constant dense<0.000000e+00> : vector<8x128xf32>
    %288 = tpu.matmul %287, %281, %cst_420 {dimension_numbers = #tpu.dot_dimension_numbers<[1], [0], [0], [1], [0, 0, 1, 1], [], []>} : vector<8x128xbf16>, vector<128x128xbf16>, vector<8x128xf32> -> vector<8x128xf32>
    %289 = arith.addf %255, %288 : vector<8x128xf32>
    %c0_421 = arith.constant 0 : index
    %c0_422 = arith.constant 0 : index
    %c3_423 = arith.constant 3 : index
    %c1_424 = arith.constant 1 : index
    %c0_425 = arith.constant 0 : index
    %290 = vector.load %arg2[%c0_421, %c0_422, %c3_423, %c1_424, %c0_425] : memref<1x4x9x9x128xbf16, #tpu.memory_space<vmem>>, vector<1x1x1x8x128xbf16>
    %291 = vector.shape_cast %290 : vector<1x1x1x8x128xbf16> to vector<8x128xbf16>
    %cst_426 = arith.constant dense<0.000000e+00> : vector<8x128xf32>
    %292 = tpu.matmul %291, %281, %cst_426 {dimension_numbers = #tpu.dot_dimension_numbers<[1], [0], [0], [1], [0, 0, 1, 1], [], []>} : vector<8x128xbf16>, vector<128x128xbf16>, vector<8x128xf32> -> vector<8x128xf32>
    %293 = arith.addf %259, %292 : vector<8x128xf32>
    %c0_427 = arith.constant 0 : index
    %c0_428 = arith.constant 0 : index
    %c4_429 = arith.constant 4 : index
    %c1_430 = arith.constant 1 : index
    %c0_431 = arith.constant 0 : index
    %294 = vector.load %arg2[%c0_427, %c0_428, %c4_429, %c1_430, %c0_431] : memref<1x4x9x9x128xbf16, #tpu.memory_space<vmem>>, vector<1x1x1x8x128xbf16>
    %295 = vector.shape_cast %294 : vector<1x1x1x8x128xbf16> to vector<8x128xbf16>
    %cst_432 = arith.constant dense<0.000000e+00> : vector<8x128xf32>
    %296 = tpu.matmul %295, %281, %cst_432 {dimension_numbers = #tpu.dot_dimension_numbers<[1], [0], [0], [1], [0, 0, 1, 1], [], []>} : vector<8x128xbf16>, vector<128x128xbf16>, vector<8x128xf32> -> vector<8x128xf32>
    %297 = arith.addf %263, %296 : vector<8x128xf32>
    %c0_433 = arith.constant 0 : index
    %c0_434 = arith.constant 0 : index
    %c5_435 = arith.constant 5 : index
    %c1_436 = arith.constant 1 : index
    %c0_437 = arith.constant 0 : index
    %298 = vector.load %arg2[%c0_433, %c0_434, %c5_435, %c1_436, %c0_437] : memref<1x4x9x9x128xbf16, #tpu.memory_space<vmem>>, vector<1x1x1x8x128xbf16>
    %299 = vector.shape_cast %298 : vector<1x1x1x8x128xbf16> to vector<8x128xbf16>
    %cst_438 = arith.constant dense<0.000000e+00> : vector<8x128xf32>
    %300 = tpu.matmul %299, %281, %cst_438 {dimension_numbers = #tpu.dot_dimension_numbers<[1], [0], [0], [1], [0, 0, 1, 1], [], []>} : vector<8x128xbf16>, vector<128x128xbf16>, vector<8x128xf32> -> vector<8x128xf32>
    %301 = arith.addf %267, %300 : vector<8x128xf32>
    %c0_439 = arith.constant 0 : index
    %c0_440 = arith.constant 0 : index
    %c6_441 = arith.constant 6 : index
    %c1_442 = arith.constant 1 : index
    %c0_443 = arith.constant 0 : index
    %302 = vector.load %arg2[%c0_439, %c0_440, %c6_441, %c1_442, %c0_443] : memref<1x4x9x9x128xbf16, #tpu.memory_space<vmem>>, vector<1x1x1x8x128xbf16>
    %303 = vector.shape_cast %302 : vector<1x1x1x8x128xbf16> to vector<8x128xbf16>
    %cst_444 = arith.constant dense<0.000000e+00> : vector<8x128xf32>
    %304 = tpu.matmul %303, %281, %cst_444 {dimension_numbers = #tpu.dot_dimension_numbers<[1], [0], [0], [1], [0, 0, 1, 1], [], []>} : vector<8x128xbf16>, vector<128x128xbf16>, vector<8x128xf32> -> vector<8x128xf32>
    %305 = arith.addf %271, %304 : vector<8x128xf32>
    %c0_445 = arith.constant 0 : index
    %c0_446 = arith.constant 0 : index
    %c7_447 = arith.constant 7 : index
    %c1_448 = arith.constant 1 : index
    %c0_449 = arith.constant 0 : index
    %306 = vector.load %arg2[%c0_445, %c0_446, %c7_447, %c1_448, %c0_449] : memref<1x4x9x9x128xbf16, #tpu.memory_space<vmem>>, vector<1x1x1x8x128xbf16>
    %307 = vector.shape_cast %306 : vector<1x1x1x8x128xbf16> to vector<8x128xbf16>
    %cst_450 = arith.constant dense<0.000000e+00> : vector<8x128xf32>
    %308 = tpu.matmul %307, %281, %cst_450 {dimension_numbers = #tpu.dot_dimension_numbers<[1], [0], [0], [1], [0, 0, 1, 1], [], []>} : vector<8x128xbf16>, vector<128x128xbf16>, vector<8x128xf32> -> vector<8x128xf32>
    %309 = arith.addf %275, %308 : vector<8x128xf32>
    %c0_451 = arith.constant 0 : index
    %c0_452 = arith.constant 0 : index
    %c8_453 = arith.constant 8 : index
    %c1_454 = arith.constant 1 : index
    %c0_455 = arith.constant 0 : index
    %310 = vector.load %arg2[%c0_451, %c0_452, %c8_453, %c1_454, %c0_455] : memref<1x4x9x9x128xbf16, #tpu.memory_space<vmem>>, vector<1x1x1x8x128xbf16>
    %311 = vector.shape_cast %310 : vector<1x1x1x8x128xbf16> to vector<8x128xbf16>
    %cst_456 = arith.constant dense<0.000000e+00> : vector<8x128xf32>
    %312 = tpu.matmul %311, %281, %cst_456 {dimension_numbers = #tpu.dot_dimension_numbers<[1], [0], [0], [1], [0, 0, 1, 1], [], []>} : vector<8x128xbf16>, vector<128x128xbf16>, vector<8x128xf32> -> vector<8x128xf32>
    %313 = arith.addf %279, %312 : vector<8x128xf32>
    %c0_457 = arith.constant 0 : index
    %c0_458 = arith.constant 0 : index
    %314 = vector.load %arg4[%c0_457, %c0_458] : memref<1x128xf32, #tpu.memory_space<vmem>>, vector<1x128xf32>
    %315 = vector.broadcast %314 : vector<1x128xf32> to vector<8x128xf32>
    %316 = arith.addf %285, %315 : vector<8x128xf32>
    %cst_459 = arith.constant 0.000000e+00 : f32
    %317 = vector.broadcast %cst_459 : f32 to vector<8x128xf32>
    %318 = arith.maximumf %316, %317 : vector<8x128xf32>
    %319 = arith.truncf %318 : vector<8x128xf32> to vector<8x128xbf16>
    %c0_460 = arith.constant 0 : index
    %c0_461 = arith.constant 0 : index
    %c0_462 = arith.constant 0 : index
    %c0_463 = arith.constant 0 : index
    %320 = vector.load %arg5[%c0_460, %c0_461, %c0_462, %c0_463] : memref<1x8x8x128xbf16, #tpu.memory_space<vmem>>, vector<1x1x8x128xbf16>
    %321 = vector.shape_cast %320 : vector<1x1x8x128xbf16> to vector<8x128xbf16>
    %322 = vector.shape_cast %319 : vector<8x128xbf16> to vector<1x1x8x128xbf16>
    tpu.vector_store %arg5[%c0_460, %c0_461, %c0_462, %c0_463], %322 {strides = array<i32>} : memref<1x8x8x128xbf16, #tpu.memory_space<vmem>>, vector<1x1x8x128xbf16>,
    %323 = vector.broadcast %314 : vector<1x128xf32> to vector<8x128xf32>
    %324 = arith.addf %289, %323 : vector<8x128xf32>
    %cst_464 = arith.constant 0.000000e+00 : f32
    %325 = vector.broadcast %cst_464 : f32 to vector<8x128xf32>
    %326 = arith.maximumf %324, %325 : vector<8x128xf32>
    %327 = arith.truncf %326 : vector<8x128xf32> to vector<8x128xbf16>
    %c0_465 = arith.constant 0 : index
    %c1_466 = arith.constant 1 : index
    %c0_467 = arith.constant 0 : index
    %c0_468 = arith.constant 0 : index
    %328 = vector.load %arg5[%c0_465, %c1_466, %c0_467, %c0_468] : memref<1x8x8x128xbf16, #tpu.memory_space<vmem>>, vector<1x1x8x128xbf16>
    %329 = vector.shape_cast %328 : vector<1x1x8x128xbf16> to vector<8x128xbf16>
    %330 = vector.shape_cast %327 : vector<8x128xbf16> to vector<1x1x8x128xbf16>
    tpu.vector_store %arg5[%c0_465, %c1_466, %c0_467, %c0_468], %330 {strides = array<i32>} : memref<1x8x8x128xbf16, #tpu.memory_space<vmem>>, vector<1x1x8x128xbf16>,
    %331 = vector.broadcast %314 : vector<1x128xf32> to vector<8x128xf32>
    %332 = arith.addf %293, %331 : vector<8x128xf32>
    %cst_469 = arith.constant 0.000000e+00 : f32
    %333 = vector.broadcast %cst_469 : f32 to vector<8x128xf32>
    %334 = arith.maximumf %332, %333 : vector<8x128xf32>
    %335 = arith.truncf %334 : vector<8x128xf32> to vector<8x128xbf16>
    %c0_470 = arith.constant 0 : index
    %c2_471 = arith.constant 2 : index
    %c0_472 = arith.constant 0 : index
    %c0_473 = arith.constant 0 : index
    %336 = vector.load %arg5[%c0_470, %c2_471, %c0_472, %c0_473] : memref<1x8x8x128xbf16, #tpu.memory_space<vmem>>, vector<1x1x8x128xbf16>
    %337 = vector.shape_cast %336 : vector<1x1x8x128xbf16> to vector<8x128xbf16>
    %338 = vector.shape_cast %335 : vector<8x128xbf16> to vector<1x1x8x128xbf16>
    tpu.vector_store %arg5[%c0_470, %c2_471, %c0_472, %c0_473], %338 {strides = array<i32>} : memref<1x8x8x128xbf16, #tpu.memory_space<vmem>>, vector<1x1x8x128xbf16>,
    %339 = vector.broadcast %314 : vector<1x128xf32> to vector<8x128xf32>
    %340 = arith.addf %297, %339 : vector<8x128xf32>
    %cst_474 = arith.constant 0.000000e+00 : f32
    %341 = vector.broadcast %cst_474 : f32 to vector<8x128xf32>
    %342 = arith.maximumf %340, %341 : vector<8x128xf32>
    %343 = arith.truncf %342 : vector<8x128xf32> to vector<8x128xbf16>
    %c0_475 = arith.constant 0 : index
    %c3_476 = arith.constant 3 : index
    %c0_477 = arith.constant 0 : index
    %c0_478 = arith.constant 0 : index
    %344 = vector.load %arg5[%c0_475, %c3_476, %c0_477, %c0_478] : memref<1x8x8x128xbf16, #tpu.memory_space<vmem>>, vector<1x1x8x128xbf16>
    %345 = vector.shape_cast %344 : vector<1x1x8x128xbf16> to vector<8x128xbf16>
    %346 = vector.shape_cast %343 : vector<8x128xbf16> to vector<1x1x8x128xbf16>
    tpu.vector_store %arg5[%c0_475, %c3_476, %c0_477, %c0_478], %346 {strides = array<i32>} : memref<1x8x8x128xbf16, #tpu.memory_space<vmem>>, vector<1x1x8x128xbf16>,
    %347 = vector.broadcast %314 : vector<1x128xf32> to vector<8x128xf32>
    %348 = arith.addf %301, %347 : vector<8x128xf32>
    %cst_479 = arith.constant 0.000000e+00 : f32
    %349 = vector.broadcast %cst_479 : f32 to vector<8x128xf32>
    %350 = arith.maximumf %348, %349 : vector<8x128xf32>
    %351 = arith.truncf %350 : vector<8x128xf32> to vector<8x128xbf16>
    %c0_480 = arith.constant 0 : index
    %c4_481 = arith.constant 4 : index
    %c0_482 = arith.constant 0 : index
    %c0_483 = arith.constant 0 : index
    %352 = vector.load %arg5[%c0_480, %c4_481, %c0_482, %c0_483] : memref<1x8x8x128xbf16, #tpu.memory_space<vmem>>, vector<1x1x8x128xbf16>
    %353 = vector.shape_cast %352 : vector<1x1x8x128xbf16> to vector<8x128xbf16>
    %354 = vector.shape_cast %351 : vector<8x128xbf16> to vector<1x1x8x128xbf16>
    tpu.vector_store %arg5[%c0_480, %c4_481, %c0_482, %c0_483], %354 {strides = array<i32>} : memref<1x8x8x128xbf16, #tpu.memory_space<vmem>>, vector<1x1x8x128xbf16>,
    %355 = vector.broadcast %314 : vector<1x128xf32> to vector<8x128xf32>
    %356 = arith.addf %305, %355 : vector<8x128xf32>
    %cst_484 = arith.constant 0.000000e+00 : f32
    %357 = vector.broadcast %cst_484 : f32 to vector<8x128xf32>
    %358 = arith.maximumf %356, %357 : vector<8x128xf32>
    %359 = arith.truncf %358 : vector<8x128xf32> to vector<8x128xbf16>
    %c0_485 = arith.constant 0 : index
    %c5_486 = arith.constant 5 : index
    %c0_487 = arith.constant 0 : index
    %c0_488 = arith.constant 0 : index
    %360 = vector.load %arg5[%c0_485, %c5_486, %c0_487, %c0_488] : memref<1x8x8x128xbf16, #tpu.memory_space<vmem>>, vector<1x1x8x128xbf16>
    %361 = vector.shape_cast %360 : vector<1x1x8x128xbf16> to vector<8x128xbf16>
    %362 = vector.shape_cast %359 : vector<8x128xbf16> to vector<1x1x8x128xbf16>
    tpu.vector_store %arg5[%c0_485, %c5_486, %c0_487, %c0_488], %362 {strides = array<i32>} : memref<1x8x8x128xbf16, #tpu.memory_space<vmem>>, vector<1x1x8x128xbf16>,
    %363 = vector.broadcast %314 : vector<1x128xf32> to vector<8x128xf32>
    %364 = arith.addf %309, %363 : vector<8x128xf32>
    %cst_489 = arith.constant 0.000000e+00 : f32
    %365 = vector.broadcast %cst_489 : f32 to vector<8x128xf32>
    %366 = arith.maximumf %364, %365 : vector<8x128xf32>
    %367 = arith.truncf %366 : vector<8x128xf32> to vector<8x128xbf16>
    %c0_490 = arith.constant 0 : index
    %c6_491 = arith.constant 6 : index
    %c0_492 = arith.constant 0 : index
    %c0_493 = arith.constant 0 : index
    %368 = vector.load %arg5[%c0_490, %c6_491, %c0_492, %c0_493] : memref<1x8x8x128xbf16, #tpu.memory_space<vmem>>, vector<1x1x8x128xbf16>
    %369 = vector.shape_cast %368 : vector<1x1x8x128xbf16> to vector<8x128xbf16>
    %370 = vector.shape_cast %367 : vector<8x128xbf16> to vector<1x1x8x128xbf16>
    tpu.vector_store %arg5[%c0_490, %c6_491, %c0_492, %c0_493], %370 {strides = array<i32>} : memref<1x8x8x128xbf16, #tpu.memory_space<vmem>>, vector<1x1x8x128xbf16>,
    %371 = vector.broadcast %314 : vector<1x128xf32> to vector<8x128xf32>
    %372 = arith.addf %313, %371 : vector<8x128xf32>
    %cst_494 = arith.constant 0.000000e+00 : f32
    %373 = vector.broadcast %cst_494 : f32 to vector<8x128xf32>
    %374 = arith.maximumf %372, %373 : vector<8x128xf32>
    %375 = arith.truncf %374 : vector<8x128xf32> to vector<8x128xbf16>
    %c0_495 = arith.constant 0 : index
    %c7_496 = arith.constant 7 : index
    %c0_497 = arith.constant 0 : index
    %c0_498 = arith.constant 0 : index
    %376 = vector.load %arg5[%c0_495, %c7_496, %c0_497, %c0_498] : memref<1x8x8x128xbf16, #tpu.memory_space<vmem>>, vector<1x1x8x128xbf16>
    %377 = vector.shape_cast %376 : vector<1x1x8x128xbf16> to vector<8x128xbf16>
    %378 = vector.shape_cast %375 : vector<8x128xbf16> to vector<1x1x8x128xbf16>
    tpu.vector_store %arg5[%c0_495, %c7_496, %c0_497, %c0_498], %378 {strides = array<i32>} : memref<1x8x8x128xbf16, #tpu.memory_space<vmem>>, vector<1x1x8x128xbf16>,
    return
  }
  func.func @transform_0(%arg0: i32, %arg1: i32) -> (i32, i32, i32, i32, i32) {
    %c0_i32 = arith.constant 0 : i32
    %c0_i32_0 = arith.constant 0 : i32
    %c0_i32_1 = arith.constant 0 : i32
    %c0_i32_2 = arith.constant 0 : i32
    %c0_i32_3 = arith.constant 0 : i32
    return %arg0, %c0_i32, %c0_i32_0, %c0_i32_1, %c0_i32_2 : i32, i32, i32, i32, i32
  }
  func.func @transform_1(%arg0: i32, %arg1: i32) -> (i32, i32, i32) {
    %c0_i32 = arith.constant 0 : i32
    %c0_i32_0 = arith.constant 0 : i32
    %c0_i32_1 = arith.constant 0 : i32
    return %c0_i32, %c0_i32_0, %arg1 : i32, i32, i32
  }
  func.func @transform_2(%arg0: i32, %arg1: i32) -> (i32, i32) {
    %c0_i32 = arith.constant 0 : i32
    %c0_i32_0 = arith.constant 0 : i32
    return %c0_i32, %arg1 : i32, i32
  }
  func.func @transform_3(%arg0: i32, %arg1: i32) -> (i32, i32, i32, i32) {
    %c0_i32 = arith.constant 0 : i32
    %c0_i32_0 = arith.constant 0 : i32
    %c0_i32_1 = arith.constant 0 : i32
    return %arg0, %c0_i32, %c0_i32_0, %arg1 : i32, i32, i32, i32
  }
}

module attributes {stable_mosaic.version = 11 : i64} {
  func.func @_conv2d_relu_kernel(%arg0: i32, %arg1: i32, %arg2: memref<1x4x5x5x128xbf16, #tpu.memory_space<vmem>>, %arg3: memref<9x128x128xbf16, #tpu.memory_space<vmem>>, %arg4: memref<1x128xf32, #tpu.memory_space<vmem>>, %arg5: memref<1x4x4x128xbf16, #tpu.memory_space<vmem>>) attributes {dimension_semantics = [#tpu.dimension_semantics<parallel>, #tpu.dimension_semantics<parallel>], iteration_bounds = array<i64: 2, 1>, scalar_prefetch = 0 : i64, scratch_operands = 0 : i64, tpu.core_type = #tpu.core_type<tc>, window_params = [{transform_indices = @transform_0, window_bounds = array<i64: 1, 4, 5, 5, 128>}, {transform_indices = @transform_1, window_bounds = array<i64: 9, 128, 128>}, {transform_indices = @transform_2, window_bounds = array<i64: 1, 128>}, {transform_indices = @transform_3, window_bounds = array<i64: 1, 4, 4, 128>}]} {
    %cst = arith.constant 0.000000e+00 : f32
    %0 = vector.broadcast %cst : f32 to vector<4x128xf32>
    %cst_0 = arith.constant 0.000000e+00 : f32
    %1 = vector.broadcast %cst_0 : f32 to vector<4x128xf32>
    %cst_1 = arith.constant 0.000000e+00 : f32
    %2 = vector.broadcast %cst_1 : f32 to vector<4x128xf32>
    %cst_2 = arith.constant 0.000000e+00 : f32
    %3 = vector.broadcast %cst_2 : f32 to vector<4x128xf32>
    %c0 = arith.constant 0 : index
    %c0_3 = arith.constant 0 : index
    %c0_4 = arith.constant 0 : index
    %4 = vector.load %arg3[%c0, %c0_3, %c0_4] : memref<9x128x128xbf16, #tpu.memory_space<vmem>>, vector<1x128x128xbf16>
    %5 = vector.shape_cast %4 : vector<1x128x128xbf16> to vector<128x128xbf16>
    %c0_5 = arith.constant 0 : index
    %c0_6 = arith.constant 0 : index
    %c0_7 = arith.constant 0 : index
    %c0_8 = arith.constant 0 : index
    %c0_9 = arith.constant 0 : index
    %6 = vector.load %arg2[%c0_5, %c0_6, %c0_7, %c0_8, %c0_9] : memref<1x4x5x5x128xbf16, #tpu.memory_space<vmem>>, vector<1x1x1x4x128xbf16>
    %7 = vector.shape_cast %6 : vector<1x1x1x4x128xbf16> to vector<4x128xbf16>
    %cst_10 = arith.constant dense<0.000000e+00> : vector<4x128xf32>
    %8 = tpu.matmul %7, %5, %cst_10 {dimension_numbers = #tpu.dot_dimension_numbers<[1], [0], [0], [1], [0, 0, 1, 1], [], []>} : vector<4x128xbf16>, vector<128x128xbf16>, vector<4x128xf32> -> vector<4x128xf32>
    %9 = arith.addf %0, %8 : vector<4x128xf32>
    %c0_11 = arith.constant 0 : index
    %c0_12 = arith.constant 0 : index
    %c1 = arith.constant 1 : index
    %c0_13 = arith.constant 0 : index
    %c0_14 = arith.constant 0 : index
    %10 = vector.load %arg2[%c0_11, %c0_12, %c1, %c0_13, %c0_14] : memref<1x4x5x5x128xbf16, #tpu.memory_space<vmem>>, vector<1x1x1x4x128xbf16>
    %11 = vector.shape_cast %10 : vector<1x1x1x4x128xbf16> to vector<4x128xbf16>
    %cst_15 = arith.constant dense<0.000000e+00> : vector<4x128xf32>
    %12 = tpu.matmul %11, %5, %cst_15 {dimension_numbers = #tpu.dot_dimension_numbers<[1], [0], [0], [1], [0, 0, 1, 1], [], []>} : vector<4x128xbf16>, vector<128x128xbf16>, vector<4x128xf32> -> vector<4x128xf32>
    %13 = arith.addf %1, %12 : vector<4x128xf32>
    %c0_16 = arith.constant 0 : index
    %c0_17 = arith.constant 0 : index
    %c2 = arith.constant 2 : index
    %c0_18 = arith.constant 0 : index
    %c0_19 = arith.constant 0 : index
    %14 = vector.load %arg2[%c0_16, %c0_17, %c2, %c0_18, %c0_19] : memref<1x4x5x5x128xbf16, #tpu.memory_space<vmem>>, vector<1x1x1x4x128xbf16>
    %15 = vector.shape_cast %14 : vector<1x1x1x4x128xbf16> to vector<4x128xbf16>
    %cst_20 = arith.constant dense<0.000000e+00> : vector<4x128xf32>
    %16 = tpu.matmul %15, %5, %cst_20 {dimension_numbers = #tpu.dot_dimension_numbers<[1], [0], [0], [1], [0, 0, 1, 1], [], []>} : vector<4x128xbf16>, vector<128x128xbf16>, vector<4x128xf32> -> vector<4x128xf32>
    %17 = arith.addf %2, %16 : vector<4x128xf32>
    %c0_21 = arith.constant 0 : index
    %c0_22 = arith.constant 0 : index
    %c3 = arith.constant 3 : index
    %c0_23 = arith.constant 0 : index
    %c0_24 = arith.constant 0 : index
    %18 = vector.load %arg2[%c0_21, %c0_22, %c3, %c0_23, %c0_24] : memref<1x4x5x5x128xbf16, #tpu.memory_space<vmem>>, vector<1x1x1x4x128xbf16>
    %19 = vector.shape_cast %18 : vector<1x1x1x4x128xbf16> to vector<4x128xbf16>
    %cst_25 = arith.constant dense<0.000000e+00> : vector<4x128xf32>
    %20 = tpu.matmul %19, %5, %cst_25 {dimension_numbers = #tpu.dot_dimension_numbers<[1], [0], [0], [1], [0, 0, 1, 1], [], []>} : vector<4x128xbf16>, vector<128x128xbf16>, vector<4x128xf32> -> vector<4x128xf32>
    %21 = arith.addf %3, %20 : vector<4x128xf32>
    %c1_26 = arith.constant 1 : index
    %c0_27 = arith.constant 0 : index
    %c0_28 = arith.constant 0 : index
    %22 = vector.load %arg3[%c1_26, %c0_27, %c0_28] : memref<9x128x128xbf16, #tpu.memory_space<vmem>>, vector<1x128x128xbf16>
    %23 = vector.shape_cast %22 : vector<1x128x128xbf16> to vector<128x128xbf16>
    %c0_29 = arith.constant 0 : index
    %c1_30 = arith.constant 1 : index
    %c0_31 = arith.constant 0 : index
    %c0_32 = arith.constant 0 : index
    %c0_33 = arith.constant 0 : index
    %24 = vector.load %arg2[%c0_29, %c1_30, %c0_31, %c0_32, %c0_33] : memref<1x4x5x5x128xbf16, #tpu.memory_space<vmem>>, vector<1x1x1x4x128xbf16>
    %25 = vector.shape_cast %24 : vector<1x1x1x4x128xbf16> to vector<4x128xbf16>
    %cst_34 = arith.constant dense<0.000000e+00> : vector<4x128xf32>
    %26 = tpu.matmul %25, %23, %cst_34 {dimension_numbers = #tpu.dot_dimension_numbers<[1], [0], [0], [1], [0, 0, 1, 1], [], []>} : vector<4x128xbf16>, vector<128x128xbf16>, vector<4x128xf32> -> vector<4x128xf32>
    %27 = arith.addf %9, %26 : vector<4x128xf32>
    %c0_35 = arith.constant 0 : index
    %c1_36 = arith.constant 1 : index
    %c1_37 = arith.constant 1 : index
    %c0_38 = arith.constant 0 : index
    %c0_39 = arith.constant 0 : index
    %28 = vector.load %arg2[%c0_35, %c1_36, %c1_37, %c0_38, %c0_39] : memref<1x4x5x5x128xbf16, #tpu.memory_space<vmem>>, vector<1x1x1x4x128xbf16>
    %29 = vector.shape_cast %28 : vector<1x1x1x4x128xbf16> to vector<4x128xbf16>
    %cst_40 = arith.constant dense<0.000000e+00> : vector<4x128xf32>
    %30 = tpu.matmul %29, %23, %cst_40 {dimension_numbers = #tpu.dot_dimension_numbers<[1], [0], [0], [1], [0, 0, 1, 1], [], []>} : vector<4x128xbf16>, vector<128x128xbf16>, vector<4x128xf32> -> vector<4x128xf32>
    %31 = arith.addf %13, %30 : vector<4x128xf32>
    %c0_41 = arith.constant 0 : index
    %c1_42 = arith.constant 1 : index
    %c2_43 = arith.constant 2 : index
    %c0_44 = arith.constant 0 : index
    %c0_45 = arith.constant 0 : index
    %32 = vector.load %arg2[%c0_41, %c1_42, %c2_43, %c0_44, %c0_45] : memref<1x4x5x5x128xbf16, #tpu.memory_space<vmem>>, vector<1x1x1x4x128xbf16>
    %33 = vector.shape_cast %32 : vector<1x1x1x4x128xbf16> to vector<4x128xbf16>
    %cst_46 = arith.constant dense<0.000000e+00> : vector<4x128xf32>
    %34 = tpu.matmul %33, %23, %cst_46 {dimension_numbers = #tpu.dot_dimension_numbers<[1], [0], [0], [1], [0, 0, 1, 1], [], []>} : vector<4x128xbf16>, vector<128x128xbf16>, vector<4x128xf32> -> vector<4x128xf32>
    %35 = arith.addf %17, %34 : vector<4x128xf32>
    %c0_47 = arith.constant 0 : index
    %c1_48 = arith.constant 1 : index
    %c3_49 = arith.constant 3 : index
    %c0_50 = arith.constant 0 : index
    %c0_51 = arith.constant 0 : index
    %36 = vector.load %arg2[%c0_47, %c1_48, %c3_49, %c0_50, %c0_51] : memref<1x4x5x5x128xbf16, #tpu.memory_space<vmem>>, vector<1x1x1x4x128xbf16>
    %37 = vector.shape_cast %36 : vector<1x1x1x4x128xbf16> to vector<4x128xbf16>
    %cst_52 = arith.constant dense<0.000000e+00> : vector<4x128xf32>
    %38 = tpu.matmul %37, %23, %cst_52 {dimension_numbers = #tpu.dot_dimension_numbers<[1], [0], [0], [1], [0, 0, 1, 1], [], []>} : vector<4x128xbf16>, vector<128x128xbf16>, vector<4x128xf32> -> vector<4x128xf32>
    %39 = arith.addf %21, %38 : vector<4x128xf32>
    %c2_53 = arith.constant 2 : index
    %c0_54 = arith.constant 0 : index
    %c0_55 = arith.constant 0 : index
    %40 = vector.load %arg3[%c2_53, %c0_54, %c0_55] : memref<9x128x128xbf16, #tpu.memory_space<vmem>>, vector<1x128x128xbf16>
    %41 = vector.shape_cast %40 : vector<1x128x128xbf16> to vector<128x128xbf16>
    %c0_56 = arith.constant 0 : index
    %c0_57 = arith.constant 0 : index
    %c0_58 = arith.constant 0 : index
    %c1_59 = arith.constant 1 : index
    %c0_60 = arith.constant 0 : index
    %42 = vector.load %arg2[%c0_56, %c0_57, %c0_58, %c1_59, %c0_60] : memref<1x4x5x5x128xbf16, #tpu.memory_space<vmem>>, vector<1x1x1x4x128xbf16>
    %43 = vector.shape_cast %42 : vector<1x1x1x4x128xbf16> to vector<4x128xbf16>
    %cst_61 = arith.constant dense<0.000000e+00> : vector<4x128xf32>
    %44 = tpu.matmul %43, %41, %cst_61 {dimension_numbers = #tpu.dot_dimension_numbers<[1], [0], [0], [1], [0, 0, 1, 1], [], []>} : vector<4x128xbf16>, vector<128x128xbf16>, vector<4x128xf32> -> vector<4x128xf32>
    %45 = arith.addf %27, %44 : vector<4x128xf32>
    %c0_62 = arith.constant 0 : index
    %c0_63 = arith.constant 0 : index
    %c1_64 = arith.constant 1 : index
    %c1_65 = arith.constant 1 : index
    %c0_66 = arith.constant 0 : index
    %46 = vector.load %arg2[%c0_62, %c0_63, %c1_64, %c1_65, %c0_66] : memref<1x4x5x5x128xbf16, #tpu.memory_space<vmem>>, vector<1x1x1x4x128xbf16>
    %47 = vector.shape_cast %46 : vector<1x1x1x4x128xbf16> to vector<4x128xbf16>
    %cst_67 = arith.constant dense<0.000000e+00> : vector<4x128xf32>
    %48 = tpu.matmul %47, %41, %cst_67 {dimension_numbers = #tpu.dot_dimension_numbers<[1], [0], [0], [1], [0, 0, 1, 1], [], []>} : vector<4x128xbf16>, vector<128x128xbf16>, vector<4x128xf32> -> vector<4x128xf32>
    %49 = arith.addf %31, %48 : vector<4x128xf32>
    %c0_68 = arith.constant 0 : index
    %c0_69 = arith.constant 0 : index
    %c2_70 = arith.constant 2 : index
    %c1_71 = arith.constant 1 : index
    %c0_72 = arith.constant 0 : index
    %50 = vector.load %arg2[%c0_68, %c0_69, %c2_70, %c1_71, %c0_72] : memref<1x4x5x5x128xbf16, #tpu.memory_space<vmem>>, vector<1x1x1x4x128xbf16>
    %51 = vector.shape_cast %50 : vector<1x1x1x4x128xbf16> to vector<4x128xbf16>
    %cst_73 = arith.constant dense<0.000000e+00> : vector<4x128xf32>
    %52 = tpu.matmul %51, %41, %cst_73 {dimension_numbers = #tpu.dot_dimension_numbers<[1], [0], [0], [1], [0, 0, 1, 1], [], []>} : vector<4x128xbf16>, vector<128x128xbf16>, vector<4x128xf32> -> vector<4x128xf32>
    %53 = arith.addf %35, %52 : vector<4x128xf32>
    %c0_74 = arith.constant 0 : index
    %c0_75 = arith.constant 0 : index
    %c3_76 = arith.constant 3 : index
    %c1_77 = arith.constant 1 : index
    %c0_78 = arith.constant 0 : index
    %54 = vector.load %arg2[%c0_74, %c0_75, %c3_76, %c1_77, %c0_78] : memref<1x4x5x5x128xbf16, #tpu.memory_space<vmem>>, vector<1x1x1x4x128xbf16>
    %55 = vector.shape_cast %54 : vector<1x1x1x4x128xbf16> to vector<4x128xbf16>
    %cst_79 = arith.constant dense<0.000000e+00> : vector<4x128xf32>
    %56 = tpu.matmul %55, %41, %cst_79 {dimension_numbers = #tpu.dot_dimension_numbers<[1], [0], [0], [1], [0, 0, 1, 1], [], []>} : vector<4x128xbf16>, vector<128x128xbf16>, vector<4x128xf32> -> vector<4x128xf32>
    %57 = arith.addf %39, %56 : vector<4x128xf32>
    %c3_80 = arith.constant 3 : index
    %c0_81 = arith.constant 0 : index
    %c0_82 = arith.constant 0 : index
    %58 = vector.load %arg3[%c3_80, %c0_81, %c0_82] : memref<9x128x128xbf16, #tpu.memory_space<vmem>>, vector<1x128x128xbf16>
    %59 = vector.shape_cast %58 : vector<1x128x128xbf16> to vector<128x128xbf16>
    %c0_83 = arith.constant 0 : index
    %c2_84 = arith.constant 2 : index
    %c0_85 = arith.constant 0 : index
    %c0_86 = arith.constant 0 : index
    %c0_87 = arith.constant 0 : index
    %60 = vector.load %arg2[%c0_83, %c2_84, %c0_85, %c0_86, %c0_87] : memref<1x4x5x5x128xbf16, #tpu.memory_space<vmem>>, vector<1x1x1x4x128xbf16>
    %61 = vector.shape_cast %60 : vector<1x1x1x4x128xbf16> to vector<4x128xbf16>
    %cst_88 = arith.constant dense<0.000000e+00> : vector<4x128xf32>
    %62 = tpu.matmul %61, %59, %cst_88 {dimension_numbers = #tpu.dot_dimension_numbers<[1], [0], [0], [1], [0, 0, 1, 1], [], []>} : vector<4x128xbf16>, vector<128x128xbf16>, vector<4x128xf32> -> vector<4x128xf32>
    %63 = arith.addf %45, %62 : vector<4x128xf32>
    %c0_89 = arith.constant 0 : index
    %c2_90 = arith.constant 2 : index
    %c1_91 = arith.constant 1 : index
    %c0_92 = arith.constant 0 : index
    %c0_93 = arith.constant 0 : index
    %64 = vector.load %arg2[%c0_89, %c2_90, %c1_91, %c0_92, %c0_93] : memref<1x4x5x5x128xbf16, #tpu.memory_space<vmem>>, vector<1x1x1x4x128xbf16>
    %65 = vector.shape_cast %64 : vector<1x1x1x4x128xbf16> to vector<4x128xbf16>
    %cst_94 = arith.constant dense<0.000000e+00> : vector<4x128xf32>
    %66 = tpu.matmul %65, %59, %cst_94 {dimension_numbers = #tpu.dot_dimension_numbers<[1], [0], [0], [1], [0, 0, 1, 1], [], []>} : vector<4x128xbf16>, vector<128x128xbf16>, vector<4x128xf32> -> vector<4x128xf32>
    %67 = arith.addf %49, %66 : vector<4x128xf32>
    %c0_95 = arith.constant 0 : index
    %c2_96 = arith.constant 2 : index
    %c2_97 = arith.constant 2 : index
    %c0_98 = arith.constant 0 : index
    %c0_99 = arith.constant 0 : index
    %68 = vector.load %arg2[%c0_95, %c2_96, %c2_97, %c0_98, %c0_99] : memref<1x4x5x5x128xbf16, #tpu.memory_space<vmem>>, vector<1x1x1x4x128xbf16>
    %69 = vector.shape_cast %68 : vector<1x1x1x4x128xbf16> to vector<4x128xbf16>
    %cst_100 = arith.constant dense<0.000000e+00> : vector<4x128xf32>
    %70 = tpu.matmul %69, %59, %cst_100 {dimension_numbers = #tpu.dot_dimension_numbers<[1], [0], [0], [1], [0, 0, 1, 1], [], []>} : vector<4x128xbf16>, vector<128x128xbf16>, vector<4x128xf32> -> vector<4x128xf32>
    %71 = arith.addf %53, %70 : vector<4x128xf32>
    %c0_101 = arith.constant 0 : index
    %c2_102 = arith.constant 2 : index
    %c3_103 = arith.constant 3 : index
    %c0_104 = arith.constant 0 : index
    %c0_105 = arith.constant 0 : index
    %72 = vector.load %arg2[%c0_101, %c2_102, %c3_103, %c0_104, %c0_105] : memref<1x4x5x5x128xbf16, #tpu.memory_space<vmem>>, vector<1x1x1x4x128xbf16>
    %73 = vector.shape_cast %72 : vector<1x1x1x4x128xbf16> to vector<4x128xbf16>
    %cst_106 = arith.constant dense<0.000000e+00> : vector<4x128xf32>
    %74 = tpu.matmul %73, %59, %cst_106 {dimension_numbers = #tpu.dot_dimension_numbers<[1], [0], [0], [1], [0, 0, 1, 1], [], []>} : vector<4x128xbf16>, vector<128x128xbf16>, vector<4x128xf32> -> vector<4x128xf32>
    %75 = arith.addf %57, %74 : vector<4x128xf32>
    %c4 = arith.constant 4 : index
    %c0_107 = arith.constant 0 : index
    %c0_108 = arith.constant 0 : index
    %76 = vector.load %arg3[%c4, %c0_107, %c0_108] : memref<9x128x128xbf16, #tpu.memory_space<vmem>>, vector<1x128x128xbf16>
    %77 = vector.shape_cast %76 : vector<1x128x128xbf16> to vector<128x128xbf16>
    %c0_109 = arith.constant 0 : index
    %c3_110 = arith.constant 3 : index
    %c0_111 = arith.constant 0 : index
    %c0_112 = arith.constant 0 : index
    %c0_113 = arith.constant 0 : index
    %78 = vector.load %arg2[%c0_109, %c3_110, %c0_111, %c0_112, %c0_113] : memref<1x4x5x5x128xbf16, #tpu.memory_space<vmem>>, vector<1x1x1x4x128xbf16>
    %79 = vector.shape_cast %78 : vector<1x1x1x4x128xbf16> to vector<4x128xbf16>
    %cst_114 = arith.constant dense<0.000000e+00> : vector<4x128xf32>
    %80 = tpu.matmul %79, %77, %cst_114 {dimension_numbers = #tpu.dot_dimension_numbers<[1], [0], [0], [1], [0, 0, 1, 1], [], []>} : vector<4x128xbf16>, vector<128x128xbf16>, vector<4x128xf32> -> vector<4x128xf32>
    %81 = arith.addf %63, %80 : vector<4x128xf32>
    %c0_115 = arith.constant 0 : index
    %c3_116 = arith.constant 3 : index
    %c1_117 = arith.constant 1 : index
    %c0_118 = arith.constant 0 : index
    %c0_119 = arith.constant 0 : index
    %82 = vector.load %arg2[%c0_115, %c3_116, %c1_117, %c0_118, %c0_119] : memref<1x4x5x5x128xbf16, #tpu.memory_space<vmem>>, vector<1x1x1x4x128xbf16>
    %83 = vector.shape_cast %82 : vector<1x1x1x4x128xbf16> to vector<4x128xbf16>
    %cst_120 = arith.constant dense<0.000000e+00> : vector<4x128xf32>
    %84 = tpu.matmul %83, %77, %cst_120 {dimension_numbers = #tpu.dot_dimension_numbers<[1], [0], [0], [1], [0, 0, 1, 1], [], []>} : vector<4x128xbf16>, vector<128x128xbf16>, vector<4x128xf32> -> vector<4x128xf32>
    %85 = arith.addf %67, %84 : vector<4x128xf32>
    %c0_121 = arith.constant 0 : index
    %c3_122 = arith.constant 3 : index
    %c2_123 = arith.constant 2 : index
    %c0_124 = arith.constant 0 : index
    %c0_125 = arith.constant 0 : index
    %86 = vector.load %arg2[%c0_121, %c3_122, %c2_123, %c0_124, %c0_125] : memref<1x4x5x5x128xbf16, #tpu.memory_space<vmem>>, vector<1x1x1x4x128xbf16>
    %87 = vector.shape_cast %86 : vector<1x1x1x4x128xbf16> to vector<4x128xbf16>
    %cst_126 = arith.constant dense<0.000000e+00> : vector<4x128xf32>
    %88 = tpu.matmul %87, %77, %cst_126 {dimension_numbers = #tpu.dot_dimension_numbers<[1], [0], [0], [1], [0, 0, 1, 1], [], []>} : vector<4x128xbf16>, vector<128x128xbf16>, vector<4x128xf32> -> vector<4x128xf32>
    %89 = arith.addf %71, %88 : vector<4x128xf32>
    %c0_127 = arith.constant 0 : index
    %c3_128 = arith.constant 3 : index
    %c3_129 = arith.constant 3 : index
    %c0_130 = arith.constant 0 : index
    %c0_131 = arith.constant 0 : index
    %90 = vector.load %arg2[%c0_127, %c3_128, %c3_129, %c0_130, %c0_131] : memref<1x4x5x5x128xbf16, #tpu.memory_space<vmem>>, vector<1x1x1x4x128xbf16>
    %91 = vector.shape_cast %90 : vector<1x1x1x4x128xbf16> to vector<4x128xbf16>
    %cst_132 = arith.constant dense<0.000000e+00> : vector<4x128xf32>
    %92 = tpu.matmul %91, %77, %cst_132 {dimension_numbers = #tpu.dot_dimension_numbers<[1], [0], [0], [1], [0, 0, 1, 1], [], []>} : vector<4x128xbf16>, vector<128x128xbf16>, vector<4x128xf32> -> vector<4x128xf32>
    %93 = arith.addf %75, %92 : vector<4x128xf32>
    %c5 = arith.constant 5 : index
    %c0_133 = arith.constant 0 : index
    %c0_134 = arith.constant 0 : index
    %94 = vector.load %arg3[%c5, %c0_133, %c0_134] : memref<9x128x128xbf16, #tpu.memory_space<vmem>>, vector<1x128x128xbf16>
    %95 = vector.shape_cast %94 : vector<1x128x128xbf16> to vector<128x128xbf16>
    %c0_135 = arith.constant 0 : index
    %c2_136 = arith.constant 2 : index
    %c0_137 = arith.constant 0 : index
    %c1_138 = arith.constant 1 : index
    %c0_139 = arith.constant 0 : index
    %96 = vector.load %arg2[%c0_135, %c2_136, %c0_137, %c1_138, %c0_139] : memref<1x4x5x5x128xbf16, #tpu.memory_space<vmem>>, vector<1x1x1x4x128xbf16>
    %97 = vector.shape_cast %96 : vector<1x1x1x4x128xbf16> to vector<4x128xbf16>
    %cst_140 = arith.constant dense<0.000000e+00> : vector<4x128xf32>
    %98 = tpu.matmul %97, %95, %cst_140 {dimension_numbers = #tpu.dot_dimension_numbers<[1], [0], [0], [1], [0, 0, 1, 1], [], []>} : vector<4x128xbf16>, vector<128x128xbf16>, vector<4x128xf32> -> vector<4x128xf32>
    %99 = arith.addf %81, %98 : vector<4x128xf32>
    %c0_141 = arith.constant 0 : index
    %c2_142 = arith.constant 2 : index
    %c1_143 = arith.constant 1 : index
    %c1_144 = arith.constant 1 : index
    %c0_145 = arith.constant 0 : index
    %100 = vector.load %arg2[%c0_141, %c2_142, %c1_143, %c1_144, %c0_145] : memref<1x4x5x5x128xbf16, #tpu.memory_space<vmem>>, vector<1x1x1x4x128xbf16>
    %101 = vector.shape_cast %100 : vector<1x1x1x4x128xbf16> to vector<4x128xbf16>
    %cst_146 = arith.constant dense<0.000000e+00> : vector<4x128xf32>
    %102 = tpu.matmul %101, %95, %cst_146 {dimension_numbers = #tpu.dot_dimension_numbers<[1], [0], [0], [1], [0, 0, 1, 1], [], []>} : vector<4x128xbf16>, vector<128x128xbf16>, vector<4x128xf32> -> vector<4x128xf32>
    %103 = arith.addf %85, %102 : vector<4x128xf32>
    %c0_147 = arith.constant 0 : index
    %c2_148 = arith.constant 2 : index
    %c2_149 = arith.constant 2 : index
    %c1_150 = arith.constant 1 : index
    %c0_151 = arith.constant 0 : index
    %104 = vector.load %arg2[%c0_147, %c2_148, %c2_149, %c1_150, %c0_151] : memref<1x4x5x5x128xbf16, #tpu.memory_space<vmem>>, vector<1x1x1x4x128xbf16>
    %105 = vector.shape_cast %104 : vector<1x1x1x4x128xbf16> to vector<4x128xbf16>
    %cst_152 = arith.constant dense<0.000000e+00> : vector<4x128xf32>
    %106 = tpu.matmul %105, %95, %cst_152 {dimension_numbers = #tpu.dot_dimension_numbers<[1], [0], [0], [1], [0, 0, 1, 1], [], []>} : vector<4x128xbf16>, vector<128x128xbf16>, vector<4x128xf32> -> vector<4x128xf32>
    %107 = arith.addf %89, %106 : vector<4x128xf32>
    %c0_153 = arith.constant 0 : index
    %c2_154 = arith.constant 2 : index
    %c3_155 = arith.constant 3 : index
    %c1_156 = arith.constant 1 : index
    %c0_157 = arith.constant 0 : index
    %108 = vector.load %arg2[%c0_153, %c2_154, %c3_155, %c1_156, %c0_157] : memref<1x4x5x5x128xbf16, #tpu.memory_space<vmem>>, vector<1x1x1x4x128xbf16>
    %109 = vector.shape_cast %108 : vector<1x1x1x4x128xbf16> to vector<4x128xbf16>
    %cst_158 = arith.constant dense<0.000000e+00> : vector<4x128xf32>
    %110 = tpu.matmul %109, %95, %cst_158 {dimension_numbers = #tpu.dot_dimension_numbers<[1], [0], [0], [1], [0, 0, 1, 1], [], []>} : vector<4x128xbf16>, vector<128x128xbf16>, vector<4x128xf32> -> vector<4x128xf32>
    %111 = arith.addf %93, %110 : vector<4x128xf32>
    %c6 = arith.constant 6 : index
    %c0_159 = arith.constant 0 : index
    %c0_160 = arith.constant 0 : index
    %112 = vector.load %arg3[%c6, %c0_159, %c0_160] : memref<9x128x128xbf16, #tpu.memory_space<vmem>>, vector<1x128x128xbf16>
    %113 = vector.shape_cast %112 : vector<1x128x128xbf16> to vector<128x128xbf16>
    %c0_161 = arith.constant 0 : index
    %c0_162 = arith.constant 0 : index
    %c1_163 = arith.constant 1 : index
    %c0_164 = arith.constant 0 : index
    %c0_165 = arith.constant 0 : index
    %114 = vector.load %arg2[%c0_161, %c0_162, %c1_163, %c0_164, %c0_165] : memref<1x4x5x5x128xbf16, #tpu.memory_space<vmem>>, vector<1x1x1x4x128xbf16>
    %115 = vector.shape_cast %114 : vector<1x1x1x4x128xbf16> to vector<4x128xbf16>
    %cst_166 = arith.constant dense<0.000000e+00> : vector<4x128xf32>
    %116 = tpu.matmul %115, %113, %cst_166 {dimension_numbers = #tpu.dot_dimension_numbers<[1], [0], [0], [1], [0, 0, 1, 1], [], []>} : vector<4x128xbf16>, vector<128x128xbf16>, vector<4x128xf32> -> vector<4x128xf32>
    %117 = arith.addf %99, %116 : vector<4x128xf32>
    %c0_167 = arith.constant 0 : index
    %c0_168 = arith.constant 0 : index
    %c2_169 = arith.constant 2 : index
    %c0_170 = arith.constant 0 : index
    %c0_171 = arith.constant 0 : index
    %118 = vector.load %arg2[%c0_167, %c0_168, %c2_169, %c0_170, %c0_171] : memref<1x4x5x5x128xbf16, #tpu.memory_space<vmem>>, vector<1x1x1x4x128xbf16>
    %119 = vector.shape_cast %118 : vector<1x1x1x4x128xbf16> to vector<4x128xbf16>
    %cst_172 = arith.constant dense<0.000000e+00> : vector<4x128xf32>
    %120 = tpu.matmul %119, %113, %cst_172 {dimension_numbers = #tpu.dot_dimension_numbers<[1], [0], [0], [1], [0, 0, 1, 1], [], []>} : vector<4x128xbf16>, vector<128x128xbf16>, vector<4x128xf32> -> vector<4x128xf32>
    %121 = arith.addf %103, %120 : vector<4x128xf32>
    %c0_173 = arith.constant 0 : index
    %c0_174 = arith.constant 0 : index
    %c3_175 = arith.constant 3 : index
    %c0_176 = arith.constant 0 : index
    %c0_177 = arith.constant 0 : index
    %122 = vector.load %arg2[%c0_173, %c0_174, %c3_175, %c0_176, %c0_177] : memref<1x4x5x5x128xbf16, #tpu.memory_space<vmem>>, vector<1x1x1x4x128xbf16>
    %123 = vector.shape_cast %122 : vector<1x1x1x4x128xbf16> to vector<4x128xbf16>
    %cst_178 = arith.constant dense<0.000000e+00> : vector<4x128xf32>
    %124 = tpu.matmul %123, %113, %cst_178 {dimension_numbers = #tpu.dot_dimension_numbers<[1], [0], [0], [1], [0, 0, 1, 1], [], []>} : vector<4x128xbf16>, vector<128x128xbf16>, vector<4x128xf32> -> vector<4x128xf32>
    %125 = arith.addf %107, %124 : vector<4x128xf32>
    %c0_179 = arith.constant 0 : index
    %c0_180 = arith.constant 0 : index
    %c4_181 = arith.constant 4 : index
    %c0_182 = arith.constant 0 : index
    %c0_183 = arith.constant 0 : index
    %126 = vector.load %arg2[%c0_179, %c0_180, %c4_181, %c0_182, %c0_183] : memref<1x4x5x5x128xbf16, #tpu.memory_space<vmem>>, vector<1x1x1x4x128xbf16>
    %127 = vector.shape_cast %126 : vector<1x1x1x4x128xbf16> to vector<4x128xbf16>
    %cst_184 = arith.constant dense<0.000000e+00> : vector<4x128xf32>
    %128 = tpu.matmul %127, %113, %cst_184 {dimension_numbers = #tpu.dot_dimension_numbers<[1], [0], [0], [1], [0, 0, 1, 1], [], []>} : vector<4x128xbf16>, vector<128x128xbf16>, vector<4x128xf32> -> vector<4x128xf32>
    %129 = arith.addf %111, %128 : vector<4x128xf32>
    %c7 = arith.constant 7 : index
    %c0_185 = arith.constant 0 : index
    %c0_186 = arith.constant 0 : index
    %130 = vector.load %arg3[%c7, %c0_185, %c0_186] : memref<9x128x128xbf16, #tpu.memory_space<vmem>>, vector<1x128x128xbf16>
    %131 = vector.shape_cast %130 : vector<1x128x128xbf16> to vector<128x128xbf16>
    %c0_187 = arith.constant 0 : index
    %c1_188 = arith.constant 1 : index
    %c1_189 = arith.constant 1 : index
    %c0_190 = arith.constant 0 : index
    %c0_191 = arith.constant 0 : index
    %132 = vector.load %arg2[%c0_187, %c1_188, %c1_189, %c0_190, %c0_191] : memref<1x4x5x5x128xbf16, #tpu.memory_space<vmem>>, vector<1x1x1x4x128xbf16>
    %133 = vector.shape_cast %132 : vector<1x1x1x4x128xbf16> to vector<4x128xbf16>
    %cst_192 = arith.constant dense<0.000000e+00> : vector<4x128xf32>
    %134 = tpu.matmul %133, %131, %cst_192 {dimension_numbers = #tpu.dot_dimension_numbers<[1], [0], [0], [1], [0, 0, 1, 1], [], []>} : vector<4x128xbf16>, vector<128x128xbf16>, vector<4x128xf32> -> vector<4x128xf32>
    %135 = arith.addf %117, %134 : vector<4x128xf32>
    %c0_193 = arith.constant 0 : index
    %c1_194 = arith.constant 1 : index
    %c2_195 = arith.constant 2 : index
    %c0_196 = arith.constant 0 : index
    %c0_197 = arith.constant 0 : index
    %136 = vector.load %arg2[%c0_193, %c1_194, %c2_195, %c0_196, %c0_197] : memref<1x4x5x5x128xbf16, #tpu.memory_space<vmem>>, vector<1x1x1x4x128xbf16>
    %137 = vector.shape_cast %136 : vector<1x1x1x4x128xbf16> to vector<4x128xbf16>
    %cst_198 = arith.constant dense<0.000000e+00> : vector<4x128xf32>
    %138 = tpu.matmul %137, %131, %cst_198 {dimension_numbers = #tpu.dot_dimension_numbers<[1], [0], [0], [1], [0, 0, 1, 1], [], []>} : vector<4x128xbf16>, vector<128x128xbf16>, vector<4x128xf32> -> vector<4x128xf32>
    %139 = arith.addf %121, %138 : vector<4x128xf32>
    %c0_199 = arith.constant 0 : index
    %c1_200 = arith.constant 1 : index
    %c3_201 = arith.constant 3 : index
    %c0_202 = arith.constant 0 : index
    %c0_203 = arith.constant 0 : index
    %140 = vector.load %arg2[%c0_199, %c1_200, %c3_201, %c0_202, %c0_203] : memref<1x4x5x5x128xbf16, #tpu.memory_space<vmem>>, vector<1x1x1x4x128xbf16>
    %141 = vector.shape_cast %140 : vector<1x1x1x4x128xbf16> to vector<4x128xbf16>
    %cst_204 = arith.constant dense<0.000000e+00> : vector<4x128xf32>
    %142 = tpu.matmul %141, %131, %cst_204 {dimension_numbers = #tpu.dot_dimension_numbers<[1], [0], [0], [1], [0, 0, 1, 1], [], []>} : vector<4x128xbf16>, vector<128x128xbf16>, vector<4x128xf32> -> vector<4x128xf32>
    %143 = arith.addf %125, %142 : vector<4x128xf32>
    %c0_205 = arith.constant 0 : index
    %c1_206 = arith.constant 1 : index
    %c4_207 = arith.constant 4 : index
    %c0_208 = arith.constant 0 : index
    %c0_209 = arith.constant 0 : index
    %144 = vector.load %arg2[%c0_205, %c1_206, %c4_207, %c0_208, %c0_209] : memref<1x4x5x5x128xbf16, #tpu.memory_space<vmem>>, vector<1x1x1x4x128xbf16>
    %145 = vector.shape_cast %144 : vector<1x1x1x4x128xbf16> to vector<4x128xbf16>
    %cst_210 = arith.constant dense<0.000000e+00> : vector<4x128xf32>
    %146 = tpu.matmul %145, %131, %cst_210 {dimension_numbers = #tpu.dot_dimension_numbers<[1], [0], [0], [1], [0, 0, 1, 1], [], []>} : vector<4x128xbf16>, vector<128x128xbf16>, vector<4x128xf32> -> vector<4x128xf32>
    %147 = arith.addf %129, %146 : vector<4x128xf32>
    %c8 = arith.constant 8 : index
    %c0_211 = arith.constant 0 : index
    %c0_212 = arith.constant 0 : index
    %148 = vector.load %arg3[%c8, %c0_211, %c0_212] : memref<9x128x128xbf16, #tpu.memory_space<vmem>>, vector<1x128x128xbf16>
    %149 = vector.shape_cast %148 : vector<1x128x128xbf16> to vector<128x128xbf16>
    %c0_213 = arith.constant 0 : index
    %c0_214 = arith.constant 0 : index
    %c1_215 = arith.constant 1 : index
    %c1_216 = arith.constant 1 : index
    %c0_217 = arith.constant 0 : index
    %150 = vector.load %arg2[%c0_213, %c0_214, %c1_215, %c1_216, %c0_217] : memref<1x4x5x5x128xbf16, #tpu.memory_space<vmem>>, vector<1x1x1x4x128xbf16>
    %151 = vector.shape_cast %150 : vector<1x1x1x4x128xbf16> to vector<4x128xbf16>
    %cst_218 = arith.constant dense<0.000000e+00> : vector<4x128xf32>
    %152 = tpu.matmul %151, %149, %cst_218 {dimension_numbers = #tpu.dot_dimension_numbers<[1], [0], [0], [1], [0, 0, 1, 1], [], []>} : vector<4x128xbf16>, vector<128x128xbf16>, vector<4x128xf32> -> vector<4x128xf32>
    %153 = arith.addf %135, %152 : vector<4x128xf32>
    %c0_219 = arith.constant 0 : index
    %c0_220 = arith.constant 0 : index
    %c2_221 = arith.constant 2 : index
    %c1_222 = arith.constant 1 : index
    %c0_223 = arith.constant 0 : index
    %154 = vector.load %arg2[%c0_219, %c0_220, %c2_221, %c1_222, %c0_223] : memref<1x4x5x5x128xbf16, #tpu.memory_space<vmem>>, vector<1x1x1x4x128xbf16>
    %155 = vector.shape_cast %154 : vector<1x1x1x4x128xbf16> to vector<4x128xbf16>
    %cst_224 = arith.constant dense<0.000000e+00> : vector<4x128xf32>
    %156 = tpu.matmul %155, %149, %cst_224 {dimension_numbers = #tpu.dot_dimension_numbers<[1], [0], [0], [1], [0, 0, 1, 1], [], []>} : vector<4x128xbf16>, vector<128x128xbf16>, vector<4x128xf32> -> vector<4x128xf32>
    %157 = arith.addf %139, %156 : vector<4x128xf32>
    %c0_225 = arith.constant 0 : index
    %c0_226 = arith.constant 0 : index
    %c3_227 = arith.constant 3 : index
    %c1_228 = arith.constant 1 : index
    %c0_229 = arith.constant 0 : index
    %158 = vector.load %arg2[%c0_225, %c0_226, %c3_227, %c1_228, %c0_229] : memref<1x4x5x5x128xbf16, #tpu.memory_space<vmem>>, vector<1x1x1x4x128xbf16>
    %159 = vector.shape_cast %158 : vector<1x1x1x4x128xbf16> to vector<4x128xbf16>
    %cst_230 = arith.constant dense<0.000000e+00> : vector<4x128xf32>
    %160 = tpu.matmul %159, %149, %cst_230 {dimension_numbers = #tpu.dot_dimension_numbers<[1], [0], [0], [1], [0, 0, 1, 1], [], []>} : vector<4x128xbf16>, vector<128x128xbf16>, vector<4x128xf32> -> vector<4x128xf32>
    %161 = arith.addf %143, %160 : vector<4x128xf32>
    %c0_231 = arith.constant 0 : index
    %c0_232 = arith.constant 0 : index
    %c4_233 = arith.constant 4 : index
    %c1_234 = arith.constant 1 : index
    %c0_235 = arith.constant 0 : index
    %162 = vector.load %arg2[%c0_231, %c0_232, %c4_233, %c1_234, %c0_235] : memref<1x4x5x5x128xbf16, #tpu.memory_space<vmem>>, vector<1x1x1x4x128xbf16>
    %163 = vector.shape_cast %162 : vector<1x1x1x4x128xbf16> to vector<4x128xbf16>
    %cst_236 = arith.constant dense<0.000000e+00> : vector<4x128xf32>
    %164 = tpu.matmul %163, %149, %cst_236 {dimension_numbers = #tpu.dot_dimension_numbers<[1], [0], [0], [1], [0, 0, 1, 1], [], []>} : vector<4x128xbf16>, vector<128x128xbf16>, vector<4x128xf32> -> vector<4x128xf32>
    %165 = arith.addf %147, %164 : vector<4x128xf32>
    %c0_237 = arith.constant 0 : index
    %c0_238 = arith.constant 0 : index
    %166 = vector.load %arg4[%c0_237, %c0_238] : memref<1x128xf32, #tpu.memory_space<vmem>>, vector<1x128xf32>
    %167 = vector.broadcast %166 : vector<1x128xf32> to vector<4x128xf32>
    %168 = arith.addf %153, %167 : vector<4x128xf32>
    %cst_239 = arith.constant 0.000000e+00 : f32
    %169 = vector.broadcast %cst_239 : f32 to vector<4x128xf32>
    %170 = arith.maximumf %168, %169 : vector<4x128xf32>
    %171 = arith.truncf %170 : vector<4x128xf32> to vector<4x128xbf16>
    %c0_240 = arith.constant 0 : index
    %c0_241 = arith.constant 0 : index
    %c0_242 = arith.constant 0 : index
    %c0_243 = arith.constant 0 : index
    %172 = vector.load %arg5[%c0_240, %c0_241, %c0_242, %c0_243] : memref<1x4x4x128xbf16, #tpu.memory_space<vmem>>, vector<1x1x4x128xbf16>
    %173 = vector.shape_cast %172 : vector<1x1x4x128xbf16> to vector<4x128xbf16>
    %174 = vector.shape_cast %171 : vector<4x128xbf16> to vector<1x1x4x128xbf16>
    tpu.vector_store %arg5[%c0_240, %c0_241, %c0_242, %c0_243], %174 {strides = array<i32>} : memref<1x4x4x128xbf16, #tpu.memory_space<vmem>>, vector<1x1x4x128xbf16>,
    %175 = vector.broadcast %166 : vector<1x128xf32> to vector<4x128xf32>
    %176 = arith.addf %157, %175 : vector<4x128xf32>
    %cst_244 = arith.constant 0.000000e+00 : f32
    %177 = vector.broadcast %cst_244 : f32 to vector<4x128xf32>
    %178 = arith.maximumf %176, %177 : vector<4x128xf32>
    %179 = arith.truncf %178 : vector<4x128xf32> to vector<4x128xbf16>
    %c0_245 = arith.constant 0 : index
    %c1_246 = arith.constant 1 : index
    %c0_247 = arith.constant 0 : index
    %c0_248 = arith.constant 0 : index
    %180 = vector.load %arg5[%c0_245, %c1_246, %c0_247, %c0_248] : memref<1x4x4x128xbf16, #tpu.memory_space<vmem>>, vector<1x1x4x128xbf16>
    %181 = vector.shape_cast %180 : vector<1x1x4x128xbf16> to vector<4x128xbf16>
    %182 = vector.shape_cast %179 : vector<4x128xbf16> to vector<1x1x4x128xbf16>
    tpu.vector_store %arg5[%c0_245, %c1_246, %c0_247, %c0_248], %182 {strides = array<i32>} : memref<1x4x4x128xbf16, #tpu.memory_space<vmem>>, vector<1x1x4x128xbf16>,
    %183 = vector.broadcast %166 : vector<1x128xf32> to vector<4x128xf32>
    %184 = arith.addf %161, %183 : vector<4x128xf32>
    %cst_249 = arith.constant 0.000000e+00 : f32
    %185 = vector.broadcast %cst_249 : f32 to vector<4x128xf32>
    %186 = arith.maximumf %184, %185 : vector<4x128xf32>
    %187 = arith.truncf %186 : vector<4x128xf32> to vector<4x128xbf16>
    %c0_250 = arith.constant 0 : index
    %c2_251 = arith.constant 2 : index
    %c0_252 = arith.constant 0 : index
    %c0_253 = arith.constant 0 : index
    %188 = vector.load %arg5[%c0_250, %c2_251, %c0_252, %c0_253] : memref<1x4x4x128xbf16, #tpu.memory_space<vmem>>, vector<1x1x4x128xbf16>
    %189 = vector.shape_cast %188 : vector<1x1x4x128xbf16> to vector<4x128xbf16>
    %190 = vector.shape_cast %187 : vector<4x128xbf16> to vector<1x1x4x128xbf16>
    tpu.vector_store %arg5[%c0_250, %c2_251, %c0_252, %c0_253], %190 {strides = array<i32>} : memref<1x4x4x128xbf16, #tpu.memory_space<vmem>>, vector<1x1x4x128xbf16>,
    %191 = vector.broadcast %166 : vector<1x128xf32> to vector<4x128xf32>
    %192 = arith.addf %165, %191 : vector<4x128xf32>
    %cst_254 = arith.constant 0.000000e+00 : f32
    %193 = vector.broadcast %cst_254 : f32 to vector<4x128xf32>
    %194 = arith.maximumf %192, %193 : vector<4x128xf32>
    %195 = arith.truncf %194 : vector<4x128xf32> to vector<4x128xbf16>
    %c0_255 = arith.constant 0 : index
    %c3_256 = arith.constant 3 : index
    %c0_257 = arith.constant 0 : index
    %c0_258 = arith.constant 0 : index
    %196 = vector.load %arg5[%c0_255, %c3_256, %c0_257, %c0_258] : memref<1x4x4x128xbf16, #tpu.memory_space<vmem>>, vector<1x1x4x128xbf16>
    %197 = vector.shape_cast %196 : vector<1x1x4x128xbf16> to vector<4x128xbf16>
    %198 = vector.shape_cast %195 : vector<4x128xbf16> to vector<1x1x4x128xbf16>
    tpu.vector_store %arg5[%c0_255, %c3_256, %c0_257, %c0_258], %198 {strides = array<i32>} : memref<1x4x4x128xbf16, #tpu.memory_space<vmem>>, vector<1x1x4x128xbf16>,
    return
  }
  func.func @transform_0(%arg0: i32, %arg1: i32) -> (i32, i32, i32, i32, i32) {
    %c0_i32 = arith.constant 0 : i32
    %c0_i32_0 = arith.constant 0 : i32
    %c0_i32_1 = arith.constant 0 : i32
    %c0_i32_2 = arith.constant 0 : i32
    %c0_i32_3 = arith.constant 0 : i32
    return %arg0, %c0_i32, %c0_i32_0, %c0_i32_1, %c0_i32_2 : i32, i32, i32, i32, i32
  }
  func.func @transform_1(%arg0: i32, %arg1: i32) -> (i32, i32, i32) {
    %c0_i32 = arith.constant 0 : i32
    %c0_i32_0 = arith.constant 0 : i32
    %c0_i32_1 = arith.constant 0 : i32
    return %c0_i32, %c0_i32_0, %arg1 : i32, i32, i32
  }
  func.func @transform_2(%arg0: i32, %arg1: i32) -> (i32, i32) {
    %c0_i32 = arith.constant 0 : i32
    %c0_i32_0 = arith.constant 0 : i32
    return %c0_i32, %arg1 : i32, i32
  }
  func.func @transform_3(%arg0: i32, %arg1: i32) -> (i32, i32, i32, i32) {
    %c0_i32 = arith.constant 0 : i32
    %c0_i32_0 = arith.constant 0 : i32
    %c0_i32_1 = arith.constant 0 : i32
    return %arg0, %c0_i32, %c0_i32_0, %arg1 : i32, i32, i32, i32
  }
}

module attributes {stable_mosaic.version = 11 : i64} {
  func.func @_fused_mlp_kernel(%arg0: i32, %arg1: memref<2x2048xbf16, #tpu.memory_space<vmem>>, %arg2: memref<2048x128xf32, #tpu.memory_space<vmem>>, %arg3: memref<1x128xf32, #tpu.memory_space<vmem>>, %arg4: memref<128x128xf32, #tpu.memory_space<vmem>>, %arg5: memref<1x128xf32, #tpu.memory_space<vmem>>, %arg6: memref<2x128xf32, #tpu.memory_space<vmem>>) attributes {dimension_semantics = [#tpu.dimension_semantics<arbitrary>], iteration_bounds = array<i64: 1>, scalar_prefetch = 0 : i64, scratch_operands = 0 : i64, tpu.core_type = #tpu.core_type<tc>, window_params = [{pipeline_mode = #tpu.pipeline_mode<synchronous>, transform_indices = @transform_0, window_bounds = array<i64: 2, 2048>}, {pipeline_mode = #tpu.pipeline_mode<synchronous>, transform_indices = @transform_1, window_bounds = array<i64: 2048, 128>}, {pipeline_mode = #tpu.pipeline_mode<synchronous>, transform_indices = @transform_2, window_bounds = array<i64: 1, 128>}, {pipeline_mode = #tpu.pipeline_mode<synchronous>, transform_indices = @transform_3, window_bounds = array<i64: 128, 128>}, {pipeline_mode = #tpu.pipeline_mode<synchronous>, transform_indices = @transform_4, window_bounds = array<i64: 1, 128>}, {pipeline_mode = #tpu.pipeline_mode<synchronous>, transform_indices = @transform_5, window_bounds = array<i64: 2, 128>}]} {
    %c0 = arith.constant 0 : index
    %c0_0 = arith.constant 0 : index
    %0 = vector.load %arg1[%c0, %c0_0] : memref<2x2048xbf16, #tpu.memory_space<vmem>>, vector<2x2048xbf16>
    %1 = arith.extf %0 : vector<2x2048xbf16> to vector<2x2048xf32>
    %c0_1 = arith.constant 0 : index
    %c0_2 = arith.constant 0 : index
    %2 = vector.load %arg2[%c0_1, %c0_2] : memref<2048x128xf32, #tpu.memory_space<vmem>>, vector<2048x128xf32>
    %c0_3 = arith.constant 0 : index
    %c0_4 = arith.constant 0 : index
    %3 = vector.load %arg3[%c0_3, %c0_4] : memref<1x128xf32, #tpu.memory_space<vmem>>, vector<1x128xf32>
    %cst = arith.constant dense<0.000000e+00> : vector<2x128xf32>
    %4 = tpu.matmul %1, %2, %cst {dimension_numbers = #tpu.dot_dimension_numbers<[1], [0], [0], [1], [0, 0, 1, 1], [], []>} : vector<2x2048xf32>, vector<2048x128xf32>, vector<2x128xf32> -> vector<2x128xf32>
    %5 = vector.broadcast %3 : vector<1x128xf32> to vector<2x128xf32>
    %6 = arith.addf %4, %5 : vector<2x128xf32>
    %cst_5 = arith.constant 0.000000e+00 : f32
    %7 = vector.broadcast %cst_5 : f32 to vector<2x128xf32>
    %8 = arith.maximumf %6, %7 : vector<2x128xf32>
    %c0_6 = arith.constant 0 : index
    %c0_7 = arith.constant 0 : index
    %9 = vector.load %arg4[%c0_6, %c0_7] : memref<128x128xf32, #tpu.memory_space<vmem>>, vector<128x128xf32>
    %c0_8 = arith.constant 0 : index
    %c0_9 = arith.constant 0 : index
    %10 = vector.load %arg5[%c0_8, %c0_9] : memref<1x128xf32, #tpu.memory_space<vmem>>, vector<1x128xf32>
    %cst_10 = arith.constant dense<0.000000e+00> : vector<2x128xf32>
    %11 = tpu.matmul %8, %9, %cst_10 {dimension_numbers = #tpu.dot_dimension_numbers<[1], [0], [0], [1], [0, 0, 1, 1], [], []>} : vector<2x128xf32>, vector<128x128xf32>, vector<2x128xf32> -> vector<2x128xf32>
    %12 = vector.broadcast %10 : vector<1x128xf32> to vector<2x128xf32>
    %13 = arith.addf %11, %12 : vector<2x128xf32>
    %14 = math.tanh %13 : vector<2x128xf32>
    %c0_11 = arith.constant 0 : index
    %c0_12 = arith.constant 0 : index
    %15 = vector.load %arg6[%c0_11, %c0_12] : memref<2x128xf32, #tpu.memory_space<vmem>>, vector<2x128xf32>
    tpu.vector_store %arg6[%c0_11, %c0_12], %14 {strides = array<i32>} : memref<2x128xf32, #tpu.memory_space<vmem>>, vector<2x128xf32>,
    return
  }
  func.func @transform_0(%arg0: i32) -> (i32, i32) {
    %c0_i32 = arith.constant 0 : i32
    %c0_i32_0 = arith.constant 0 : i32
    %c0_i32_1 = arith.constant 0 : i32
    return %c0_i32, %c0_i32_0 : i32, i32
  }
  func.func @transform_1(%arg0: i32) -> (i32, i32) {
    %c0_i32 = arith.constant 0 : i32
    %c0_i32_0 = arith.constant 0 : i32
    %c0_i32_1 = arith.constant 0 : i32
    return %c0_i32, %c0_i32_0 : i32, i32
  }
  func.func @transform_2(%arg0: i32) -> (i32, i32) {
    %c0_i32 = arith.constant 0 : i32
    %c0_i32_0 = arith.constant 0 : i32
    %c0_i32_1 = arith.constant 0 : i32
    return %c0_i32, %c0_i32_0 : i32, i32
  }
  func.func @transform_3(%arg0: i32) -> (i32, i32) {
    %c0_i32 = arith.constant 0 : i32
    %c0_i32_0 = arith.constant 0 : i32
    %c0_i32_1 = arith.constant 0 : i32
    return %c0_i32, %c0_i32_0 : i32, i32
  }
  func.func @transform_4(%arg0: i32) -> (i32, i32) {
    %c0_i32 = arith.constant 0 : i32
    %c0_i32_0 = arith.constant 0 : i32
    %c0_i32_1 = arith.constant 0 : i32
    return %c0_i32, %c0_i32_0 : i32, i32
  }
  func.func @transform_5(%arg0: i32) -> (i32, i32) {
    %c0_i32 = arith.constant 0 : i32
    %c0_i32_0 = arith.constant 0 : i32
    %c0_i32_1 = arith.constant 0 : i32
    return %c0_i32, %c0_i32_0 : i32, i32
  }
}

</mosaic_0001>

<bundles_post_ra>
// kernel: cnn_forward.5
= control target key start
LH: loop header
LB: loop body
LE: loop exit
PB: predicated region body
PF: predicated region fallthrough
CT: control target
= control target key end

     0   :  { %v1410_v30 = vmov 1983009808   ;;  %v298_v32 = vlaneseq  ;;  %s2293_s0 = inlined_call_operand.vmem [shape: bf16[2,2048], index: 0, kind: input, shape index: {}]   ;;  %s2294_s1 = inlined_call_operand.vmem [shape: f32[2048,128], index: 1, kind: input, shape index: {}]   ;;  %s2295_s2 = inlined_call_operand.vmem [shape: f32[1,128], index: 2, kind: input, shape index: {}]   ;;  %s2296_s3 = inlined_call_operand.vmem [shape: f32[128,128], index: 3, kind: input, shape index: {}]   ;;  %s2297_s4 = inlined_call_operand.vmem [shape: f32[1,128], index: 4, kind: input, shape index: {}]   ;;  %s2298_s5 = inlined_call_operand.hbm [shape: f32[2,128], index: 5, kind: output, shape index: {}]  }
   0x1   :  { %v58_v0 = vld [vmem:[%s2294_s1 + $0xf8] sm:$0xff]  ;;  %v57_v4 = vld [vmem:[%s2294_s1 + $0xf0] sm:$0xff]  ;;  %v56_v8 = vld [vmem:[%s2294_s1 + $0xe8] sm:$0xff]  ;;  %v296_v31 = vunpack.c.l.s4 %v1410_v30 }
   0x2   :  { %v90_v1 = vld [vmem:[%s2294_s1 + $0x1f8] sm:$0xff]  ;;  %1050 = vmatprep.subr.mxu0 %v58_v0  ;;  %v89_v5 = vld [vmem:[%s2294_s1 + $0x1f0] sm:$0xff]  ;;  %v88_v9 = vld [vmem:[%s2294_s1 + $0x1e8] sm:$0xff]  ;;  %v299_v42 = vshrl.u32 %v298_v32, 7 }
   0x3   :  { %v42_v2 = vld [vmem:[%s2294_s1 + $0x78] sm:$0xff]  ;;  %1085 = vmatprep.subr.mxu1 %v90_v1  ;;  %v41_v6 = vld [vmem:[%s2294_s1 + $0x70] sm:$0xff]  ;;  %v40_v10 = vld [vmem:[%s2294_s1 + $0x68] sm:$0xff]  ;;  %v297_v41 = vunpack.c.0.s8 %v296_v31 }
   0x4   :  { %v74_v3 = vld [vmem:[%s2294_s1 + $0x178] sm:$0xff]  ;;  %1051 = vmatpush3.msra.mxu0 %v42_v2  ;;  %v73_v7 = vld [vmem:[%s2294_s1 + $0x170] sm:$0xff]  ;;  %v72_v11 = vld [vmem:[%s2294_s1 + $0x168] sm:$0xff] }
   0x5   :  { %1086 = vmatpush3.msra.mxu1 %v74_v3  ;;  %1052 = vmatprep.subr.mxu0 %v57_v4  ;;  %v55_v12 = vld [vmem:[%s2294_s1 + $0xe0] sm:$0xff]  ;;  %v54_v16 = vld [vmem:[%s2294_s1 + $0xd8] sm:$0xff]  ;;  %v53_v20 = vld [vmem:[%s2294_s1 + $0xd0] sm:$0xff]  ;;  %v1582_v51 = vsub.s32 %v297_v41, %v299_v42 }
   0x6   :  { %1087 = vmatprep.subr.mxu1 %v89_v5  ;;  %1053 = vmatpush3.msra.mxu0 %v41_v6  ;;  %v87_v13 = vld [vmem:[%s2294_s1 + $0x1e0] sm:$0xff]  ;;  %v86_v17 = vld [vmem:[%s2294_s1 + $0x1d8] sm:$0xff]  ;;  %v85_v21 = vld [vmem:[%s2294_s1 + $0x1d0] sm:$0xff] }
   0x7   :  { %1088 = vmatpush3.msra.mxu1 %v73_v7  ;;  %1054 = vmatprep.subr.mxu0 %v56_v8  ;;  %v39_v14 = vld [vmem:[%s2294_s1 + $0x60] sm:$0xff]  ;;  %v38_v18 = vld [vmem:[%s2294_s1 + $0x58] sm:$0xff]  ;;  %v37_v22 = vld [vmem:[%s2294_s1 + $0x50] sm:$0xff] }
   0x8   :  { %1089 = vmatprep.subr.mxu1 %v88_v9  ;;  %v71_v15 = vld [vmem:[%s2294_s1 + $0x160] sm:$0xff]  ;;  %1055 = vmatpush3.msra.mxu0 %v40_v10  ;;  %v70_v19 = vld [vmem:[%s2294_s1 + $0x158] sm:$0xff]  ;;  %v69_v23 = vld [vmem:[%s2294_s1 + $0x150] sm:$0xff] }
   0x9   :  { %1090 = vmatpush3.msra.mxu1 %v72_v11  ;;  %1056 = vmatprep.subr.mxu0 %v55_v12  ;;  %v52_v24 = vld [vmem:[%s2294_s1 + $0xc8] sm:$0xff]  ;;  %v51_v28 = vld [vmem:[%s2294_s1 + $0xc0] sm:$0xff]  ;;  %v50_v35 = vld [vmem:[%s2294_s1 + $0xb8] sm:$0xff] }
   0xa   :  { %1091 = vmatprep.subr.mxu1 %v87_v13  ;;  %1057 = vmatpush3.msra.mxu0 %v39_v14  ;;  %v84_v25 = vld [vmem:[%s2294_s1 + $0x1c8] sm:$0xff]  ;;  %v83_v29 = vld [vmem:[%s2294_s1 + $0x1c0] sm:$0xff]  ;;  %v82_v36 = vld [vmem:[%s2294_s1 + $0x1b8] sm:$0xff] }
   0xb   :  { %1092 = vmatpush3.msra.mxu1 %v71_v15  ;;  %1058 = vmatprep.subr.mxu0 %v54_v16  ;;  %v36_v26 = vld [vmem:[%s2294_s1 + $0x48] sm:$0xff]  ;;  %v35_v33 = vld [vmem:[%s2294_s1 + $0x40] sm:$0xff]  ;;  %v34_v37 = vld [vmem:[%s2294_s1 + $0x38] sm:$0xff] }
   0xc   :  { %1093 = vmatprep.subr.mxu1 %v86_v17  ;;  %1059 = vmatpush3.msra.mxu0 %v38_v18  ;;  %v68_v27 = vld [vmem:[%s2294_s1 + $0x148] sm:$0xff]  ;;  %v67_v34 = vld [vmem:[%s2294_s1 + $0x140] sm:$0xff]  ;;  %v66_v38 = vld [vmem:[%s2294_s1 + $0x138] sm:$0xff] }
   0xd   :  { %1094 = vmatpush3.msra.mxu1 %v70_v19  ;;  %1060 = vmatprep.subr.mxu0 %v53_v20  ;;  %v49_v39 = vld [vmem:[%s2294_s1 + $0xb0] sm:$0xff]  ;;  %v48_v45 = vld [vmem:[%s2294_s1 + $0xa8] sm:$0xff]  ;;  %v47_v49 = vld [vmem:[%s2294_s1 + $0xa0] sm:$0xff] }
   0xe   :  { %1095 = vmatprep.subr.mxu1 %v85_v21  ;;  %1061 = vmatpush3.msra.mxu0 %v37_v22  ;;  %v81_v40 = vld [vmem:[%s2294_s1 + $0x1b0] sm:$0xff]  ;;  %v80_v46 = vld [vmem:[%s2294_s1 + $0x1a8] sm:$0xff]  ;;  %v79_v50 = vld [vmem:[%s2294_s1 + $0x1a0] sm:$0xff] }
   0xf   :  { %1096 = vmatpush3.msra.mxu1 %v69_v23  ;;  %1062 = vmatprep.subr.mxu0 %v52_v24  ;;  %v33_v43 = vld [vmem:[%s2294_s1 + $0x30] sm:$0xff]  ;;  %v32_v47 = vld [vmem:[%s2294_s1 + $0x28] sm:$0xff]  ;;  %v31_v52 = vld [vmem:[%s2294_s1 + $0x20] sm:$0xff] }
  0x10   :  { %1097 = vmatprep.subr.mxu1 %v84_v25  ;;  %1063 = vmatpush3.msra.mxu0 %v36_v26  ;;  %v65_v44 = vld [vmem:[%s2294_s1 + $0x130] sm:$0xff]  ;;  %v64_v48 = vld [vmem:[%s2294_s1 + $0x128] sm:$0xff]  ;;  %v63_v53 = vld [vmem:[%s2294_s1 + $0x120] sm:$0xff] }
  0x11   :  { %1098 = vmatpush3.msra.mxu1 %v68_v27  ;;  %1064 = vmatprep.subr.mxu0 %v51_v28  ;;  %v1593_v54 = vld [vmem:[%s2293_s0] sm:$0xff]  ;;  %v46_v55 = vld [vmem:[%s2294_s1 + $0x98] sm:$0xff]  ;;  %v45_v60 = vld [vmem:[%s2294_s1 + $0x90] sm:$0xff] }
  0x12   :  { %1099 = vmatprep.subr.mxu1 %v83_v29  ;;  %1065 = vmatpush3.msra.mxu0 %v35_v33  ;;  %v78_v56 = vld [vmem:[%s2294_s1 + $0x198] sm:$0xff]  ;;  %v23_v57 = vunpack.c.l.bf16 %v1593_v54  ;;  %v77_v61 = vld [vmem:[%s2294_s1 + $0x190] sm:$0xff]  ;;  %v44_v2 = vld [vmem:[%s2294_s1 + $0x88] sm:$0xff] }
  0x13   :  { %1100 = vmatpush3.msra.mxu1 %v67_v34  ;;  %1066 = vmatprep.subr.mxu0 %v50_v35  ;;  %v30_v58 = vld [vmem:[%s2294_s1 + $0x18] sm:$0xff]  ;;  %v29_v0 = vld [vmem:[%s2294_s1 + $0x10] sm:$0xff]  ;;  %v76_v3 = vld [vmem:[%s2294_s1 + $0x188] sm:$0xff] }
  0x14   :  { %1101 = vmatprep.subr.mxu1 %v82_v36  ;;  %1067 = vmatpush3.msra.mxu0 %v34_v37  ;;  %v62_v59 = vld [vmem:[%s2294_s1 + $0x118] sm:$0xff]  ;;  %v301_v62 = vrot.slane %v23_v57, %v1582_v51  ;;  %v294_v63 = vcombine.high %v23_v57, %v23_v57  ;;  %v61_v1 = vld [vmem:[%s2294_s1 + $0x110] sm:$0xff]  ;;  %v28_v5 = vld [vmem:[%s2294_s1 + $0x8] sm:$0xff] }
  0x15   :  { %1102 = vmatpush3.msra.mxu1 %v66_v38  ;;  %1068 = vmatprep.subr.mxu0 %v49_v39  ;;  %v60_v6 = vld [vmem:[%s2294_s1 + $0x108] sm:$0xff]  ;;  %v43_v7 = vld [vmem:[%s2294_s1 + $0x80] sm:$0xff]  ;;  %v122_v13 = vld [vmem:[%s2294_s1 + $0x2f8] sm:$0xff] }
  0x16   :  { %1103 = vmatprep.subr.mxu1 %v81_v40  ;;  %1069 = vmatpush3.msra.mxu0 %v33_v43  ;;  %v308_v4 = vrot.slane %v294_v63, %v1582_v51  ;;  %v75_v8 = vld [vmem:[%s2294_s1 + $0x180] sm:$0xff]  ;;  %v309_v9 = vcombine.high %v301_v62, %v301_v62  ;;  %v154_v14 = vld [vmem:[%s2294_s1 + $0x3f8] sm:$0xff]  ;;  %v121_v17 = vld [vmem:[%s2294_s1 + $0x2f0] sm:$0xff] }
  0x17   :  { %1104 = vmatpush3.msra.mxu1 %v65_v44  ;;  %1070 = vmatprep.subr.mxu0 %v48_v45  ;;  %v27_v10 = vld [vmem:[%s2294_s1] sm:$0xff]  ;;  %v106_v15 = vld [vmem:[%s2294_s1 + $0x278] sm:$0xff]  ;;  %v153_v18 = vld [vmem:[%s2294_s1 + $0x3f0] sm:$0xff] }
  0x18   :  { %1105 = vmatprep.subr.mxu1 %v80_v46  ;;  %1071 = vmatpush3.msra.mxu0 %v32_v47  ;;  %v59_v11 = vld [vmem:[%s2294_s1 + $0x100] sm:$0xff]  ;;  %v310_v12 = vcombine.high %v308_v4, %v308_v4  ;;  %v138_v16 = vld [vmem:[%s2294_s1 + $0x378] sm:$0xff]  ;;  %v105_v19 = vld [vmem:[%s2294_s1 + $0x270] sm:$0xff] }
  0x19   :  { %1106 = vmatpush3.msra.mxu1 %v64_v48  ;;  %1072 = vmatprep.subr.mxu0 %v47_v49  ;;  %v137_v20 = vld [vmem:[%s2294_s1 + $0x370] sm:$0xff]  ;;  %v120_v21 = vld [vmem:[%s2294_s1 + $0x2e8] sm:$0xff]  ;;  %v119_v25 = vld [vmem:[%s2294_s1 + $0x2e0] sm:$0xff] }
  0x1a   :  { %1107 = vmatprep.subr.mxu1 %v79_v50  ;;  %1073 = vmatpush3.msra.mxu0 %v31_v52  ;;  %v152_v22 = vld [vmem:[%s2294_s1 + $0x3e8] sm:$0xff]  ;;  %v151_v26 = vld [vmem:[%s2294_s1 + $0x3e0] sm:$0xff]  ;;  %v118_v29 = vld [vmem:[%s2294_s1 + $0x2d8] sm:$0xff] }
  0x1b   :  { %1108 = vmatpush3.msra.mxu1 %v63_v53  ;;  %1074 = vmatprep.subr.mxu0 %v46_v55  ;;  %v104_v23 = vld [vmem:[%s2294_s1 + $0x268] sm:$0xff]  ;;  %v103_v27 = vld [vmem:[%s2294_s1 + $0x260] sm:$0xff]  ;;  %v150_v30 = vld [vmem:[%s2294_s1 + $0x3d8] sm:$0xff]  ;;  %v24_v55 = vunpack.c.h.bf16 %v1593_v54 }
  0x1c   :  { %1109 = vmatprep.subr.mxu1 %v78_v56  ;;  %1075 = vmatpush3.msra.mxu0 %v30_v58  ;;  %v136_v24 = vld [vmem:[%s2294_s1 + $0x368] sm:$0xff]  ;;  %v135_v28 = vld [vmem:[%s2294_s1 + $0x360] sm:$0xff]  ;;  %v102_v31 = vld [vmem:[%s2294_s1 + $0x258] sm:$0xff] }
  0x1d   :  { %1110 = vmatpush3.msra.mxu1 %v62_v59  ;;  %1076 = vmatprep.subr.mxu0 %v45_v60  ;;  %v134_v32 = vld [vmem:[%s2294_s1 + $0x358] sm:$0xff]  ;;  %v117_v33 = vld [vmem:[%s2294_s1 + $0x2d0] sm:$0xff]  ;;  %v116_v37 = vld [vmem:[%s2294_s1 + $0x2c8] sm:$0xff] }
  0x1e   :  { %1111 = vmatprep.subr.mxu1 %v77_v61  ;;  %1077 = vmatpush3.msra.mxu0 %v29_v0  ;;  %v149_v34 = vld [vmem:[%s2294_s1 + $0x3d0] sm:$0xff]  ;;  %v148_v38 = vld [vmem:[%s2294_s1 + $0x3c8] sm:$0xff]  ;;  %v115_v41 = vld [vmem:[%s2294_s1 + $0x2c0] sm:$0xff] }
  0x1f   :  { %1112 = vmatpush3.msra.mxu1 %v61_v1  ;;  %1078 = vmatprep.subr.mxu0 %v44_v2  ;;  %v101_v35 = vld [vmem:[%s2294_s1 + $0x250] sm:$0xff]  ;;  %v100_v39 = vld [vmem:[%s2294_s1 + $0x248] sm:$0xff]  ;;  %v147_v42 = vld [vmem:[%s2294_s1 + $0x3c0] sm:$0xff]  ;;  %v311_v1 = vcombine.high %v24_v55, %v24_v55 }
  0x20   :  { %1113 = vmatprep.subr.mxu1 %v76_v3  ;;  %1079 = vmatpush3.msra.mxu0 %v28_v5  ;;  %v133_v36 = vld [vmem:[%s2294_s1 + $0x350] sm:$0xff]  ;;  %v132_v40 = vld [vmem:[%s2294_s1 + $0x348] sm:$0xff]  ;;  %v99_v43 = vld [vmem:[%s2294_s1 + $0x240] sm:$0xff] }
  0x21   :  { %1114 = vmatpush3.msra.mxu1 %v60_v6  ;;  %1080 = vmatprep.subr.mxu0 %v43_v7  ;;  %v131_v44 = vld [vmem:[%s2294_s1 + $0x340] sm:$0xff]  ;;  %v114_v45 = vld [vmem:[%s2294_s1 + $0x2b8] sm:$0xff]  ;;  %v113_v49 = vld [vmem:[%s2294_s1 + $0x2b0] sm:$0xff]  ;;  %v318_v6 = vrot.slane %v24_v55, %v1582_v51 }
  0x22   :  { %1115 = vmatprep.subr.mxu1 %v75_v8  ;;  %1081 = vmatpush3.msra.mxu0 %v27_v10  ;;  %v146_v46 = vld [vmem:[%s2294_s1 + $0x3b8] sm:$0xff]  ;;  %v145_v50 = vld [vmem:[%s2294_s1 + $0x3b0] sm:$0xff]  ;;  %v112_v56 = vld [vmem:[%s2294_s1 + $0x2a8] sm:$0xff] }
  0x23   :  { %442 = vmatprep.mubr.f32.mxu0 %v309_v9  ;;  %1116 = vmatpush3.msra.mxu1 %v59_v11  ;;  %v98_v47 = vld [vmem:[%s2294_s1 + $0x238] sm:$0xff]  ;;  %v97_v52 = vld [vmem:[%s2294_s1 + $0x230] sm:$0xff]  ;;  %v144_v57 = vld [vmem:[%s2294_s1 + $0x3a8] sm:$0xff]  ;;  %v325_v11 = vrot.slane %v311_v1, %v1582_v51 }
  0x24   :  { %443 = vmatmul.mubr.f32.vlgmr.msra.gmra.mxu0 %v301_v62  ;;  %512 = vmatprep.mubr.f32.mxu1 %v310_v12  ;;  %v130_v48 = vld [vmem:[%s2294_s1 + $0x338] sm:$0xff]  ;;  %v129_v53 = vld [vmem:[%s2294_s1 + $0x330] sm:$0xff]  ;;  %v96_v58 = vld [vmem:[%s2294_s1 + $0x228] sm:$0xff] }
  0x25   :  { %1120 = vmatprep.subr.mxu0 %v122_v13  ;;  %1155 = vmatprep.subr.mxu1 %v154_v14  ;;  %v128_v54 = vld [vmem:[%s2294_s1 + $0x328] sm:$0xff]  ;;  %v111_v59 = vld [vmem:[%s2294_s1 + $0x2a0] sm:$0xff]  ;;  %v110_v63 = vld [vmem:[%s2294_s1 + $0x298] sm:$0xff] }
  0x26   :  { %513 = vmatmul.mubr.f32.vlgmr.msra.gmra.mxu1 %v308_v4  ;;  %1121 = vmatpush3.msra.mxu0 %v106_v15  ;;  %v143_v60 = vld [vmem:[%s2294_s1 + $0x3a0] sm:$0xff]  ;;  %v142_v0 = vld [vmem:[%s2294_s1 + $0x398] sm:$0xff]  ;;  %v109_v4 = vld [vmem:[%s2294_s1 + $0x290] sm:$0xff] }
  0x27   :  { %1156 = vmatpush3.msra.mxu1 %v138_v16  ;;  %1122 = vmatprep.subr.mxu0 %v121_v17  ;;  %v95_v61 = vld [vmem:[%s2294_s1 + $0x220] sm:$0xff]  ;;  %v94_v2 = vld [vmem:[%s2294_s1 + $0x218] sm:$0xff]  ;;  %v141_v5 = vld [vmem:[%s2294_s1 + $0x390] sm:$0xff]  ;;  %v326_v16 = vcombine.high %v318_v6, %v318_v6 }
  0x28   :  { %1157 = vmatprep.subr.mxu1 %v153_v18  ;;  %1123 = vmatpush3.msra.mxu0 %v105_v19  ;;  %v127_v62 = vld [vmem:[%s2294_s1 + $0x320] sm:$0xff]  ;;  %v126_v3 = vld [vmem:[%s2294_s1 + $0x318] sm:$0xff]  ;;  %v93_v7 = vld [vmem:[%s2294_s1 + $0x210] sm:$0xff]  ;;  %v327_v19 = vcombine.high %v325_v11, %v325_v11 }
  0x29   :  { %1158 = vmatpush3.msra.mxu1 %v137_v20  ;;  %1124 = vmatprep.subr.mxu0 %v120_v21  ;;  %v125_v8 = vld [vmem:[%s2294_s1 + $0x310] sm:$0xff]  ;;  %v108_v9 = vld [vmem:[%s2294_s1 + $0x288] sm:$0xff]  ;;  %v107_v14 = vld [vmem:[%s2294_s1 + $0x280] sm:$0xff] }
  0x2a   :  { %1159 = vmatprep.subr.mxu1 %v152_v22  ;;  %1125 = vmatpush3.msra.mxu0 %v104_v23  ;;  %v140_v10 = vld [vmem:[%s2294_s1 + $0x388] sm:$0xff]  ;;  %v139_v15 = vld [vmem:[%s2294_s1 + $0x380] sm:$0xff]  ;;  %v186_v20 = vld [vmem:[%s2294_s1 + $0x4f8] sm:$0xff] }
  0x2b   :  { %1160 = vmatpush3.msra.mxu1 %v136_v24  ;;  %1126 = vmatprep.subr.mxu0 %v119_v25  ;;  %v92_v12 = vld [vmem:[%s2294_s1 + $0x208] sm:$0xff]  ;;  %v91_v17 = vld [vmem:[%s2294_s1 + $0x200] sm:$0xff]  ;;  %v218_v21 = vld [vmem:[%s2294_s1 + $0x5f8] sm:$0xff] }
  0x2c   :  { %1161 = vmatprep.subr.mxu1 %v151_v26  ;;  %1127 = vmatpush3.msra.mxu0 %v103_v27  ;;  %v124_v13 = vld [vmem:[%s2294_s1 + $0x308] sm:$0xff]  ;;  %v123_v18 = vld [vmem:[%s2294_s1 + $0x300] sm:$0xff]  ;;  %v170_v22 = vld [vmem:[%s2294_s1 + $0x478] sm:$0xff] }
  0x2d   :  { %1162 = vmatpush3.msra.mxu1 %v135_v28  ;;  %1128 = vmatprep.subr.mxu0 %v118_v29  ;;  %v202_v23 = vld [vmem:[%s2294_s1 + $0x578] sm:$0xff]  ;;  %v185_v24 = vld [vmem:[%s2294_s1 + $0x4f0] sm:$0xff]  ;;  %v184_v28 = vld [vmem:[%s2294_s1 + $0x4e8] sm:$0xff] }
  0x2e   :  { %1163 = vmatprep.subr.mxu1 %v150_v30  ;;  %1129 = vmatpush3.msra.mxu0 %v102_v31  ;;  %v217_v25 = vld [vmem:[%s2294_s1 + $0x5f0] sm:$0xff]  ;;  %v216_v29 = vld [vmem:[%s2294_s1 + $0x5e8] sm:$0xff]  ;;  %v210_v55 = vld [vmem:[%s2294_s1 + $0x5b8] sm:$0xff] }
  0x2f   :  { %1164 = vmatpush3.msra.mxu1 %v134_v32  ;;  %1130 = vmatprep.subr.mxu0 %v117_v33  ;;  %v169_v26 = vld [vmem:[%s2294_s1 + $0x470] sm:$0xff]  ;;  %v168_v30 = vld [vmem:[%s2294_s1 + $0x468] sm:$0xff]  ;;  %v183_v32 = vld [vmem:[%s2294_s1 + $0x4e0] sm:$0xff] }
  0x30   :  { %1165 = vmatprep.subr.mxu1 %v149_v34  ;;  %1131 = vmatpush3.msra.mxu0 %v101_v35  ;;  %v201_v27 = vld [vmem:[%s2294_s1 + $0x570] sm:$0xff]  ;;  %v200_v31 = vld [vmem:[%s2294_s1 + $0x568] sm:$0xff]  ;;  %v215_v33 = vld [vmem:[%s2294_s1 + $0x5e0] sm:$0xff] }
  0x31   :  { %1166 = vmatpush3.msra.mxu1 %v133_v36  ;;  %1132 = vmatprep.subr.mxu0 %v116_v37  ;;  %v167_v34 = vld [vmem:[%s2294_s1 + $0x460] sm:$0xff]  ;;  %v182_v36 = vld [vmem:[%s2294_s1 + $0x4d8] sm:$0xff] }
  0x32   :  { %1167 = vmatprep.subr.mxu1 %v148_v38  ;;  %1133 = vmatpush3.msra.mxu0 %v100_v39  ;;  %v199_v35 = vld [vmem:[%s2294_s1 + $0x560] sm:$0xff]  ;;  %v214_v37 = vld [vmem:[%s2294_s1 + $0x5d8] sm:$0xff] }
  0x33   :  { %1168 = vmatpush3.msra.mxu1 %v132_v40  ;;  %1134 = vmatprep.subr.mxu0 %v115_v41  ;;  %v166_v38 = vld [vmem:[%s2294_s1 + $0x458] sm:$0xff]  ;;  %v181_v40 = vld [vmem:[%s2294_s1 + $0x4d0] sm:$0xff] }
  0x34   :  { %1169 = vmatprep.subr.mxu1 %v147_v42  ;;  %1135 = vmatpush3.msra.mxu0 %v99_v43  ;;  %v198_v39 = vld [vmem:[%s2294_s1 + $0x558] sm:$0xff]  ;;  %v213_v41 = vld [vmem:[%s2294_s1 + $0x5d0] sm:$0xff] }
  0x35   :  { %1170 = vmatpush3.msra.mxu1 %v131_v44  ;;  %1136 = vmatprep.subr.mxu0 %v114_v45  ;;  %v165_v42 = vld [vmem:[%s2294_s1 + $0x450] sm:$0xff]  ;;  %v180_v44 = vld [vmem:[%s2294_s1 + $0x4c8] sm:$0xff] }
  0x36   :  { %1171 = vmatprep.subr.mxu1 %v146_v46  ;;  %1137 = vmatpush3.msra.mxu0 %v98_v47  ;;  %v197_v43 = vld [vmem:[%s2294_s1 + $0x550] sm:$0xff]  ;;  %v212_v45 = vld [vmem:[%s2294_s1 + $0x5c8] sm:$0xff] }
  0x37   :  { %1172 = vmatpush3.msra.mxu1 %v130_v48  ;;  %1138 = vmatprep.subr.mxu0 %v113_v49  ;;  %v164_v46 = vld [vmem:[%s2294_s1 + $0x448] sm:$0xff]  ;;  %v179_v48 = vld [vmem:[%s2294_s1 + $0x4c0] sm:$0xff] }
  0x38   :  { %1173 = vmatprep.subr.mxu1 %v145_v50  ;;  %1139 = vmatpush3.msra.mxu0 %v97_v52  ;;  %v196_v47 = vld [vmem:[%s2294_s1 + $0x548] sm:$0xff]  ;;  %v211_v49 = vld [vmem:[%s2294_s1 + $0x5c0] sm:$0xff] }
  0x39   :  { %1174 = vmatpush3.msra.mxu1 %v129_v53  ;;  %1140 = vmatprep.subr.mxu0 %v112_v56  ;;  %v163_v50 = vld [vmem:[%s2294_s1 + $0x440] sm:$0xff]  ;;  %v178_v53 = vld [vmem:[%s2294_s1 + $0x4b8] sm:$0xff] }
  0x3a   :  { %1175 = vmatprep.subr.mxu1 %v144_v57  ;;  %1141 = vmatpush3.msra.mxu0 %v96_v58  ;;  %v195_v52 = vld [vmem:[%s2294_s1 + $0x540] sm:$0xff]  ;;  %v162_v56 = vld [vmem:[%s2294_s1 + $0x438] sm:$0xff]  ;;  %v1952_v58 = vld [vmem:[%s2293_s0 + $0x8] sm:$0xff] }
  0x3b   :  { %1176 = vmatpush3.msra.mxu1 %v128_v54  ;;  %1142 = vmatprep.subr.mxu0 %v111_v59  ;;  %v194_v57 = vld [vmem:[%s2294_s1 + $0x538] sm:$0xff]  ;;  %v177_v54 = vld [vmem:[%s2294_s1 + $0x4b0] sm:$0xff] }
  0x3c   :  { %1177 = vmatprep.subr.mxu1 %v143_v60  ;;  %1143 = vmatpush3.msra.mxu0 %v95_v61  ;;  %v209_v59 = vld [vmem:[%s2294_s1 + $0x5b0] sm:$0xff] }
  0x3d   :  { %1178 = vmatpush3.msra.mxu1 %v127_v62  ;;  %1144 = vmatprep.subr.mxu0 %v110_v63  ;;  %v161_v60 = vld [vmem:[%s2294_s1 + $0x430] sm:$0xff]  ;;  %v176_v62 = vld [vmem:[%s2294_s1 + $0x4a8] sm:$0xff] }
  0x3e   :  { %1179 = vmatprep.subr.mxu1 %v142_v0  ;;  %1145 = vmatpush3.msra.mxu0 %v94_v2  ;;  %v193_v61 = vld [vmem:[%s2294_s1 + $0x530] sm:$0xff]  ;;  %v208_v63 = vld [vmem:[%s2294_s1 + $0x5a8] sm:$0xff]  ;;  %v25_v0 = vunpack.c.l.bf16 %v1952_v58 }
  0x3f   :  { %1180 = vmatpush3.msra.mxu1 %v126_v3  ;;  %1146 = vmatprep.subr.mxu0 %v109_v4 }
  0x40   :  { %1181 = vmatprep.subr.mxu1 %v141_v5  ;;  %1147 = vmatpush3.msra.mxu0 %v93_v7 }
  0x41   :  { %1182 = vmatpush3.msra.mxu1 %v125_v8  ;;  %1148 = vmatprep.subr.mxu0 %v108_v9 }
  0x42   :  { %1183 = vmatprep.subr.mxu1 %v140_v10  ;;  %1149 = vmatpush3.msra.mxu0 %v92_v12 }
  0x43   :  { %1184 = vmatpush3.msra.mxu1 %v124_v13  ;;  %1150 = vmatprep.subr.mxu0 %v107_v14 }
  0x44   :  { %1185 = vmatprep.subr.mxu1 %v139_v15  ;;  %1151 = vmatpush3.msra.mxu0 %v91_v17 }
  0x45   :  { %582 = vmatprep.mubr.f32.mxu0 %v326_v16  ;;  %1186 = vmatpush3.msra.mxu1 %v123_v18 }
  0x46   :  { %583 = vmatmul.mubr.f32.vlgmr.msra.gmra.mxu0 %v318_v6  ;;  %652 = vmatprep.mubr.f32.mxu1 %v327_v19 }
  0x47   :  { %1190 = vmatprep.subr.mxu0 %v186_v20  ;;  %1225 = vmatprep.subr.mxu1 %v218_v21 }
  0x48   :  { %653 = vmatmul.mubr.f32.vlgmr.msra.gmra.mxu1 %v325_v11  ;;  %1191 = vmatpush3.msra.mxu0 %v170_v22 }
  0x49   :  { %1226 = vmatpush3.msra.mxu1 %v202_v23  ;;  %1192 = vmatprep.subr.mxu0 %v185_v24 }
  0x4a   :  { %1227 = vmatprep.subr.mxu1 %v217_v25  ;;  %1193 = vmatpush3.msra.mxu0 %v169_v26 }
  0x4b   :  { %1228 = vmatpush3.msra.mxu1 %v201_v27  ;;  %1194 = vmatprep.subr.mxu0 %v184_v28 }
  0x4c   :  { %1229 = vmatprep.subr.mxu1 %v216_v29  ;;  %1195 = vmatpush3.msra.mxu0 %v168_v30 }
  0x4d   :  { %1230 = vmatpush3.msra.mxu1 %v200_v31  ;;  %1196 = vmatprep.subr.mxu0 %v183_v32 }
  0x4e   :  { %1231 = vmatprep.subr.mxu1 %v215_v33  ;;  %1197 = vmatpush3.msra.mxu0 %v167_v34 }
  0x4f   :  { %1232 = vmatpush3.msra.mxu1 %v199_v35  ;;  %1198 = vmatprep.subr.mxu0 %v182_v36 }
  0x50   :  { %1233 = vmatprep.subr.mxu1 %v214_v37  ;;  %1199 = vmatpush3.msra.mxu0 %v166_v38 }
  0x51   :  { %1234 = vmatpush3.msra.mxu1 %v198_v39  ;;  %1200 = vmatprep.subr.mxu0 %v181_v40 }
  0x52   :  { %1235 = vmatprep.subr.mxu1 %v213_v41  ;;  %1201 = vmatpush3.msra.mxu0 %v165_v42 }
  0x53   :  { %1236 = vmatpush3.msra.mxu1 %v197_v43  ;;  %1202 = vmatprep.subr.mxu0 %v180_v44 }
  0x54   :  { %1237 = vmatprep.subr.mxu1 %v212_v45  ;;  %1203 = vmatpush3.msra.mxu0 %v164_v46 }
  0x55   :  { %1238 = vmatpush3.msra.mxu1 %v196_v47  ;;  %1204 = vmatprep.subr.mxu0 %v179_v48 }
  0x56   :  { %1239 = vmatprep.subr.mxu1 %v211_v49  ;;  %1205 = vmatpush3.msra.mxu0 %v163_v50 }
  0x57   :  { %1240 = vmatpush3.msra.mxu1 %v195_v52  ;;  %1206 = vmatprep.subr.mxu0 %v178_v53 }
  0x58   :  { %1241 = vmatprep.subr.mxu1 %v210_v55  ;;  %1207 = vmatpush3.msra.mxu0 %v162_v56 }
  0x59   :  { %1242 = vmatpush3.msra.mxu1 %v194_v57 }
  0x5a   :  { %10 = vsyncpa [#allocation3], 0  ;;  %1208 = vmatprep.subr.mxu0 %v177_v54  ;;  %1243 = vmatprep.subr.mxu1 %v209_v59  ;;  %v160_v1 = vld [vmem:[%s2294_s1 + $0x428] sm:$0xff]  ;;  %v175_v3 = vld [vmem:[%s2294_s1 + $0x4a0] sm:$0xff]  ;;  %v328_v9 = vcombine.high %v25_v0, %v25_v0  ;;  %v335_v14 = vrot.slane %v25_v0, %v1582_v51  ;;  %vm1412_vm0 = vmmov 0   ;;  %s1413_s0 = smov [#allocation2]  }
  0x5b   :  { %v192_v2 = vld [vmem:[%s2294_s1 + $0x528] sm:$0xff]  ;;  %1209 = vmatpush3.msra.mxu0 %v161_v60  ;;  %1244 = vmatpush3.msra.mxu1 %v193_v61  ;;  %v207_v4 = vld [vmem:[%s2294_s1 + $0x5a0] sm:$0xff]  ;;  %v174_v7 = vld [vmem:[%s2294_s1 + $0x498] sm:$0xff]  ;;  %s1040_s8 = sshll.u32 %s1413_s0, 4  ;;  %s1041_s8 = int_to_ptr.vmem [resolvable:$true] %s1040_s8 }
  0x5c   :  { %1210 = vmatprep.subr.mxu0 %v176_v62  ;;  %1245 = vmatprep.subr.mxu1 %v208_v63  ;;  %v159_v5 = vld [vmem:[%s2294_s1 + $0x420] sm:$0xff]  ;;  %v206_v8 = vld [vmem:[%s2294_s1 + $0x598] sm:$0xff]  ;;  %v173_v12 = vld [vmem:[%s2294_s1 + $0x490] sm:$0xff]  ;;  %v342_v19 = vrot.slane %v328_v9, %v1582_v51  ;;  %v343_v24 = vcombine.high %v335_v14, %v335_v14  ;;  %s1388_s9 = scalar_lea.vmem %s1041_s8, 32  ;;  %p1393_p1 = scmp.lt.s32.totalorder %s1041_s8, %s1041_s8 }
  0x5d   :  { %v191_v6 = vld [vmem:[%s2294_s1 + $0x520] sm:$0xff]  ;;  %1211 = vmatpush3.msra.mxu0 %v160_v1  ;;  %1246 = vmatpush3.msra.mxu1 %v192_v2  ;;  %v158_v10 = vld [vmem:[%s2294_s1 + $0x418] sm:$0xff]  ;;  %v205_v13 = vld [vmem:[%s2294_s1 + $0x590] sm:$0xff]  ;;  %p1389_p0 = scmp.ne.s32.totalorder %s1041_s8, %s1388_s9  ;;  %p1394_p2 = scmp.lt.s32.totalorder %s1388_s9, %s1388_s9 }
  0x5e   :  { %1212 = vmatprep.subr.mxu0 %v175_v3  ;;  %1247 = vmatprep.subr.mxu1 %v207_v4  ;;  %v190_v11 = vld [vmem:[%s2294_s1 + $0x518] sm:$0xff]  ;;  %v157_v15 = vld [vmem:[%s2294_s1 + $0x410] sm:$0xff]  ;;  %v172_v17 = vld [vmem:[%s2294_s1 + $0x488] sm:$0xff]  ;;  %v344_v27 = vcombine.high %v342_v19, %v342_v19 }
  0x5f   :  { %1213 = vmatpush3.msra.mxu0 %v159_v5  ;;  %1248 = vmatpush3.msra.mxu1 %v191_v6  ;;  %v189_v16 = vld [vmem:[%s2294_s1 + $0x510] sm:$0xff]  ;;  %v204_v18 = vld [vmem:[%s2294_s1 + $0x588] sm:$0xff]  ;;  %v171_v22 = vld [vmem:[%s2294_s1 + $0x480] sm:$0xff]  ;;  %v26_v6 = vunpack.c.h.bf16 %v1952_v58  ;;  %p1395_p3 = por %p1394_p2, %p1393_p1 }
  0x60   :  { %1214 = vmatprep.subr.mxu0 %v174_v7  ;;  %1249 = vmatprep.subr.mxu1 %v206_v8  ;;  %v156_v20 = vld [vmem:[%s2294_s1 + $0x408] sm:$0xff]  ;;  %v203_v23 = vld [vmem:[%s2294_s1 + $0x580] sm:$0xff]  ;;  %v250_v28 = vld [vmem:[%s2294_s1 + $0x6f8] sm:$0xff] }
  0x61   :  { %1215 = vmatpush3.msra.mxu0 %v158_v10  ;;  %1250 = vmatpush3.msra.mxu1 %v190_v11  ;;  %v188_v21 = vld [vmem:[%s2294_s1 + $0x508] sm:$0xff]  ;;  %v155_v25 = vld [vmem:[%s2294_s1 + $0x400] sm:$0xff]  ;;  %v282_v29 = vld [vmem:[%s2294_s1 + $0x7f8] sm:$0xff]  ;;  %p1396_p4 = pnand %p1395_p3, %p1389_p0 }
  0x62   :  { %1216 = vmatprep.subr.mxu0 %v173_v12  ;;  %1251 = vmatprep.subr.mxu1 %v205_v13  ;;  %v187_v26 = vld [vmem:[%s2294_s1 + $0x500] sm:$0xff]  ;;  %v234_v30 = vld [vmem:[%s2294_s1 + $0x678] sm:$0xff]  ;;  %v249_v32 = vld [vmem:[%s2294_s1 + $0x6f0] sm:$0xff] }
  0x63   :  { %1217 = vmatpush3.msra.mxu0 %v157_v15  ;;  %1252 = vmatpush3.msra.mxu1 %v189_v16  ;;  %v266_v31 = vld [vmem:[%s2294_s1 + $0x778] sm:$0xff]  ;;  %v281_v33 = vld [vmem:[%s2294_s1 + $0x7f0] sm:$0xff]  ;;  %v248_v36 = vld [vmem:[%s2294_s1 + $0x6e8] sm:$0xff] }
  0x64   :  { %1218 = vmatprep.subr.mxu0 %v172_v17  ;;  %1253 = vmatprep.subr.mxu1 %v204_v18  ;;  %v233_v34 = vld [vmem:[%s2294_s1 + $0x670] sm:$0xff]  ;;  %v280_v37 = vld [vmem:[%s2294_s1 + $0x7e8] sm:$0xff]  ;;  %v247_v40 = vld [vmem:[%s2294_s1 + $0x6e0] sm:$0xff] }
  0x65   :  { %1219 = vmatpush3.msra.mxu0 %v156_v20  ;;  %1254 = vmatpush3.msra.mxu1 %v188_v21  ;;  %v265_v35 = vld [vmem:[%s2294_s1 + $0x770] sm:$0xff]  ;;  %v232_v38 = vld [vmem:[%s2294_s1 + $0x668] sm:$0xff]  ;;  %v279_v41 = vld [vmem:[%s2294_s1 + $0x7e0] sm:$0xff]  ;;  %v352_v21 = vrot.slane %v26_v6, %v1582_v51 }
  0x66   :  { %1220 = vmatprep.subr.mxu0 %v171_v22  ;;  %1255 = vmatprep.subr.mxu1 %v203_v23  ;;  %v264_v39 = vld [vmem:[%s2294_s1 + $0x768] sm:$0xff]  ;;  %v231_v42 = vld [vmem:[%s2294_s1 + $0x660] sm:$0xff]  ;;  %v246_v44 = vld [vmem:[%s2294_s1 + $0x6d8] sm:$0xff] }
  0x67   :  { %1221 = vmatpush3.msra.mxu0 %v155_v25  ;;  %722 = vmatprep.mubr.f32.mxu0 %v343_v24  ;;  %v263_v43 = vld [vmem:[%s2294_s1 + $0x760] sm:$0xff]  ;;  %v278_v45 = vld [vmem:[%s2294_s1 + $0x7d8] sm:$0xff]  ;;  %v245_v48 = vld [vmem:[%s2294_s1 + $0x6d0] sm:$0xff] }
  0x68   :  { %1256 = vmatpush3.msra.mxu1 %v187_v26  ;;  %723 = vmatmul.mubr.f32.vlgmr.msra.gmra.mxu0 %v335_v14  ;;  %v230_v46 = vld [vmem:[%s2294_s1 + $0x658] sm:$0xff]  ;;  %v277_v49 = vld [vmem:[%s2294_s1 + $0x7d0] sm:$0xff]  ;;  %v244_v53 = vld [vmem:[%s2294_s1 + $0x6c8] sm:$0xff]  ;;  %v345_v14 = vcombine.high %v26_v6, %v26_v6 }
  0x69   :  { %792 = vmatprep.mubr.f32.mxu1 %v344_v27  ;;  %1260 = vmatprep.subr.mxu0 %v250_v28  ;;  %v262_v47 = vld [vmem:[%s2294_s1 + $0x758] sm:$0xff]  ;;  %v229_v50 = vld [vmem:[%s2294_s1 + $0x650] sm:$0xff]  ;;  %v276_v55 = vld [vmem:[%s2294_s1 + $0x7c8] sm:$0xff] }
  0x6a   :  { %1295 = vmatprep.subr.mxu1 %v282_v29  ;;  %793 = vmatmul.mubr.f32.vlgmr.msra.gmra.mxu1 %v342_v19  ;;  %v261_v52 = vld [vmem:[%s2294_s1 + $0x750] sm:$0xff]  ;;  %v228_v56 = vld [vmem:[%s2294_s1 + $0x648] sm:$0xff]  ;;  %v243_v54 = vld [vmem:[%s2294_s1 + $0x6c0] sm:$0xff]  ;;  %v359_v24 = vrot.slane %v345_v14, %v1582_v51 }
  0x6b   :  { %1261 = vmatpush3.msra.mxu0 %v234_v30  ;;  %1296 = vmatpush3.msra.mxu1 %v266_v31  ;;  %v260_v57 = vld [vmem:[%s2294_s1 + $0x748] sm:$0xff]  ;;  %v275_v59 = vld [vmem:[%s2294_s1 + $0x7c0] sm:$0xff]  ;;  %v242_v62 = vld [vmem:[%s2294_s1 + $0x6b8] sm:$0xff]  ;;  %v360_v30 = vcombine.high %v352_v21, %v352_v21 }
  0x6c   :  { %1262 = vmatprep.subr.mxu0 %v249_v32  ;;  %1297 = vmatprep.subr.mxu1 %v281_v33  ;;  %v227_v60 = vld [vmem:[%s2294_s1 + $0x640] sm:$0xff]  ;;  %v274_v63 = vld [vmem:[%s2294_s1 + $0x7b8] sm:$0xff]  ;;  %v241_v2 = vld [vmem:[%s2294_s1 + $0x6b0] sm:$0xff]  ;;  %v361_v32 = vcombine.high %v359_v24, %v359_v24 }
  0x6d   :  { %1263 = vmatpush3.msra.mxu0 %v233_v34  ;;  %1298 = vmatpush3.msra.mxu1 %v265_v35  ;;  %v259_v61 = vld [vmem:[%s2294_s1 + $0x740] sm:$0xff]  ;;  %v226_v0 = vld [vmem:[%s2294_s1 + $0x638] sm:$0xff]  ;;  %v273_v3 = vld [vmem:[%s2294_s1 + $0x7b0] sm:$0xff]  ;;  %v1411_v35 = vmov 0.0  }
  0x6e   :  { %1264 = vmatprep.subr.mxu0 %v248_v36  ;;  %1299 = vmatprep.subr.mxu1 %v280_v37  ;;  %v258_v1 = vld [vmem:[%s2294_s1 + $0x738] sm:$0xff]  ;;  %v225_v4 = vld [vmem:[%s2294_s1 + $0x630] sm:$0xff]  ;;  %v240_v7 = vld [vmem:[%s2294_s1 + $0x6a8] sm:$0xff] }
  0x6f   :  { %1265 = vmatpush3.msra.mxu0 %v232_v38  ;;  %1300 = vmatpush3.msra.mxu1 %v264_v39  ;;  %v257_v5 = vld [vmem:[%s2294_s1 + $0x730] sm:$0xff]  ;;  %v272_v8 = vld [vmem:[%s2294_s1 + $0x7a8] sm:$0xff]  ;;  %v239_v10 = vld [vmem:[%s2294_s1 + $0x6a0] sm:$0xff] }
  0x70   :  { %1266 = vmatprep.subr.mxu0 %v247_v40  ;;  %1301 = vmatprep.subr.mxu1 %v279_v41  ;;  %v224_v9 = vld [vmem:[%s2294_s1 + $0x628] sm:$0xff]  ;;  %v271_v11 = vld [vmem:[%s2294_s1 + $0x7a0] sm:$0xff]  ;;  %v238_v15 = vld [vmem:[%s2294_s1 + $0x698] sm:$0xff] }
  0x71   :  { %1267 = vmatpush3.msra.mxu0 %v231_v42  ;;  %1302 = vmatpush3.msra.mxu1 %v263_v43  ;;  %v256_v58 = vld [vmem:[%s2294_s1 + $0x728] sm:$0xff]  ;;  %v223_v12 = vld [vmem:[%s2294_s1 + $0x620] sm:$0xff]  ;;  %v270_v16 = vld [vmem:[%s2294_s1 + $0x798] sm:$0xff] }
  0x72   :  { %1268 = vmatprep.subr.mxu0 %v246_v44  ;;  %1303 = vmatprep.subr.mxu1 %v278_v45  ;;  %v255_v13 = vld [vmem:[%s2294_s1 + $0x720] sm:$0xff]  ;;  %v222_v17 = vld [vmem:[%s2294_s1 + $0x618] sm:$0xff]  ;;  %v237_v19 = vld [vmem:[%s2294_s1 + $0x690] sm:$0xff] }
  0x73   :  { %1269 = vmatpush3.msra.mxu0 %v230_v46  ;;  %1304 = vmatpush3.msra.mxu1 %v262_v47  ;;  %v254_v18 = vld [vmem:[%s2294_s1 + $0x718] sm:$0xff]  ;;  %v269_v20 = vld [vmem:[%s2294_s1 + $0x790] sm:$0xff]  ;;  %v236_v25 = vld [vmem:[%s2294_s1 + $0x688] sm:$0xff] }
  0x74   :  { %1270 = vmatprep.subr.mxu0 %v245_v48  ;;  %1305 = vmatprep.subr.mxu1 %v277_v49  ;;  %v221_v22 = vld [vmem:[%s2294_s1 + $0x610] sm:$0xff]  ;;  %v268_v26 = vld [vmem:[%s2294_s1 + $0x788] sm:$0xff]  ;;  %v235_v28 = vld [vmem:[%s2294_s1 + $0x680] sm:$0xff] }
  0x75   :  { %1271 = vmatpush3.msra.mxu0 %v229_v50  ;;  %1306 = vmatpush3.msra.mxu1 %v261_v52  ;;  %v253_v23 = vld [vmem:[%s2294_s1 + $0x710] sm:$0xff]  ;;  %v220_v27 = vld [vmem:[%s2294_s1 + $0x608] sm:$0xff]  ;;  %v267_v29 = vld [vmem:[%s2294_s1 + $0x780] sm:$0xff] }
  0x76   :  { %1272 = vmatprep.subr.mxu0 %v244_v53  ;;  %1307 = vmatprep.subr.mxu1 %v276_v55  ;;  %v252_v51 = vld [vmem:[%s2294_s1 + $0x708] sm:$0xff]  ;;  %v219_v31 = vld [vmem:[%s2294_s1 + $0x600] sm:$0xff]  ;;  %v954_v34 = vld [vmem:[%s2296_s3 + $0x78] sm:$0xff] }
  0x77   :  { %1273 = vmatpush3.msra.mxu0 %v228_v56  ;;  %1308 = vmatpush3.msra.mxu1 %v260_v57  ;;  %v251_v33 = vld [vmem:[%s2294_s1 + $0x700] sm:$0xff]  ;;  %v953_v36 = vld [vmem:[%s2296_s3 + $0x70] sm:$0xff]  ;;  %v952_v37 = vld [vmem:[%s2296_s3 + $0x68] sm:$0xff] }
  0x78   :  { %1274 = vmatprep.subr.mxu0 %v243_v54  ;;  %1309 = vmatprep.subr.mxu1 %v275_v59  ;;  %v951_v38 = vld [vmem:[%s2296_s3 + $0x60] sm:$0xff]  ;;  %v950_v39 = vld [vmem:[%s2296_s3 + $0x58] sm:$0xff]  ;;  %v949_v40 = vld [vmem:[%s2296_s3 + $0x50] sm:$0xff] }
  0x79   :  { %1275 = vmatpush3.msra.mxu0 %v227_v60  ;;  %1310 = vmatpush3.msra.mxu1 %v259_v61  ;;  %v948_v41 = vld [vmem:[%s2296_s3 + $0x48] sm:$0xff]  ;;  %v947_v42 = vld [vmem:[%s2296_s3 + $0x40] sm:$0xff]  ;;  %v946_v43 = vld [vmem:[%s2296_s3 + $0x38] sm:$0xff] }
  0x7a   :  { %1276 = vmatprep.subr.mxu0 %v242_v62  ;;  %1311 = vmatprep.subr.mxu1 %v274_v63  ;;  %v945_v44 = vld [vmem:[%s2296_s3 + $0x30] sm:$0xff]  ;;  %v944_v45 = vld [vmem:[%s2296_s3 + $0x28] sm:$0xff]  ;;  %v943_v46 = vld [vmem:[%s2296_s3 + $0x20] sm:$0xff] }
  0x7b   :  { %1277 = vmatpush3.msra.mxu0 %v226_v0  ;;  %1312 = vmatpush3.msra.mxu1 %v258_v1  ;;  %v942_v47 = vld [vmem:[%s2296_s3 + $0x18] sm:$0xff]  ;;  %v941_v48 = vld [vmem:[%s2296_s3 + $0x10] sm:$0xff]  ;;  %v940_v49 = vld [vmem:[%s2296_s3 + $0x8] sm:$0xff] }
  0x7c   :  { %1278 = vmatprep.subr.mxu0 %v241_v2  ;;  %1313 = vmatprep.subr.mxu1 %v273_v3  ;;  %v939_v50 = vld [vmem:[%s2296_s3] sm:$0xff] }
  0x7d   :  { %1279 = vmatpush3.msra.mxu0 %v225_v4  ;;  %1314 = vmatpush3.msra.mxu1 %v257_v5  ;;  %v1048_v54 = vld [vmem:[%s2295_s2] ss:$0 sm:$0xff] }
  0x7e   :  { %1280 = vmatprep.subr.mxu0 %v240_v7  ;;  %1315 = vmatprep.subr.mxu1 %v272_v8 }
  0x7f   :  { %1281 = vmatpush3.msra.mxu0 %v224_v9  ;;  %1316 = vmatpush3.msra.mxu1 %v256_v58 }
  0x80   :  { %1282 = vmatprep.subr.mxu0 %v239_v10  ;;  %1317 = vmatprep.subr.mxu1 %v271_v11 }
  0x81   :  { %1283 = vmatpush3.msra.mxu0 %v223_v12  ;;  %1318 = vmatpush3.msra.mxu1 %v255_v13 }
  0x82   :  { %1284 = vmatprep.subr.mxu0 %v238_v15  ;;  %1319 = vmatprep.subr.mxu1 %v270_v16 }
  0x83   :  { %1285 = vmatpush3.msra.mxu0 %v222_v17  ;;  %1320 = vmatpush3.msra.mxu1 %v254_v18 }
  0x84   :  { %1286 = vmatprep.subr.mxu0 %v237_v19  ;;  %1321 = vmatprep.subr.mxu1 %v269_v20 }
  0x85   :  { %1287 = vmatpush3.msra.mxu0 %v221_v22  ;;  %1322 = vmatpush3.msra.mxu1 %v253_v23  ;;  %v1049_v22 = vld [vmem:[%s2297_s4] ss:$0 sm:$0xff] }
  0x86   :  { %1288 = vmatprep.subr.mxu0 %v236_v25  ;;  %1323 = vmatprep.subr.mxu1 %v268_v26 }
  0x87   :  { %1289 = vmatpush3.msra.mxu0 %v220_v27  ;;  %1324 = vmatpush3.msra.mxu1 %v252_v51 }
  0x88   :  { %1290 = vmatprep.subr.mxu0 %v235_v28  ;;  %1325 = vmatprep.subr.mxu1 %v267_v29 }
  0x89   :  { %1291 = vmatpush3.msra.mxu0 %v219_v31  ;;  %862 = vmatprep.mubr.f32.mxu0 %v360_v30 }
  0x8a   :  { %1326 = vmatpush3.msra.mxu1 %v251_v33  ;;  %932 = vmatprep.mubr.f32.mxu1 %v361_v32 }
  0x8b   :  { %863 = vmatmul.mubr.f32.vlgmr.msra.gmra.mxu0 %v352_v21  ;;  %933 = vmatmul.mubr.f32.vlgmr.msra.gmra.mxu1 %v359_v24 }
  0x8c   :  { %1347 = vmatprep.subr.mxu0 %v1411_v35  ;;  %1379 = vmatprep.mubr.msk.f32.mxu0 %vm1412_vm0, %v1411_v35 }
  0x8d   :  { %1348 = vmatpush3.msra.mxu0 %v954_v34 }
  0x8e   :  { %1349 = vmatprep.subr.mxu0 %v1411_v35 }
  0x8f   :  { %1350 = vmatpush3.msra.mxu0 %v953_v36 }
  0x90   :  { %1351 = vmatprep.subr.mxu0 %v1411_v35 }
  0x91   :  { %1352 = vmatpush3.msra.mxu0 %v952_v37 }
  0x92   :  { %1353 = vmatprep.subr.mxu0 %v1411_v35 }
  0x93   :  { %1354 = vmatpush3.msra.mxu0 %v951_v38 }
  0x94   :  { %1355 = vmatprep.subr.mxu0 %v1411_v35 }
  0x95   :  { %1356 = vmatpush3.msra.mxu0 %v950_v39 }
  0x96   :  { %1357 = vmatprep.subr.mxu0 %v1411_v35 }
  0x97   :  { %1358 = vmatpush3.msra.mxu0 %v949_v40 }
  0x98   :  { %1359 = vmatprep.subr.mxu0 %v1411_v35 }
  0x99   :  { %1360 = vmatpush3.msra.mxu0 %v948_v41 }
  0x9a   :  { %1361 = vmatprep.subr.mxu0 %v1411_v35 }
  0x9b   :  { %1362 = vmatpush3.msra.mxu0 %v947_v42 }
  0x9c   :  { %1363 = vmatprep.subr.mxu0 %v1411_v35 }
  0x9d   :  { %1364 = vmatpush3.msra.mxu0 %v946_v43 }
  0x9e   :  { %1365 = vmatprep.subr.mxu0 %v1411_v35 }
  0x9f   :  { %1366 = vmatpush3.msra.mxu0 %v945_v44 }
  0xa0   :  { %1367 = vmatprep.subr.mxu0 %v1411_v35 }
  0xa1   :  { %1368 = vmatpush3.msra.mxu0 %v944_v45 }
  0xa2   :  { %1369 = vmatprep.subr.mxu0 %v1411_v35 }
  0xa3   :  { %1370 = vmatpush3.msra.mxu0 %v943_v46 }
  0xa4   :  { %1371 = vmatprep.subr.mxu0 %v1411_v35 }
  0xa5   :  { %1372 = vmatpush3.msra.mxu0 %v942_v47 }
  0xa6   :  { %1373 = vmatprep.subr.mxu0 %v1411_v35 }
  0xa7   :  { %1374 = vmatpush3.msra.mxu0 %v941_v48 }
  0xa8   :  { %1375 = vmatprep.subr.mxu0 %v1411_v35 }
  0xa9   :  { %1376 = vmatpush3.msra.mxu0 %v940_v49 }
  0xaa   :  { %1377 = vmatprep.subr.mxu0 %v1411_v35 }
  0xab   :  { %1378 = vmatpush3.msra.mxu0 %v939_v50 }
  0xe4   :  { %v1082_v52 = vpop.f32.mrf.mxu0 }
  0xe6   :  { %v1117_v53 = vpop.f32.mrf.mxu1  ;;  %v1083_v55 = vpop.f32.mrf.mxu0 }
  0xe7   :  { %v1084_v57 = vadd.f32 %v1083_v55, %v1082_v52 }
  0xe8   :  { %v1118_v59 = vpop.f32.mrf.mxu1 }
  0xe9   :  { %v445_v62 = vadd.f32 %v1084_v57, %v1048_v54  ;;  %v1119_v63 = vadd.f32 %v1118_v59, %v1117_v53 }
  0xeb   :  { %v515_v3 = vadd.f32 %v1119_v63, %v445_v62 }
 0x106   :  { %v1152_v56 = vpop.f32.mrf.mxu0 }
 0x108   :  { %v1187_v60 = vpop.f32.mrf.mxu1  ;;  %v1153_v61 = vpop.f32.mrf.mxu0 }
 0x109   :  { %v1154_v1 = vadd.f32 %v1153_v61, %v1152_v56 }
 0x10a   :  { %v1188_v2 = vpop.f32.mrf.mxu1 }
 0x10b   :  { %v585_v6 = vadd.f32 %v1154_v1, %v515_v3  ;;  %v1189_v7 = vadd.f32 %v1188_v2, %v1187_v60 }
 0x10d   :  { %v655_v58 = vadd.f32 %v1189_v7, %v585_v6 }
 0x128   :  { %v1222_v0 = vpop.f32.mrf.mxu0 }
 0x12a   :  { %v1257_v4 = vpop.f32.mrf.mxu1  ;;  %v1223_v5 = vpop.f32.mrf.mxu0 }
 0x12b   :  { %v1224_v8 = vadd.f32 %v1223_v5, %v1222_v0 }
 0x12c   :  { %v1258_v9 = vpop.f32.mrf.mxu1 }
 0x12d   :  { %v725_v10 = vadd.f32 %v1224_v8, %v655_v58  ;;  %v1259_v11 = vadd.f32 %v1258_v9, %v1257_v4 }
 0x12f   :  { %v795_v16 = vadd.f32 %v1259_v11, %v725_v10 }
 0x14b   :  { %v1292_v12 = vpop.f32.mrf.mxu0  ;;  %v1327_v13 = vpop.f32.mrf.mxu1 }
 0x14d   :  { %v1293_v14 = vpop.f32.mrf.mxu0  ;;  %v1328_v15 = vpop.f32.mrf.mxu1 }
 0x14e   :  { %v1294_v17 = vadd.f32 %v1293_v14, %v1292_v12  ;;  %v1329_v19 = vadd.f32 %v1328_v15, %v1327_v13 }
 0x150   :  { %v865_v18 = vadd.f32 %v1294_v17, %v795_v16 }
 0x152   :  { %v935_v20 = vadd.f32 %v1329_v19, %v865_v18 }
 0x154   :  { %v938_v21 = vmax.f32 %v935_v20, 0.0 }
 0x156   :  { %1380 = vmatmul.mubr.f32.vlgmr.msra.gmra.mxu0 %v938_v21 }
 0x216   :  { %v1028_v23 = vpop.f32.mrf.mxu0 }
 0x217   :  { %v1029_v24 = vadd.f32 %v1049_v22, %v1028_v23 }
 0x218   :  { %v1381_v25 = vpop.f32.mrf.mxu0 }
 0x219   :  { %1386 = vtanh.f32 %v1029_v24 }
 0x226   :  { %v1387_v26 = vpop.eup %1386 }
 0x227   :  { %1033 = vst [vmem:[#allocation2] sm:$0x3] %v1387_v26 }
 0x228   :  { %1399 = shalt.err (!%p1396_p4)
}
 0x229   :  { %1043 = dma.vmem_to_hbm [thread:$0]  %s1041_s8, 32, %s2298_s5, [#allocation3]  }
 0x22a   :  { %1408 = dma.done.wait [#allocation3], 32  }
 0x22b   :  { %1409 = vsyncadd [#allocation3], 4294967264 }
 0x22c   :  { %1047 = vsyncpa [#allocation3], 1 }

// kernel: cnn_forward.4
= control target key start
LH: loop header
LB: loop body
LE: loop exit
PB: predicated region body
PF: predicated region fallthrough
CT: control target
= control target key end

     0   :  { %s4004_s12 = smov 0   ;;  %s4006_s13 = smov 0   ;;  %s4911_s0 = inlined_call_operand.vmem [shape: bf16[2,4,5,5,128], index: 0, kind: input, shape index: {}]   ;;  %s4912_s1 = inlined_call_operand.vmem [shape: bf16[9,128,128], index: 1, kind: input, shape index: {}]   ;;  %s4913_s2 = inlined_call_operand.vmem [shape: f32[1,128], index: 2, kind: input, shape index: {}]   ;;  %s4914_s3 = inlined_call_operand.vmem [shape: bf16[2,4,4,128], index: 3, kind: output, shape index: {}]  }
   0x1   :  { %s4008_s14 = smov 0  }
   0x2 LB: > { %s25_s15 = sadd.s32 1, %s3976_s13  ;;  %p2555_p0 = scmp.ge.s32.totalorder %s3980_s14, 1  ;;  %s3980_s14 = sphi %s4008_s14, %s13_s14   ;;  %s3976_s13 = sphi %s4006_s13, %s4916_s13   ;;  %s3972_s12 = sphi %s4004_s12, %s4915_s12  }
   0x3   : > { %p27_p1 = scmp.ge.s32.totalorder %s25_s15, 2  ;;  %p168_p2 = scmp.lt.s32.totalorder %s3980_s14, 3 }
   0x5   : > { %s4918_s15 = smov (%p27_p1, %s25_s15), 0  ;;  %p169_p3 = pnand %p2555_p0, %p168_p2 }
   0x6   : > { %p202_p4 = scmp.lt.s32.totalorder (!%p169_p3), %s3972_s12, 1 }
   0x7   : > { %172 = sbr.rel (%p169_p3) target bundleno = 792 (0x318), region = 32 }
   0xc   : > { %v4027_v0 = vld [vmem:[%s4912_s1 + $0x78] sm:$0xff]   ;;  %v3982_v1 = vmov 0.0   ;;  %v4040_v3 = vld [vmem:[%s4912_s1 + $0x70] sm:$0xff]   ;;  %vm3983_vm0 = vmmov 0   ;;  %v4058_v5 = vld [vmem:[%s4912_s1 + $0x68] sm:$0xff]   ;;  %s4920_s12 = smov (!%p202_p4, %s3972_s12), 1 }
   0xd   : > { %3124 = vmatprep.subr.bf16.mxu0 %v3982_v1  ;;  %3144 = vmatprep.subr.bf16.mxu1 %v3982_v1  ;;  %v4034_v2 = vld [vmem:[%s4912_s1 + $0x38] sm:$0xff]   ;;  %v4049_v4 = vld [vmem:[%s4912_s1 + $0x30] sm:$0xff]   ;;  %v4065_v6 = vld [vmem:[%s4912_s1 + $0x28] sm:$0xff]   ;;  %s3844_s17 = smul.u32 80, %s4920_s12  ;;  %s2799_s5 = sshll.u32 %s4920_s12, 3 }
   0xe   : > { %3125 = vmatpush3.bf16.msra.mxu0 %v4027_v0  ;;  %3140 = vmatprep.mubr.msk.bf16.mxu0 %vm3983_vm0, %v3982_v1  ;;  %v4072_v7 = vld [vmem:[%s4912_s1 + $0x60] sm:$0xff]   ;;  %v4087_v9 = vld [vmem:[%s4912_s1 + $0x58] sm:$0xff]   ;;  %v4104_v11 = vld [vmem:[%s4912_s1 + $0x50] sm:$0xff]   ;;  %s221_s8 = scalar_lea.vmem %s4914_s3, %s2799_s5 }
   0xf   : > { %3145 = vmatpush3.bf16.msra.mxu1 %v4034_v2  ;;  %3126 = vmatprep.subr.bf16.mxu0 %v3982_v1  ;;  %v4079_v8 = vld [vmem:[%s4912_s1 + $0x20] sm:$0xff]   ;;  %v4094_v10 = vld [vmem:[%s4912_s1 + $0x18] sm:$0xff]   ;;  %v4111_v12 = vld [vmem:[%s4912_s1 + $0x10] sm:$0xff]   ;;  %s4137_s26 = scalar_lea.vmem %s4911_s0, %s3844_s17 }
  0x10   : > { %3146 = vmatprep.subr.bf16.mxu1 %v3982_v1  ;;  %3160 = vmatprep.mubr.msk.bf16.mxu1 %vm3983_vm0, %v3982_v1  ;;  %v4119_v13 = vld [vmem:[%s4912_s1 + $0x48] sm:$0xff]   ;;  %v4132_v15 = vld [vmem:[%s4912_s1 + $0x40] sm:$0xff]   ;;  %v2578_v17 = vld [vmem:[%s4137_s26 + $0x14] sm:$0x3] }
  0x11   : > { %v4126_v14 = vld [vmem:[%s4912_s1 + $0x8] sm:$0xff]   ;;  %v4145_v16 = vld [vmem:[%s4912_s1] sm:$0xff]   ;;  %v2595_v19 = vld [vmem:[%s4137_s26 + $0x18] sm:$0x3] }
  0x12   : > { %3127 = vmatpush3.bf16.msra.mxu0 %v4040_v3  ;;  %v239_v18 = vld [vmem:[%s4137_s26] sm:$0x3]  ;;  %v2559_v20 = vld [vmem:[%s4137_s26 + $0x4] sm:$0x3]  ;;  %v2596_v21 = vld [vmem:[%s4137_s26 + $0x1c] sm:$0x3] }
  0x13   : > { %3147 = vmatpush3.bf16.msra.mxu1 %v4049_v4  ;;  %3128 = vmatprep.subr.bf16.mxu0 %v3982_v1  ;;  %v2560_v22 = vld [vmem:[%s4137_s26 + $0x8] sm:$0x3]  ;;  %v2597_v23 = vld [vmem:[%s4137_s26 + $0x20] sm:$0x3]  ;;  %v3887_v24 = vld [vmem:[%s4912_s1 + $0xb8] sm:$0xff]  }
  0x14   : > { %3148 = vmatprep.subr.bf16.mxu1 %v3982_v1  ;;  %v2561_v25 = vld [vmem:[%s4137_s26 + $0xc] sm:$0x3]  ;;  %v3888_v26 = vld [vmem:[%s4912_s1 + $0xb0] sm:$0xff]   ;;  %v3890_v28 = vld [vmem:[%s4912_s1 + $0xa0] sm:$0xff]  }
  0x15   : > { %v3889_v27 = vld [vmem:[%s4912_s1 + $0xa8] sm:$0xff]   ;;  %v3891_v29 = vld [vmem:[%s4912_s1 + $0x98] sm:$0xff]   ;;  %v3895_v30 = vld [vmem:[%s4137_s26] ss:$0 sps:$4 sm:$0x77]  }
  0x16   : > { %3129 = vmatpush3.bf16.msra.mxu0 %v4058_v5  ;;  %v3892_v31 = vld [vmem:[%s4912_s1 + $0x90] sm:$0xff]   ;;  %v3896_v32 = vld [vmem:[%s4137_s26 + $0x4] ss:$0 sps:$4 sm:$0x77]   ;;  %v711_v33 = vshll.u32 %v3895_v30, 16  ;;  %v3893_v34 = vld [vmem:[%s4912_s1 + $0x88] sm:$0xff]  }
  0x17   : > { %3149 = vmatpush3.bf16.msra.mxu1 %v4065_v6  ;;  %3130 = vmatprep.subr.bf16.mxu0 %v3982_v1  ;;  %v812_v35 = vshll.u32 %v3896_v32, 16  ;;  %v709_v36 = vshrl.u32 %v3895_v30, 16  ;;  %v3894_v38 = vld [vmem:[%s4912_s1 + $0x80] sm:$0xff]   ;;  %v810_v39 = vshrl.u32 %v3896_v32, 16  ;;  %v3899_v53 = vld [vmem:[%s4912_s1 + $0xf8] sm:$0xff]   ;;  %v3900_v54 = vld [vmem:[%s4912_s1 + $0xf0] sm:$0xff]  }
  0x18   : > { %3150 = vmatprep.subr.bf16.mxu1 %v3982_v1  ;;  %v713_v37 = vrot.slane %v711_v33, 1  ;;  %v3897_v43 = vld [vmem:[%s4137_s26 + $0x8] ss:$0 sps:$4 sm:$0x77]   ;;  %v3902_v56 = vld [vmem:[%s4912_s1 + $0xe0] sm:$0xff]   ;;  %v3903_v57 = vld [vmem:[%s4912_s1 + $0xd8] sm:$0xff]  }
  0x19   : > { %v814_v40 = vrot.slane %v812_v35, 1  ;;  %v3898_v44 = vld [vmem:[%s4137_s26 + $0xc] ss:$0 sps:$4 sm:$0x77]   ;;  %v865_v45 = vshll.u32 %v3897_v43, 16  ;;  %v863_v47 = vshrl.u32 %v3897_v43, 16 }
  0x1a   : > { %3131 = vmatpush3.bf16.msra.mxu0 %v4072_v7  ;;  %v714_v41 = vor.u32 %v713_v37, %v709_v36  ;;  %v918_v46 = vshll.u32 %v3898_v44, 16  ;;  %v916_v49 = vshrl.u32 %v3898_v44, 16  ;;  %v3901_v55 = vld [vmem:[%s4912_s1 + $0xe8] sm:$0xff]   ;;  %v3904_v58 = vld [vmem:[%s4912_s1 + $0xd0] sm:$0xff]   ;;  %v3906_v60 = vld [vmem:[%s4912_s1 + $0xc0] sm:$0xff]  }
  0x1b   : > { %3151 = vmatpush3.bf16.msra.mxu1 %v4079_v8  ;;  %3132 = vmatprep.subr.bf16.mxu0 %v3982_v1  ;;  %v4312_v42 = vor.u32 %v814_v40, %v810_v39  ;;  %v867_v48 = vrot.slane %v865_v45, 1  ;;  %v3905_v59 = vld [vmem:[%s4912_s1 + $0xc8] sm:$0xff]   ;;  %v2683_v39 = vld [vmem:[%s4137_s26 + $0x44] sm:$0x3]  ;;  %v4499_v40 = vld [vmem:[%s4912_s1 + $0x178] sm:$0xff]  }
  0x1c   : > { %3152 = vmatprep.subr.bf16.mxu1 %v3982_v1  ;;  %v920_v50 = vrot.slane %v918_v46, 1  ;;  %v2645_v61 = vld [vmem:[%s4137_s26 + $0x28] sm:$0x3]  ;;  %v2654_v62 = vld [vmem:[%s4137_s26 + $0x2c] sm:$0x3]  ;;  %v4508_v45 = vld [vmem:[%s4912_s1 + $0x170] sm:$0xff]  }
  0x1d   : > { %v4337_v51 = vor.u32 %v867_v48, %v863_v47 }
  0x1e   : > { %3133 = vmatpush3.bf16.msra.mxu0 %v4087_v9  ;;  %v4339_v52 = vor.u32 %v920_v50, %v916_v49 }
  0x1f   : > { %3153 = vmatpush3.bf16.msra.mxu1 %v4094_v10  ;;  %3134 = vmatprep.subr.bf16.mxu0 %v3982_v1 }
  0x20   : > { %3154 = vmatprep.subr.bf16.mxu1 %v3982_v1 }
  0x22   : > { %3135 = vmatpush3.bf16.msra.mxu0 %v4104_v11 }
  0x23   : > { %3155 = vmatpush3.bf16.msra.mxu1 %v4111_v12  ;;  %3136 = vmatprep.subr.bf16.mxu0 %v3982_v1 }
  0x24   : > { %3156 = vmatprep.subr.bf16.mxu1 %v3982_v1 }
  0x26   : > { %3137 = vmatpush3.bf16.msra.mxu0 %v4119_v13 }
  0x27   : > { %3157 = vmatpush3.bf16.msra.mxu1 %v4126_v14  ;;  %3138 = vmatprep.subr.bf16.mxu0 %v3982_v1 }
  0x28   : > { %3158 = vmatprep.subr.bf16.mxu1 %v3982_v1 }
  0x2a   : > { %3139 = vmatpush3.bf16.msra.mxu0 %v4132_v15 }
  0x2b   : > { %3159 = vmatpush3.bf16.msra.mxu1 %v4145_v16  ;;  %3164 = vmatprep.subr.bf16.mxu0 %v3982_v1 }
  0x2c   : > { %3184 = vmatprep.subr.bf16.mxu1 %v3982_v1 }
  0x2d   : > { %3141 = vmatmul.mubr.bf16.vlgmr.msra.gmra.mxu0 %v2578_v17 }
  0x2e   : > { %3161 = vmatmul.mubr.bf16.vlgmr.msra.gmra.mxu1 %v239_v18  ;;  %3165 = vmatpush3.bf16.msra.mxu0 %v4027_v0 }
  0x2f   : > { %3185 = vmatpush3.bf16.msra.mxu1 %v4034_v2  ;;  %3166 = vmatprep.subr.bf16.mxu0 %v3982_v1 }
  0x30   : > { %3186 = vmatprep.subr.bf16.mxu1 %v3982_v1  ;;  %3180 = vmatprep.mubr.msk.bf16.mxu0 %vm3983_vm0, %v3982_v1 }
  0x31   : > { %3200 = vmatprep.mubr.msk.bf16.mxu1 %vm3983_vm0, %v3982_v1 }
  0x32   : > { %3167 = vmatpush3.bf16.msra.mxu0 %v4040_v3 }
  0x33   : > { %3187 = vmatpush3.bf16.msra.mxu1 %v4049_v4  ;;  %3168 = vmatprep.subr.bf16.mxu0 %v3982_v1 }
  0x34   : > { %3188 = vmatprep.subr.bf16.mxu1 %v3982_v1 }
  0x36   : > { %3169 = vmatpush3.bf16.msra.mxu0 %v4058_v5 }
  0x37   : > { %3189 = vmatpush3.bf16.msra.mxu1 %v4065_v6  ;;  %3170 = vmatprep.subr.bf16.mxu0 %v3982_v1 }
  0x38   : > { %3190 = vmatprep.subr.bf16.mxu1 %v3982_v1 }
  0x3a   : > { %3171 = vmatpush3.bf16.msra.mxu0 %v4072_v7 }
  0x3b   : > { %3191 = vmatpush3.bf16.msra.mxu1 %v4079_v8  ;;  %3172 = vmatprep.subr.bf16.mxu0 %v3982_v1 }
  0x3c   : > { %3192 = vmatprep.subr.bf16.mxu1 %v3982_v1 }
  0x3e   : > { %3173 = vmatpush3.bf16.msra.mxu0 %v4087_v9 }
  0x3f   : > { %3193 = vmatpush3.bf16.msra.mxu1 %v4094_v10  ;;  %3174 = vmatprep.subr.bf16.mxu0 %v3982_v1 }
  0x40   : > { %3194 = vmatprep.subr.bf16.mxu1 %v3982_v1 }
  0x42   : > { %3175 = vmatpush3.bf16.msra.mxu0 %v4104_v11 }
  0x43   : > { %3195 = vmatpush3.bf16.msra.mxu1 %v4111_v12  ;;  %3176 = vmatprep.subr.bf16.mxu0 %v3982_v1 }
  0x44   : > { %3196 = vmatprep.subr.bf16.mxu1 %v3982_v1 }
  0x46   : > { %3177 = vmatpush3.bf16.msra.mxu0 %v4119_v13 }
  0x47   : > { %3197 = vmatpush3.bf16.msra.mxu1 %v4126_v14  ;;  %3178 = vmatprep.subr.bf16.mxu0 %v3982_v1 }
  0x48   : > { %3198 = vmatprep.subr.bf16.mxu1 %v3982_v1 }
  0x4a   : > { %3179 = vmatpush3.bf16.msra.mxu0 %v4132_v15 }
  0x4b   : > { %3199 = vmatpush3.bf16.msra.mxu1 %v4145_v16  ;;  %3204 = vmatprep.subr.bf16.mxu0 %v3982_v1 }
  0x4c   : > { %3224 = vmatprep.subr.bf16.mxu1 %v3982_v1 }
  0x4d   : > { %3181 = vmatmul.mubr.bf16.vlgmr.msra.gmra.mxu0 %v2595_v19 }
  0x4e   : > { %3201 = vmatmul.mubr.bf16.vlgmr.msra.gmra.mxu1 %v2559_v20  ;;  %3205 = vmatpush3.bf16.msra.mxu0 %v4027_v0  ;;  %v3909_v20 = vld [vmem:[%s4912_s1 + $0x128] sm:$0xff]  }
  0x4f   : > { %3225 = vmatpush3.bf16.msra.mxu1 %v4034_v2  ;;  %3206 = vmatprep.subr.bf16.mxu0 %v3982_v1 }
  0x50   : > { %3226 = vmatprep.subr.bf16.mxu1 %v3982_v1  ;;  %3220 = vmatprep.mubr.msk.bf16.mxu0 %vm3983_vm0, %v3982_v1 }
  0x51   : > { %3240 = vmatprep.mubr.msk.bf16.mxu1 %vm3983_vm0, %v3982_v1 }
  0x52   : > { %3207 = vmatpush3.bf16.msra.mxu0 %v4040_v3 }
  0x53   : > { %3227 = vmatpush3.bf16.msra.mxu1 %v4049_v4  ;;  %3208 = vmatprep.subr.bf16.mxu0 %v3982_v1 }
  0x54   : > { %3228 = vmatprep.subr.bf16.mxu1 %v3982_v1 }
  0x56   : > { %3209 = vmatpush3.bf16.msra.mxu0 %v4058_v5 }
  0x57   : > { %3229 = vmatpush3.bf16.msra.mxu1 %v4065_v6  ;;  %3210 = vmatprep.subr.bf16.mxu0 %v3982_v1 }
  0x58   : > { %3230 = vmatprep.subr.bf16.mxu1 %v3982_v1 }
  0x5a   : > { %3211 = vmatpush3.bf16.msra.mxu0 %v4072_v7 }
  0x5b   : > { %3231 = vmatpush3.bf16.msra.mxu1 %v4079_v8  ;;  %3212 = vmatprep.subr.bf16.mxu0 %v3982_v1 }
  0x5c   : > { %3232 = vmatprep.subr.bf16.mxu1 %v3982_v1 }
  0x5e   : > { %3213 = vmatpush3.bf16.msra.mxu0 %v4087_v9 }
  0x5f   : > { %3233 = vmatpush3.bf16.msra.mxu1 %v4094_v10  ;;  %3214 = vmatprep.subr.bf16.mxu0 %v3982_v1 }
  0x60   : > { %3234 = vmatprep.subr.bf16.mxu1 %v3982_v1 }
  0x62   : > { %3215 = vmatpush3.bf16.msra.mxu0 %v4104_v11 }
  0x63   : > { %3235 = vmatpush3.bf16.msra.mxu1 %v4111_v12  ;;  %3216 = vmatprep.subr.bf16.mxu0 %v3982_v1 }
  0x64   : > { %3236 = vmatprep.subr.bf16.mxu1 %v3982_v1 }
  0x66   : > { %3217 = vmatpush3.bf16.msra.mxu0 %v4119_v13 }
  0x67   : > { %3237 = vmatpush3.bf16.msra.mxu1 %v4126_v14  ;;  %3218 = vmatprep.subr.bf16.mxu0 %v3982_v1 }
  0x68   : > { %3238 = vmatprep.subr.bf16.mxu1 %v3982_v1 }
  0x6a   : > { %3219 = vmatpush3.bf16.msra.mxu0 %v4132_v15 }
  0x6b   : > { %3239 = vmatpush3.bf16.msra.mxu1 %v4145_v16  ;;  %3244 = vmatprep.subr.bf16.mxu0 %v3982_v1 }
  0x6c   : > { %3264 = vmatprep.subr.bf16.mxu1 %v3982_v1 }
  0x6d   : > { %3221 = vmatmul.mubr.bf16.vlgmr.msra.gmra.mxu0 %v2596_v21 }
  0x6e   : > { %3241 = vmatmul.mubr.bf16.vlgmr.msra.gmra.mxu1 %v2560_v22  ;;  %3245 = vmatpush3.bf16.msra.mxu0 %v4027_v0 }
  0x6f   : > { %3265 = vmatpush3.bf16.msra.mxu1 %v4034_v2  ;;  %3246 = vmatprep.subr.bf16.mxu0 %v3982_v1 }
  0x70   : > { %3266 = vmatprep.subr.bf16.mxu1 %v3982_v1  ;;  %3260 = vmatprep.mubr.msk.bf16.mxu0 %vm3983_vm0, %v3982_v1 }
  0x71   : > { %3280 = vmatprep.mubr.msk.bf16.mxu1 %vm3983_vm0, %v3982_v1 }
  0x72   : > { %3247 = vmatpush3.bf16.msra.mxu0 %v4040_v3 }
  0x73   : > { %3267 = vmatpush3.bf16.msra.mxu1 %v4049_v4  ;;  %3248 = vmatprep.subr.bf16.mxu0 %v3982_v1 }
  0x74   : > { %3268 = vmatprep.subr.bf16.mxu1 %v3982_v1 }
  0x76   : > { %3249 = vmatpush3.bf16.msra.mxu0 %v4058_v5 }
  0x77   : > { %3269 = vmatpush3.bf16.msra.mxu1 %v4065_v6  ;;  %3250 = vmatprep.subr.bf16.mxu0 %v3982_v1 }
  0x78   : > { %3270 = vmatprep.subr.bf16.mxu1 %v3982_v1 }
  0x7a   : > { %3251 = vmatpush3.bf16.msra.mxu0 %v4072_v7 }
  0x7b   : > { %3271 = vmatpush3.bf16.msra.mxu1 %v4079_v8  ;;  %3252 = vmatprep.subr.bf16.mxu0 %v3982_v1 }
  0x7c   : > { %3272 = vmatprep.subr.bf16.mxu1 %v3982_v1 }
  0x7e   : > { %3253 = vmatpush3.bf16.msra.mxu0 %v4087_v9  ;;  %v2655_v9 = vld [vmem:[%s4137_s26 + $0x30] sm:$0x3] }
  0x7f   : > { %3273 = vmatpush3.bf16.msra.mxu1 %v4094_v10  ;;  %3254 = vmatprep.subr.bf16.mxu0 %v3982_v1  ;;  %v4415_v10 = vld [vmem:[%s4912_s1 + $0x138] sm:$0xff]  }
  0x80   : > { %3274 = vmatprep.subr.bf16.mxu1 %v3982_v1 }
  0x82   : > { %3255 = vmatpush3.bf16.msra.mxu0 %v4104_v11  ;;  %v2656_v11 = vld [vmem:[%s4137_s26 + $0x34] sm:$0x3] }
  0x83   : > { %3275 = vmatpush3.bf16.msra.mxu1 %v4111_v12  ;;  %3256 = vmatprep.subr.bf16.mxu0 %v3982_v1 }
  0x84   : > { %3276 = vmatprep.subr.bf16.mxu1 %v3982_v1 }
  0x86   : > { %3257 = vmatpush3.bf16.msra.mxu0 %v4119_v13 }
  0x87   : > { %3277 = vmatpush3.bf16.msra.mxu1 %v4126_v14  ;;  %3258 = vmatprep.subr.bf16.mxu0 %v3982_v1  ;;  %v4424_v14 = vld [vmem:[%s4912_s1 + $0x130] sm:$0xff]  }
  0x88   : > { %3278 = vmatprep.subr.bf16.mxu1 %v3982_v1 }
  0x8a   : > { %3259 = vmatpush3.bf16.msra.mxu0 %v4132_v15 }
  0x8b   : > { %3279 = vmatpush3.bf16.msra.mxu1 %v4145_v16  ;;  %3284 = vmatprep.subr.bf16.mxu0 %v3982_v1 }
  0x8c   : > { %3304 = vmatprep.subr.bf16.mxu1 %v3982_v1 }
  0x8d   : > { %3261 = vmatmul.mubr.bf16.vlgmr.msra.gmra.mxu0 %v2597_v23  ;;  %v3910_v23 = vld [vmem:[%s4912_s1 + $0x120] sm:$0xff]  }
  0x8e   : > { %3281 = vmatmul.mubr.bf16.vlgmr.msra.gmra.mxu1 %v2561_v25  ;;  %3285 = vmatpush3.bf16.msra.mxu0 %v3887_v24  ;;  %v3912_v25 = vld [vmem:[%s4912_s1 + $0x110] sm:$0xff]  }
  0x8f   : > { %3305 = vmatpush3.bf16.msra.mxu1 %v3887_v24  ;;  %3286 = vmatprep.subr.bf16.mxu0 %v3982_v1 }
  0x90   : > { %3306 = vmatprep.subr.bf16.mxu1 %v3982_v1  ;;  %3300 = vmatprep.mubr.msk.bf16.mxu0 %vm3983_vm0, %v3982_v1 }
  0x91   : > { %3320 = vmatprep.mubr.msk.bf16.mxu1 %vm3983_vm0, %v3982_v1 }
  0x92   : > { %3287 = vmatpush3.bf16.msra.mxu0 %v3888_v26 }
  0x93   : > { %3307 = vmatpush3.bf16.msra.mxu1 %v3888_v26  ;;  %3288 = vmatprep.subr.bf16.mxu0 %v3982_v1 }
  0x94   : > { %3308 = vmatprep.subr.bf16.mxu1 %v3982_v1 }
  0x96   : > { %3289 = vmatpush3.bf16.msra.mxu0 %v3889_v27 }
  0x97   : > { %3309 = vmatpush3.bf16.msra.mxu1 %v3889_v27  ;;  %3290 = vmatprep.subr.bf16.mxu0 %v3982_v1 }
  0x98   : > { %3310 = vmatprep.subr.bf16.mxu1 %v3982_v1 }
  0x9a   : > { %3291 = vmatpush3.bf16.msra.mxu0 %v3890_v28 }
  0x9b   : > { %3311 = vmatpush3.bf16.msra.mxu1 %v3890_v28  ;;  %3292 = vmatprep.subr.bf16.mxu0 %v3982_v1 }
  0x9c   : > { %3312 = vmatprep.subr.bf16.mxu1 %v3982_v1 }
  0x9e   : > { %3293 = vmatpush3.bf16.msra.mxu0 %v3891_v29 }
  0x9f   : > { %3313 = vmatpush3.bf16.msra.mxu1 %v3891_v29  ;;  %3294 = vmatprep.subr.bf16.mxu0 %v3982_v1 }
  0xa0   : > { %3314 = vmatprep.subr.bf16.mxu1 %v3982_v1 }
  0xa2   : > { %3295 = vmatpush3.bf16.msra.mxu0 %v3892_v31 }
  0xa3   : > { %3315 = vmatpush3.bf16.msra.mxu1 %v3892_v31  ;;  %3296 = vmatprep.subr.bf16.mxu0 %v3982_v1 }
  0xa4   : > { %3316 = vmatprep.subr.bf16.mxu1 %v3982_v1 }
  0xa6   : > { %3297 = vmatpush3.bf16.msra.mxu0 %v3893_v34 }
  0xa7   : > { %3317 = vmatpush3.bf16.msra.mxu1 %v3893_v34  ;;  %3298 = vmatprep.subr.bf16.mxu0 %v3982_v1 }
  0xa8   : > { %3318 = vmatprep.subr.bf16.mxu1 %v3982_v1 }
  0xaa   : > { %3299 = vmatpush3.bf16.msra.mxu0 %v3894_v38 }
  0xab   : > { %3319 = vmatpush3.bf16.msra.mxu1 %v3894_v38  ;;  %3324 = vmatprep.subr.bf16.mxu0 %v3982_v1 }
  0xac   : > { %3344 = vmatprep.subr.bf16.mxu1 %v3982_v1 }
  0xad   : > { %3301 = vmatmul.mubr.bf16.vlgmr.msra.gmra.mxu0 %v714_v41  ;;  %v2684_v41 = vld [vmem:[%s4137_s26 + $0x48] sm:$0x3] }
  0xae   : > { %3321 = vmatmul.mubr.bf16.vlgmr.msra.gmra.mxu1 %v4312_v42  ;;  %3325 = vmatpush3.bf16.msra.mxu0 %v3887_v24 }
  0xaf   : > { %3345 = vmatpush3.bf16.msra.mxu1 %v3887_v24  ;;  %3326 = vmatprep.subr.bf16.mxu0 %v3982_v1  ;;  %v3911_v24 = vld [vmem:[%s4912_s1 + $0x118] sm:$0xff]  }
  0xb0   : > { %3346 = vmatprep.subr.bf16.mxu1 %v3982_v1  ;;  %3340 = vmatprep.mubr.msk.bf16.mxu0 %vm3983_vm0, %v3982_v1 }
  0xb1   : > { %3360 = vmatprep.mubr.msk.bf16.mxu1 %vm3983_vm0, %v3982_v1 }
  0xb2   : > { %3327 = vmatpush3.bf16.msra.mxu0 %v3888_v26 }
  0xb3   : > { %3347 = vmatpush3.bf16.msra.mxu1 %v3888_v26  ;;  %3328 = vmatprep.subr.bf16.mxu0 %v3982_v1  ;;  %v3913_v26 = vld [vmem:[%s4912_s1 + $0x108] sm:$0xff]  }
  0xb4   : > { %3348 = vmatprep.subr.bf16.mxu1 %v3982_v1 }
  0xb6   : > { %3329 = vmatpush3.bf16.msra.mxu0 %v3889_v27 }
  0xb7   : > { %3349 = vmatpush3.bf16.msra.mxu1 %v3889_v27  ;;  %3330 = vmatprep.subr.bf16.mxu0 %v3982_v1  ;;  %v3914_v27 = vld [vmem:[%s4912_s1 + $0x100] sm:$0xff]  }
  0xb8   : > { %3350 = vmatprep.subr.bf16.mxu1 %v3982_v1 }
  0xba   : > { %3331 = vmatpush3.bf16.msra.mxu0 %v3890_v28 }
  0xbb   : > { %3351 = vmatpush3.bf16.msra.mxu1 %v3890_v28  ;;  %3332 = vmatprep.subr.bf16.mxu0 %v3982_v1  ;;  %v2673_v28 = vld [vmem:[%s4137_s26 + $0x3c] sm:$0x3] }
  0xbc   : > { %3352 = vmatprep.subr.bf16.mxu1 %v3982_v1 }
  0xbe   : > { %3333 = vmatpush3.bf16.msra.mxu0 %v3891_v29 }
  0xbf   : > { %3353 = vmatpush3.bf16.msra.mxu1 %v3891_v29  ;;  %3334 = vmatprep.subr.bf16.mxu0 %v3982_v1  ;;  %v2682_v29 = vld [vmem:[%s4137_s26 + $0x40] sm:$0x3] }
  0xc0   : > { %3354 = vmatprep.subr.bf16.mxu1 %v3982_v1 }
  0xc2   : > { %3335 = vmatpush3.bf16.msra.mxu0 %v3892_v31 }
  0xc3   : > { %3355 = vmatpush3.bf16.msra.mxu1 %v3892_v31  ;;  %3336 = vmatprep.subr.bf16.mxu0 %v3982_v1 }
  0xc4   : > { %3356 = vmatprep.subr.bf16.mxu1 %v3982_v1 }
  0xc6   : > { %3337 = vmatpush3.bf16.msra.mxu0 %v3893_v34 }
  0xc7   : > { %3357 = vmatpush3.bf16.msra.mxu1 %v3893_v34  ;;  %3338 = vmatprep.subr.bf16.mxu0 %v3982_v1 }
  0xc8   : > { %3358 = vmatprep.subr.bf16.mxu1 %v3982_v1 }
  0xca   : > { %3339 = vmatpush3.bf16.msra.mxu0 %v3894_v38 }
  0xcb   : > { %3359 = vmatpush3.bf16.msra.mxu1 %v3894_v38  ;;  %3364 = vmatprep.subr.bf16.mxu0 %v3982_v1 }
  0xcc   : > { %3384 = vmatprep.subr.bf16.mxu1 %v3982_v1 }
  0xcd   : > { %3341 = vmatmul.mubr.bf16.vlgmr.msra.gmra.mxu0 %v4337_v51 }
  0xce   : > { %3361 = vmatmul.mubr.bf16.vlgmr.msra.gmra.mxu1 %v4339_v52  ;;  %3365 = vmatpush3.bf16.msra.mxu0 %v3899_v53 }
  0xcf   : > { %3385 = vmatpush3.bf16.msra.mxu1 %v3899_v53  ;;  %3366 = vmatprep.subr.bf16.mxu0 %v3982_v1 }
  0xd0   : > { %3386 = vmatprep.subr.bf16.mxu1 %v3982_v1  ;;  %3380 = vmatprep.mubr.msk.bf16.mxu0 %vm3983_vm0, %v3982_v1 }
  0xd1   : > { %3400 = vmatprep.mubr.msk.bf16.mxu1 %vm3983_vm0, %v3982_v1 }
  0xd2   : > { %3367 = vmatpush3.bf16.msra.mxu0 %v3900_v54 }
  0xd3   : > { %3387 = vmatpush3.bf16.msra.mxu1 %v3900_v54  ;;  %3368 = vmatprep.subr.bf16.mxu0 %v3982_v1 }
  0xd4   : > { %3388 = vmatprep.subr.bf16.mxu1 %v3982_v1 }
  0xd6   : > { %3369 = vmatpush3.bf16.msra.mxu0 %v3901_v55 }
  0xd7   : > { %3389 = vmatpush3.bf16.msra.mxu1 %v3901_v55  ;;  %3370 = vmatprep.subr.bf16.mxu0 %v3982_v1 }
  0xd8   : > { %3390 = vmatprep.subr.bf16.mxu1 %v3982_v1 }
  0xda   : > { %3371 = vmatpush3.bf16.msra.mxu0 %v3902_v56 }
  0xdb   : > { %3391 = vmatpush3.bf16.msra.mxu1 %v3902_v56  ;;  %3372 = vmatprep.subr.bf16.mxu0 %v3982_v1 }
  0xdc   : > { %3392 = vmatprep.subr.bf16.mxu1 %v3982_v1 }
  0xde   : > { %3373 = vmatpush3.bf16.msra.mxu0 %v3903_v57 }
  0xdf   : > { %3393 = vmatpush3.bf16.msra.mxu1 %v3903_v57  ;;  %3374 = vmatprep.subr.bf16.mxu0 %v3982_v1 }
  0xe0   : > { %3394 = vmatprep.subr.bf16.mxu1 %v3982_v1 }
  0xe2   : > { %3375 = vmatpush3.bf16.msra.mxu0 %v3904_v58 }
  0xe3   : > { %3395 = vmatpush3.bf16.msra.mxu1 %v3904_v58  ;;  %3376 = vmatprep.subr.bf16.mxu0 %v3982_v1 }
  0xe4   : > { %3396 = vmatprep.subr.bf16.mxu1 %v3982_v1 }
  0xe6   : > { %3377 = vmatpush3.bf16.msra.mxu0 %v3905_v59 }
  0xe7   : > { %3397 = vmatpush3.bf16.msra.mxu1 %v3905_v59  ;;  %3378 = vmatprep.subr.bf16.mxu0 %v3982_v1 }
  0xe8   : > { %3398 = vmatprep.subr.bf16.mxu1 %v3982_v1 }
  0xea   : > { %3379 = vmatpush3.bf16.msra.mxu0 %v3906_v60 }
  0xeb   : > { %3399 = vmatpush3.bf16.msra.mxu1 %v3906_v60  ;;  %3404 = vmatprep.subr.bf16.mxu0 %v3982_v1 }
  0xec   : > { %3424 = vmatprep.subr.bf16.mxu1 %v3982_v1 }
  0xed   : > { %v347_v63 = vpop.f32.mrf.mxu0  ;;  %3381 = vmatmul.mubr.bf16.vlgmr.msra.gmra.mxu0 %v2645_v61 }
  0xee   : > { %v435_v0 = vpop.f32.mrf.mxu1  ;;  %3401 = vmatmul.mubr.bf16.vlgmr.msra.gmra.mxu1 %v2654_v62  ;;  %3405 = vmatpush3.bf16.msra.mxu0 %v3899_v53  ;;  %v4561_v62 = vld [vmem:[%s4912_s1 + $0x148] sm:$0xff]  }
  0xef   : > { %v4391_v2 = vadd.f32 %v435_v0, %v347_v63  ;;  %3425 = vmatpush3.bf16.msra.mxu1 %v3899_v53  ;;  %v3142_v3 = vpop.f32.mrf.mxu0  ;;  %3406 = vmatprep.subr.bf16.mxu0 %v3982_v1  ;;  %v4523_v53 = vld [vmem:[%s4912_s1 + $0x168] sm:$0xff]  }
  0xf0   : > { %v3162_v4 = vpop.f32.mrf.mxu1  ;;  %3426 = vmatprep.subr.bf16.mxu1 %v3982_v1  ;;  %3420 = vmatprep.mubr.msk.bf16.mxu0 %vm3983_vm0, %v3982_v1 }
  0xf1   : > { %v350_v5 = vpop.f32.mrf.mxu0  ;;  %3440 = vmatprep.mubr.msk.bf16.mxu1 %vm3983_vm0, %v3982_v1  ;;  %v4570_v4 = vld [vmem:[%s4912_s1 + $0x140] sm:$0xff]  }
  0xf2   : > { %v438_v6 = vpop.f32.mrf.mxu1  ;;  %3407 = vmatpush3.bf16.msra.mxu0 %v3900_v54 }
  0xf3   : > { %3427 = vmatpush3.bf16.msra.mxu1 %v3900_v54  ;;  %v3143_v7 = vpop.f32.mrf.mxu0  ;;  %3408 = vmatprep.subr.bf16.mxu0 %v3982_v1 }
  0xf4   : > { %v3163_v8 = vpop.f32.mrf.mxu1  ;;  %3428 = vmatprep.subr.bf16.mxu1 %v3982_v1 }
  0xf6   : > { %3409 = vmatpush3.bf16.msra.mxu0 %v3901_v55 }
  0xf7   : > { %3429 = vmatpush3.bf16.msra.mxu1 %v3901_v55  ;;  %3410 = vmatprep.subr.bf16.mxu0 %v3982_v1 }
  0xf8   : > { %3430 = vmatprep.subr.bf16.mxu1 %v3982_v1 }
  0xfa   : > { %3411 = vmatpush3.bf16.msra.mxu0 %v3902_v56 }
  0xfb   : > { %3431 = vmatpush3.bf16.msra.mxu1 %v3902_v56  ;;  %3412 = vmatprep.subr.bf16.mxu0 %v3982_v1  ;;  %v4532_v56 = vld [vmem:[%s4912_s1 + $0x160] sm:$0xff]  }
  0xfc   : > { %3432 = vmatprep.subr.bf16.mxu1 %v3982_v1 }
  0xfe   : > { %3413 = vmatpush3.bf16.msra.mxu0 %v3903_v57 }
  0xff   : > { %3433 = vmatpush3.bf16.msra.mxu1 %v3903_v57  ;;  %3414 = vmatprep.subr.bf16.mxu0 %v3982_v1  ;;  %v4541_v57 = vld [vmem:[%s4912_s1 + $0x158] sm:$0xff]  }
 0x100   : > { %3434 = vmatprep.subr.bf16.mxu1 %v3982_v1 }
 0x102   : > { %3415 = vmatpush3.bf16.msra.mxu0 %v3904_v58 }
 0x103   : > { %3435 = vmatpush3.bf16.msra.mxu1 %v3904_v58  ;;  %3416 = vmatprep.subr.bf16.mxu0 %v3982_v1  ;;  %v3923_v58 = vld [vmem:[%s4137_s26 + $0x28] ss:$0 sps:$4 sm:$0x77]  }
 0x104   : > { %3436 = vmatprep.subr.bf16.mxu1 %v3982_v1  ;;  %v1462_v61 = vshll.u32 %v3923_v58, 16  ;;  %v1460_v0 = vshrl.u32 %v3923_v58, 16 }
 0x106   : > { %3417 = vmatpush3.bf16.msra.mxu0 %v3905_v59  ;;  %v1464_v3 = vrot.slane %v1462_v61, 1  ;;  %v4714_v61 = vld [vmem:[%s4912_s1 + $0x1f8] sm:$0xff]  }
 0x107   : > { %3437 = vmatpush3.bf16.msra.mxu1 %v3905_v59  ;;  %3418 = vmatprep.subr.bf16.mxu0 %v3982_v1  ;;  %v4551_v59 = vld [vmem:[%s4912_s1 + $0x150] sm:$0xff]  }
 0x108   : > { %3438 = vmatprep.subr.bf16.mxu1 %v3982_v1  ;;  %v1465_v7 = vor.u32 %v1464_v3, %v1460_v0  ;;  %v3954_v0 = vld [vmem:[%s4137_s26 + $0xc] sm:$0x3] }
 0x10a   : > { %3419 = vmatpush3.bf16.msra.mxu0 %v3906_v60 }
 0x10b   : > { %3439 = vmatpush3.bf16.msra.mxu1 %v3906_v60  ;;  %3444 = vmatprep.subr.bf16.mxu0 %v3982_v1  ;;  %v3924_v60 = vld [vmem:[%s4137_s26 + $0x2c] ss:$0 sps:$4 sm:$0x77]  }
 0x10c   : > { %3464 = vmatprep.subr.bf16.mxu1 %v3982_v1  ;;  %v1563_v63 = vshll.u32 %v3924_v60, 16  ;;  %v1561_v5 = vshrl.u32 %v3924_v60, 16 }
 0x10d   : > { %v477_v12 = vpop.f32.mrf.mxu0  ;;  %3421 = vmatmul.mubr.bf16.vlgmr.msra.gmra.mxu0 %v2655_v9 }
 0x10e   : > { %v517_v13 = vpop.f32.mrf.mxu1  ;;  %3441 = vmatmul.mubr.bf16.vlgmr.msra.gmra.mxu1 %v2656_v11  ;;  %3445 = vmatpush3.bf16.msra.mxu0 %v4415_v10  ;;  %v1565_v6 = vrot.slane %v1563_v63, 1 }
 0x10f   : > { %v4426_v15 = vadd.f32 %v517_v13, %v477_v12  ;;  %3465 = vmatpush3.bf16.msra.mxu1 %v4415_v10  ;;  %v3182_v16 = vpop.f32.mrf.mxu0  ;;  %3446 = vmatprep.subr.bf16.mxu0 %v3982_v1 }
 0x110   : > { %v3202_v17 = vpop.f32.mrf.mxu1  ;;  %3466 = vmatprep.subr.bf16.mxu1 %v3982_v1  ;;  %3460 = vmatprep.mubr.msk.bf16.mxu0 %vm3983_vm0, %v3982_v1  ;;  %v1566_v8 = vor.u32 %v1565_v6, %v1561_v5  ;;  %v4727_v5 = vld [vmem:[%s4912_s1 + $0x1f0] sm:$0xff]  }
 0x111   : > { %v480_v18 = vpop.f32.mrf.mxu0  ;;  %3480 = vmatprep.mubr.msk.bf16.mxu1 %vm3983_vm0, %v3982_v1 }
 0x112   : > { %v520_v19 = vpop.f32.mrf.mxu1  ;;  %3447 = vmatpush3.bf16.msra.mxu0 %v4424_v14  ;;  %v3925_v18 = vld [vmem:[%s4137_s26 + $0x30] ss:$0 sps:$4 sm:$0x77]  }
 0x113   : > { %3467 = vmatpush3.bf16.msra.mxu1 %v4424_v14  ;;  %v3183_v21 = vpop.f32.mrf.mxu0  ;;  %3448 = vmatprep.subr.bf16.mxu0 %v3982_v1  ;;  %v3926_v19 = vld [vmem:[%s4137_s26 + $0x34] ss:$0 sps:$4 sm:$0x77]  }
 0x114   : > { %v3203_v22 = vpop.f32.mrf.mxu1  ;;  %3468 = vmatprep.subr.bf16.mxu1 %v3982_v1  ;;  %v1669_v21 = vshll.u32 %v3926_v19, 16 }
 0x115   : > { %v1614_v22 = vshrl.u32 %v3925_v18, 16 }
 0x116   : > { %3449 = vmatpush3.bf16.msra.mxu0 %v3909_v20 }
 0x117   : > { %3469 = vmatpush3.bf16.msra.mxu1 %v3909_v20  ;;  %3450 = vmatprep.subr.bf16.mxu0 %v3982_v1 }
 0x118   : > { %3470 = vmatprep.subr.bf16.mxu1 %v3982_v1 }
 0x11a   : > { %3451 = vmatpush3.bf16.msra.mxu0 %v3910_v23 }
 0x11b   : > { %3471 = vmatpush3.bf16.msra.mxu1 %v3910_v23  ;;  %3452 = vmatprep.subr.bf16.mxu0 %v3982_v1 }
 0x11c   : > { %3472 = vmatprep.subr.bf16.mxu1 %v3982_v1 }
 0x11e   : > { %3453 = vmatpush3.bf16.msra.mxu0 %v3911_v24 }
 0x11f   : > { %3473 = vmatpush3.bf16.msra.mxu1 %v3911_v24  ;;  %3454 = vmatprep.subr.bf16.mxu0 %v3982_v1 }
 0x120   : > { %3474 = vmatprep.subr.bf16.mxu1 %v3982_v1 }
 0x122   : > { %3455 = vmatpush3.bf16.msra.mxu0 %v3912_v25 }
 0x123   : > { %3475 = vmatpush3.bf16.msra.mxu1 %v3912_v25  ;;  %3456 = vmatprep.subr.bf16.mxu0 %v3982_v1 }
 0x124   : > { %3476 = vmatprep.subr.bf16.mxu1 %v3982_v1 }
 0x126   : > { %3457 = vmatpush3.bf16.msra.mxu0 %v3913_v26 }
 0x127   : > { %3477 = vmatpush3.bf16.msra.mxu1 %v3913_v26  ;;  %3458 = vmatprep.subr.bf16.mxu0 %v3982_v1 }
 0x128   : > { %3478 = vmatprep.subr.bf16.mxu1 %v3982_v1 }
 0x12a   : > { %3459 = vmatpush3.bf16.msra.mxu0 %v3914_v27 }
 0x12b   : > { %3479 = vmatpush3.bf16.msra.mxu1 %v3914_v27  ;;  %3484 = vmatprep.subr.bf16.mxu0 %v3982_v1 }
 0x12c   : > { %3504 = vmatprep.subr.bf16.mxu1 %v3982_v1 }
 0x12d   : > { %v559_v30 = vpop.f32.mrf.mxu0  ;;  %3461 = vmatmul.mubr.bf16.vlgmr.msra.gmra.mxu0 %v2673_v28  ;;  %v4623_v28 = vld [vmem:[%s4912_s1 + $0x1b8] sm:$0xff]  }
 0x12e   : > { %v599_v31 = vpop.f32.mrf.mxu1  ;;  %3481 = vmatmul.mubr.bf16.vlgmr.msra.gmra.mxu1 %v2682_v29  ;;  %3485 = vmatpush3.bf16.msra.mxu0 %v4415_v10 }
 0x12f   : > { %v4472_v32 = vadd.f32 %v599_v31, %v559_v30  ;;  %3505 = vmatpush3.bf16.msra.mxu1 %v4415_v10  ;;  %v3222_v33 = vpop.f32.mrf.mxu0  ;;  %3486 = vmatprep.subr.bf16.mxu0 %v3982_v1 }
 0x130   : > { %v3242_v34 = vpop.f32.mrf.mxu1  ;;  %3506 = vmatprep.subr.bf16.mxu1 %v3982_v1  ;;  %3500 = vmatprep.mubr.msk.bf16.mxu0 %vm3983_vm0, %v3982_v1  ;;  %v4635_v33 = vld [vmem:[%s4912_s1 + $0x1b0] sm:$0xff]  }
 0x131   : > { %v562_v35 = vpop.f32.mrf.mxu0  ;;  %3520 = vmatprep.mubr.msk.bf16.mxu1 %vm3983_vm0, %v3982_v1 }
 0x132   : > { %v602_v36 = vpop.f32.mrf.mxu1  ;;  %3487 = vmatpush3.bf16.msra.mxu0 %v4424_v14 }
 0x133   : > { %3507 = vmatpush3.bf16.msra.mxu1 %v4424_v14  ;;  %v3223_v37 = vpop.f32.mrf.mxu0  ;;  %3488 = vmatprep.subr.bf16.mxu0 %v3982_v1 }
 0x134   : > { %v3243_v38 = vpop.f32.mrf.mxu1  ;;  %3508 = vmatprep.subr.bf16.mxu1 %v3982_v1 }
 0x135   : > { %v3929_v38 = vld [vmem:[%s4912_s1 + $0x1a8] sm:$0xff]  }
 0x136   : > { %3489 = vmatpush3.bf16.msra.mxu0 %v3909_v20 }
 0x137   : > { %3509 = vmatpush3.bf16.msra.mxu1 %v3909_v20  ;;  %3490 = vmatprep.subr.bf16.mxu0 %v3982_v1  ;;  %v1616_v20 = vshll.u32 %v3925_v18, 16 }
 0x138   : > { %3510 = vmatprep.subr.bf16.mxu1 %v3982_v1 }
 0x13a   : > { %3491 = vmatpush3.bf16.msra.mxu0 %v3910_v23 }
 0x13b   : > { %3511 = vmatpush3.bf16.msra.mxu1 %v3910_v23  ;;  %3492 = vmatprep.subr.bf16.mxu0 %v3982_v1  ;;  %v1618_v23 = vrot.slane %v1616_v20, 1 }
 0x13c   : > { %3512 = vmatprep.subr.bf16.mxu1 %v3982_v1 }
 0x13e   : > { %3493 = vmatpush3.bf16.msra.mxu0 %v3911_v24 }
 0x13f   : > { %3513 = vmatpush3.bf16.msra.mxu1 %v3911_v24  ;;  %3494 = vmatprep.subr.bf16.mxu0 %v3982_v1  ;;  %v1667_v24 = vshrl.u32 %v3926_v19, 16  ;;  %v3955_v19 = vld [vmem:[%s4137_s26 + $0x18] sm:$0x3] }
 0x140   : > { %3514 = vmatprep.subr.bf16.mxu1 %v3982_v1 }
 0x142   : > { %3495 = vmatpush3.bf16.msra.mxu0 %v3912_v25 }
 0x143   : > { %3515 = vmatpush3.bf16.msra.mxu1 %v3912_v25  ;;  %3496 = vmatprep.subr.bf16.mxu0 %v3982_v1  ;;  %v1671_v25 = vrot.slane %v1669_v21, 1 }
 0x144   : > { %3516 = vmatprep.subr.bf16.mxu1 %v3982_v1 }
 0x146   : > { %3497 = vmatpush3.bf16.msra.mxu0 %v3913_v26 }
 0x147   : > { %3517 = vmatpush3.bf16.msra.mxu1 %v3913_v26  ;;  %3498 = vmatprep.subr.bf16.mxu0 %v3982_v1  ;;  %v1619_v26 = vor.u32 %v1618_v23, %v1614_v22  ;;  %v3956_v22 = vld [vmem:[%s4137_s26 + $0x1c] sm:$0x3] }
 0x148   : > { %3518 = vmatprep.subr.bf16.mxu1 %v3982_v1 }
 0x14a   : > { %3499 = vmatpush3.bf16.msra.mxu0 %v3914_v27 }
 0x14b   : > { %3519 = vmatpush3.bf16.msra.mxu1 %v3914_v27  ;;  %3524 = vmatprep.subr.bf16.mxu0 %v3982_v1  ;;  %v1672_v27 = vor.u32 %v1671_v25, %v1667_v24 }
 0x14c   : > { %3544 = vmatprep.subr.bf16.mxu1 %v3982_v1 }
 0x14d   : > { %v641_v43 = vpop.f32.mrf.mxu0  ;;  %3501 = vmatmul.mubr.bf16.vlgmr.msra.gmra.mxu0 %v2683_v39 }
 0x14e   : > { %v681_v44 = vpop.f32.mrf.mxu1  ;;  %3521 = vmatmul.mubr.bf16.vlgmr.msra.gmra.mxu1 %v2684_v41  ;;  %3525 = vmatpush3.bf16.msra.mxu0 %v4499_v40  ;;  %v3930_v41 = vld [vmem:[%s4912_s1 + $0x1a0] sm:$0xff]  }
 0x14f   : > { %v4510_v46 = vadd.f32 %v681_v44, %v641_v43  ;;  %3545 = vmatpush3.bf16.msra.mxu1 %v4499_v40  ;;  %v3262_v47 = vpop.f32.mrf.mxu0  ;;  %3526 = vmatprep.subr.bf16.mxu0 %v3982_v1  ;;  %v3931_v43 = vld [vmem:[%s4912_s1 + $0x198] sm:$0xff]   ;;  %v3932_v44 = vld [vmem:[%s4912_s1 + $0x190] sm:$0xff]  }
 0x150   : > { %v3282_v48 = vpop.f32.mrf.mxu1  ;;  %3546 = vmatprep.subr.bf16.mxu1 %v3982_v1  ;;  %3540 = vmatprep.mubr.msk.bf16.mxu0 %vm3983_vm0, %v3982_v1 }
 0x151   : > { %v644_v49 = vpop.f32.mrf.mxu0  ;;  %3560 = vmatprep.mubr.msk.bf16.mxu1 %vm3983_vm0, %v3982_v1  ;;  %v3952_v48 = vld [vmem:[%s4137_s26 + $0x4] sm:$0x3] }
 0x152   : > { %v684_v50 = vpop.f32.mrf.mxu1  ;;  %3527 = vmatpush3.bf16.msra.mxu0 %v4508_v45 }
 0x153   : > { %3547 = vmatpush3.bf16.msra.mxu1 %v4508_v45  ;;  %v3263_v54 = vpop.f32.mrf.mxu0  ;;  %3528 = vmatprep.subr.bf16.mxu0 %v3982_v1 }
 0x154   : > { %v3283_v55 = vpop.f32.mrf.mxu1  ;;  %3548 = vmatprep.subr.bf16.mxu1 %v3982_v1 }
 0x156   : > { %3529 = vmatpush3.bf16.msra.mxu0 %v4523_v53 }
 0x157   : > { %3549 = vmatpush3.bf16.msra.mxu1 %v4523_v53  ;;  %3530 = vmatprep.subr.bf16.mxu0 %v3982_v1 }
 0x158   : > { %3550 = vmatprep.subr.bf16.mxu1 %v3982_v1 }
 0x15a   : > { %3531 = vmatpush3.bf16.msra.mxu0 %v4532_v56 }
 0x15b   : > { %3551 = vmatpush3.bf16.msra.mxu1 %v4532_v56  ;;  %3532 = vmatprep.subr.bf16.mxu0 %v3982_v1 }
 0x15c   : > { %3552 = vmatprep.subr.bf16.mxu1 %v3982_v1 }
 0x15e   : > { %3533 = vmatpush3.bf16.msra.mxu0 %v4541_v57 }
 0x15f   : > { %3553 = vmatpush3.bf16.msra.mxu1 %v4541_v57  ;;  %3534 = vmatprep.subr.bf16.mxu0 %v3982_v1 }
 0x160   : > { %3554 = vmatprep.subr.bf16.mxu1 %v3982_v1 }
 0x162   : > { %3535 = vmatpush3.bf16.msra.mxu0 %v4551_v59 }
 0x163   : > { %3555 = vmatpush3.bf16.msra.mxu1 %v4551_v59  ;;  %3536 = vmatprep.subr.bf16.mxu0 %v3982_v1 }
 0x164   : > { %3556 = vmatprep.subr.bf16.mxu1 %v3982_v1 }
 0x166   : > { %3537 = vmatpush3.bf16.msra.mxu0 %v4561_v62 }
 0x167   : > { %3557 = vmatpush3.bf16.msra.mxu1 %v4561_v62  ;;  %3538 = vmatprep.subr.bf16.mxu0 %v3982_v1 }
 0x168   : > { %3558 = vmatprep.subr.bf16.mxu1 %v3982_v1 }
 0x16a   : > { %3539 = vmatpush3.bf16.msra.mxu0 %v4570_v4 }
 0x16b   : > { %3559 = vmatpush3.bf16.msra.mxu1 %v4570_v4  ;;  %3564 = vmatprep.subr.bf16.mxu0 %v3982_v1 }
 0x16c   : > { %3584 = vmatprep.subr.bf16.mxu1 %v3982_v1 }
 0x16d   : > { %v798_v9 = vpop.f32.mrf.mxu0  ;;  %3541 = vmatmul.mubr.bf16.vlgmr.msra.gmra.mxu0 %v1465_v7 }
 0x16e   : > { %v4580_v10 = vadd.f32 %v798_v9, %v4391_v2  ;;  %v851_v11 = vpop.f32.mrf.mxu1  ;;  %3561 = vmatmul.mubr.bf16.vlgmr.msra.gmra.mxu1 %v1566_v8  ;;  %3565 = vmatpush3.bf16.msra.mxu0 %v4499_v40 }
 0x16f   : > { %v4584_v12 = vadd.f32 %v851_v11, %v4426_v15  ;;  %3585 = vmatpush3.bf16.msra.mxu1 %v4499_v40  ;;  %v3302_v13 = vpop.f32.mrf.mxu0  ;;  %3566 = vmatprep.subr.bf16.mxu0 %v3982_v1  ;;  %v3937_v11 = vld [vmem:[%s4912_s1 + $0x1e8] sm:$0xff]  }
 0x170   : > { %v3322_v14 = vpop.f32.mrf.mxu1  ;;  %3586 = vmatprep.subr.bf16.mxu1 %v3982_v1  ;;  %3580 = vmatprep.mubr.msk.bf16.mxu0 %vm3983_vm0, %v3982_v1 }
 0x171   : > { %v801_v2 = vpop.f32.mrf.mxu0  ;;  %3600 = vmatprep.mubr.msk.bf16.mxu1 %vm3983_vm0, %v3982_v1  ;;  %v3938_v14 = vld [vmem:[%s4912_s1 + $0x1e0] sm:$0xff]  }
 0x172   : > { %v854_v16 = vpop.f32.mrf.mxu1  ;;  %3567 = vmatpush3.bf16.msra.mxu0 %v4508_v45  ;;  %v3939_v2 = vld [vmem:[%s4912_s1 + $0x1d8] sm:$0xff]  }
 0x173   : > { %3587 = vmatpush3.bf16.msra.mxu1 %v4508_v45  ;;  %v3303_v15 = vpop.f32.mrf.mxu0  ;;  %3568 = vmatprep.subr.bf16.mxu0 %v3982_v1  ;;  %v3933_v45 = vld [vmem:[%s4912_s1 + $0x188] sm:$0xff]   ;;  %v3940_v16 = vld [vmem:[%s4912_s1 + $0x1d0] sm:$0xff]  }
 0x174   : > { %v3323_v17 = vpop.f32.mrf.mxu1  ;;  %3588 = vmatprep.subr.bf16.mxu1 %v3982_v1  ;;  %v3941_v15 = vld [vmem:[%s4912_s1 + $0x1c8] sm:$0xff]  }
 0x175   : > { %v3942_v17 = vld [vmem:[%s4912_s1 + $0x1c0] sm:$0xff]  }
 0x176   : > { %3569 = vmatpush3.bf16.msra.mxu0 %v4523_v53 }
 0x177   : > { %3589 = vmatpush3.bf16.msra.mxu1 %v4523_v53  ;;  %3570 = vmatprep.subr.bf16.mxu0 %v3982_v1  ;;  %v3953_v53 = vld [vmem:[%s4137_s26 + $0x8] sm:$0x3] }
 0x178   : > { %3590 = vmatprep.subr.bf16.mxu1 %v3982_v1 }
 0x17a   : > { %3571 = vmatpush3.bf16.msra.mxu0 %v4532_v56 }
 0x17b   : > { %3591 = vmatpush3.bf16.msra.mxu1 %v4532_v56  ;;  %3572 = vmatprep.subr.bf16.mxu0 %v3982_v1 }
 0x17c   : > { %3592 = vmatprep.subr.bf16.mxu1 %v3982_v1 }
 0x17e   : > { %3573 = vmatpush3.bf16.msra.mxu0 %v4541_v57 }
 0x17f   : > { %3593 = vmatpush3.bf16.msra.mxu1 %v4541_v57  ;;  %3574 = vmatprep.subr.bf16.mxu0 %v3982_v1 }
 0x180   : > { %3594 = vmatprep.subr.bf16.mxu1 %v3982_v1 }
 0x182   : > { %3575 = vmatpush3.bf16.msra.mxu0 %v4551_v59 }
 0x183   : > { %3595 = vmatpush3.bf16.msra.mxu1 %v4551_v59  ;;  %3576 = vmatprep.subr.bf16.mxu0 %v3982_v1 }
 0x184   : > { %3596 = vmatprep.subr.bf16.mxu1 %v3982_v1 }
 0x186   : > { %3577 = vmatpush3.bf16.msra.mxu0 %v4561_v62 }
 0x187   : > { %3597 = vmatpush3.bf16.msra.mxu1 %v4561_v62  ;;  %3578 = vmatprep.subr.bf16.mxu0 %v3982_v1  ;;  %v2741_v62 = vld [vmem:[%s4137_s26 + $0x10] sm:$0x3] }
 0x188   : > { %3598 = vmatprep.subr.bf16.mxu1 %v3982_v1 }
 0x18a   : > { %3579 = vmatpush3.bf16.msra.mxu0 %v4570_v4 }
 0x18b   : > { %3599 = vmatpush3.bf16.msra.mxu1 %v4570_v4  ;;  %3604 = vmatprep.subr.bf16.mxu0 %v3982_v1 }
 0x18c   : > { %3624 = vmatprep.subr.bf16.mxu1 %v3982_v1 }
 0x18d   : > { %v904_v29 = vpop.f32.mrf.mxu0  ;;  %3581 = vmatmul.mubr.bf16.vlgmr.msra.gmra.mxu0 %v1619_v26 }
 0x18e   : > { %v4629_v30 = vadd.f32 %v904_v29, %v4472_v32  ;;  %v957_v31 = vpop.f32.mrf.mxu1  ;;  %3601 = vmatmul.mubr.bf16.vlgmr.msra.gmra.mxu1 %v1672_v27  ;;  %3605 = vmatpush3.bf16.msra.mxu0 %v4623_v28 }
 0x18f   : > { %v4638_v34 = vadd.f32 %v957_v31, %v4510_v46  ;;  %3625 = vmatpush3.bf16.msra.mxu1 %v4623_v28  ;;  %v3342_v35 = vpop.f32.mrf.mxu0  ;;  %3606 = vmatprep.subr.bf16.mxu0 %v3982_v1  ;;  %v3934_v46 = vld [vmem:[%s4912_s1 + $0x180] sm:$0xff]  }
 0x190   : > { %v3362_v36 = vpop.f32.mrf.mxu1  ;;  %3626 = vmatprep.subr.bf16.mxu1 %v3982_v1  ;;  %3620 = vmatprep.mubr.msk.bf16.mxu0 %vm3983_vm0, %v3982_v1  ;;  %v2766_v31 = vld [vmem:[%s4137_s26 + $0x24] sm:$0x3] }
 0x191   : > { %v907_v32 = vpop.f32.mrf.mxu0  ;;  %3640 = vmatprep.mubr.msk.bf16.mxu1 %vm3983_vm0, %v3982_v1 }
 0x192   : > { %v960_v37 = vpop.f32.mrf.mxu1  ;;  %3607 = vmatpush3.bf16.msra.mxu0 %v4635_v33  ;;  %v4819_v32 = vld [vmem:[%s4912_s1 + $0x230] sm:$0xff]  }
 0x193   : > { %3627 = vmatpush3.bf16.msra.mxu1 %v4635_v33  ;;  %v3343_v39 = vpop.f32.mrf.mxu0  ;;  %3608 = vmatprep.subr.bf16.mxu0 %v3982_v1 }
 0x194   : > { %v3363_v40 = vpop.f32.mrf.mxu1  ;;  %3628 = vmatprep.subr.bf16.mxu1 %v3982_v1 }
 0x196   : > { %3609 = vmatpush3.bf16.msra.mxu0 %v3929_v38 }
 0x197   : > { %3629 = vmatpush3.bf16.msra.mxu1 %v3929_v38  ;;  %3610 = vmatprep.subr.bf16.mxu0 %v3982_v1 }
 0x198   : > { %3630 = vmatprep.subr.bf16.mxu1 %v3982_v1 }
 0x19a   : > { %3611 = vmatpush3.bf16.msra.mxu0 %v3930_v41 }
 0x19b   : > { %3631 = vmatpush3.bf16.msra.mxu1 %v3930_v41  ;;  %3612 = vmatprep.subr.bf16.mxu0 %v3982_v1 }
 0x19c   : > { %3632 = vmatprep.subr.bf16.mxu1 %v3982_v1 }
 0x19e   : > { %3613 = vmatpush3.bf16.msra.mxu0 %v3931_v43 }
 0x19f   : > { %3633 = vmatpush3.bf16.msra.mxu1 %v3931_v43  ;;  %3614 = vmatprep.subr.bf16.mxu0 %v3982_v1 }
 0x1a0   : > { %3634 = vmatprep.subr.bf16.mxu1 %v3982_v1 }
 0x1a2   : > { %3615 = vmatpush3.bf16.msra.mxu0 %v3932_v44 }
 0x1a3   : > { %3635 = vmatpush3.bf16.msra.mxu1 %v3932_v44  ;;  %3616 = vmatprep.subr.bf16.mxu0 %v3982_v1 }
 0x1a4   : > { %3636 = vmatprep.subr.bf16.mxu1 %v3982_v1 }
 0x1a6   : > { %3617 = vmatpush3.bf16.msra.mxu0 %v3933_v45 }
 0x1a7   : > { %3637 = vmatpush3.bf16.msra.mxu1 %v3933_v45  ;;  %3618 = vmatprep.subr.bf16.mxu0 %v3982_v1 }
 0x1a8   : > { %3638 = vmatprep.subr.bf16.mxu1 %v3982_v1 }
 0x1aa   : > { %3619 = vmatpush3.bf16.msra.mxu0 %v3934_v46 }
 0x1ab   : > { %3639 = vmatpush3.bf16.msra.mxu1 %v3934_v46  ;;  %3644 = vmatprep.subr.bf16.mxu0 %v3982_v1 }
 0x1ac   : > { %3664 = vmatprep.subr.bf16.mxu1 %v3982_v1 }
 0x1ad   : > { %v1065_v47 = vpop.f32.mrf.mxu0  ;;  %3621 = vmatmul.mubr.bf16.vlgmr.msra.gmra.mxu0 %v3952_v48  ;;  %v3948_v48 = vld [vmem:[%s4912_s1 + $0x210] sm:$0xff]  }
 0x1ae   : > { %v4683_v49 = vadd.f32 %v1065_v47, %v4580_v10  ;;  %v1108_v50 = vpop.f32.mrf.mxu1  ;;  %3641 = vmatmul.mubr.bf16.vlgmr.msra.gmra.mxu1 %v3953_v53  ;;  %3645 = vmatpush3.bf16.msra.mxu0 %v4623_v28  ;;  %v3947_v47 = vld [vmem:[%s4912_s1 + $0x218] sm:$0xff]  }
 0x1af   : > { %v4688_v54 = vadd.f32 %v1108_v50, %v4584_v12  ;;  %3665 = vmatpush3.bf16.msra.mxu1 %v4623_v28  ;;  %v3382_v55 = vpop.f32.mrf.mxu0  ;;  %3646 = vmatprep.subr.bf16.mxu0 %v3982_v1  ;;  %v3950_v50 = vld [vmem:[%s4912_s1 + $0x200] sm:$0xff]  }
 0x1b0   : > { %v3402_v56 = vpop.f32.mrf.mxu1  ;;  %3666 = vmatprep.subr.bf16.mxu1 %v3982_v1  ;;  %3660 = vmatprep.mubr.msk.bf16.mxu0 %vm3983_vm0, %v3982_v1 }
 0x1b1   : > { %v1068_v57 = vpop.f32.mrf.mxu0  ;;  %3680 = vmatprep.mubr.msk.bf16.mxu1 %vm3983_vm0, %v3982_v1 }
 0x1b2   : > { %v1111_v58 = vpop.f32.mrf.mxu1  ;;  %3647 = vmatpush3.bf16.msra.mxu0 %v4635_v33 }
 0x1b3   : > { %3667 = vmatpush3.bf16.msra.mxu1 %v4635_v33  ;;  %v3383_v59 = vpop.f32.mrf.mxu0  ;;  %3648 = vmatprep.subr.bf16.mxu0 %v3982_v1 }
 0x1b4   : > { %v3403_v60 = vpop.f32.mrf.mxu1  ;;  %3668 = vmatprep.subr.bf16.mxu1 %v3982_v1 }
 0x1b6   : > { %3649 = vmatpush3.bf16.msra.mxu0 %v3929_v38 }
 0x1b7   : > { %3669 = vmatpush3.bf16.msra.mxu1 %v3929_v38  ;;  %3650 = vmatprep.subr.bf16.mxu0 %v3982_v1 }
 0x1b8   : > { %3670 = vmatprep.subr.bf16.mxu1 %v3982_v1 }
 0x1ba   : > { %3651 = vmatpush3.bf16.msra.mxu0 %v3930_v41 }
 0x1bb   : > { %3671 = vmatpush3.bf16.msra.mxu1 %v3930_v41  ;;  %3652 = vmatprep.subr.bf16.mxu0 %v3982_v1 }
 0x1bc   : > { %3672 = vmatprep.subr.bf16.mxu1 %v3982_v1 }
 0x1be   : > { %3653 = vmatpush3.bf16.msra.mxu0 %v3931_v43 }
 0x1bf   : > { %3673 = vmatpush3.bf16.msra.mxu1 %v3931_v43  ;;  %3654 = vmatprep.subr.bf16.mxu0 %v3982_v1  ;;  %v3945_v43 = vld [vmem:[%s4912_s1 + $0x228] sm:$0xff]  }
 0x1c0   : > { %3674 = vmatprep.subr.bf16.mxu1 %v3982_v1 }
 0x1c2   : > { %3655 = vmatpush3.bf16.msra.mxu0 %v3932_v44 }
 0x1c3   : > { %3675 = vmatpush3.bf16.msra.mxu1 %v3932_v44  ;;  %3656 = vmatprep.subr.bf16.mxu0 %v3982_v1 }
 0x1c4   : > { %3676 = vmatprep.subr.bf16.mxu1 %v3982_v1 }
 0x1c6   : > { %3657 = vmatpush3.bf16.msra.mxu0 %v3933_v45 }
 0x1c7   : > { %3677 = vmatpush3.bf16.msra.mxu1 %v3933_v45  ;;  %3658 = vmatprep.subr.bf16.mxu0 %v3982_v1 }
 0x1c8   : > { %3678 = vmatprep.subr.bf16.mxu1 %v3982_v1 }
 0x1ca   : > { %3659 = vmatpush3.bf16.msra.mxu0 %v3934_v46 }
 0x1cb   : > { %3679 = vmatpush3.bf16.msra.mxu1 %v3934_v46  ;;  %3684 = vmatprep.subr.bf16.mxu0 %v3982_v1  ;;  %v3946_v46 = vld [vmem:[%s4912_s1 + $0x220] sm:$0xff]  }
 0x1cc   : > { %3704 = vmatprep.subr.bf16.mxu1 %v3982_v1 }
 0x1cd   : > { %v1151_v63 = vpop.f32.mrf.mxu0  ;;  %3661 = vmatmul.mubr.bf16.vlgmr.msra.gmra.mxu0 %v3954_v0 }
 0x1ce   : > { %v4721_v3 = vadd.f32 %v1151_v63, %v4629_v30  ;;  %v1194_v4 = vpop.f32.mrf.mxu1  ;;  %3681 = vmatmul.mubr.bf16.vlgmr.msra.gmra.mxu1 %v2741_v62  ;;  %3685 = vmatpush3.bf16.msra.mxu0 %v4714_v61  ;;  %v4806_v30 = vld [vmem:[%s4912_s1 + $0x238] sm:$0xff]  }
 0x1cf   : > { %v4730_v6 = vadd.f32 %v1194_v4, %v4638_v34  ;;  %3705 = vmatpush3.bf16.msra.mxu1 %v4714_v61  ;;  %v3422_v7 = vpop.f32.mrf.mxu0  ;;  %3686 = vmatprep.subr.bf16.mxu0 %v3982_v1  ;;  %v3957_v34 = vld [vmem:[%s4137_s26 + $0x20] sm:$0x3] }
 0x1d0   : > { %v3442_v8 = vpop.f32.mrf.mxu1  ;;  %3706 = vmatprep.subr.bf16.mxu1 %v3982_v1  ;;  %3700 = vmatprep.mubr.msk.bf16.mxu0 %vm3983_vm0, %v3982_v1 }
 0x1d1   : > { %v1154_v9 = vpop.f32.mrf.mxu0  ;;  %3720 = vmatprep.mubr.msk.bf16.mxu1 %vm3983_vm0, %v3982_v1 }
 0x1d2   : > { %v1197_v10 = vpop.f32.mrf.mxu1  ;;  %3687 = vmatpush3.bf16.msra.mxu0 %v4727_v5 }
 0x1d3   : > { %3707 = vmatpush3.bf16.msra.mxu1 %v4727_v5  ;;  %v3423_v12 = vpop.f32.mrf.mxu0  ;;  %3688 = vmatprep.subr.bf16.mxu0 %v3982_v1 }
 0x1d4   : > { %v3443_v13 = vpop.f32.mrf.mxu1  ;;  %3708 = vmatprep.subr.bf16.mxu1 %v3982_v1 }
 0x1d6   : > { %3689 = vmatpush3.bf16.msra.mxu0 %v3937_v11 }
 0x1d7   : > { %3709 = vmatpush3.bf16.msra.mxu1 %v3937_v11  ;;  %3690 = vmatprep.subr.bf16.mxu0 %v3982_v1 }
 0x1d8   : > { %3710 = vmatprep.subr.bf16.mxu1 %v3982_v1 }
 0x1da   : > { %3691 = vmatpush3.bf16.msra.mxu0 %v3938_v14 }
 0x1db   : > { %3711 = vmatpush3.bf16.msra.mxu1 %v3938_v14  ;;  %3692 = vmatprep.subr.bf16.mxu0 %v3982_v1 }
 0x1dc   : > { %3712 = vmatprep.subr.bf16.mxu1 %v3982_v1 }
 0x1de   : > { %3693 = vmatpush3.bf16.msra.mxu0 %v3939_v2 }
 0x1df   : > { %3713 = vmatpush3.bf16.msra.mxu1 %v3939_v2  ;;  %3694 = vmatprep.subr.bf16.mxu0 %v3982_v1 }
 0x1e0   : > { %3714 = vmatprep.subr.bf16.mxu1 %v3982_v1 }
 0x1e2   : > { %3695 = vmatpush3.bf16.msra.mxu0 %v3940_v16 }
 0x1e3   : > { %3715 = vmatpush3.bf16.msra.mxu1 %v3940_v16  ;;  %3696 = vmatprep.subr.bf16.mxu0 %v3982_v1 }
 0x1e4   : > { %3716 = vmatprep.subr.bf16.mxu1 %v3982_v1 }
 0x1e6   : > { %3697 = vmatpush3.bf16.msra.mxu0 %v3941_v15 }
 0x1e7   : > { %3717 = vmatpush3.bf16.msra.mxu1 %v3941_v15  ;;  %3698 = vmatprep.subr.bf16.mxu0 %v3982_v1 }
 0x1e8   : > { %3718 = vmatprep.subr.bf16.mxu1 %v3982_v1 }
 0x1ea   : > { %3699 = vmatpush3.bf16.msra.mxu0 %v3942_v17 }
 0x1eb   : > { %3719 = vmatpush3.bf16.msra.mxu1 %v3942_v17  ;;  %3724 = vmatprep.subr.bf16.mxu0 %v3982_v1 }
 0x1ec   : > { %3744 = vmatprep.subr.bf16.mxu1 %v3982_v1 }
 0x1ed   : > { %v1302_v18 = vpop.f32.mrf.mxu0  ;;  %3701 = vmatmul.mubr.bf16.vlgmr.msra.gmra.mxu0 %v3955_v19 }
 0x1ee   : > { %v4775_v20 = vadd.f32 %v1302_v18, %v4683_v49  ;;  %v1345_v21 = vpop.f32.mrf.mxu1  ;;  %3721 = vmatmul.mubr.bf16.vlgmr.msra.gmra.mxu1 %v3956_v22  ;;  %3725 = vmatpush3.bf16.msra.mxu0 %v4714_v61  ;;  %v3949_v49 = vld [vmem:[%s4912_s1 + $0x208] sm:$0xff]  }
 0x1ef   : > { %v4780_v23 = vadd.f32 %v1345_v21, %v4688_v54  ;;  %3745 = vmatpush3.bf16.msra.mxu1 %v4714_v61  ;;  %v3462_v24 = vpop.f32.mrf.mxu0  ;;  %3726 = vmatprep.subr.bf16.mxu0 %v3982_v1  ;;  %v3951_v61 = vld [vmem:[%s4137_s26 + $0x10] ss:$0 sps:$4 sm:$0x77]  }
 0x1f0   : > { %v3482_v25 = vpop.f32.mrf.mxu1  ;;  %3746 = vmatprep.subr.bf16.mxu1 %v3982_v1  ;;  %3740 = vmatprep.mubr.msk.bf16.mxu0 %vm3983_vm0, %v3982_v1  ;;  %v2372_v62 = vshll.u32 %v3951_v61, 16  ;;  %v2370_v63 = vshrl.u32 %v3951_v61, 16 }
 0x1f1   : > { %v1305_v26 = vpop.f32.mrf.mxu0  ;;  %3760 = vmatprep.mubr.msk.bf16.mxu1 %vm3983_vm0, %v3982_v1 }
 0x1f2   : > { %v1348_v27 = vpop.f32.mrf.mxu1  ;;  %3727 = vmatpush3.bf16.msra.mxu0 %v4727_v5  ;;  %v2374_v0 = vrot.slane %v2372_v62, 1 }
 0x1f3   : > { %3747 = vmatpush3.bf16.msra.mxu1 %v4727_v5  ;;  %v3463_v28 = vpop.f32.mrf.mxu0  ;;  %3728 = vmatprep.subr.bf16.mxu0 %v3982_v1 }
 0x1f4   : > { %v3483_v29 = vpop.f32.mrf.mxu1  ;;  %3748 = vmatprep.subr.bf16.mxu1 %v3982_v1 }
 0x1f6   : > { %3729 = vmatpush3.bf16.msra.mxu0 %v3937_v11 }
 0x1f7   : > { %3749 = vmatpush3.bf16.msra.mxu1 %v3937_v11  ;;  %3730 = vmatprep.subr.bf16.mxu0 %v3982_v1 }
 0x1f8   : > { %3750 = vmatprep.subr.bf16.mxu1 %v3982_v1 }
 0x1fa   : > { %3731 = vmatpush3.bf16.msra.mxu0 %v3938_v14 }
 0x1fb   : > { %3751 = vmatpush3.bf16.msra.mxu1 %v3938_v14  ;;  %3732 = vmatprep.subr.bf16.mxu0 %v3982_v1 }
 0x1fc   : > { %3752 = vmatprep.subr.bf16.mxu1 %v3982_v1 }
 0x1fe   : > { %3733 = vmatpush3.bf16.msra.mxu0 %v3939_v2 }
 0x1ff   : > { %3753 = vmatpush3.bf16.msra.mxu1 %v3939_v2  ;;  %3734 = vmatprep.subr.bf16.mxu0 %v3982_v1 }
 0x200   : > { %3754 = vmatprep.subr.bf16.mxu1 %v3982_v1 }
 0x202   : > { %3735 = vmatpush3.bf16.msra.mxu0 %v3940_v16 }
 0x203   : > { %3755 = vmatpush3.bf16.msra.mxu1 %v3940_v16  ;;  %3736 = vmatprep.subr.bf16.mxu0 %v3982_v1 }
 0x204   : > { %3756 = vmatprep.subr.bf16.mxu1 %v3982_v1 }
 0x206   : > { %3737 = vmatpush3.bf16.msra.mxu0 %v3941_v15 }
 0x207   : > { %3757 = vmatpush3.bf16.msra.mxu1 %v3941_v15  ;;  %3738 = vmatprep.subr.bf16.mxu0 %v3982_v1 }
 0x208   : > { %3758 = vmatprep.subr.bf16.mxu1 %v3982_v1 }
 0x20a   : > { %3739 = vmatpush3.bf16.msra.mxu0 %v3942_v17 }
 0x20b   : > { %3759 = vmatpush3.bf16.msra.mxu1 %v3942_v17  ;;  %3764 = vmatprep.subr.bf16.mxu0 %v3982_v1 }
 0x20c   : > { %3784 = vmatprep.subr.bf16.mxu1 %v3982_v1 }
 0x20d   : > { %v1388_v33 = vpop.f32.mrf.mxu0  ;;  %3741 = vmatmul.mubr.bf16.vlgmr.msra.gmra.mxu0 %v3957_v34 }
 0x20e   : > { %v4813_v35 = vadd.f32 %v1388_v33, %v4721_v3  ;;  %v1431_v36 = vpop.f32.mrf.mxu1  ;;  %3761 = vmatmul.mubr.bf16.vlgmr.msra.gmra.mxu1 %v2766_v31  ;;  %3765 = vmatpush3.bf16.msra.mxu0 %v4806_v30  ;;  %v2375_v3 = vor.u32 %v2374_v0, %v2370_v63 }
 0x20f   : > { %v4822_v37 = vadd.f32 %v1431_v36, %v4730_v6  ;;  %3785 = vmatpush3.bf16.msra.mxu1 %v4806_v30  ;;  %v3502_v38 = vpop.f32.mrf.mxu0  ;;  %3766 = vmatprep.subr.bf16.mxu0 %v3982_v1 }
 0x210   : > { %v3522_v39 = vpop.f32.mrf.mxu1  ;;  %3786 = vmatprep.subr.bf16.mxu1 %v3982_v1  ;;  %3780 = vmatprep.mubr.msk.bf16.mxu0 %vm3983_vm0, %v3982_v1 }
 0x211   : > { %v1391_v40 = vpop.f32.mrf.mxu0  ;;  %3800 = vmatprep.mubr.msk.bf16.mxu1 %vm3983_vm0, %v3982_v1 }
 0x212   : > { %v1434_v41 = vpop.f32.mrf.mxu1  ;;  %3767 = vmatpush3.bf16.msra.mxu0 %v4819_v32 }
 0x213   : > { %3787 = vmatpush3.bf16.msra.mxu1 %v4819_v32  ;;  %v3503_v44 = vpop.f32.mrf.mxu0  ;;  %3768 = vmatprep.subr.bf16.mxu0 %v3982_v1 }
 0x214   : > { %v3523_v45 = vpop.f32.mrf.mxu1  ;;  %3788 = vmatprep.subr.bf16.mxu1 %v3982_v1 }
 0x216   : > { %3769 = vmatpush3.bf16.msra.mxu0 %v3945_v43 }
 0x217   : > { %3789 = vmatpush3.bf16.msra.mxu1 %v3945_v43  ;;  %3770 = vmatprep.subr.bf16.mxu0 %v3982_v1 }
 0x218   : > { %3790 = vmatprep.subr.bf16.mxu1 %v3982_v1 }
 0x21a   : > { %3771 = vmatpush3.bf16.msra.mxu0 %v3946_v46 }
 0x21b   : > { %3791 = vmatpush3.bf16.msra.mxu1 %v3946_v46  ;;  %3772 = vmatprep.subr.bf16.mxu0 %v3982_v1 }
 0x21c   : > { %3792 = vmatprep.subr.bf16.mxu1 %v3982_v1 }
 0x21e   : > { %3773 = vmatpush3.bf16.msra.mxu0 %v3947_v47 }
 0x21f   : > { %3793 = vmatpush3.bf16.msra.mxu1 %v3947_v47  ;;  %3774 = vmatprep.subr.bf16.mxu0 %v3982_v1 }
 0x220   : > { %3794 = vmatprep.subr.bf16.mxu1 %v3982_v1 }
 0x222   : > { %3775 = vmatpush3.bf16.msra.mxu0 %v3948_v48 }
 0x223   : > { %3795 = vmatpush3.bf16.msra.mxu1 %v3948_v48  ;;  %3776 = vmatprep.subr.bf16.mxu0 %v3982_v1 }
 0x224   : > { %3796 = vmatprep.subr.bf16.mxu1 %v3982_v1 }
 0x226   : > { %3777 = vmatpush3.bf16.msra.mxu0 %v3949_v49 }
 0x227   : > { %3797 = vmatpush3.bf16.msra.mxu1 %v3949_v49  ;;  %3778 = vmatprep.subr.bf16.mxu0 %v3982_v1 }
 0x228   : > { %3798 = vmatprep.subr.bf16.mxu1 %v3982_v1 }
 0x22a   : > { %3779 = vmatpush3.bf16.msra.mxu0 %v3950_v50 }
 0x22b   : > { %3799 = vmatpush3.bf16.msra.mxu1 %v3950_v50  ;;  %3804 = vmatprep.subr.bf16.mxu0 %v3982_v1 }
 0x22c   : > { %3824 = vmatprep.subr.bf16.mxu1 %v3982_v1 }
 0x22d   : > { %v1549_v53 = vpop.f32.mrf.mxu0  ;;  %3781 = vmatmul.mubr.bf16.vlgmr.msra.gmra.mxu0 %v4312_v42 }
 0x22e   : > { %v1555_v54 = vadd.f32 %v1549_v53, %v4775_v20  ;;  %v1602_v55 = vpop.f32.mrf.mxu1  ;;  %3801 = vmatmul.mubr.bf16.vlgmr.msra.gmra.mxu1 %v4337_v51  ;;  %3805 = vmatpush3.bf16.msra.mxu0 %v4806_v30  ;;  %v2793_v53 = vld [vmem:[%s4913_s2] ss:$0 sm:$0xff] }
 0x22f   : > { %v1608_v56 = vadd.f32 %v1602_v55, %v4780_v23  ;;  %3825 = vmatpush3.bf16.msra.mxu1 %v4806_v30  ;;  %v3542_v57 = vpop.f32.mrf.mxu0  ;;  %3806 = vmatprep.subr.bf16.mxu0 %v3982_v1 }
 0x230   : > { %v3562_v58 = vpop.f32.mrf.mxu1  ;;  %3826 = vmatprep.subr.bf16.mxu1 %v3982_v1  ;;  %3820 = vmatprep.mubr.msk.bf16.mxu0 %vm3983_vm0, %v3982_v1 }
 0x231   : > { %v1552_v42 = vpop.f32.mrf.mxu0  ;;  %3840 = vmatprep.mubr.msk.bf16.mxu1 %vm3983_vm0, %v3982_v1 }
 0x232   : > { %v1605_v51 = vpop.f32.mrf.mxu1  ;;  %3807 = vmatpush3.bf16.msra.mxu0 %v4819_v32 }
 0x233   : > { %3827 = vmatpush3.bf16.msra.mxu1 %v4819_v32  ;;  %v3543_v59 = vpop.f32.mrf.mxu0  ;;  %3808 = vmatprep.subr.bf16.mxu0 %v3982_v1 }
 0x234   : > { %v3563_v60 = vpop.f32.mrf.mxu1  ;;  %3828 = vmatprep.subr.bf16.mxu1 %v3982_v1 }
 0x236   : > { %3809 = vmatpush3.bf16.msra.mxu0 %v3945_v43 }
 0x237   : > { %3829 = vmatpush3.bf16.msra.mxu1 %v3945_v43  ;;  %3810 = vmatprep.subr.bf16.mxu0 %v3982_v1 }
 0x238   : > { %3830 = vmatprep.subr.bf16.mxu1 %v3982_v1 }
 0x23a   : > { %3811 = vmatpush3.bf16.msra.mxu0 %v3946_v46 }
 0x23b   : > { %3831 = vmatpush3.bf16.msra.mxu1 %v3946_v46  ;;  %3812 = vmatprep.subr.bf16.mxu0 %v3982_v1 }
 0x23c   : > { %3832 = vmatprep.subr.bf16.mxu1 %v3982_v1 }
 0x23e   : > { %3813 = vmatpush3.bf16.msra.mxu0 %v3947_v47 }
 0x23f   : > { %3833 = vmatpush3.bf16.msra.mxu1 %v3947_v47  ;;  %3814 = vmatprep.subr.bf16.mxu0 %v3982_v1 }
 0x240   : > { %3834 = vmatprep.subr.bf16.mxu1 %v3982_v1 }
 0x242   : > { %3815 = vmatpush3.bf16.msra.mxu0 %v3948_v48 }
 0x243   : > { %3835 = vmatpush3.bf16.msra.mxu1 %v3948_v48  ;;  %3816 = vmatprep.subr.bf16.mxu0 %v3982_v1 }
 0x244   : > { %3836 = vmatprep.subr.bf16.mxu1 %v3982_v1 }
 0x246   : > { %3817 = vmatpush3.bf16.msra.mxu0 %v3949_v49 }
 0x247   : > { %3837 = vmatpush3.bf16.msra.mxu1 %v3949_v49  ;;  %3818 = vmatprep.subr.bf16.mxu0 %v3982_v1 }
 0x248   : > { %3838 = vmatprep.subr.bf16.mxu1 %v3982_v1 }
 0x24a   : > { %3819 = vmatpush3.bf16.msra.mxu0 %v3950_v50 }
 0x24b   : > { %3839 = vmatpush3.bf16.msra.mxu1 %v3950_v50 }
 0x24d   : > { %v1655_v4 = vpop.f32.mrf.mxu0  ;;  %3821 = vmatmul.mubr.bf16.vlgmr.msra.gmra.mxu0 %v4339_v52 }
 0x24e   : > { %v1661_v5 = vadd.f32 %v1655_v4, %v4813_v35  ;;  %v1708_v6 = vpop.f32.mrf.mxu1  ;;  %3841 = vmatmul.mubr.bf16.vlgmr.msra.gmra.mxu1 %v2375_v3 }
 0x24f   : > { %v1714_v7 = vadd.f32 %v1708_v6, %v4822_v37  ;;  %v3582_v8 = vpop.f32.mrf.mxu0 }
 0x250   : > { %v3602_v9 = vpop.f32.mrf.mxu1 }
 0x251   : > { %v1658_v10 = vpop.f32.mrf.mxu0 }
 0x252   : > { %v1711_v11 = vpop.f32.mrf.mxu1 }
 0x253   : > { %v3583_v12 = vpop.f32.mrf.mxu0 }
 0x254   : > { %v3603_v13 = vpop.f32.mrf.mxu1 }
 0x26d   : > { %v1814_v14 = vpop.f32.mrf.mxu0 }
 0x26e   : > { %v1820_v1 = vadd.f32 %v1814_v14, %v1555_v54  ;;  %v1855_v2 = vpop.f32.mrf.mxu1 }
 0x26f   : > { %v1861_v16 = vadd.f32 %v1855_v2, %v1608_v56  ;;  %v3622_v15 = vpop.f32.mrf.mxu0 }
 0x270   : > { %v3642_v17 = vpop.f32.mrf.mxu1 }
 0x271   : > { %v1817_v18 = vpop.f32.mrf.mxu0 }
 0x272   : > { %v1858_v52 = vpop.f32.mrf.mxu1 }
 0x273   : > { %v3623_v19 = vpop.f32.mrf.mxu0 }
 0x274   : > { %v3643_v20 = vpop.f32.mrf.mxu1 }
 0x28d   : > { %v1896_v21 = vpop.f32.mrf.mxu0 }
 0x28e   : > { %v1902_v22 = vadd.f32 %v1896_v21, %v1661_v5  ;;  %v1939_v23 = vpop.f32.mrf.mxu1 }
 0x28f   : > { %v1945_v24 = vadd.f32 %v1939_v23, %v1714_v7  ;;  %v3662_v25 = vpop.f32.mrf.mxu0 }
 0x290   : > { %v3682_v26 = vpop.f32.mrf.mxu1 }
 0x291   : > { %v1899_v27 = vpop.f32.mrf.mxu0 }
 0x292   : > { %v1942_v28 = vpop.f32.mrf.mxu1 }
 0x293   : > { %v3663_v29 = vpop.f32.mrf.mxu0 }
 0x294   : > { %v3683_v30 = vpop.f32.mrf.mxu1 }
 0x2ad   : > { %v2045_v31 = vpop.f32.mrf.mxu0 }
 0x2ae   : > { %v2086_v33 = vpop.f32.mrf.mxu1  ;;  %v2051_v48 = vadd.f32 %v2045_v31, %v1820_v1 }
 0x2af   : > { %v3702_v34 = vpop.f32.mrf.mxu0  ;;  %v2092_v49 = vadd.f32 %v2086_v33, %v1861_v16 }
 0x2b0   : > { %v3722_v35 = vpop.f32.mrf.mxu1 }
 0x2b1   : > { %v2048_v36 = vpop.f32.mrf.mxu0 }
 0x2b2   : > { %v2089_v32 = vpop.f32.mrf.mxu1 }
 0x2b3   : > { %v3703_v37 = vpop.f32.mrf.mxu0 }
 0x2b4   : > { %v3723_v38 = vpop.f32.mrf.mxu1 }
 0x2cd   : > { %v2127_v39 = vpop.f32.mrf.mxu0 }
 0x2ce   : > { %v2170_v40 = vpop.f32.mrf.mxu1  ;;  %v2133_v5 = vadd.f32 %v2127_v39, %v1902_v22 }
 0x2cf   : > { %v3742_v41 = vpop.f32.mrf.mxu0  ;;  %v2176_v6 = vadd.f32 %v2170_v40, %v1945_v24 }
 0x2d0   : > { %v3762_v43 = vpop.f32.mrf.mxu1 }
 0x2d1   : > { %v2130_v44 = vpop.f32.mrf.mxu0 }
 0x2d2   : > { %v2173_v45 = vpop.f32.mrf.mxu1 }
 0x2d3   : > { %v3743_v46 = vpop.f32.mrf.mxu0 }
 0x2d4   : > { %v3763_v47 = vpop.f32.mrf.mxu1 }
 0x2ed   : > { %v2276_v50 = vpop.f32.mrf.mxu0 }
 0x2ee   : > { %v2282_v54 = vadd.f32 %v2276_v50, %v2051_v48  ;;  %v2317_v55 = vpop.f32.mrf.mxu1 }
 0x2ef   : > { %v2323_v56 = vadd.f32 %v2317_v55, %v2092_v49  ;;  %v3782_v57 = vpop.f32.mrf.mxu0 }
 0x2f0   : > { %v2425_v58 = vadd.f32 %v2793_v53, %v2282_v54  ;;  %v3802_v42 = vpop.f32.mrf.mxu1 }
 0x2f1   : > { %v2429_v51 = vadd.f32 %v2793_v53, %v2323_v56  ;;  %v2279_v59 = vpop.f32.mrf.mxu0 }
 0x2f2   : > { %v2426_v60 = vmax.f32 %v2425_v58, 0.0  ;;  %v2320_v61 = vpop.f32.mrf.mxu1 }
 0x2f3   : > { %v2430_v62 = vmax.f32 %v2429_v51, 0.0  ;;  %v3783_v63 = vpop.f32.mrf.mxu0 }
 0x2f4   : > { %v2427_v0 = vpack.c.bf16 %v2426_v60, %v2426_v60  ;;  %v3803_v3 = vpop.f32.mrf.mxu1 }
 0x2f5   : > { %v2431_v4 = vpack.c.bf16 %v2430_v62, %v2430_v62 }
 0x2f6   : > { %2428 = vst [vmem:[%s221_s8] sm:$0x3] %v2427_v0 }
 0x2f7   : > { %2794 = vst [vmem:[%s221_s8 + $0x2] sm:$0x3] %v2431_v4 }
 0x30d   : > { %v2358_v7 = vpop.f32.mrf.mxu0 }
 0x30e   : > { %v2364_v8 = vadd.f32 %v2358_v7, %v2133_v5  ;;  %v2411_v9 = vpop.f32.mrf.mxu1 }
 0x30f   : > { %v2417_v10 = vadd.f32 %v2411_v9, %v2176_v6  ;;  %v3822_v11 = vpop.f32.mrf.mxu0 }
 0x310   : > { %v2434_v12 = vadd.f32 %v2793_v53, %v2364_v8  ;;  %v3842_v13 = vpop.f32.mrf.mxu1 }
 0x311   : > { %v2439_v14 = vadd.f32 %v2793_v53, %v2417_v10  ;;  %v2361_v1 = vpop.f32.mrf.mxu0 }
 0x312   : > { %v2435_v2 = vmax.f32 %v2434_v12, 0.0  ;;  %v2414_v16 = vpop.f32.mrf.mxu1 }
 0x313   : > { %v2440_v15 = vmax.f32 %v2439_v14, 0.0  ;;  %v3823_v17 = vpop.f32.mrf.mxu0 }
 0x314   : > { %v2436_v18 = vpack.c.bf16 %v2435_v2, %v2435_v2  ;;  %v3843_v52 = vpop.f32.mrf.mxu1 }
 0x315   : > { %v2441_v19 = vpack.c.bf16 %v2440_v15, %v2440_v15 }
 0x316   : > { %2795 = vst [vmem:[%s221_s8 + $0x4] sm:$0x3] %v2436_v18 }
 0x317   : > { %2796 = vst [vmem:[%s221_s8 + $0x6] sm:$0x3] %v2441_v19 }
 0x318 PF: > { %s13_s14 = sadd.s32 1, %s3980_s14   ;;  %s4915_s12 = smov %s3976_s13 }
 0x319   : > { %p10_p5 = scmp.ge.s32.totalorder %s13_s14, 4   ;;  %s4916_s13 = smov %s4918_s15 }
 0x31b   :  { %12 = sbr.rel (!%p10_p5) target bundleno = 2 (0x2), region = 96 }

// kernel: cnn_forward.3
= control target key start
LH: loop header
LB: loop body
LE: loop exit
PB: predicated region body
PF: predicated region fallthrough
CT: control target
= control target key end

     0   :  { %s6806_s12 = smov 0   ;;  %s6808_s13 = smov 0   ;;  %s8757_s0 = inlined_call_operand.vmem [shape: bf16[2,4,9,9,128], index: 0, kind: input, shape index: {}]   ;;  %s8758_s1 = inlined_call_operand.vmem [shape: bf16[9,128,128], index: 1, kind: input, shape index: {}]   ;;  %s8759_s2 = inlined_call_operand.vmem [shape: f32[1,128], index: 2, kind: input, shape index: {}]   ;;  %s8760_s3 = inlined_call_operand.vmem [shape: bf16[2,8,8,128], index: 3, kind: output, shape index: {}]  }
   0x1   :  { %s6810_s14 = smov 0  }
   0x2 LB: > { %s25_s15 = sadd.s32 1, %s6778_s13  ;;  %p4222_p0 = scmp.ge.s32.totalorder %s6782_s14, 1  ;;  %s6782_s14 = sphi %s6810_s14, %s13_s14   ;;  %s6778_s13 = sphi %s6808_s13, %s8762_s13   ;;  %s6774_s12 = sphi %s6806_s12, %s8761_s12  }
   0x3   : > { %p27_p1 = scmp.ge.s32.totalorder %s25_s15, 2  ;;  %p168_p2 = scmp.lt.s32.totalorder %s6782_s14, 3 }
   0x5   : > { %s8764_s15 = smov (%p27_p1, %s25_s15), 0  ;;  %p169_p3 = pnand %p4222_p0, %p168_p2 }
   0x6   : > { %p202_p4 = scmp.lt.s32.totalorder (!%p169_p3), %s6774_s12, 1 }
   0x7   : > { %172 = sbr.rel (%p169_p3) target bundleno = 1368 (0x558), region = 32 }
   0xc   : > { %v6829_v0 = vld [vmem:[%s8758_s1 + $0x78] sm:$0xff]   ;;  %v6784_v1 = vmov 0.0   ;;  %v6842_v3 = vld [vmem:[%s8758_s1 + $0x70] sm:$0xff]   ;;  %vm6785_vm0 = vmmov 0   ;;  %v6860_v5 = vld [vmem:[%s8758_s1 + $0x68] sm:$0xff]   ;;  %s8766_s12 = smov (!%p202_p4, %s6774_s12), 1 }
   0xd   : > { %5190 = vmatprep.subr.bf16.mxu0 %v6784_v1  ;;  %5210 = vmatprep.subr.bf16.mxu1 %v6784_v1  ;;  %v6836_v2 = vld [vmem:[%s8758_s1 + $0x38] sm:$0xff]   ;;  %v6851_v4 = vld [vmem:[%s8758_s1 + $0x30] sm:$0xff]   ;;  %v6867_v6 = vld [vmem:[%s8758_s1 + $0x28] sm:$0xff]   ;;  %s6630_s17 = smul.u32 288, %s8766_s12  ;;  %s4518_s5 = sshll.u32 %s8766_s12, 5 }
   0xe   : > { %5191 = vmatpush3.bf16.msra.mxu0 %v6829_v0  ;;  %5206 = vmatprep.mubr.msk.bf16.mxu0 %vm6785_vm0, %v6784_v1  ;;  %v6874_v7 = vld [vmem:[%s8758_s1 + $0x60] sm:$0xff]   ;;  %v6889_v9 = vld [vmem:[%s8758_s1 + $0x58] sm:$0xff]   ;;  %v6906_v11 = vld [vmem:[%s8758_s1 + $0x50] sm:$0xff]   ;;  %s8742_s8 = scalar_lea.vmem %s8760_s3, %s4518_s5 }
   0xf   : > { %5211 = vmatpush3.bf16.msra.mxu1 %v6836_v2  ;;  %5192 = vmatprep.subr.bf16.mxu0 %v6784_v1  ;;  %v6882_v8 = vld [vmem:[%s8758_s1 + $0x20] sm:$0xff]   ;;  %v6899_v10 = vld [vmem:[%s8758_s1 + $0x18] sm:$0xff]   ;;  %v6911_v12 = vld [vmem:[%s8758_s1 + $0x10] sm:$0xff]   ;;  %s6933_s24 = scalar_lea.vmem %s8757_s0, %s6630_s17 }
  0x10   : > { %5212 = vmatprep.subr.bf16.mxu1 %v6784_v1  ;;  %5226 = vmatprep.mubr.msk.bf16.mxu1 %vm6785_vm0, %v6784_v1  ;;  %v6920_v13 = vld [vmem:[%s8758_s1 + $0x48] sm:$0xff]   ;;  %v6939_v15 = vld [vmem:[%s8758_s1 + $0x40] sm:$0xff]   ;;  %v4266_v19 = vld [vmem:[%s6933_s24 + $0x50] sm:$0xf] }
  0x11   : > { %v6925_v14 = vld [vmem:[%s8758_s1 + $0x8] sm:$0xff]   ;;  %v6944_v16 = vld [vmem:[%s8758_s1] sm:$0xff]   ;;  %v4267_v21 = vld [vmem:[%s6933_s24 + $0x58] sm:$0xf] }
  0x12   : > { %5193 = vmatpush3.bf16.msra.mxu0 %v6842_v3  ;;  %v4249_v17 = vld [vmem:[%s6933_s24 + $0x48] sm:$0xf]  ;;  %v239_v18 = vld [vmem:[%s6933_s24] sm:$0xf]  ;;  %v4227_v22 = vld [vmem:[%s6933_s24 + $0x10] sm:$0xf] }
  0x13   : > { %5213 = vmatpush3.bf16.msra.mxu1 %v6851_v4  ;;  %5194 = vmatprep.subr.bf16.mxu0 %v6784_v1  ;;  %v4226_v20 = vld [vmem:[%s6933_s24 + $0x8] sm:$0xf]  ;;  %v4268_v23 = vld [vmem:[%s6933_s24 + $0x60] sm:$0xf]  ;;  %v4228_v24 = vld [vmem:[%s6933_s24 + $0x18] sm:$0xf] }
  0x14   : > { %5214 = vmatprep.subr.bf16.mxu1 %v6784_v1  ;;  %v4269_v25 = vld [vmem:[%s6933_s24 + $0x68] sm:$0xf]  ;;  %v4229_v26 = vld [vmem:[%s6933_s24 + $0x20] sm:$0xf]  ;;  %v4270_v27 = vld [vmem:[%s6933_s24 + $0x70] sm:$0xf] }
  0x15   : > { %v4230_v28 = vld [vmem:[%s6933_s24 + $0x28] sm:$0xf]  ;;  %v4271_v29 = vld [vmem:[%s6933_s24 + $0x78] sm:$0xf]  ;;  %v4231_v30 = vld [vmem:[%s6933_s24 + $0x30] sm:$0xf] }
  0x16   : > { %5195 = vmatpush3.bf16.msra.mxu0 %v6860_v5  ;;  %v4272_v40 = vld [vmem:[%s6933_s24 + $0x80] sm:$0xf]  ;;  %v7223_v41 = vld [vmem:[%s8758_s1 + $0xb8] sm:$0xff]   ;;  %v7233_v45 = vld [vmem:[%s8758_s1 + $0xb0] sm:$0xff]  }
  0x17   : > { %5215 = vmatpush3.bf16.msra.mxu1 %v6867_v6  ;;  %5196 = vmatprep.subr.bf16.mxu0 %v6784_v1  ;;  %v4232_v42 = vld [vmem:[%s6933_s24 + $0x38] sm:$0xf]  ;;  %v7248_v51 = vld [vmem:[%s8758_s1 + $0xa8] sm:$0xff]   ;;  %v7257_v54 = vld [vmem:[%s8758_s1 + $0xa0] sm:$0xff]  }
  0x18   : > { %5216 = vmatprep.subr.bf16.mxu1 %v6784_v1  ;;  %v7266_v55 = vld [vmem:[%s8758_s1 + $0x98] sm:$0xff]   ;;  %v6681_v56 = vld [vmem:[%s6933_s24] sm:$0x1f]   ;;  %v7276_v57 = vld [vmem:[%s8758_s1 + $0x90] sm:$0xff]  }
  0x19   : > { %v6682_v58 = vld [vmem:[%s6933_s24 + $0x8] sm:$0x1f]   ;;  %v1050_v59 = vshll.u32 %v6681_v56, 16  ;;  %v1048_v62 = vshrl.u32 %v6681_v56, 16 }
  0x1a   : > { %5197 = vmatpush3.bf16.msra.mxu0 %v6874_v7  ;;  %v7286_v60 = vld [vmem:[%s8758_s1 + $0x88] sm:$0xff]   ;;  %v1154_v61 = vshll.u32 %v6682_v58, 16 }
  0x1b   : > { %5217 = vmatpush3.bf16.msra.mxu1 %v6882_v8  ;;  %5198 = vmatprep.subr.bf16.mxu0 %v6784_v1  ;;  %v1052_v63 = vrot.slane %v1050_v59, 1 }
  0x1c   : > { %5218 = vmatprep.subr.bf16.mxu1 %v6784_v1 }
  0x1e   : > { %5199 = vmatpush3.bf16.msra.mxu0 %v6889_v9 }
  0x1f   : > { %5219 = vmatpush3.bf16.msra.mxu1 %v6899_v10  ;;  %5200 = vmatprep.subr.bf16.mxu0 %v6784_v1 }
  0x20   : > { %5220 = vmatprep.subr.bf16.mxu1 %v6784_v1 }
  0x22   : > { %5201 = vmatpush3.bf16.msra.mxu0 %v6906_v11 }
  0x23   : > { %5221 = vmatpush3.bf16.msra.mxu1 %v6911_v12  ;;  %5202 = vmatprep.subr.bf16.mxu0 %v6784_v1 }
  0x24   : > { %5222 = vmatprep.subr.bf16.mxu1 %v6784_v1 }
  0x26   : > { %5203 = vmatpush3.bf16.msra.mxu0 %v6920_v13 }
  0x27   : > { %5223 = vmatpush3.bf16.msra.mxu1 %v6925_v14  ;;  %5204 = vmatprep.subr.bf16.mxu0 %v6784_v1 }
  0x28   : > { %5224 = vmatprep.subr.bf16.mxu1 %v6784_v1 }
  0x2a   : > { %5205 = vmatpush3.bf16.msra.mxu0 %v6939_v15 }
  0x2b   : > { %5225 = vmatpush3.bf16.msra.mxu1 %v6944_v16  ;;  %5230 = vmatprep.subr.bf16.mxu0 %v6784_v1 }
  0x2c   : > { %5250 = vmatprep.subr.bf16.mxu1 %v6784_v1 }
  0x2d   : > { %5207 = vmatmul.mubr.bf16.vlgmr.msra.gmra.mxu0 %v4249_v17 }
  0x2e   : > { %5227 = vmatmul.mubr.bf16.vlgmr.msra.gmra.mxu1 %v239_v18  ;;  %5231 = vmatpush3.bf16.msra.mxu0 %v6829_v0 }
  0x2f   : > { %5251 = vmatpush3.bf16.msra.mxu1 %v6836_v2  ;;  %5232 = vmatprep.subr.bf16.mxu0 %v6784_v1 }
  0x30   : > { %5252 = vmatprep.subr.bf16.mxu1 %v6784_v1  ;;  %5246 = vmatprep.mubr.msk.bf16.mxu0 %vm6785_vm0, %v6784_v1 }
  0x31   : > { %5266 = vmatprep.mubr.msk.bf16.mxu1 %vm6785_vm0, %v6784_v1 }
  0x32   : > { %5233 = vmatpush3.bf16.msra.mxu0 %v6842_v3 }
  0x33   : > { %5253 = vmatpush3.bf16.msra.mxu1 %v6851_v4  ;;  %5234 = vmatprep.subr.bf16.mxu0 %v6784_v1 }
  0x34   : > { %5254 = vmatprep.subr.bf16.mxu1 %v6784_v1 }
  0x36   : > { %5235 = vmatpush3.bf16.msra.mxu0 %v6860_v5 }
  0x37   : > { %5255 = vmatpush3.bf16.msra.mxu1 %v6867_v6  ;;  %5236 = vmatprep.subr.bf16.mxu0 %v6784_v1 }
  0x38   : > { %5256 = vmatprep.subr.bf16.mxu1 %v6784_v1 }
  0x3a   : > { %5237 = vmatpush3.bf16.msra.mxu0 %v6874_v7 }
  0x3b   : > { %5257 = vmatpush3.bf16.msra.mxu1 %v6882_v8  ;;  %5238 = vmatprep.subr.bf16.mxu0 %v6784_v1 }
  0x3c   : > { %5258 = vmatprep.subr.bf16.mxu1 %v6784_v1 }
  0x3e   : > { %5239 = vmatpush3.bf16.msra.mxu0 %v6889_v9 }
  0x3f   : > { %5259 = vmatpush3.bf16.msra.mxu1 %v6899_v10  ;;  %5240 = vmatprep.subr.bf16.mxu0 %v6784_v1 }
  0x40   : > { %5260 = vmatprep.subr.bf16.mxu1 %v6784_v1 }
  0x42   : > { %5241 = vmatpush3.bf16.msra.mxu0 %v6906_v11 }
  0x43   : > { %5261 = vmatpush3.bf16.msra.mxu1 %v6911_v12  ;;  %5242 = vmatprep.subr.bf16.mxu0 %v6784_v1 }
  0x44   : > { %5262 = vmatprep.subr.bf16.mxu1 %v6784_v1 }
  0x46   : > { %5243 = vmatpush3.bf16.msra.mxu0 %v6920_v13 }
  0x47   : > { %5263 = vmatpush3.bf16.msra.mxu1 %v6925_v14  ;;  %5244 = vmatprep.subr.bf16.mxu0 %v6784_v1 }
  0x48   : > { %5264 = vmatprep.subr.bf16.mxu1 %v6784_v1 }
  0x4a   : > { %5245 = vmatpush3.bf16.msra.mxu0 %v6939_v15 }
  0x4b   : > { %5265 = vmatpush3.bf16.msra.mxu1 %v6944_v16  ;;  %5270 = vmatprep.subr.bf16.mxu0 %v6784_v1 }
  0x4c   : > { %5290 = vmatprep.subr.bf16.mxu1 %v6784_v1 }
  0x4d   : > { %5247 = vmatmul.mubr.bf16.vlgmr.msra.gmra.mxu0 %v4266_v19 }
  0x4e   : > { %5267 = vmatmul.mubr.bf16.vlgmr.msra.gmra.mxu1 %v4226_v20  ;;  %5271 = vmatpush3.bf16.msra.mxu0 %v6829_v0 }
  0x4f   : > { %5291 = vmatpush3.bf16.msra.mxu1 %v6836_v2  ;;  %5272 = vmatprep.subr.bf16.mxu0 %v6784_v1 }
  0x50   : > { %5292 = vmatprep.subr.bf16.mxu1 %v6784_v1  ;;  %5286 = vmatprep.mubr.msk.bf16.mxu0 %vm6785_vm0, %v6784_v1 }
  0x51   : > { %5306 = vmatprep.mubr.msk.bf16.mxu1 %vm6785_vm0, %v6784_v1 }
  0x52   : > { %5273 = vmatpush3.bf16.msra.mxu0 %v6842_v3 }
  0x53   : > { %5293 = vmatpush3.bf16.msra.mxu1 %v6851_v4  ;;  %5274 = vmatprep.subr.bf16.mxu0 %v6784_v1 }
  0x54   : > { %5294 = vmatprep.subr.bf16.mxu1 %v6784_v1 }
  0x56   : > { %5275 = vmatpush3.bf16.msra.mxu0 %v6860_v5 }
  0x57   : > { %5295 = vmatpush3.bf16.msra.mxu1 %v6867_v6  ;;  %5276 = vmatprep.subr.bf16.mxu0 %v6784_v1 }
  0x58   : > { %5296 = vmatprep.subr.bf16.mxu1 %v6784_v1 }
  0x5a   : > { %5277 = vmatpush3.bf16.msra.mxu0 %v6874_v7 }
  0x5b   : > { %5297 = vmatpush3.bf16.msra.mxu1 %v6882_v8  ;;  %5278 = vmatprep.subr.bf16.mxu0 %v6784_v1 }
  0x5c   : > { %5298 = vmatprep.subr.bf16.mxu1 %v6784_v1 }
  0x5e   : > { %5279 = vmatpush3.bf16.msra.mxu0 %v6889_v9 }
  0x5f   : > { %5299 = vmatpush3.bf16.msra.mxu1 %v6899_v10  ;;  %5280 = vmatprep.subr.bf16.mxu0 %v6784_v1 }
  0x60   : > { %5300 = vmatprep.subr.bf16.mxu1 %v6784_v1 }
  0x62   : > { %5281 = vmatpush3.bf16.msra.mxu0 %v6906_v11 }
  0x63   : > { %5301 = vmatpush3.bf16.msra.mxu1 %v6911_v12  ;;  %5282 = vmatprep.subr.bf16.mxu0 %v6784_v1 }
  0x64   : > { %5302 = vmatprep.subr.bf16.mxu1 %v6784_v1 }
  0x66   : > { %5283 = vmatpush3.bf16.msra.mxu0 %v6920_v13 }
  0x67   : > { %5303 = vmatpush3.bf16.msra.mxu1 %v6925_v14  ;;  %5284 = vmatprep.subr.bf16.mxu0 %v6784_v1 }
  0x68   : > { %5304 = vmatprep.subr.bf16.mxu1 %v6784_v1 }
  0x6a   : > { %5285 = vmatpush3.bf16.msra.mxu0 %v6939_v15 }
  0x6b   : > { %5305 = vmatpush3.bf16.msra.mxu1 %v6944_v16  ;;  %5310 = vmatprep.subr.bf16.mxu0 %v6784_v1 }
  0x6c   : > { %5330 = vmatprep.subr.bf16.mxu1 %v6784_v1 }
  0x6d   : > { %5287 = vmatmul.mubr.bf16.vlgmr.msra.gmra.mxu0 %v4267_v21 }
  0x6e   : > { %5307 = vmatmul.mubr.bf16.vlgmr.msra.gmra.mxu1 %v4227_v22  ;;  %5311 = vmatpush3.bf16.msra.mxu0 %v6829_v0 }
  0x6f   : > { %5331 = vmatpush3.bf16.msra.mxu1 %v6836_v2  ;;  %5312 = vmatprep.subr.bf16.mxu0 %v6784_v1 }
  0x70   : > { %5332 = vmatprep.subr.bf16.mxu1 %v6784_v1  ;;  %5326 = vmatprep.mubr.msk.bf16.mxu0 %vm6785_vm0, %v6784_v1 }
  0x71   : > { %5346 = vmatprep.mubr.msk.bf16.mxu1 %vm6785_vm0, %v6784_v1 }
  0x72   : > { %5313 = vmatpush3.bf16.msra.mxu0 %v6842_v3 }
  0x73   : > { %5333 = vmatpush3.bf16.msra.mxu1 %v6851_v4  ;;  %5314 = vmatprep.subr.bf16.mxu0 %v6784_v1 }
  0x74   : > { %5334 = vmatprep.subr.bf16.mxu1 %v6784_v1 }
  0x76   : > { %5315 = vmatpush3.bf16.msra.mxu0 %v6860_v5 }
  0x77   : > { %5335 = vmatpush3.bf16.msra.mxu1 %v6867_v6  ;;  %5316 = vmatprep.subr.bf16.mxu0 %v6784_v1 }
  0x78   : > { %5336 = vmatprep.subr.bf16.mxu1 %v6784_v1 }
  0x7a   : > { %5317 = vmatpush3.bf16.msra.mxu0 %v6874_v7 }
  0x7b   : > { %5337 = vmatpush3.bf16.msra.mxu1 %v6882_v8  ;;  %5318 = vmatprep.subr.bf16.mxu0 %v6784_v1 }
  0x7c   : > { %5338 = vmatprep.subr.bf16.mxu1 %v6784_v1 }
  0x7e   : > { %5319 = vmatpush3.bf16.msra.mxu0 %v6889_v9 }
  0x7f   : > { %5339 = vmatpush3.bf16.msra.mxu1 %v6899_v10  ;;  %5320 = vmatprep.subr.bf16.mxu0 %v6784_v1 }
  0x80   : > { %5340 = vmatprep.subr.bf16.mxu1 %v6784_v1 }
  0x82   : > { %5321 = vmatpush3.bf16.msra.mxu0 %v6906_v11 }
  0x83   : > { %5341 = vmatpush3.bf16.msra.mxu1 %v6911_v12  ;;  %5322 = vmatprep.subr.bf16.mxu0 %v6784_v1 }
  0x84   : > { %5342 = vmatprep.subr.bf16.mxu1 %v6784_v1 }
  0x86   : > { %5323 = vmatpush3.bf16.msra.mxu0 %v6920_v13 }
  0x87   : > { %5343 = vmatpush3.bf16.msra.mxu1 %v6925_v14  ;;  %5324 = vmatprep.subr.bf16.mxu0 %v6784_v1 }
  0x88   : > { %5344 = vmatprep.subr.bf16.mxu1 %v6784_v1 }
  0x8a   : > { %5325 = vmatpush3.bf16.msra.mxu0 %v6939_v15 }
  0x8b   : > { %5345 = vmatpush3.bf16.msra.mxu1 %v6944_v16  ;;  %5350 = vmatprep.subr.bf16.mxu0 %v6784_v1 }
  0x8c   : > { %5370 = vmatprep.subr.bf16.mxu1 %v6784_v1 }
  0x8d   : > { %5327 = vmatmul.mubr.bf16.vlgmr.msra.gmra.mxu0 %v4268_v23 }
  0x8e   : > { %5347 = vmatmul.mubr.bf16.vlgmr.msra.gmra.mxu1 %v4228_v24  ;;  %5351 = vmatpush3.bf16.msra.mxu0 %v6829_v0 }
  0x8f   : > { %5371 = vmatpush3.bf16.msra.mxu1 %v6836_v2  ;;  %5352 = vmatprep.subr.bf16.mxu0 %v6784_v1 }
  0x90   : > { %5372 = vmatprep.subr.bf16.mxu1 %v6784_v1  ;;  %5366 = vmatprep.mubr.msk.bf16.mxu0 %vm6785_vm0, %v6784_v1 }
  0x91   : > { %5386 = vmatprep.mubr.msk.bf16.mxu1 %vm6785_vm0, %v6784_v1 }
  0x92   : > { %5353 = vmatpush3.bf16.msra.mxu0 %v6842_v3 }
  0x93   : > { %5373 = vmatpush3.bf16.msra.mxu1 %v6851_v4  ;;  %5354 = vmatprep.subr.bf16.mxu0 %v6784_v1 }
  0x94   : > { %5374 = vmatprep.subr.bf16.mxu1 %v6784_v1 }
  0x96   : > { %5355 = vmatpush3.bf16.msra.mxu0 %v6860_v5 }
  0x97   : > { %5375 = vmatpush3.bf16.msra.mxu1 %v6867_v6  ;;  %5356 = vmatprep.subr.bf16.mxu0 %v6784_v1 }
  0x98   : > { %5376 = vmatprep.subr.bf16.mxu1 %v6784_v1 }
  0x9a   : > { %5357 = vmatpush3.bf16.msra.mxu0 %v6874_v7 }
  0x9b   : > { %5377 = vmatpush3.bf16.msra.mxu1 %v6882_v8  ;;  %5358 = vmatprep.subr.bf16.mxu0 %v6784_v1 }
  0x9c   : > { %5378 = vmatprep.subr.bf16.mxu1 %v6784_v1 }
  0x9e   : > { %5359 = vmatpush3.bf16.msra.mxu0 %v6889_v9 }
  0x9f   : > { %5379 = vmatpush3.bf16.msra.mxu1 %v6899_v10  ;;  %5360 = vmatprep.subr.bf16.mxu0 %v6784_v1 }
  0xa0   : > { %5380 = vmatprep.subr.bf16.mxu1 %v6784_v1 }
  0xa2   : > { %5361 = vmatpush3.bf16.msra.mxu0 %v6906_v11 }
  0xa3   : > { %5381 = vmatpush3.bf16.msra.mxu1 %v6911_v12  ;;  %5362 = vmatprep.subr.bf16.mxu0 %v6784_v1 }
  0xa4   : > { %5382 = vmatprep.subr.bf16.mxu1 %v6784_v1 }
  0xa6   : > { %5363 = vmatpush3.bf16.msra.mxu0 %v6920_v13 }
  0xa7   : > { %5383 = vmatpush3.bf16.msra.mxu1 %v6925_v14  ;;  %5364 = vmatprep.subr.bf16.mxu0 %v6784_v1 }
  0xa8   : > { %5384 = vmatprep.subr.bf16.mxu1 %v6784_v1 }
  0xaa   : > { %5365 = vmatpush3.bf16.msra.mxu0 %v6939_v15 }
  0xab   : > { %5385 = vmatpush3.bf16.msra.mxu1 %v6944_v16  ;;  %5390 = vmatprep.subr.bf16.mxu0 %v6784_v1 }
  0xac   : > { %5410 = vmatprep.subr.bf16.mxu1 %v6784_v1 }
  0xad   : > { %5367 = vmatmul.mubr.bf16.vlgmr.msra.gmra.mxu0 %v4269_v25 }
  0xae   : > { %5387 = vmatmul.mubr.bf16.vlgmr.msra.gmra.mxu1 %v4229_v26  ;;  %5391 = vmatpush3.bf16.msra.mxu0 %v6829_v0 }
  0xaf   : > { %5411 = vmatpush3.bf16.msra.mxu1 %v6836_v2  ;;  %5392 = vmatprep.subr.bf16.mxu0 %v6784_v1 }
  0xb0   : > { %5412 = vmatprep.subr.bf16.mxu1 %v6784_v1  ;;  %5406 = vmatprep.mubr.msk.bf16.mxu0 %vm6785_vm0, %v6784_v1 }
  0xb1   : > { %5426 = vmatprep.mubr.msk.bf16.mxu1 %vm6785_vm0, %v6784_v1 }
  0xb2   : > { %5393 = vmatpush3.bf16.msra.mxu0 %v6842_v3 }
  0xb3   : > { %5413 = vmatpush3.bf16.msra.mxu1 %v6851_v4  ;;  %5394 = vmatprep.subr.bf16.mxu0 %v6784_v1 }
  0xb4   : > { %5414 = vmatprep.subr.bf16.mxu1 %v6784_v1 }
  0xb6   : > { %5395 = vmatpush3.bf16.msra.mxu0 %v6860_v5 }
  0xb7   : > { %5415 = vmatpush3.bf16.msra.mxu1 %v6867_v6  ;;  %5396 = vmatprep.subr.bf16.mxu0 %v6784_v1 }
  0xb8   : > { %5416 = vmatprep.subr.bf16.mxu1 %v6784_v1 }
  0xba   : > { %5397 = vmatpush3.bf16.msra.mxu0 %v6874_v7 }
  0xbb   : > { %5417 = vmatpush3.bf16.msra.mxu1 %v6882_v8  ;;  %5398 = vmatprep.subr.bf16.mxu0 %v6784_v1 }
  0xbc   : > { %5418 = vmatprep.subr.bf16.mxu1 %v6784_v1 }
  0xbe   : > { %5399 = vmatpush3.bf16.msra.mxu0 %v6889_v9 }
  0xbf   : > { %5419 = vmatpush3.bf16.msra.mxu1 %v6899_v10  ;;  %5400 = vmatprep.subr.bf16.mxu0 %v6784_v1 }
  0xc0   : > { %5420 = vmatprep.subr.bf16.mxu1 %v6784_v1 }
  0xc2   : > { %5401 = vmatpush3.bf16.msra.mxu0 %v6906_v11 }
  0xc3   : > { %5421 = vmatpush3.bf16.msra.mxu1 %v6911_v12  ;;  %5402 = vmatprep.subr.bf16.mxu0 %v6784_v1 }
  0xc4   : > { %5422 = vmatprep.subr.bf16.mxu1 %v6784_v1 }
  0xc6   : > { %5403 = vmatpush3.bf16.msra.mxu0 %v6920_v13 }
  0xc7   : > { %5423 = vmatpush3.bf16.msra.mxu1 %v6925_v14  ;;  %5404 = vmatprep.subr.bf16.mxu0 %v6784_v1 }
  0xc8   : > { %5424 = vmatprep.subr.bf16.mxu1 %v6784_v1 }
  0xca   : > { %5405 = vmatpush3.bf16.msra.mxu0 %v6939_v15 }
  0xcb   : > { %5425 = vmatpush3.bf16.msra.mxu1 %v6944_v16  ;;  %5430 = vmatprep.subr.bf16.mxu0 %v6784_v1 }
  0xcc   : > { %5450 = vmatprep.subr.bf16.mxu1 %v6784_v1 }
  0xcd   : > { %5407 = vmatmul.mubr.bf16.vlgmr.msra.gmra.mxu0 %v4270_v27 }
  0xce   : > { %5427 = vmatmul.mubr.bf16.vlgmr.msra.gmra.mxu1 %v4230_v28  ;;  %5431 = vmatpush3.bf16.msra.mxu0 %v6829_v0 }
  0xcf   : > { %5451 = vmatpush3.bf16.msra.mxu1 %v6836_v2  ;;  %5432 = vmatprep.subr.bf16.mxu0 %v6784_v1 }
  0xd0   : > { %5452 = vmatprep.subr.bf16.mxu1 %v6784_v1  ;;  %5446 = vmatprep.mubr.msk.bf16.mxu0 %vm6785_vm0, %v6784_v1 }
  0xd1   : > { %5466 = vmatprep.mubr.msk.bf16.mxu1 %vm6785_vm0, %v6784_v1 }
  0xd2   : > { %5433 = vmatpush3.bf16.msra.mxu0 %v6842_v3 }
  0xd3   : > { %5453 = vmatpush3.bf16.msra.mxu1 %v6851_v4  ;;  %5434 = vmatprep.subr.bf16.mxu0 %v6784_v1 }
  0xd4   : > { %5454 = vmatprep.subr.bf16.mxu1 %v6784_v1 }
  0xd6   : > { %5435 = vmatpush3.bf16.msra.mxu0 %v6860_v5 }
  0xd7   : > { %5455 = vmatpush3.bf16.msra.mxu1 %v6867_v6  ;;  %5436 = vmatprep.subr.bf16.mxu0 %v6784_v1 }
  0xd8   : > { %5456 = vmatprep.subr.bf16.mxu1 %v6784_v1 }
  0xda   : > { %5437 = vmatpush3.bf16.msra.mxu0 %v6874_v7 }
  0xdb   : > { %5457 = vmatpush3.bf16.msra.mxu1 %v6882_v8  ;;  %5438 = vmatprep.subr.bf16.mxu0 %v6784_v1 }
  0xdc   : > { %5458 = vmatprep.subr.bf16.mxu1 %v6784_v1 }
  0xde   : > { %5439 = vmatpush3.bf16.msra.mxu0 %v6889_v9 }
  0xdf   : > { %5459 = vmatpush3.bf16.msra.mxu1 %v6899_v10  ;;  %5440 = vmatprep.subr.bf16.mxu0 %v6784_v1 }
  0xe0   : > { %5460 = vmatprep.subr.bf16.mxu1 %v6784_v1 }
  0xe2   : > { %5441 = vmatpush3.bf16.msra.mxu0 %v6906_v11 }
  0xe3   : > { %5461 = vmatpush3.bf16.msra.mxu1 %v6911_v12  ;;  %5442 = vmatprep.subr.bf16.mxu0 %v6784_v1 }
  0xe4   : > { %5462 = vmatprep.subr.bf16.mxu1 %v6784_v1 }
  0xe6   : > { %5443 = vmatpush3.bf16.msra.mxu0 %v6920_v13 }
  0xe7   : > { %5463 = vmatpush3.bf16.msra.mxu1 %v6925_v14  ;;  %5444 = vmatprep.subr.bf16.mxu0 %v6784_v1 }
  0xe8   : > { %5464 = vmatprep.subr.bf16.mxu1 %v6784_v1 }
  0xea   : > { %5445 = vmatpush3.bf16.msra.mxu0 %v6939_v15 }
  0xeb   : > { %5465 = vmatpush3.bf16.msra.mxu1 %v6944_v16  ;;  %5470 = vmatprep.subr.bf16.mxu0 %v6784_v1 }
  0xec   : > { %5490 = vmatprep.subr.bf16.mxu1 %v6784_v1 }
  0xed   : > { %v355_v31 = vpop.f32.mrf.mxu0  ;;  %5447 = vmatmul.mubr.bf16.vlgmr.msra.gmra.mxu0 %v4271_v29 }
  0xee   : > { %v443_v32 = vpop.f32.mrf.mxu1  ;;  %5467 = vmatmul.mubr.bf16.vlgmr.msra.gmra.mxu1 %v4231_v30  ;;  %5471 = vmatpush3.bf16.msra.mxu0 %v6829_v0  ;;  %v7295_v0 = vld [vmem:[%s8758_s1 + $0x80] sm:$0xff]  }
  0xef   : > { %v7185_v33 = vadd.f32 %v443_v32, %v355_v31  ;;  %5491 = vmatpush3.bf16.msra.mxu1 %v6836_v2  ;;  %v5208_v34 = vpop.f32.mrf.mxu0  ;;  %5472 = vmatprep.subr.bf16.mxu0 %v6784_v1  ;;  %v1152_v2 = vshrl.u32 %v6682_v58, 16 }
  0xf0   : > { %v5228_v35 = vpop.f32.mrf.mxu1  ;;  %5492 = vmatprep.subr.bf16.mxu1 %v6784_v1  ;;  %5486 = vmatprep.mubr.msk.bf16.mxu0 %vm6785_vm0, %v6784_v1 }
  0xf1   : > { %v358_v36 = vpop.f32.mrf.mxu0  ;;  %5506 = vmatprep.mubr.msk.bf16.mxu1 %vm6785_vm0, %v6784_v1  ;;  %v6685_v35 = vld [vmem:[%s6933_s24 + $0x20] sm:$0x1f]  }
  0xf2   : > { %v446_v37 = vpop.f32.mrf.mxu1  ;;  %5473 = vmatpush3.bf16.msra.mxu0 %v6842_v3  ;;  %v1156_v3 = vrot.slane %v1154_v61, 1  ;;  %v6686_v36 = vld [vmem:[%s6933_s24 + $0x28] sm:$0x1f]   ;;  %v6688_v61 = vld [vmem:[%s6933_s24 + $0x38] sm:$0x1f]  }
  0xf3   : > { %5493 = vmatpush3.bf16.msra.mxu1 %v6851_v4  ;;  %v5209_v38 = vpop.f32.mrf.mxu0  ;;  %5474 = vmatprep.subr.bf16.mxu0 %v6784_v1  ;;  %v1053_v4 = vor.u32 %v1052_v63, %v1048_v62  ;;  %v1322_v37 = vshll.u32 %v6685_v35, 16  ;;  %v1490_v62 = vshll.u32 %v6688_v61, 16 }
  0xf4   : > { %v5229_v39 = vpop.f32.mrf.mxu1  ;;  %5494 = vmatprep.subr.bf16.mxu1 %v6784_v1  ;;  %v1378_v38 = vshll.u32 %v6686_v36, 16 }
  0xf5   : > { %v1320_v39 = vshrl.u32 %v6685_v35, 16 }
  0xf6   : > { %5475 = vmatpush3.bf16.msra.mxu0 %v6860_v5  ;;  %v7301_v5 = vor.u32 %v1156_v3, %v1152_v2  ;;  %v1488_v2 = vshrl.u32 %v6688_v61, 16 }
  0xf7   : > { %5495 = vmatpush3.bf16.msra.mxu1 %v6867_v6  ;;  %5476 = vmatprep.subr.bf16.mxu0 %v6784_v1 }
  0xf8   : > { %5496 = vmatprep.subr.bf16.mxu1 %v6784_v1 }
  0xfa   : > { %5477 = vmatpush3.bf16.msra.mxu0 %v6874_v7 }
  0xfb   : > { %5497 = vmatpush3.bf16.msra.mxu1 %v6882_v8  ;;  %5478 = vmatprep.subr.bf16.mxu0 %v6784_v1 }
  0xfc   : > { %5498 = vmatprep.subr.bf16.mxu1 %v6784_v1 }
  0xfe   : > { %5479 = vmatpush3.bf16.msra.mxu0 %v6889_v9 }
  0xff   : > { %5499 = vmatpush3.bf16.msra.mxu1 %v6899_v10  ;;  %5480 = vmatprep.subr.bf16.mxu0 %v6784_v1 }
 0x100   : > { %5500 = vmatprep.subr.bf16.mxu1 %v6784_v1 }
 0x102   : > { %5481 = vmatpush3.bf16.msra.mxu0 %v6906_v11 }
 0x103   : > { %5501 = vmatpush3.bf16.msra.mxu1 %v6911_v12  ;;  %5482 = vmatprep.subr.bf16.mxu0 %v6784_v1 }
 0x104   : > { %5502 = vmatprep.subr.bf16.mxu1 %v6784_v1 }
 0x106   : > { %5483 = vmatpush3.bf16.msra.mxu0 %v6920_v13 }
 0x107   : > { %5503 = vmatpush3.bf16.msra.mxu1 %v6925_v14  ;;  %5484 = vmatprep.subr.bf16.mxu0 %v6784_v1 }
 0x108   : > { %5504 = vmatprep.subr.bf16.mxu1 %v6784_v1 }
 0x10a   : > { %5485 = vmatpush3.bf16.msra.mxu0 %v6939_v15  ;;  %v6683_v15 = vld [vmem:[%s6933_s24 + $0x10] sm:$0x1f]  }
 0x10b   : > { %5505 = vmatpush3.bf16.msra.mxu1 %v6944_v16  ;;  %5510 = vmatprep.subr.bf16.mxu0 %v6784_v1  ;;  %v6684_v16 = vld [vmem:[%s6933_s24 + $0x18] sm:$0x1f]   ;;  %v1210_v17 = vshll.u32 %v6683_v15, 16  ;;  %v1208_v19 = vshrl.u32 %v6683_v15, 16 }
 0x10c   : > { %5530 = vmatprep.subr.bf16.mxu1 %v6784_v1  ;;  %v1266_v18 = vshll.u32 %v6684_v16, 16  ;;  %v1264_v21 = vshrl.u32 %v6684_v16, 16  ;;  %v7478_v16 = vld [vmem:[%s8758_s1 + $0xe0] sm:$0xff]  }
 0x10d   : > { %v485_v43 = vpop.f32.mrf.mxu0  ;;  %5487 = vmatmul.mubr.bf16.vlgmr.msra.gmra.mxu0 %v4272_v40  ;;  %v1212_v20 = vrot.slane %v1210_v17, 1  ;;  %v1324_v40 = vrot.slane %v1322_v37, 1  ;;  %v7487_v17 = vld [vmem:[%s8758_s1 + $0xd8] sm:$0xff]   ;;  %v4346_v37 = vld [vmem:[%s6933_s24 + $0xa8] sm:$0xf] }
 0x10e   : > { %v525_v44 = vpop.f32.mrf.mxu1  ;;  %5507 = vmatmul.mubr.bf16.vlgmr.msra.gmra.mxu1 %v4232_v42  ;;  %5511 = vmatpush3.bf16.msra.mxu0 %v7223_v41  ;;  %v1268_v22 = vrot.slane %v1266_v18, 1  ;;  %v1376_v42 = vshrl.u32 %v6686_v36, 16  ;;  %v7496_v18 = vld [vmem:[%s8758_s1 + $0xd0] sm:$0xff]   ;;  %v4345_v36 = vld [vmem:[%s6933_s24 + $0xa0] sm:$0xf] }
 0x10f   : > { %v7235_v46 = vadd.f32 %v525_v44, %v485_v43  ;;  %5531 = vmatpush3.bf16.msra.mxu1 %v7223_v41  ;;  %v5248_v47 = vpop.f32.mrf.mxu0  ;;  %5512 = vmatprep.subr.bf16.mxu0 %v6784_v1  ;;  %v7343_v23 = vor.u32 %v1212_v20, %v1208_v19  ;;  %v1380_v43 = vrot.slane %v1378_v38, 1  ;;  %v7389_v44 = vor.u32 %v1324_v40, %v1320_v39  ;;  %v7505_v19 = vld [vmem:[%s8758_s1 + $0xc8] sm:$0xff]   ;;  %v7514_v20 = vld [vmem:[%s8758_s1 + $0xc0] sm:$0xff]  }
 0x110   : > { %v5268_v48 = vpop.f32.mrf.mxu1  ;;  %5532 = vmatprep.subr.bf16.mxu1 %v6784_v1  ;;  %5526 = vmatprep.mubr.msk.bf16.mxu0 %vm6785_vm0, %v6784_v1  ;;  %v7346_v24 = vor.u32 %v1268_v22, %v1264_v21  ;;  %v4335_v21 = vld [vmem:[%s6933_s24 + $0x90] sm:$0xf]  ;;  %v4344_v22 = vld [vmem:[%s6933_s24 + $0x98] sm:$0xf] }
 0x111   : > { %v488_v49 = vpop.f32.mrf.mxu0  ;;  %5546 = vmatprep.mubr.msk.bf16.mxu1 %vm6785_vm0, %v6784_v1  ;;  %v7392_v47 = vor.u32 %v1380_v43, %v1376_v42 }
 0x112   : > { %v528_v50 = vpop.f32.mrf.mxu1  ;;  %5513 = vmatpush3.bf16.msra.mxu0 %v7233_v45 }
 0x113   : > { %5533 = vmatpush3.bf16.msra.mxu1 %v7233_v45  ;;  %v5249_v52 = vpop.f32.mrf.mxu0  ;;  %5514 = vmatprep.subr.bf16.mxu0 %v6784_v1 }
 0x114   : > { %v5269_v53 = vpop.f32.mrf.mxu1  ;;  %5534 = vmatprep.subr.bf16.mxu1 %v6784_v1 }
 0x116   : > { %5515 = vmatpush3.bf16.msra.mxu0 %v7248_v51 }
 0x117   : > { %5535 = vmatpush3.bf16.msra.mxu1 %v7248_v51  ;;  %5516 = vmatprep.subr.bf16.mxu0 %v6784_v1 }
 0x118   : > { %5536 = vmatprep.subr.bf16.mxu1 %v6784_v1 }
 0x11a   : > { %5517 = vmatpush3.bf16.msra.mxu0 %v7257_v54 }
 0x11b   : > { %5537 = vmatpush3.bf16.msra.mxu1 %v7257_v54  ;;  %5518 = vmatprep.subr.bf16.mxu0 %v6784_v1 }
 0x11c   : > { %5538 = vmatprep.subr.bf16.mxu1 %v6784_v1 }
 0x11e   : > { %5519 = vmatpush3.bf16.msra.mxu0 %v7266_v55 }
 0x11f   : > { %5539 = vmatpush3.bf16.msra.mxu1 %v7266_v55  ;;  %5520 = vmatprep.subr.bf16.mxu0 %v6784_v1 }
 0x120   : > { %5540 = vmatprep.subr.bf16.mxu1 %v6784_v1 }
 0x122   : > { %5521 = vmatpush3.bf16.msra.mxu0 %v7276_v57 }
 0x123   : > { %5541 = vmatpush3.bf16.msra.mxu1 %v7276_v57  ;;  %5522 = vmatprep.subr.bf16.mxu0 %v6784_v1 }
 0x124   : > { %5542 = vmatprep.subr.bf16.mxu1 %v6784_v1 }
 0x126   : > { %5523 = vmatpush3.bf16.msra.mxu0 %v7286_v60 }
 0x127   : > { %5543 = vmatpush3.bf16.msra.mxu1 %v7286_v60  ;;  %5524 = vmatprep.subr.bf16.mxu0 %v6784_v1 }
 0x128   : > { %5544 = vmatprep.subr.bf16.mxu1 %v6784_v1 }
 0x12a   : > { %5525 = vmatpush3.bf16.msra.mxu0 %v7295_v0 }
 0x12b   : > { %5545 = vmatpush3.bf16.msra.mxu1 %v7295_v0  ;;  %5550 = vmatprep.subr.bf16.mxu0 %v6784_v1 }
 0x12c   : > { %5570 = vmatprep.subr.bf16.mxu1 %v6784_v1 }
 0x12d   : > { %v567_v6 = vpop.f32.mrf.mxu0  ;;  %5527 = vmatmul.mubr.bf16.vlgmr.msra.gmra.mxu0 %v1053_v4  ;;  %v7443_v4 = vld [vmem:[%s8758_s1 + $0xf8] sm:$0xff]  }
 0x12e   : > { %v607_v7 = vpop.f32.mrf.mxu1  ;;  %5547 = vmatmul.mubr.bf16.vlgmr.msra.gmra.mxu1 %v7301_v5  ;;  %5551 = vmatpush3.bf16.msra.mxu0 %v7223_v41 }
 0x12f   : > { %v7308_v8 = vadd.f32 %v607_v7, %v567_v6  ;;  %5571 = vmatpush3.bf16.msra.mxu1 %v7223_v41  ;;  %v5288_v9 = vpop.f32.mrf.mxu0  ;;  %5552 = vmatprep.subr.bf16.mxu0 %v6784_v1  ;;  %v7454_v7 = vld [vmem:[%s8758_s1 + $0xf0] sm:$0xff]  }
 0x130   : > { %v5308_v10 = vpop.f32.mrf.mxu1  ;;  %5572 = vmatprep.subr.bf16.mxu1 %v6784_v1  ;;  %5566 = vmatprep.mubr.msk.bf16.mxu0 %vm6785_vm0, %v6784_v1 }
 0x131   : > { %v570_v11 = vpop.f32.mrf.mxu0  ;;  %5586 = vmatprep.mubr.msk.bf16.mxu1 %vm6785_vm0, %v6784_v1 }
 0x132   : > { %v610_v12 = vpop.f32.mrf.mxu1  ;;  %5553 = vmatpush3.bf16.msra.mxu0 %v7233_v45 }
 0x133   : > { %5573 = vmatpush3.bf16.msra.mxu1 %v7233_v45  ;;  %v5289_v13 = vpop.f32.mrf.mxu0  ;;  %5554 = vmatprep.subr.bf16.mxu0 %v6784_v1 }
 0x134   : > { %v5309_v14 = vpop.f32.mrf.mxu1  ;;  %5574 = vmatprep.subr.bf16.mxu1 %v6784_v1  ;;  %v7469_v13 = vld [vmem:[%s8758_s1 + $0xe8] sm:$0xff]  }
 0x136   : > { %5555 = vmatpush3.bf16.msra.mxu0 %v7248_v51 }
 0x137   : > { %5575 = vmatpush3.bf16.msra.mxu1 %v7248_v51  ;;  %5556 = vmatprep.subr.bf16.mxu0 %v6784_v1 }
 0x138   : > { %5576 = vmatprep.subr.bf16.mxu1 %v6784_v1 }
 0x13a   : > { %5557 = vmatpush3.bf16.msra.mxu0 %v7257_v54 }
 0x13b   : > { %5577 = vmatpush3.bf16.msra.mxu1 %v7257_v54  ;;  %5558 = vmatprep.subr.bf16.mxu0 %v6784_v1 }
 0x13c   : > { %5578 = vmatprep.subr.bf16.mxu1 %v6784_v1 }
 0x13e   : > { %5559 = vmatpush3.bf16.msra.mxu0 %v7266_v55 }
 0x13f   : > { %5579 = vmatpush3.bf16.msra.mxu1 %v7266_v55  ;;  %5560 = vmatprep.subr.bf16.mxu0 %v6784_v1 }
 0x140   : > { %5580 = vmatprep.subr.bf16.mxu1 %v6784_v1 }
 0x142   : > { %5561 = vmatpush3.bf16.msra.mxu0 %v7276_v57 }
 0x143   : > { %5581 = vmatpush3.bf16.msra.mxu1 %v7276_v57  ;;  %5562 = vmatprep.subr.bf16.mxu0 %v6784_v1 }
 0x144   : > { %5582 = vmatprep.subr.bf16.mxu1 %v6784_v1 }
 0x146   : > { %5563 = vmatpush3.bf16.msra.mxu0 %v7286_v60 }
 0x147   : > { %5583 = vmatpush3.bf16.msra.mxu1 %v7286_v60  ;;  %5564 = vmatprep.subr.bf16.mxu0 %v6784_v1 }
 0x148   : > { %5584 = vmatprep.subr.bf16.mxu1 %v6784_v1 }
 0x14a   : > { %5565 = vmatpush3.bf16.msra.mxu0 %v7295_v0 }
 0x14b   : > { %5585 = vmatpush3.bf16.msra.mxu1 %v7295_v0  ;;  %5590 = vmatprep.subr.bf16.mxu0 %v6784_v1 }
 0x14c   : > { %5610 = vmatprep.subr.bf16.mxu1 %v6784_v1 }
 0x14d   : > { %v649_v25 = vpop.f32.mrf.mxu0  ;;  %5567 = vmatmul.mubr.bf16.vlgmr.msra.gmra.mxu0 %v7343_v23 }
 0x14e   : > { %v689_v26 = vpop.f32.mrf.mxu1  ;;  %5587 = vmatmul.mubr.bf16.vlgmr.msra.gmra.mxu1 %v7346_v24  ;;  %5591 = vmatpush3.bf16.msra.mxu0 %v7223_v41 }
 0x14f   : > { %v7354_v27 = vadd.f32 %v689_v26, %v649_v25  ;;  %5611 = vmatpush3.bf16.msra.mxu1 %v7223_v41  ;;  %v5328_v28 = vpop.f32.mrf.mxu0  ;;  %5592 = vmatprep.subr.bf16.mxu0 %v6784_v1 }
 0x150   : > { %v5348_v29 = vpop.f32.mrf.mxu1  ;;  %5612 = vmatprep.subr.bf16.mxu1 %v6784_v1  ;;  %5606 = vmatprep.mubr.msk.bf16.mxu0 %vm6785_vm0, %v6784_v1 }
 0x151   : > { %v652_v30 = vpop.f32.mrf.mxu0  ;;  %5626 = vmatprep.mubr.msk.bf16.mxu1 %vm6785_vm0, %v6784_v1 }
 0x152   : > { %v692_v31 = vpop.f32.mrf.mxu1  ;;  %5593 = vmatpush3.bf16.msra.mxu0 %v7233_v45 }
 0x153   : > { %5613 = vmatpush3.bf16.msra.mxu1 %v7233_v45  ;;  %v5329_v32 = vpop.f32.mrf.mxu0  ;;  %5594 = vmatprep.subr.bf16.mxu0 %v6784_v1 }
 0x154   : > { %v5349_v34 = vpop.f32.mrf.mxu1  ;;  %5614 = vmatprep.subr.bf16.mxu1 %v6784_v1 }
 0x156   : > { %5595 = vmatpush3.bf16.msra.mxu0 %v7248_v51 }
 0x157   : > { %5615 = vmatpush3.bf16.msra.mxu1 %v7248_v51  ;;  %5596 = vmatprep.subr.bf16.mxu0 %v6784_v1 }
 0x158   : > { %5616 = vmatprep.subr.bf16.mxu1 %v6784_v1 }
 0x15a   : > { %5597 = vmatpush3.bf16.msra.mxu0 %v7257_v54 }
 0x15b   : > { %5617 = vmatpush3.bf16.msra.mxu1 %v7257_v54  ;;  %5598 = vmatprep.subr.bf16.mxu0 %v6784_v1 }
 0x15c   : > { %5618 = vmatprep.subr.bf16.mxu1 %v6784_v1 }
 0x15e   : > { %5599 = vmatpush3.bf16.msra.mxu0 %v7266_v55 }
 0x15f   : > { %5619 = vmatpush3.bf16.msra.mxu1 %v7266_v55  ;;  %5600 = vmatprep.subr.bf16.mxu0 %v6784_v1 }
 0x160   : > { %5620 = vmatprep.subr.bf16.mxu1 %v6784_v1 }
 0x162   : > { %5601 = vmatpush3.bf16.msra.mxu0 %v7276_v57 }
 0x163   : > { %5621 = vmatpush3.bf16.msra.mxu1 %v7276_v57  ;;  %5602 = vmatprep.subr.bf16.mxu0 %v6784_v1 }
 0x164   : > { %5622 = vmatprep.subr.bf16.mxu1 %v6784_v1 }
 0x166   : > { %5603 = vmatpush3.bf16.msra.mxu0 %v7286_v60 }
 0x167   : > { %5623 = vmatpush3.bf16.msra.mxu1 %v7286_v60  ;;  %5604 = vmatprep.subr.bf16.mxu0 %v6784_v1 }
 0x168   : > { %5624 = vmatprep.subr.bf16.mxu1 %v6784_v1 }
 0x16a   : > { %5605 = vmatpush3.bf16.msra.mxu0 %v7295_v0 }
 0x16b   : > { %5625 = vmatpush3.bf16.msra.mxu1 %v7295_v0  ;;  %5630 = vmatprep.subr.bf16.mxu0 %v6784_v1 }
 0x16c   : > { %5650 = vmatprep.subr.bf16.mxu1 %v6784_v1 }
 0x16d   : > { %v731_v48 = vpop.f32.mrf.mxu0  ;;  %5607 = vmatmul.mubr.bf16.vlgmr.msra.gmra.mxu0 %v7389_v44 }
 0x16e   : > { %v771_v49 = vpop.f32.mrf.mxu1  ;;  %5627 = vmatmul.mubr.bf16.vlgmr.msra.gmra.mxu1 %v7392_v47  ;;  %5631 = vmatpush3.bf16.msra.mxu0 %v7223_v41 }
 0x16f   : > { %v7400_v50 = vadd.f32 %v771_v49, %v731_v48  ;;  %5651 = vmatpush3.bf16.msra.mxu1 %v7223_v41  ;;  %v5368_v52 = vpop.f32.mrf.mxu0  ;;  %5632 = vmatprep.subr.bf16.mxu0 %v6784_v1 }
 0x170   : > { %v5388_v53 = vpop.f32.mrf.mxu1  ;;  %5652 = vmatprep.subr.bf16.mxu1 %v6784_v1  ;;  %5646 = vmatprep.mubr.msk.bf16.mxu0 %vm6785_vm0, %v6784_v1 }
 0x171   : > { %v734_v56 = vpop.f32.mrf.mxu0  ;;  %5666 = vmatprep.mubr.msk.bf16.mxu1 %vm6785_vm0, %v6784_v1 }
 0x172   : > { %v774_v58 = vpop.f32.mrf.mxu1  ;;  %5633 = vmatpush3.bf16.msra.mxu0 %v7233_v45  ;;  %v4347_v56 = vld [vmem:[%s6933_s24 + $0xb0] sm:$0xf] }
 0x173   : > { %5653 = vmatpush3.bf16.msra.mxu1 %v7233_v45  ;;  %v5369_v41 = vpop.f32.mrf.mxu0  ;;  %5634 = vmatprep.subr.bf16.mxu0 %v6784_v1  ;;  %v6687_v45 = vld [vmem:[%s6933_s24 + $0x30] sm:$0x1f]   ;;  %v4348_v58 = vld [vmem:[%s6933_s24 + $0xb8] sm:$0xf] }
 0x174   : > { %v5389_v59 = vpop.f32.mrf.mxu1  ;;  %5654 = vmatprep.subr.bf16.mxu1 %v6784_v1 }
 0x176   : > { %5635 = vmatpush3.bf16.msra.mxu0 %v7248_v51 }
 0x177   : > { %5655 = vmatpush3.bf16.msra.mxu1 %v7248_v51  ;;  %5636 = vmatprep.subr.bf16.mxu0 %v6784_v1  ;;  %v1434_v51 = vshll.u32 %v6687_v45, 16 }
 0x178   : > { %5656 = vmatprep.subr.bf16.mxu1 %v6784_v1 }
 0x179   : > { %v1436_v63 = vrot.slane %v1434_v51, 1 }
 0x17a   : > { %5637 = vmatpush3.bf16.msra.mxu0 %v7257_v54 }
 0x17b   : > { %5657 = vmatpush3.bf16.msra.mxu1 %v7257_v54  ;;  %5638 = vmatprep.subr.bf16.mxu0 %v6784_v1  ;;  %v1432_v54 = vshrl.u32 %v6687_v45, 16 }
 0x17c   : > { %5658 = vmatprep.subr.bf16.mxu1 %v6784_v1 }
 0x17d   : > { %v7435_v3 = vor.u32 %v1436_v63, %v1432_v54 }
 0x17e   : > { %5639 = vmatpush3.bf16.msra.mxu0 %v7266_v55 }
 0x17f   : > { %5659 = vmatpush3.bf16.msra.mxu1 %v7266_v55  ;;  %5640 = vmatprep.subr.bf16.mxu0 %v6784_v1  ;;  %v1492_v55 = vrot.slane %v1490_v62, 1 }
 0x180   : > { %5660 = vmatprep.subr.bf16.mxu1 %v6784_v1 }
 0x182   : > { %5641 = vmatpush3.bf16.msra.mxu0 %v7276_v57 }
 0x183   : > { %5661 = vmatpush3.bf16.msra.mxu1 %v7276_v57  ;;  %5642 = vmatprep.subr.bf16.mxu0 %v6784_v1  ;;  %v7438_v57 = vor.u32 %v1492_v55, %v1488_v2  ;;  %v4349_v2 = vld [vmem:[%s6933_s24 + $0xc0] sm:$0xf]  ;;  %v7648_v55 = vld [vmem:[%s8758_s1 + $0x138] sm:$0xff]  }
 0x184   : > { %5662 = vmatprep.subr.bf16.mxu1 %v6784_v1 }
 0x186   : > { %5643 = vmatpush3.bf16.msra.mxu0 %v7286_v60 }
 0x187   : > { %5663 = vmatpush3.bf16.msra.mxu1 %v7286_v60  ;;  %5644 = vmatprep.subr.bf16.mxu0 %v6784_v1 }
 0x188   : > { %5664 = vmatprep.subr.bf16.mxu1 %v6784_v1 }
 0x18a   : > { %5645 = vmatpush3.bf16.msra.mxu0 %v7295_v0 }
 0x18b   : > { %5665 = vmatpush3.bf16.msra.mxu1 %v7295_v0  ;;  %5670 = vmatprep.subr.bf16.mxu0 %v6784_v1 }
 0x18c   : > { %5690 = vmatprep.subr.bf16.mxu1 %v6784_v1 }
 0x18d   : > { %v813_v60 = vpop.f32.mrf.mxu0  ;;  %5647 = vmatmul.mubr.bf16.vlgmr.msra.gmra.mxu0 %v7435_v3 }
 0x18e   : > { %v853_v6 = vpop.f32.mrf.mxu1  ;;  %5667 = vmatmul.mubr.bf16.vlgmr.msra.gmra.mxu1 %v7438_v57  ;;  %5671 = vmatpush3.bf16.msra.mxu0 %v7443_v4 }
 0x18f   : > { %v7456_v9 = vadd.f32 %v853_v6, %v813_v60  ;;  %5691 = vmatpush3.bf16.msra.mxu1 %v7443_v4  ;;  %v5408_v0 = vpop.f32.mrf.mxu0  ;;  %5672 = vmatprep.subr.bf16.mxu0 %v6784_v1 }
 0x190   : > { %v5428_v10 = vpop.f32.mrf.mxu1  ;;  %5692 = vmatprep.subr.bf16.mxu1 %v6784_v1  ;;  %5686 = vmatprep.mubr.msk.bf16.mxu0 %vm6785_vm0, %v6784_v1  ;;  %v7661_v0 = vld [vmem:[%s8758_s1 + $0x130] sm:$0xff]  }
 0x191   : > { %v816_v11 = vpop.f32.mrf.mxu0  ;;  %5706 = vmatprep.mubr.msk.bf16.mxu1 %vm6785_vm0, %v6784_v1 }
 0x192   : > { %v856_v12 = vpop.f32.mrf.mxu1  ;;  %5673 = vmatpush3.bf16.msra.mxu0 %v7454_v7 }
 0x193   : > { %5693 = vmatpush3.bf16.msra.mxu1 %v7454_v7  ;;  %v5409_v14 = vpop.f32.mrf.mxu0  ;;  %5674 = vmatprep.subr.bf16.mxu0 %v6784_v1 }
 0x194   : > { %v5429_v15 = vpop.f32.mrf.mxu1  ;;  %5694 = vmatprep.subr.bf16.mxu1 %v6784_v1 }
 0x196   : > { %5675 = vmatpush3.bf16.msra.mxu0 %v7469_v13 }
 0x197   : > { %5695 = vmatpush3.bf16.msra.mxu1 %v7469_v13  ;;  %5676 = vmatprep.subr.bf16.mxu0 %v6784_v1 }
 0x198   : > { %5696 = vmatprep.subr.bf16.mxu1 %v6784_v1 }
 0x19a   : > { %5677 = vmatpush3.bf16.msra.mxu0 %v7478_v16 }
 0x19b   : > { %5697 = vmatpush3.bf16.msra.mxu1 %v7478_v16  ;;  %5678 = vmatprep.subr.bf16.mxu0 %v6784_v1 }
 0x19c   : > { %5698 = vmatprep.subr.bf16.mxu1 %v6784_v1 }
 0x19e   : > { %5679 = vmatpush3.bf16.msra.mxu0 %v7487_v17 }
 0x19f   : > { %5699 = vmatpush3.bf16.msra.mxu1 %v7487_v17  ;;  %5680 = vmatprep.subr.bf16.mxu0 %v6784_v1 }
 0x1a0   : > { %5700 = vmatprep.subr.bf16.mxu1 %v6784_v1 }
 0x1a2   : > { %5681 = vmatpush3.bf16.msra.mxu0 %v7496_v18 }
 0x1a3   : > { %5701 = vmatpush3.bf16.msra.mxu1 %v7496_v18  ;;  %5682 = vmatprep.subr.bf16.mxu0 %v6784_v1 }
 0x1a4   : > { %5702 = vmatprep.subr.bf16.mxu1 %v6784_v1 }
 0x1a6   : > { %5683 = vmatpush3.bf16.msra.mxu0 %v7505_v19 }
 0x1a7   : > { %5703 = vmatpush3.bf16.msra.mxu1 %v7505_v19  ;;  %5684 = vmatprep.subr.bf16.mxu0 %v6784_v1 }
 0x1a8   : > { %5704 = vmatprep.subr.bf16.mxu1 %v6784_v1 }
 0x1aa   : > { %5685 = vmatpush3.bf16.msra.mxu0 %v7514_v20 }
 0x1ab   : > { %5705 = vmatpush3.bf16.msra.mxu1 %v7514_v20  ;;  %5710 = vmatprep.subr.bf16.mxu0 %v6784_v1 }
 0x1ac   : > { %5730 = vmatprep.subr.bf16.mxu1 %v6784_v1 }
 0x1ad   : > { %v895_v25 = vpop.f32.mrf.mxu0  ;;  %5687 = vmatmul.mubr.bf16.vlgmr.msra.gmra.mxu0 %v4335_v21  ;;  %v4367_v21 = vld [vmem:[%s6933_s24 + $0xd8] sm:$0xf] }
 0x1ae   : > { %v935_v26 = vpop.f32.mrf.mxu1  ;;  %5707 = vmatmul.mubr.bf16.vlgmr.msra.gmra.mxu1 %v4344_v22  ;;  %5711 = vmatpush3.bf16.msra.mxu0 %v7443_v4  ;;  %v4376_v22 = vld [vmem:[%s6933_s24 + $0xe0] sm:$0xf] }
 0x1af   : > { %v7526_v28 = vadd.f32 %v935_v26, %v895_v25  ;;  %5731 = vmatpush3.bf16.msra.mxu1 %v7443_v4  ;;  %v5448_v29 = vpop.f32.mrf.mxu0  ;;  %5712 = vmatprep.subr.bf16.mxu0 %v6784_v1 }
 0x1b0   : > { %v5468_v30 = vpop.f32.mrf.mxu1  ;;  %5732 = vmatprep.subr.bf16.mxu1 %v6784_v1  ;;  %5726 = vmatprep.mubr.msk.bf16.mxu0 %vm6785_vm0, %v6784_v1 }
 0x1b1   : > { %v898_v31 = vpop.f32.mrf.mxu0  ;;  %5746 = vmatprep.mubr.msk.bf16.mxu1 %vm6785_vm0, %v6784_v1 }
 0x1b2   : > { %v938_v32 = vpop.f32.mrf.mxu1  ;;  %5713 = vmatpush3.bf16.msra.mxu0 %v7454_v7 }
 0x1b3   : > { %5733 = vmatpush3.bf16.msra.mxu1 %v7454_v7  ;;  %v5449_v34 = vpop.f32.mrf.mxu0  ;;  %5714 = vmatprep.subr.bf16.mxu0 %v6784_v1 }
 0x1b4   : > { %v5469_v35 = vpop.f32.mrf.mxu1  ;;  %5734 = vmatprep.subr.bf16.mxu1 %v6784_v1 }
 0x1b6   : > { %5715 = vmatpush3.bf16.msra.mxu0 %v7469_v13 }
 0x1b7   : > { %5735 = vmatpush3.bf16.msra.mxu1 %v7469_v13  ;;  %5716 = vmatprep.subr.bf16.mxu0 %v6784_v1 }
 0x1b8   : > { %5736 = vmatprep.subr.bf16.mxu1 %v6784_v1 }
 0x1ba   : > { %5717 = vmatpush3.bf16.msra.mxu0 %v7478_v16 }
 0x1bb   : > { %5737 = vmatpush3.bf16.msra.mxu1 %v7478_v16  ;;  %5718 = vmatprep.subr.bf16.mxu0 %v6784_v1 }
 0x1bc   : > { %5738 = vmatprep.subr.bf16.mxu1 %v6784_v1 }
 0x1be   : > { %5719 = vmatpush3.bf16.msra.mxu0 %v7487_v17 }
 0x1bf   : > { %5739 = vmatpush3.bf16.msra.mxu1 %v7487_v17  ;;  %5720 = vmatprep.subr.bf16.mxu0 %v6784_v1 }
 0x1c0   : > { %5740 = vmatprep.subr.bf16.mxu1 %v6784_v1 }
 0x1c2   : > { %5721 = vmatpush3.bf16.msra.mxu0 %v7496_v18 }
 0x1c3   : > { %5741 = vmatpush3.bf16.msra.mxu1 %v7496_v18  ;;  %5722 = vmatprep.subr.bf16.mxu0 %v6784_v1 }
 0x1c4   : > { %5742 = vmatprep.subr.bf16.mxu1 %v6784_v1 }
 0x1c6   : > { %5723 = vmatpush3.bf16.msra.mxu0 %v7505_v19 }
 0x1c7   : > { %5743 = vmatpush3.bf16.msra.mxu1 %v7505_v19  ;;  %5724 = vmatprep.subr.bf16.mxu0 %v6784_v1 }
 0x1c8   : > { %5744 = vmatprep.subr.bf16.mxu1 %v6784_v1 }
 0x1ca   : > { %5725 = vmatpush3.bf16.msra.mxu0 %v7514_v20 }
 0x1cb   : > { %5745 = vmatpush3.bf16.msra.mxu1 %v7514_v20  ;;  %5750 = vmatprep.subr.bf16.mxu0 %v6784_v1 }
 0x1cc   : > { %5770 = vmatprep.subr.bf16.mxu1 %v6784_v1 }
 0x1cd   : > { %v977_v38 = vpop.f32.mrf.mxu0  ;;  %5727 = vmatmul.mubr.bf16.vlgmr.msra.gmra.mxu0 %v4345_v36  ;;  %v4377_v36 = vld [vmem:[%s6933_s24 + $0xe8] sm:$0xf] }
 0x1ce   : > { %v1017_v39 = vpop.f32.mrf.mxu1  ;;  %5747 = vmatmul.mubr.bf16.vlgmr.msra.gmra.mxu1 %v4346_v37  ;;  %5751 = vmatpush3.bf16.msra.mxu0 %v7443_v4  ;;  %v4378_v37 = vld [vmem:[%s6933_s24 + $0xf0] sm:$0xf] }
 0x1cf   : > { %v7566_v40 = vadd.f32 %v1017_v39, %v977_v38  ;;  %5771 = vmatpush3.bf16.msra.mxu1 %v7443_v4  ;;  %v5488_v42 = vpop.f32.mrf.mxu0  ;;  %5752 = vmatprep.subr.bf16.mxu0 %v6784_v1 }
 0x1d0   : > { %v5508_v43 = vpop.f32.mrf.mxu1  ;;  %5772 = vmatprep.subr.bf16.mxu1 %v6784_v1  ;;  %5766 = vmatprep.mubr.msk.bf16.mxu0 %vm6785_vm0, %v6784_v1 }
 0x1d1   : > { %v980_v48 = vpop.f32.mrf.mxu0  ;;  %5786 = vmatprep.mubr.msk.bf16.mxu1 %vm6785_vm0, %v6784_v1 }
 0x1d2   : > { %v1020_v49 = vpop.f32.mrf.mxu1  ;;  %5753 = vmatpush3.bf16.msra.mxu0 %v7454_v7 }
 0x1d3   : > { %5773 = vmatpush3.bf16.msra.mxu1 %v7454_v7  ;;  %v5489_v52 = vpop.f32.mrf.mxu0  ;;  %5754 = vmatprep.subr.bf16.mxu0 %v6784_v1 }
 0x1d4   : > { %v5509_v53 = vpop.f32.mrf.mxu1  ;;  %5774 = vmatprep.subr.bf16.mxu1 %v6784_v1 }
 0x1d6   : > { %5755 = vmatpush3.bf16.msra.mxu0 %v7469_v13 }
 0x1d7   : > { %5775 = vmatpush3.bf16.msra.mxu1 %v7469_v13  ;;  %5756 = vmatprep.subr.bf16.mxu0 %v6784_v1 }
 0x1d8   : > { %5776 = vmatprep.subr.bf16.mxu1 %v6784_v1 }
 0x1da   : > { %5757 = vmatpush3.bf16.msra.mxu0 %v7478_v16 }
 0x1db   : > { %5777 = vmatpush3.bf16.msra.mxu1 %v7478_v16  ;;  %5758 = vmatprep.subr.bf16.mxu0 %v6784_v1 }
 0x1dc   : > { %5778 = vmatprep.subr.bf16.mxu1 %v6784_v1 }
 0x1de   : > { %5759 = vmatpush3.bf16.msra.mxu0 %v7487_v17 }
 0x1df   : > { %5779 = vmatpush3.bf16.msra.mxu1 %v7487_v17  ;;  %5760 = vmatprep.subr.bf16.mxu0 %v6784_v1 }
 0x1e0   : > { %5780 = vmatprep.subr.bf16.mxu1 %v6784_v1 }
 0x1e2   : > { %5761 = vmatpush3.bf16.msra.mxu0 %v7496_v18 }
 0x1e3   : > { %5781 = vmatpush3.bf16.msra.mxu1 %v7496_v18  ;;  %5762 = vmatprep.subr.bf16.mxu0 %v6784_v1 }
 0x1e4   : > { %5782 = vmatprep.subr.bf16.mxu1 %v6784_v1 }
 0x1e6   : > { %5763 = vmatpush3.bf16.msra.mxu0 %v7505_v19 }
 0x1e7   : > { %5783 = vmatpush3.bf16.msra.mxu1 %v7505_v19  ;;  %5764 = vmatprep.subr.bf16.mxu0 %v6784_v1 }
 0x1e8   : > { %5784 = vmatprep.subr.bf16.mxu1 %v6784_v1 }
 0x1ea   : > { %5765 = vmatpush3.bf16.msra.mxu0 %v7514_v20 }
 0x1eb   : > { %5785 = vmatpush3.bf16.msra.mxu1 %v7514_v20  ;;  %5790 = vmatprep.subr.bf16.mxu0 %v6784_v1 }
 0x1ec   : > { %5810 = vmatprep.subr.bf16.mxu1 %v6784_v1 }
 0x1ed   : > { %v1137_v41 = vpop.f32.mrf.mxu0  ;;  %5767 = vmatmul.mubr.bf16.vlgmr.msra.gmra.mxu0 %v4347_v56  ;;  %v4379_v56 = vld [vmem:[%s6933_s24 + $0xf8] sm:$0xf] }
 0x1ee   : > { %v7606_v59 = vadd.f32 %v1137_v41, %v7185_v33  ;;  %v1193_v45 = vpop.f32.mrf.mxu1  ;;  %5787 = vmatmul.mubr.bf16.vlgmr.msra.gmra.mxu1 %v4348_v58  ;;  %5791 = vmatpush3.bf16.msra.mxu0 %v7443_v4  ;;  %v4380_v58 = vld [vmem:[%s6933_s24 + $0x100] sm:$0xf] }
 0x1ef   : > { %v7610_v61 = vadd.f32 %v1193_v45, %v7235_v46  ;;  %5811 = vmatpush3.bf16.msra.mxu1 %v7443_v4  ;;  %v5528_v51 = vpop.f32.mrf.mxu0  ;;  %5792 = vmatprep.subr.bf16.mxu0 %v6784_v1  ;;  %v4350_v4 = vld [vmem:[%s6933_s24 + $0xc8] sm:$0xf] }
 0x1f0   : > { %v5548_v62 = vpop.f32.mrf.mxu1  ;;  %5812 = vmatprep.subr.bf16.mxu1 %v6784_v1  ;;  %5806 = vmatprep.mubr.msk.bf16.mxu0 %vm6785_vm0, %v6784_v1 }
 0x1f1   : > { %v1140_v33 = vpop.f32.mrf.mxu0  ;;  %5826 = vmatprep.mubr.msk.bf16.mxu1 %vm6785_vm0, %v6784_v1 }
 0x1f2   : > { %v1196_v54 = vpop.f32.mrf.mxu1  ;;  %5793 = vmatpush3.bf16.msra.mxu0 %v7454_v7 }
 0x1f3   : > { %5813 = vmatpush3.bf16.msra.mxu1 %v7454_v7  ;;  %v5529_v46 = vpop.f32.mrf.mxu0  ;;  %5794 = vmatprep.subr.bf16.mxu0 %v6784_v1 }
 0x1f4   : > { %v5549_v63 = vpop.f32.mrf.mxu1  ;;  %5814 = vmatprep.subr.bf16.mxu1 %v6784_v1 }
 0x1f6   : > { %5795 = vmatpush3.bf16.msra.mxu0 %v7469_v13 }
 0x1f7   : > { %5815 = vmatpush3.bf16.msra.mxu1 %v7469_v13  ;;  %5796 = vmatprep.subr.bf16.mxu0 %v6784_v1 }
 0x1f8   : > { %5816 = vmatprep.subr.bf16.mxu1 %v6784_v1 }
 0x1fa   : > { %5797 = vmatpush3.bf16.msra.mxu0 %v7478_v16 }
 0x1fb   : > { %5817 = vmatpush3.bf16.msra.mxu1 %v7478_v16  ;;  %5798 = vmatprep.subr.bf16.mxu0 %v6784_v1  ;;  %v7686_v16 = vld [vmem:[%s8758_s1 + $0x120] sm:$0xff]  }
 0x1fc   : > { %5818 = vmatprep.subr.bf16.mxu1 %v6784_v1 }
 0x1fe   : > { %5799 = vmatpush3.bf16.msra.mxu0 %v7487_v17 }
 0x1ff   : > { %5819 = vmatpush3.bf16.msra.mxu1 %v7487_v17  ;;  %5800 = vmatprep.subr.bf16.mxu0 %v6784_v1  ;;  %v7695_v17 = vld [vmem:[%s8758_s1 + $0x118] sm:$0xff]  }
 0x200   : > { %5820 = vmatprep.subr.bf16.mxu1 %v6784_v1 }
 0x202   : > { %5801 = vmatpush3.bf16.msra.mxu0 %v7496_v18 }
 0x203   : > { %5821 = vmatpush3.bf16.msra.mxu1 %v7496_v18  ;;  %5802 = vmatprep.subr.bf16.mxu0 %v6784_v1  ;;  %v7704_v18 = vld [vmem:[%s8758_s1 + $0x110] sm:$0xff]  }
 0x204   : > { %5822 = vmatprep.subr.bf16.mxu1 %v6784_v1 }
 0x206   : > { %5803 = vmatpush3.bf16.msra.mxu0 %v7505_v19 }
 0x207   : > { %5823 = vmatpush3.bf16.msra.mxu1 %v7505_v19  ;;  %5804 = vmatprep.subr.bf16.mxu0 %v6784_v1  ;;  %v7713_v19 = vld [vmem:[%s8758_s1 + $0x108] sm:$0xff]  }
 0x208   : > { %5824 = vmatprep.subr.bf16.mxu1 %v6784_v1 }
 0x20a   : > { %5805 = vmatpush3.bf16.msra.mxu0 %v7514_v20 }
 0x20b   : > { %5825 = vmatpush3.bf16.msra.mxu1 %v7514_v20  ;;  %5830 = vmatprep.subr.bf16.mxu0 %v6784_v1  ;;  %v7722_v20 = vld [vmem:[%s8758_s1 + $0x100] sm:$0xff]  }
 0x20c   : > { %5850 = vmatprep.subr.bf16.mxu1 %v6784_v1 }
 0x20d   : > { %v1249_v60 = vpop.f32.mrf.mxu0  ;;  %5807 = vmatmul.mubr.bf16.vlgmr.msra.gmra.mxu0 %v4349_v2  ;;  %v4381_v2 = vld [vmem:[%s6933_s24 + $0x108] sm:$0xf] }
 0x20e   : > { %v7655_v6 = vadd.f32 %v1249_v60, %v7308_v8  ;;  %v1305_v7 = vpop.f32.mrf.mxu1  ;;  %5827 = vmatmul.mubr.bf16.vlgmr.msra.gmra.mxu1 %v4350_v4  ;;  %5831 = vmatpush3.bf16.msra.mxu0 %v7648_v55  ;;  %v4382_v4 = vld [vmem:[%s6933_s24 + $0x110] sm:$0xf] }
 0x20f   : > { %v7664_v10 = vadd.f32 %v1305_v7, %v7354_v27  ;;  %5851 = vmatpush3.bf16.msra.mxu1 %v7648_v55  ;;  %v5568_v11 = vpop.f32.mrf.mxu0  ;;  %5832 = vmatprep.subr.bf16.mxu0 %v6784_v1  ;;  %v7677_v27 = vld [vmem:[%s8758_s1 + $0x128] sm:$0xff]  }
 0x210   : > { %v5588_v12 = vpop.f32.mrf.mxu1  ;;  %5852 = vmatprep.subr.bf16.mxu1 %v6784_v1  ;;  %5846 = vmatprep.mubr.msk.bf16.mxu0 %vm6785_vm0, %v6784_v1  ;;  %v7877_v11 = vld [vmem:[%s8758_s1 + $0x170] sm:$0xff]  }
 0x211   : > { %v1252_v8 = vpop.f32.mrf.mxu0  ;;  %5866 = vmatprep.mubr.msk.bf16.mxu1 %vm6785_vm0, %v6784_v1 }
 0x212   : > { %v1308_v13 = vpop.f32.mrf.mxu1  ;;  %5833 = vmatpush3.bf16.msra.mxu0 %v7661_v0 }
 0x213   : > { %5853 = vmatpush3.bf16.msra.mxu1 %v7661_v0  ;;  %v5569_v14 = vpop.f32.mrf.mxu0  ;;  %5834 = vmatprep.subr.bf16.mxu0 %v6784_v1 }
 0x214   : > { %v5589_v15 = vpop.f32.mrf.mxu1  ;;  %5854 = vmatprep.subr.bf16.mxu1 %v6784_v1 }
 0x216   : > { %5835 = vmatpush3.bf16.msra.mxu0 %v7677_v27 }
 0x217   : > { %5855 = vmatpush3.bf16.msra.mxu1 %v7677_v27  ;;  %5836 = vmatprep.subr.bf16.mxu0 %v6784_v1 }
 0x218   : > { %5856 = vmatprep.subr.bf16.mxu1 %v6784_v1 }
 0x21a   : > { %5837 = vmatpush3.bf16.msra.mxu0 %v7686_v16 }
 0x21b   : > { %5857 = vmatpush3.bf16.msra.mxu1 %v7686_v16  ;;  %5838 = vmatprep.subr.bf16.mxu0 %v6784_v1 }
 0x21c   : > { %5858 = vmatprep.subr.bf16.mxu1 %v6784_v1 }
 0x21e   : > { %5839 = vmatpush3.bf16.msra.mxu0 %v7695_v17 }
 0x21f   : > { %5859 = vmatpush3.bf16.msra.mxu1 %v7695_v17  ;;  %5840 = vmatprep.subr.bf16.mxu0 %v6784_v1 }
 0x220   : > { %5860 = vmatprep.subr.bf16.mxu1 %v6784_v1 }
 0x222   : > { %5841 = vmatpush3.bf16.msra.mxu0 %v7704_v18 }
 0x223   : > { %5861 = vmatpush3.bf16.msra.mxu1 %v7704_v18  ;;  %5842 = vmatprep.subr.bf16.mxu0 %v6784_v1 }
 0x224   : > { %5862 = vmatprep.subr.bf16.mxu1 %v6784_v1 }
 0x226   : > { %5843 = vmatpush3.bf16.msra.mxu0 %v7713_v19 }
 0x227   : > { %5863 = vmatpush3.bf16.msra.mxu1 %v7713_v19  ;;  %5844 = vmatprep.subr.bf16.mxu0 %v6784_v1 }
 0x228   : > { %5864 = vmatprep.subr.bf16.mxu1 %v6784_v1 }
 0x22a   : > { %5845 = vmatpush3.bf16.msra.mxu0 %v7722_v20 }
 0x22b   : > { %5865 = vmatpush3.bf16.msra.mxu1 %v7722_v20  ;;  %5870 = vmatprep.subr.bf16.mxu0 %v6784_v1 }
 0x22c   : > { %5890 = vmatprep.subr.bf16.mxu1 %v6784_v1 }
 0x22d   : > { %v1361_v25 = vpop.f32.mrf.mxu0  ;;  %5847 = vmatmul.mubr.bf16.vlgmr.msra.gmra.mxu0 %v4367_v21 }
 0x22e   : > { %v7734_v26 = vadd.f32 %v1361_v25, %v7400_v50  ;;  %v1417_v29 = vpop.f32.mrf.mxu1  ;;  %5867 = vmatmul.mubr.bf16.vlgmr.msra.gmra.mxu1 %v4376_v22  ;;  %5871 = vmatpush3.bf16.msra.mxu0 %v7648_v55  ;;  %v7931_v22 = vld [vmem:[%s8758_s1 + $0x148] sm:$0xff]  }
 0x22f   : > { %v7738_v30 = vadd.f32 %v1417_v29, %v7456_v9  ;;  %5891 = vmatpush3.bf16.msra.mxu1 %v7648_v55  ;;  %v5608_v31 = vpop.f32.mrf.mxu0  ;;  %5872 = vmatprep.subr.bf16.mxu0 %v6784_v1 }
 0x230   : > { %v5628_v32 = vpop.f32.mrf.mxu1  ;;  %5892 = vmatprep.subr.bf16.mxu1 %v6784_v1  ;;  %5886 = vmatprep.mubr.msk.bf16.mxu0 %vm6785_vm0, %v6784_v1 }
 0x231   : > { %v1364_v50 = vpop.f32.mrf.mxu0  ;;  %5906 = vmatprep.mubr.msk.bf16.mxu1 %vm6785_vm0, %v6784_v1  ;;  %v7940_v32 = vld [vmem:[%s8758_s1 + $0x140] sm:$0xff]  }
 0x232   : > { %v1420_v34 = vpop.f32.mrf.mxu1  ;;  %5873 = vmatpush3.bf16.msra.mxu0 %v7661_v0 }
 0x233   : > { %5893 = vmatpush3.bf16.msra.mxu1 %v7661_v0  ;;  %v5609_v9 = vpop.f32.mrf.mxu0  ;;  %5874 = vmatprep.subr.bf16.mxu0 %v6784_v1 }
 0x234   : > { %v5629_v35 = vpop.f32.mrf.mxu1  ;;  %5894 = vmatprep.subr.bf16.mxu1 %v6784_v1 }
 0x236   : > { %5875 = vmatpush3.bf16.msra.mxu0 %v7677_v27 }
 0x237   : > { %5895 = vmatpush3.bf16.msra.mxu1 %v7677_v27  ;;  %5876 = vmatprep.subr.bf16.mxu0 %v6784_v1 }
 0x238   : > { %5896 = vmatprep.subr.bf16.mxu1 %v6784_v1 }
 0x23a   : > { %5877 = vmatpush3.bf16.msra.mxu0 %v7686_v16 }
 0x23b   : > { %5897 = vmatpush3.bf16.msra.mxu1 %v7686_v16  ;;  %5878 = vmatprep.subr.bf16.mxu0 %v6784_v1 }
 0x23c   : > { %5898 = vmatprep.subr.bf16.mxu1 %v6784_v1 }
 0x23e   : > { %5879 = vmatpush3.bf16.msra.mxu0 %v7695_v17 }
 0x23f   : > { %5899 = vmatpush3.bf16.msra.mxu1 %v7695_v17  ;;  %5880 = vmatprep.subr.bf16.mxu0 %v6784_v1 }
 0x240   : > { %5900 = vmatprep.subr.bf16.mxu1 %v6784_v1 }
 0x242   : > { %5881 = vmatpush3.bf16.msra.mxu0 %v7704_v18 }
 0x243   : > { %5901 = vmatpush3.bf16.msra.mxu1 %v7704_v18  ;;  %5882 = vmatprep.subr.bf16.mxu0 %v6784_v1 }
 0x244   : > { %5902 = vmatprep.subr.bf16.mxu1 %v6784_v1 }
 0x246   : > { %5883 = vmatpush3.bf16.msra.mxu0 %v7713_v19 }
 0x247   : > { %5903 = vmatpush3.bf16.msra.mxu1 %v7713_v19  ;;  %5884 = vmatprep.subr.bf16.mxu0 %v6784_v1 }
 0x248   : > { %5904 = vmatprep.subr.bf16.mxu1 %v6784_v1 }
 0x24a   : > { %5885 = vmatpush3.bf16.msra.mxu0 %v7722_v20 }
 0x24b   : > { %5905 = vmatpush3.bf16.msra.mxu1 %v7722_v20  ;;  %5910 = vmatprep.subr.bf16.mxu0 %v6784_v1 }
 0x24c   : > { %5930 = vmatprep.subr.bf16.mxu1 %v6784_v1 }
 0x24d   : > { %v1473_v38 = vpop.f32.mrf.mxu0  ;;  %5887 = vmatmul.mubr.bf16.vlgmr.msra.gmra.mxu0 %v4377_v36 }
 0x24e   : > { %v7778_v39 = vadd.f32 %v1473_v38, %v7526_v28  ;;  %v1529_v42 = vpop.f32.mrf.mxu1  ;;  %5907 = vmatmul.mubr.bf16.vlgmr.msra.gmra.mxu1 %v4378_v37  ;;  %5911 = vmatpush3.bf16.msra.mxu0 %v7648_v55 }
 0x24f   : > { %v7782_v43 = vadd.f32 %v1529_v42, %v7566_v40  ;;  %5931 = vmatpush3.bf16.msra.mxu1 %v7648_v55  ;;  %v5648_v48 = vpop.f32.mrf.mxu0  ;;  %5912 = vmatprep.subr.bf16.mxu0 %v6784_v1 }
 0x250   : > { %v5668_v49 = vpop.f32.mrf.mxu1  ;;  %5932 = vmatprep.subr.bf16.mxu1 %v6784_v1  ;;  %5926 = vmatprep.mubr.msk.bf16.mxu0 %vm6785_vm0, %v6784_v1 }
 0x251   : > { %v1476_v28 = vpop.f32.mrf.mxu0  ;;  %5946 = vmatprep.mubr.msk.bf16.mxu1 %vm6785_vm0, %v6784_v1 }
 0x252   : > { %v1532_v52 = vpop.f32.mrf.mxu1  ;;  %5913 = vmatpush3.bf16.msra.mxu0 %v7661_v0 }
 0x253   : > { %5933 = vmatpush3.bf16.msra.mxu1 %v7661_v0  ;;  %v5649_v40 = vpop.f32.mrf.mxu0  ;;  %5914 = vmatprep.subr.bf16.mxu0 %v6784_v1 }
 0x254   : > { %v5669_v53 = vpop.f32.mrf.mxu1  ;;  %5934 = vmatprep.subr.bf16.mxu1 %v6784_v1  ;;  %v6715_v40 = vld [vmem:[%s6933_s24 + $0xa0] sm:$0x1f]  }
 0x255   : > { %v6716_v53 = vld [vmem:[%s6933_s24 + $0xa8] sm:$0x1f]  }
 0x256   : > { %5915 = vmatpush3.bf16.msra.mxu0 %v7677_v27 }
 0x257   : > { %5935 = vmatpush3.bf16.msra.mxu1 %v7677_v27  ;;  %5916 = vmatprep.subr.bf16.mxu0 %v6784_v1 }
 0x258   : > { %5936 = vmatprep.subr.bf16.mxu1 %v6784_v1 }
 0x25a   : > { %5917 = vmatpush3.bf16.msra.mxu0 %v7686_v16 }
 0x25b   : > { %5937 = vmatpush3.bf16.msra.mxu1 %v7686_v16  ;;  %5918 = vmatprep.subr.bf16.mxu0 %v6784_v1 }
 0x25c   : > { %5938 = vmatprep.subr.bf16.mxu1 %v6784_v1 }
 0x25e   : > { %5919 = vmatpush3.bf16.msra.mxu0 %v7695_v17 }
 0x25f   : > { %5939 = vmatpush3.bf16.msra.mxu1 %v7695_v17  ;;  %5920 = vmatprep.subr.bf16.mxu0 %v6784_v1 }
 0x260   : > { %5940 = vmatprep.subr.bf16.mxu1 %v6784_v1 }
 0x262   : > { %5921 = vmatpush3.bf16.msra.mxu0 %v7704_v18 }
 0x263   : > { %5941 = vmatpush3.bf16.msra.mxu1 %v7704_v18  ;;  %5922 = vmatprep.subr.bf16.mxu0 %v6784_v1 }
 0x264   : > { %5942 = vmatprep.subr.bf16.mxu1 %v6784_v1 }
 0x266   : > { %5923 = vmatpush3.bf16.msra.mxu0 %v7713_v19 }
 0x267   : > { %5943 = vmatpush3.bf16.msra.mxu1 %v7713_v19  ;;  %5924 = vmatprep.subr.bf16.mxu0 %v6784_v1 }
 0x268   : > { %5944 = vmatprep.subr.bf16.mxu1 %v6784_v1 }
 0x26a   : > { %5925 = vmatpush3.bf16.msra.mxu0 %v7722_v20 }
 0x26b   : > { %5945 = vmatpush3.bf16.msra.mxu1 %v7722_v20  ;;  %5950 = vmatprep.subr.bf16.mxu0 %v6784_v1 }
 0x26c   : > { %5970 = vmatprep.subr.bf16.mxu1 %v6784_v1 }
 0x26d   : > { %v1637_v41 = vpop.f32.mrf.mxu0  ;;  %5927 = vmatmul.mubr.bf16.vlgmr.msra.gmra.mxu0 %v4379_v56  ;;  %v2541_v56 = vshll.u32 %v6715_v40, 16 }
 0x26e   : > { %v7822_v45 = vadd.f32 %v1637_v41, %v7606_v59  ;;  %v1680_v51 = vpop.f32.mrf.mxu1  ;;  %5947 = vmatmul.mubr.bf16.vlgmr.msra.gmra.mxu1 %v4380_v58  ;;  %5951 = vmatpush3.bf16.msra.mxu0 %v7648_v55  ;;  %v2597_v58 = vshll.u32 %v6716_v53, 16  ;;  %v2539_v41 = vshrl.u32 %v6715_v40, 16  ;;  %v8081_v40 = vld [vmem:[%s8758_s1 + $0x1b8] sm:$0xff]  }
 0x26f   : > { %v7826_v62 = vadd.f32 %v1680_v51, %v7610_v61  ;;  %5971 = vmatpush3.bf16.msra.mxu1 %v7648_v55  ;;  %v5688_v33 = vpop.f32.mrf.mxu0  ;;  %5952 = vmatprep.subr.bf16.mxu0 %v6784_v1  ;;  %v7864_v55 = vld [vmem:[%s8758_s1 + $0x178] sm:$0xff]   ;;  %v2543_v51 = vrot.slane %v2541_v56, 1 }
 0x270   : > { %v5708_v54 = vpop.f32.mrf.mxu1  ;;  %5972 = vmatprep.subr.bf16.mxu1 %v6784_v1  ;;  %5966 = vmatprep.mubr.msk.bf16.mxu0 %vm6785_vm0, %v6784_v1  ;;  %v2595_v33 = vshrl.u32 %v6716_v53, 16 }
 0x271   : > { %v1640_v59 = vpop.f32.mrf.mxu0  ;;  %5986 = vmatprep.mubr.msk.bf16.mxu1 %vm6785_vm0, %v6784_v1  ;;  %v2599_v54 = vrot.slane %v2597_v58, 1  ;;  %v8093_v58 = vld [vmem:[%s8758_s1 + $0x1b0] sm:$0xff]  }
 0x272   : > { %v1683_v46 = vpop.f32.mrf.mxu1  ;;  %5953 = vmatpush3.bf16.msra.mxu0 %v7661_v0  ;;  %v2544_v59 = vor.u32 %v2543_v51, %v2539_v41 }
 0x273   : > { %5973 = vmatpush3.bf16.msra.mxu1 %v7661_v0  ;;  %v5689_v61 = vpop.f32.mrf.mxu0  ;;  %5954 = vmatprep.subr.bf16.mxu0 %v6784_v1  ;;  %v2600_v46 = vor.u32 %v2599_v54, %v2595_v33 }
 0x274   : > { %v5709_v63 = vpop.f32.mrf.mxu1  ;;  %5974 = vmatprep.subr.bf16.mxu1 %v6784_v1 }
 0x276   : > { %5955 = vmatpush3.bf16.msra.mxu0 %v7677_v27 }
 0x277   : > { %5975 = vmatpush3.bf16.msra.mxu1 %v7677_v27  ;;  %5956 = vmatprep.subr.bf16.mxu0 %v6784_v1 }
 0x278   : > { %5976 = vmatprep.subr.bf16.mxu1 %v6784_v1 }
 0x27a   : > { %5957 = vmatpush3.bf16.msra.mxu0 %v7686_v16 }
 0x27b   : > { %5977 = vmatpush3.bf16.msra.mxu1 %v7686_v16  ;;  %5958 = vmatprep.subr.bf16.mxu0 %v6784_v1  ;;  %v7902_v16 = vld [vmem:[%s8758_s1 + $0x160] sm:$0xff]  }
 0x27c   : > { %5978 = vmatprep.subr.bf16.mxu1 %v6784_v1 }
 0x27e   : > { %5959 = vmatpush3.bf16.msra.mxu0 %v7695_v17 }
 0x27f   : > { %5979 = vmatpush3.bf16.msra.mxu1 %v7695_v17  ;;  %5960 = vmatprep.subr.bf16.mxu0 %v6784_v1  ;;  %v7911_v17 = vld [vmem:[%s8758_s1 + $0x158] sm:$0xff]  }
 0x280   : > { %5980 = vmatprep.subr.bf16.mxu1 %v6784_v1 }
 0x282   : > { %5961 = vmatpush3.bf16.msra.mxu0 %v7704_v18 }
 0x283   : > { %5981 = vmatpush3.bf16.msra.mxu1 %v7704_v18  ;;  %5962 = vmatprep.subr.bf16.mxu0 %v6784_v1  ;;  %v6713_v18 = vld [vmem:[%s6933_s24 + $0x90] sm:$0x1f]  }
 0x284   : > { %5982 = vmatprep.subr.bf16.mxu1 %v6784_v1  ;;  %v2381_v21 = vshll.u32 %v6713_v18, 16  ;;  %v2379_v29 = vshrl.u32 %v6713_v18, 16 }
 0x286   : > { %5963 = vmatpush3.bf16.msra.mxu0 %v7713_v19  ;;  %v2383_v31 = vrot.slane %v2381_v21, 1 }
 0x287   : > { %5983 = vmatpush3.bf16.msra.mxu1 %v7713_v19  ;;  %5964 = vmatprep.subr.bf16.mxu0 %v6784_v1  ;;  %v7921_v19 = vld [vmem:[%s8758_s1 + $0x150] sm:$0xff]  }
 0x288   : > { %5984 = vmatprep.subr.bf16.mxu1 %v6784_v1  ;;  %v2384_v9 = vor.u32 %v2383_v31, %v2379_v29 }
 0x28a   : > { %5965 = vmatpush3.bf16.msra.mxu0 %v7722_v20 }
 0x28b   : > { %5985 = vmatpush3.bf16.msra.mxu1 %v7722_v20  ;;  %5990 = vmatprep.subr.bf16.mxu0 %v6784_v1  ;;  %v6714_v20 = vld [vmem:[%s6933_s24 + $0x98] sm:$0x1f]  }
 0x28c   : > { %6010 = vmatprep.subr.bf16.mxu1 %v6784_v1  ;;  %v2485_v25 = vshll.u32 %v6714_v20, 16  ;;  %v2483_v50 = vshrl.u32 %v6714_v20, 16 }
 0x28d   : > { %v1723_v60 = vpop.f32.mrf.mxu0  ;;  %5967 = vmatmul.mubr.bf16.vlgmr.msra.gmra.mxu0 %v4381_v2 }
 0x28e   : > { %v7871_v7 = vadd.f32 %v1723_v60, %v7655_v6  ;;  %v1766_v0 = vpop.f32.mrf.mxu1  ;;  %5987 = vmatmul.mubr.bf16.vlgmr.msra.gmra.mxu1 %v4382_v4  ;;  %5991 = vmatpush3.bf16.msra.mxu0 %v7864_v55  ;;  %v2487_v34 = vrot.slane %v2485_v25, 1 }
 0x28f   : > { %v7880_v12 = vadd.f32 %v1766_v0, %v7664_v10  ;;  %6011 = vmatpush3.bf16.msra.mxu1 %v7864_v55  ;;  %v5728_v8 = vpop.f32.mrf.mxu0  ;;  %5992 = vmatprep.subr.bf16.mxu0 %v6784_v1  ;;  %v7893_v10 = vld [vmem:[%s8758_s1 + $0x168] sm:$0xff]  }
 0x290   : > { %v5748_v13 = vpop.f32.mrf.mxu1  ;;  %6012 = vmatprep.subr.bf16.mxu1 %v6784_v1  ;;  %6006 = vmatprep.mubr.msk.bf16.mxu0 %vm6785_vm0, %v6784_v1  ;;  %v2488_v35 = vor.u32 %v2487_v34, %v2483_v50 }
 0x291   : > { %v1726_v6 = vpop.f32.mrf.mxu0  ;;  %6026 = vmatprep.mubr.msk.bf16.mxu1 %vm6785_vm0, %v6784_v1 }
 0x292   : > { %v1769_v27 = vpop.f32.mrf.mxu1  ;;  %5993 = vmatpush3.bf16.msra.mxu0 %v7877_v11  ;;  %v6717_v6 = vld [vmem:[%s6933_s24 + $0xb0] sm:$0x1f]  }
 0x293   : > { %6013 = vmatpush3.bf16.msra.mxu1 %v7877_v11  ;;  %v5729_v14 = vpop.f32.mrf.mxu0  ;;  %5994 = vmatprep.subr.bf16.mxu0 %v6784_v1  ;;  %v6718_v27 = vld [vmem:[%s6933_s24 + $0xb8] sm:$0x1f]   ;;  %v2651_v18 = vshrl.u32 %v6717_v6, 16 }
 0x294   : > { %v5749_v15 = vpop.f32.mrf.mxu1  ;;  %6014 = vmatprep.subr.bf16.mxu1 %v6784_v1  ;;  %v2653_v14 = vshll.u32 %v6717_v6, 16  ;;  %v2707_v21 = vshrl.u32 %v6718_v27, 16  ;;  %v6747_v6 = vld [vmem:[%s6933_s24 + $0x10] sm:$0xf] }
 0x295   : > { %v2709_v15 = vshll.u32 %v6718_v27, 16 }
 0x296   : > { %5995 = vmatpush3.bf16.msra.mxu0 %v7893_v10  ;;  %v2655_v20 = vrot.slane %v2653_v14, 1 }
 0x297   : > { %6015 = vmatpush3.bf16.msra.mxu1 %v7893_v10  ;;  %5996 = vmatprep.subr.bf16.mxu0 %v6784_v1  ;;  %v2711_v25 = vrot.slane %v2709_v15, 1 }
 0x298   : > { %6016 = vmatprep.subr.bf16.mxu1 %v6784_v1  ;;  %v2656_v29 = vor.u32 %v2655_v20, %v2651_v18 }
 0x299   : > { %v2712_v31 = vor.u32 %v2711_v25, %v2707_v21  ;;  %v6748_v25 = vld [vmem:[%s6933_s24 + $0x18] sm:$0xf] }
 0x29a   : > { %5997 = vmatpush3.bf16.msra.mxu0 %v7902_v16 }
 0x29b   : > { %6017 = vmatpush3.bf16.msra.mxu1 %v7902_v16  ;;  %5998 = vmatprep.subr.bf16.mxu0 %v6784_v1 }
 0x29c   : > { %6018 = vmatprep.subr.bf16.mxu1 %v6784_v1 }
 0x29e   : > { %5999 = vmatpush3.bf16.msra.mxu0 %v7911_v17 }
 0x29f   : > { %6019 = vmatpush3.bf16.msra.mxu1 %v7911_v17  ;;  %6000 = vmatprep.subr.bf16.mxu0 %v6784_v1 }
 0x2a0   : > { %6020 = vmatprep.subr.bf16.mxu1 %v6784_v1 }
 0x2a2   : > { %6001 = vmatpush3.bf16.msra.mxu0 %v7921_v19 }
 0x2a3   : > { %6021 = vmatpush3.bf16.msra.mxu1 %v7921_v19  ;;  %6002 = vmatprep.subr.bf16.mxu0 %v6784_v1 }
 0x2a4   : > { %6022 = vmatprep.subr.bf16.mxu1 %v6784_v1 }
 0x2a6   : > { %6003 = vmatpush3.bf16.msra.mxu0 %v7931_v22 }
 0x2a7   : > { %6023 = vmatpush3.bf16.msra.mxu1 %v7931_v22  ;;  %6004 = vmatprep.subr.bf16.mxu0 %v6784_v1 }
 0x2a8   : > { %6024 = vmatprep.subr.bf16.mxu1 %v6784_v1 }
 0x2aa   : > { %6005 = vmatpush3.bf16.msra.mxu0 %v7940_v32 }
 0x2ab   : > { %6025 = vmatpush3.bf16.msra.mxu1 %v7940_v32  ;;  %6030 = vmatprep.subr.bf16.mxu0 %v6784_v1 }
 0x2ac   : > { %6050 = vmatprep.subr.bf16.mxu1 %v6784_v1 }
 0x2ad   : > { %v1809_v36 = vpop.f32.mrf.mxu0  ;;  %6007 = vmatmul.mubr.bf16.vlgmr.msra.gmra.mxu0 %v2384_v9 }
 0x2ae   : > { %v7950_v37 = vadd.f32 %v1809_v36, %v7734_v26  ;;  %v1852_v38 = vpop.f32.mrf.mxu1  ;;  %6027 = vmatmul.mubr.bf16.vlgmr.msra.gmra.mxu1 %v2488_v35  ;;  %6031 = vmatpush3.bf16.msra.mxu0 %v7864_v55 }
 0x2af   : > { %v7954_v42 = vadd.f32 %v1852_v38, %v7738_v30  ;;  %6051 = vmatpush3.bf16.msra.mxu1 %v7864_v55  ;;  %v5768_v48 = vpop.f32.mrf.mxu0  ;;  %6032 = vmatprep.subr.bf16.mxu0 %v6784_v1 }
 0x2b0   : > { %v5788_v49 = vpop.f32.mrf.mxu1  ;;  %6052 = vmatprep.subr.bf16.mxu1 %v6784_v1  ;;  %6046 = vmatprep.mubr.msk.bf16.mxu0 %vm6785_vm0, %v6784_v1 }
 0x2b1   : > { %v1812_v26 = vpop.f32.mrf.mxu0  ;;  %6066 = vmatprep.mubr.msk.bf16.mxu1 %vm6785_vm0, %v6784_v1  ;;  %v6720_v49 = vld [vmem:[%s6933_s24 + $0xc8] sm:$0x1f]  }
 0x2b2   : > { %v1855_v28 = vpop.f32.mrf.mxu1  ;;  %6033 = vmatpush3.bf16.msra.mxu0 %v7877_v11  ;;  %v2821_v26 = vshll.u32 %v6720_v49, 16 }
 0x2b3   : > { %6053 = vmatpush3.bf16.msra.mxu1 %v7877_v11  ;;  %v5769_v30 = vpop.f32.mrf.mxu0  ;;  %6034 = vmatprep.subr.bf16.mxu0 %v6784_v1 }
 0x2b4   : > { %v5789_v52 = vpop.f32.mrf.mxu1  ;;  %6054 = vmatprep.subr.bf16.mxu1 %v6784_v1  ;;  %v2819_v30 = vshrl.u32 %v6720_v49, 16 }
 0x2b6   : > { %6035 = vmatpush3.bf16.msra.mxu0 %v7893_v10 }
 0x2b7   : > { %6055 = vmatpush3.bf16.msra.mxu1 %v7893_v10  ;;  %6036 = vmatprep.subr.bf16.mxu0 %v6784_v1 }
 0x2b8   : > { %6056 = vmatprep.subr.bf16.mxu1 %v6784_v1 }
 0x2ba   : > { %6037 = vmatpush3.bf16.msra.mxu0 %v7902_v16 }
 0x2bb   : > { %6057 = vmatpush3.bf16.msra.mxu1 %v7902_v16  ;;  %6038 = vmatprep.subr.bf16.mxu0 %v6784_v1 }
 0x2bc   : > { %6058 = vmatprep.subr.bf16.mxu1 %v6784_v1 }
 0x2be   : > { %6039 = vmatpush3.bf16.msra.mxu0 %v7911_v17 }
 0x2bf   : > { %6059 = vmatpush3.bf16.msra.mxu1 %v7911_v17  ;;  %6040 = vmatprep.subr.bf16.mxu0 %v6784_v1 }
 0x2c0   : > { %6060 = vmatprep.subr.bf16.mxu1 %v6784_v1 }
 0x2c2   : > { %6041 = vmatpush3.bf16.msra.mxu0 %v7921_v19 }
 0x2c3   : > { %6061 = vmatpush3.bf16.msra.mxu1 %v7921_v19  ;;  %6042 = vmatprep.subr.bf16.mxu0 %v6784_v1 }
 0x2c4   : > { %6062 = vmatprep.subr.bf16.mxu1 %v6784_v1 }
 0x2c6   : > { %6043 = vmatpush3.bf16.msra.mxu0 %v7931_v22 }
 0x2c7   : > { %6063 = vmatpush3.bf16.msra.mxu1 %v7931_v22  ;;  %6044 = vmatprep.subr.bf16.mxu0 %v6784_v1 }
 0x2c8   : > { %6064 = vmatprep.subr.bf16.mxu1 %v6784_v1 }
 0x2ca   : > { %6045 = vmatpush3.bf16.msra.mxu0 %v7940_v32 }
 0x2cb   : > { %6065 = vmatpush3.bf16.msra.mxu1 %v7940_v32  ;;  %6070 = vmatprep.subr.bf16.mxu0 %v6784_v1 }
 0x2cc   : > { %6090 = vmatprep.subr.bf16.mxu1 %v6784_v1 }
 0x2cd   : > { %v1895_v61 = vpop.f32.mrf.mxu0  ;;  %6047 = vmatmul.mubr.bf16.vlgmr.msra.gmra.mxu0 %v2544_v59 }
 0x2ce   : > { %v7994_v63 = vadd.f32 %v1895_v61, %v7778_v39  ;;  %v1938_v2 = vpop.f32.mrf.mxu1  ;;  %6067 = vmatmul.mubr.bf16.vlgmr.msra.gmra.mxu1 %v2600_v46  ;;  %6071 = vmatpush3.bf16.msra.mxu0 %v7864_v55  ;;  %v8118_v46 = vld [vmem:[%s8758_s1 + $0x1a0] sm:$0xff]   ;;  %v8127_v61 = vld [vmem:[%s8758_s1 + $0x198] sm:$0xff]  }
 0x2cf   : > { %v7998_v4 = vadd.f32 %v1938_v2, %v7782_v43  ;;  %6091 = vmatpush3.bf16.msra.mxu1 %v7864_v55  ;;  %v5808_v60 = vpop.f32.mrf.mxu0  ;;  %6072 = vmatprep.subr.bf16.mxu0 %v6784_v1  ;;  %v8136_v2 = vld [vmem:[%s8758_s1 + $0x190] sm:$0xff]  }
 0x2d0   : > { %v5828_v0 = vpop.f32.mrf.mxu1  ;;  %6092 = vmatprep.subr.bf16.mxu1 %v6784_v1  ;;  %6086 = vmatprep.mubr.msk.bf16.mxu0 %vm6785_vm0, %v6784_v1  ;;  %v8145_v60 = vld [vmem:[%s8758_s1 + $0x188] sm:$0xff]  }
 0x2d1   : > { %v1898_v39 = vpop.f32.mrf.mxu0  ;;  %6106 = vmatprep.mubr.msk.bf16.mxu1 %vm6785_vm0, %v6784_v1  ;;  %v8154_v0 = vld [vmem:[%s8758_s1 + $0x180] sm:$0xff]  }
 0x2d2   : > { %v1941_v8 = vpop.f32.mrf.mxu1  ;;  %6073 = vmatpush3.bf16.msra.mxu0 %v7877_v11 }
 0x2d3   : > { %6093 = vmatpush3.bf16.msra.mxu1 %v7877_v11  ;;  %v5809_v43 = vpop.f32.mrf.mxu0  ;;  %6074 = vmatprep.subr.bf16.mxu0 %v6784_v1  ;;  %v6746_v8 = vld [vmem:[%s6933_s24 + $0x8] sm:$0xf] }
 0x2d4   : > { %v5829_v13 = vpop.f32.mrf.mxu1  ;;  %6094 = vmatprep.subr.bf16.mxu1 %v6784_v1 }
 0x2d6   : > { %6075 = vmatpush3.bf16.msra.mxu0 %v7893_v10 }
 0x2d7   : > { %6095 = vmatpush3.bf16.msra.mxu1 %v7893_v10  ;;  %6076 = vmatprep.subr.bf16.mxu0 %v6784_v1 }
 0x2d8   : > { %6096 = vmatprep.subr.bf16.mxu1 %v6784_v1 }
 0x2da   : > { %6077 = vmatpush3.bf16.msra.mxu0 %v7902_v16 }
 0x2db   : > { %6097 = vmatpush3.bf16.msra.mxu1 %v7902_v16  ;;  %6078 = vmatprep.subr.bf16.mxu0 %v6784_v1 }
 0x2dc   : > { %6098 = vmatprep.subr.bf16.mxu1 %v6784_v1 }
 0x2de   : > { %6079 = vmatpush3.bf16.msra.mxu0 %v7911_v17 }
 0x2df   : > { %6099 = vmatpush3.bf16.msra.mxu1 %v7911_v17  ;;  %6080 = vmatprep.subr.bf16.mxu0 %v6784_v1 }
 0x2e0   : > { %6100 = vmatprep.subr.bf16.mxu1 %v6784_v1 }
 0x2e2   : > { %6081 = vmatpush3.bf16.msra.mxu0 %v7921_v19 }
 0x2e3   : > { %6101 = vmatpush3.bf16.msra.mxu1 %v7921_v19  ;;  %6082 = vmatprep.subr.bf16.mxu0 %v6784_v1 }
 0x2e4   : > { %6102 = vmatprep.subr.bf16.mxu1 %v6784_v1 }
 0x2e6   : > { %6083 = vmatpush3.bf16.msra.mxu0 %v7931_v22 }
 0x2e7   : > { %6103 = vmatpush3.bf16.msra.mxu1 %v7931_v22  ;;  %6084 = vmatprep.subr.bf16.mxu0 %v6784_v1 }
 0x2e8   : > { %6104 = vmatprep.subr.bf16.mxu1 %v6784_v1 }
 0x2ea   : > { %6085 = vmatpush3.bf16.msra.mxu0 %v7940_v32 }
 0x2eb   : > { %6105 = vmatpush3.bf16.msra.mxu1 %v7940_v32  ;;  %6110 = vmatprep.subr.bf16.mxu0 %v6784_v1 }
 0x2ec   : > { %6130 = vmatprep.subr.bf16.mxu1 %v6784_v1 }
 0x2ed   : > { %v2046_v50 = vpop.f32.mrf.mxu0  ;;  %6087 = vmatmul.mubr.bf16.vlgmr.msra.gmra.mxu0 %v2656_v29 }
 0x2ee   : > { %v8038_v34 = vadd.f32 %v2046_v50, %v7822_v45  ;;  %v2089_v9 = vpop.f32.mrf.mxu1  ;;  %6107 = vmatmul.mubr.bf16.vlgmr.msra.gmra.mxu1 %v2712_v31  ;;  %6111 = vmatpush3.bf16.msra.mxu0 %v7864_v55  ;;  %v6749_v50 = vld [vmem:[%s6933_s24 + $0x20] sm:$0xf] }
 0x2ef   : > { %v8042_v35 = vadd.f32 %v2089_v9, %v7826_v62  ;;  %6131 = vmatpush3.bf16.msra.mxu1 %v7864_v55  ;;  %v5848_v36 = vpop.f32.mrf.mxu0  ;;  %6112 = vmatprep.subr.bf16.mxu0 %v6784_v1 }
 0x2f0   : > { %v5868_v38 = vpop.f32.mrf.mxu1  ;;  %6132 = vmatprep.subr.bf16.mxu1 %v6784_v1  ;;  %6126 = vmatprep.mubr.msk.bf16.mxu0 %vm6785_vm0, %v6784_v1 }
 0x2f1   : > { %v2049_v45 = vpop.f32.mrf.mxu0  ;;  %6146 = vmatprep.mubr.msk.bf16.mxu1 %vm6785_vm0, %v6784_v1 }
 0x2f2   : > { %v2092_v48 = vpop.f32.mrf.mxu1  ;;  %6113 = vmatpush3.bf16.msra.mxu0 %v7877_v11 }
 0x2f3   : > { %6133 = vmatpush3.bf16.msra.mxu1 %v7877_v11  ;;  %v5849_v62 = vpop.f32.mrf.mxu0  ;;  %6114 = vmatprep.subr.bf16.mxu0 %v6784_v1  ;;  %v6719_v11 = vld [vmem:[%s6933_s24 + $0xc0] sm:$0x1f]  }
 0x2f4   : > { %v5869_v55 = vpop.f32.mrf.mxu1  ;;  %6134 = vmatprep.subr.bf16.mxu1 %v6784_v1 }
 0x2f5   : > { %v6750_v55 = vld [vmem:[%s6933_s24 + $0x28] sm:$0xf] }
 0x2f6   : > { %6115 = vmatpush3.bf16.msra.mxu0 %v7893_v10 }
 0x2f7   : > { %6135 = vmatpush3.bf16.msra.mxu1 %v7893_v10  ;;  %6116 = vmatprep.subr.bf16.mxu0 %v6784_v1  ;;  %v2765_v10 = vshll.u32 %v6719_v11, 16 }
 0x2f8   : > { %6136 = vmatprep.subr.bf16.mxu1 %v6784_v1 }
 0x2f9   : > { %v2767_v28 = vrot.slane %v2765_v10, 1  ;;  %v6751_v10 = vld [vmem:[%s6933_s24 + $0x30] sm:$0xf] }
 0x2fa   : > { %6117 = vmatpush3.bf16.msra.mxu0 %v7902_v16 }
 0x2fb   : > { %6137 = vmatpush3.bf16.msra.mxu1 %v7902_v16  ;;  %6118 = vmatprep.subr.bf16.mxu0 %v6784_v1  ;;  %v2763_v16 = vshrl.u32 %v6719_v11, 16 }
 0x2fc   : > { %6138 = vmatprep.subr.bf16.mxu1 %v6784_v1 }
 0x2fd   : > { %v2768_v52 = vor.u32 %v2767_v28, %v2763_v16 }
 0x2fe   : > { %6119 = vmatpush3.bf16.msra.mxu0 %v7911_v17 }
 0x2ff   : > { %6139 = vmatpush3.bf16.msra.mxu1 %v7911_v17  ;;  %6120 = vmatprep.subr.bf16.mxu0 %v6784_v1  ;;  %v2823_v17 = vrot.slane %v2821_v26, 1 }
 0x300   : > { %6140 = vmatprep.subr.bf16.mxu1 %v6784_v1 }
 0x302   : > { %6121 = vmatpush3.bf16.msra.mxu0 %v7921_v19 }
 0x303   : > { %6141 = vmatpush3.bf16.msra.mxu1 %v7921_v19  ;;  %6122 = vmatprep.subr.bf16.mxu0 %v6784_v1  ;;  %v2824_v19 = vor.u32 %v2823_v17, %v2819_v30 }
 0x304   : > { %6142 = vmatprep.subr.bf16.mxu1 %v6784_v1 }
 0x306   : > { %6123 = vmatpush3.bf16.msra.mxu0 %v7931_v22 }
 0x307   : > { %6143 = vmatpush3.bf16.msra.mxu1 %v7931_v22  ;;  %6124 = vmatprep.subr.bf16.mxu0 %v6784_v1 }
 0x308   : > { %6144 = vmatprep.subr.bf16.mxu1 %v6784_v1 }
 0x30a   : > { %6125 = vmatpush3.bf16.msra.mxu0 %v7940_v32 }
 0x30b   : > { %6145 = vmatpush3.bf16.msra.mxu1 %v7940_v32  ;;  %6150 = vmatprep.subr.bf16.mxu0 %v6784_v1 }
 0x30c   : > { %6170 = vmatprep.subr.bf16.mxu1 %v6784_v1 }
 0x30d   : > { %v2132_v22 = vpop.f32.mrf.mxu0  ;;  %6127 = vmatmul.mubr.bf16.vlgmr.msra.gmra.mxu0 %v2768_v52  ;;  %v8295_v52 = vld [vmem:[%s8758_s1 + $0x1f8] sm:$0xff]  }
 0x30e   : > { %v8087_v53 = vadd.f32 %v2132_v22, %v7871_v7  ;;  %v2175_v56 = vpop.f32.mrf.mxu1  ;;  %6147 = vmatmul.mubr.bf16.vlgmr.msra.gmra.mxu1 %v2824_v19  ;;  %6151 = vmatpush3.bf16.msra.mxu0 %v8081_v40  ;;  %v4455_v19 = vld [vmem:[%s6933_s24 + $0x40] sm:$0xf]  ;;  %v6752_v22 = vld [vmem:[%s6933_s24 + $0x38] sm:$0xf] }
 0x30f   : > { %v8096_v32 = vadd.f32 %v2175_v56, %v7880_v12  ;;  %6171 = vmatpush3.bf16.msra.mxu1 %v8081_v40  ;;  %v5888_v41 = vpop.f32.mrf.mxu0  ;;  %6152 = vmatprep.subr.bf16.mxu0 %v6784_v1  ;;  %v8109_v12 = vld [vmem:[%s8758_s1 + $0x1a8] sm:$0xff]  }
 0x310   : > { %v5908_v51 = vpop.f32.mrf.mxu1  ;;  %6172 = vmatprep.subr.bf16.mxu1 %v6784_v1  ;;  %6166 = vmatprep.mubr.msk.bf16.mxu0 %vm6785_vm0, %v6784_v1  ;;  %v8309_v41 = vld [vmem:[%s8758_s1 + $0x1f0] sm:$0xff]  }
 0x311   : > { %v2135_v7 = vpop.f32.mrf.mxu0  ;;  %6186 = vmatprep.mubr.msk.bf16.mxu1 %vm6785_vm0, %v6784_v1 }
 0x312   : > { %v2178_v33 = vpop.f32.mrf.mxu1  ;;  %6153 = vmatpush3.bf16.msra.mxu0 %v8093_v58 }
 0x313   : > { %6173 = vmatpush3.bf16.msra.mxu1 %v8093_v58  ;;  %v5889_v54 = vpop.f32.mrf.mxu0  ;;  %6154 = vmatprep.subr.bf16.mxu0 %v6784_v1 }
 0x314   : > { %v5909_v59 = vpop.f32.mrf.mxu1  ;;  %6174 = vmatprep.subr.bf16.mxu1 %v6784_v1 }
 0x316   : > { %6155 = vmatpush3.bf16.msra.mxu0 %v8109_v12 }
 0x317   : > { %6175 = vmatpush3.bf16.msra.mxu1 %v8109_v12  ;;  %6156 = vmatprep.subr.bf16.mxu0 %v6784_v1 }
 0x318   : > { %6176 = vmatprep.subr.bf16.mxu1 %v6784_v1 }
 0x31a   : > { %6157 = vmatpush3.bf16.msra.mxu0 %v8118_v46 }
 0x31b   : > { %6177 = vmatpush3.bf16.msra.mxu1 %v8118_v46  ;;  %6158 = vmatprep.subr.bf16.mxu0 %v6784_v1 }
 0x31c   : > { %6178 = vmatprep.subr.bf16.mxu1 %v6784_v1 }
 0x31e   : > { %6159 = vmatpush3.bf16.msra.mxu0 %v8127_v61 }
 0x31f   : > { %6179 = vmatpush3.bf16.msra.mxu1 %v8127_v61  ;;  %6160 = vmatprep.subr.bf16.mxu0 %v6784_v1 }
 0x320   : > { %6180 = vmatprep.subr.bf16.mxu1 %v6784_v1 }
 0x322   : > { %6161 = vmatpush3.bf16.msra.mxu0 %v8136_v2 }
 0x323   : > { %6181 = vmatpush3.bf16.msra.mxu1 %v8136_v2  ;;  %6162 = vmatprep.subr.bf16.mxu0 %v6784_v1 }
 0x324   : > { %6182 = vmatprep.subr.bf16.mxu1 %v6784_v1 }
 0x326   : > { %6163 = vmatpush3.bf16.msra.mxu0 %v8145_v60 }
 0x327   : > { %6183 = vmatpush3.bf16.msra.mxu1 %v8145_v60  ;;  %6164 = vmatprep.subr.bf16.mxu0 %v6784_v1 }
 0x328   : > { %6184 = vmatprep.subr.bf16.mxu1 %v6784_v1 }
 0x32a   : > { %6165 = vmatpush3.bf16.msra.mxu0 %v8154_v0 }
 0x32b   : > { %6185 = vmatpush3.bf16.msra.mxu1 %v8154_v0  ;;  %6190 = vmatprep.subr.bf16.mxu0 %v6784_v1 }
 0x32c   : > { %6210 = vmatprep.subr.bf16.mxu1 %v6784_v1 }
 0x32d   : > { %v2218_v39 = vpop.f32.mrf.mxu0  ;;  %6167 = vmatmul.mubr.bf16.vlgmr.msra.gmra.mxu0 %v6746_v8  ;;  %v6753_v8 = vld [vmem:[%s6933_s24 + $0x50] sm:$0xf] }
 0x32e   : > { %v8165_v43 = vadd.f32 %v2218_v39, %v7950_v37  ;;  %v2261_v13 = vpop.f32.mrf.mxu1  ;;  %6187 = vmatmul.mubr.bf16.vlgmr.msra.gmra.mxu1 %v6747_v6  ;;  %6191 = vmatpush3.bf16.msra.mxu0 %v8081_v40 }
 0x32f   : > { %v8170_v27 = vadd.f32 %v2261_v13, %v7954_v42  ;;  %6211 = vmatpush3.bf16.msra.mxu1 %v8081_v40  ;;  %v5928_v14 = vpop.f32.mrf.mxu0  ;;  %6192 = vmatprep.subr.bf16.mxu0 %v6784_v1 }
 0x330   : > { %v5948_v15 = vpop.f32.mrf.mxu1  ;;  %6212 = vmatprep.subr.bf16.mxu1 %v6784_v1  ;;  %6206 = vmatprep.mubr.msk.bf16.mxu0 %vm6785_vm0, %v6784_v1  ;;  %v6754_v14 = vld [vmem:[%s6933_s24 + $0x58] sm:$0xf] }
 0x331   : > { %v2221_v37 = vpop.f32.mrf.mxu0  ;;  %6226 = vmatprep.mubr.msk.bf16.mxu1 %vm6785_vm0, %v6784_v1 }
 0x332   : > { %v2264_v18 = vpop.f32.mrf.mxu1  ;;  %6193 = vmatpush3.bf16.msra.mxu0 %v8093_v58 }
 0x333   : > { %6213 = vmatpush3.bf16.msra.mxu1 %v8093_v58  ;;  %v5929_v42 = vpop.f32.mrf.mxu0  ;;  %6194 = vmatprep.subr.bf16.mxu0 %v6784_v1 }
 0x334   : > { %v5949_v20 = vpop.f32.mrf.mxu1  ;;  %6214 = vmatprep.subr.bf16.mxu1 %v6784_v1 }
 0x336   : > { %6195 = vmatpush3.bf16.msra.mxu0 %v8109_v12 }
 0x337   : > { %6215 = vmatpush3.bf16.msra.mxu1 %v8109_v12  ;;  %6196 = vmatprep.subr.bf16.mxu0 %v6784_v1 }
 0x338   : > { %6216 = vmatprep.subr.bf16.mxu1 %v6784_v1 }
 0x33a   : > { %6197 = vmatpush3.bf16.msra.mxu0 %v8118_v46 }
 0x33b   : > { %6217 = vmatpush3.bf16.msra.mxu1 %v8118_v46  ;;  %6198 = vmatprep.subr.bf16.mxu0 %v6784_v1 }
 0x33c   : > { %6218 = vmatprep.subr.bf16.mxu1 %v6784_v1 }
 0x33e   : > { %6199 = vmatpush3.bf16.msra.mxu0 %v8127_v61 }
 0x33f   : > { %6219 = vmatpush3.bf16.msra.mxu1 %v8127_v61  ;;  %6200 = vmatprep.subr.bf16.mxu0 %v6784_v1 }
 0x340   : > { %6220 = vmatprep.subr.bf16.mxu1 %v6784_v1 }
 0x342   : > { %6201 = vmatpush3.bf16.msra.mxu0 %v8136_v2 }
 0x343   : > { %6221 = vmatpush3.bf16.msra.mxu1 %v8136_v2  ;;  %6202 = vmatprep.subr.bf16.mxu0 %v6784_v1 }
 0x344   : > { %6222 = vmatprep.subr.bf16.mxu1 %v6784_v1 }
 0x346   : > { %6203 = vmatpush3.bf16.msra.mxu0 %v8145_v60 }
 0x347   : > { %6223 = vmatpush3.bf16.msra.mxu1 %v8145_v60  ;;  %6204 = vmatprep.subr.bf16.mxu0 %v6784_v1 }
 0x348   : > { %6224 = vmatprep.subr.bf16.mxu1 %v6784_v1 }
 0x34a   : > { %6205 = vmatpush3.bf16.msra.mxu0 %v8154_v0 }
 0x34b   : > { %6225 = vmatpush3.bf16.msra.mxu1 %v8154_v0  ;;  %6230 = vmatprep.subr.bf16.mxu0 %v6784_v1 }
 0x34c   : > { %6250 = vmatprep.subr.bf16.mxu1 %v6784_v1 }
 0x34d   : > { %v2304_v21 = vpop.f32.mrf.mxu0  ;;  %6207 = vmatmul.mubr.bf16.vlgmr.msra.gmra.mxu0 %v6748_v25  ;;  %v6755_v25 = vld [vmem:[%s6933_s24 + $0x60] sm:$0xf] }
 0x34e   : > { %v8209_v29 = vadd.f32 %v2304_v21, %v7994_v63  ;;  %v2347_v31 = vpop.f32.mrf.mxu1  ;;  %6227 = vmatmul.mubr.bf16.vlgmr.msra.gmra.mxu1 %v6749_v50  ;;  %6231 = vmatpush3.bf16.msra.mxu0 %v8081_v40 }
 0x34f   : > { %v8214_v9 = vadd.f32 %v2347_v31, %v7998_v4  ;;  %6251 = vmatpush3.bf16.msra.mxu1 %v8081_v40  ;;  %v5968_v36 = vpop.f32.mrf.mxu0  ;;  %6232 = vmatprep.subr.bf16.mxu0 %v6784_v1 }
 0x350   : > { %v5988_v38 = vpop.f32.mrf.mxu1  ;;  %6252 = vmatprep.subr.bf16.mxu1 %v6784_v1  ;;  %6246 = vmatprep.mubr.msk.bf16.mxu0 %vm6785_vm0, %v6784_v1  ;;  %v6756_v36 = vld [vmem:[%s6933_s24 + $0x68] sm:$0xf] }
 0x351   : > { %v2307_v63 = vpop.f32.mrf.mxu0  ;;  %6266 = vmatprep.mubr.msk.bf16.mxu1 %vm6785_vm0, %v6784_v1 }
 0x352   : > { %v2350_v45 = vpop.f32.mrf.mxu1  ;;  %6233 = vmatpush3.bf16.msra.mxu0 %v8093_v58 }
 0x353   : > { %6253 = vmatpush3.bf16.msra.mxu1 %v8093_v58  ;;  %v5969_v4 = vpop.f32.mrf.mxu0  ;;  %6234 = vmatprep.subr.bf16.mxu0 %v6784_v1 }
 0x354   : > { %v5989_v48 = vpop.f32.mrf.mxu1  ;;  %6254 = vmatprep.subr.bf16.mxu1 %v6784_v1 }
 0x356   : > { %6235 = vmatpush3.bf16.msra.mxu0 %v8109_v12 }
 0x357   : > { %6255 = vmatpush3.bf16.msra.mxu1 %v8109_v12  ;;  %6236 = vmatprep.subr.bf16.mxu0 %v6784_v1 }
 0x358   : > { %6256 = vmatprep.subr.bf16.mxu1 %v6784_v1 }
 0x35a   : > { %6237 = vmatpush3.bf16.msra.mxu0 %v8118_v46 }
 0x35b   : > { %6257 = vmatpush3.bf16.msra.mxu1 %v8118_v46  ;;  %6238 = vmatprep.subr.bf16.mxu0 %v6784_v1 }
 0x35c   : > { %6258 = vmatprep.subr.bf16.mxu1 %v6784_v1 }
 0x35e   : > { %6239 = vmatpush3.bf16.msra.mxu0 %v8127_v61 }
 0x35f   : > { %6259 = vmatpush3.bf16.msra.mxu1 %v8127_v61  ;;  %6240 = vmatprep.subr.bf16.mxu0 %v6784_v1 }
 0x360   : > { %6260 = vmatprep.subr.bf16.mxu1 %v6784_v1 }
 0x362   : > { %6241 = vmatpush3.bf16.msra.mxu0 %v8136_v2 }
 0x363   : > { %6261 = vmatpush3.bf16.msra.mxu1 %v8136_v2  ;;  %6242 = vmatprep.subr.bf16.mxu0 %v6784_v1 }
 0x364   : > { %6262 = vmatprep.subr.bf16.mxu1 %v6784_v1 }
 0x366   : > { %6243 = vmatpush3.bf16.msra.mxu0 %v8145_v60 }
 0x367   : > { %6263 = vmatpush3.bf16.msra.mxu1 %v8145_v60  ;;  %6244 = vmatprep.subr.bf16.mxu0 %v6784_v1 }
 0x368   : > { %6264 = vmatprep.subr.bf16.mxu1 %v6784_v1 }
 0x36a   : > { %6245 = vmatpush3.bf16.msra.mxu0 %v8154_v0 }
 0x36b   : > { %6265 = vmatpush3.bf16.msra.mxu1 %v8154_v0  ;;  %6270 = vmatprep.subr.bf16.mxu0 %v6784_v1 }
 0x36c   : > { %6290 = vmatprep.subr.bf16.mxu1 %v6784_v1 }
 0x36d   : > { %v2468_v62 = vpop.f32.mrf.mxu0  ;;  %6247 = vmatmul.mubr.bf16.vlgmr.msra.gmra.mxu0 %v6750_v55  ;;  %v6757_v55 = vld [vmem:[%s6933_s24 + $0x70] sm:$0xf] }
 0x36e   : > { %v8253_v11 = vadd.f32 %v2468_v62, %v8038_v34  ;;  %v2524_v49 = vpop.f32.mrf.mxu1  ;;  %6267 = vmatmul.mubr.bf16.vlgmr.msra.gmra.mxu1 %v6751_v10  ;;  %6271 = vmatpush3.bf16.msra.mxu0 %v8081_v40 }
 0x36f   : > { %v8258_v26 = vadd.f32 %v2524_v49, %v8042_v35  ;;  %6291 = vmatpush3.bf16.msra.mxu1 %v8081_v40  ;;  %v6008_v16 = vpop.f32.mrf.mxu0  ;;  %6272 = vmatprep.subr.bf16.mxu0 %v6784_v1 }
 0x370   : > { %v6028_v28 = vpop.f32.mrf.mxu1  ;;  %6292 = vmatprep.subr.bf16.mxu1 %v6784_v1  ;;  %6286 = vmatprep.mubr.msk.bf16.mxu0 %vm6785_vm0, %v6784_v1  ;;  %v6758_v16 = vld [vmem:[%s6933_s24 + $0x78] sm:$0xf] }
 0x371   : > { %v2471_v34 = vpop.f32.mrf.mxu0  ;;  %6306 = vmatprep.mubr.msk.bf16.mxu1 %vm6785_vm0, %v6784_v1 }
 0x372   : > { %v2527_v30 = vpop.f32.mrf.mxu1  ;;  %6273 = vmatpush3.bf16.msra.mxu0 %v8093_v58 }
 0x373   : > { %6293 = vmatpush3.bf16.msra.mxu1 %v8093_v58  ;;  %v6009_v35 = vpop.f32.mrf.mxu0  ;;  %6274 = vmatprep.subr.bf16.mxu0 %v6784_v1 }
 0x374   : > { %v6029_v17 = vpop.f32.mrf.mxu1  ;;  %6294 = vmatprep.subr.bf16.mxu1 %v6784_v1 }
 0x376   : > { %6275 = vmatpush3.bf16.msra.mxu0 %v8109_v12 }
 0x377   : > { %6295 = vmatpush3.bf16.msra.mxu1 %v8109_v12  ;;  %6276 = vmatprep.subr.bf16.mxu0 %v6784_v1 }
 0x378   : > { %6296 = vmatprep.subr.bf16.mxu1 %v6784_v1 }
 0x37a   : > { %6277 = vmatpush3.bf16.msra.mxu0 %v8118_v46 }
 0x37b   : > { %6297 = vmatpush3.bf16.msra.mxu1 %v8118_v46  ;;  %6278 = vmatprep.subr.bf16.mxu0 %v6784_v1  ;;  %v8334_v46 = vld [vmem:[%s8758_s1 + $0x1e0] sm:$0xff]  }
 0x37c   : > { %6298 = vmatprep.subr.bf16.mxu1 %v6784_v1 }
 0x37e   : > { %6279 = vmatpush3.bf16.msra.mxu0 %v8127_v61 }
 0x37f   : > { %6299 = vmatpush3.bf16.msra.mxu1 %v8127_v61  ;;  %6280 = vmatprep.subr.bf16.mxu0 %v6784_v1  ;;  %v8343_v61 = vld [vmem:[%s8758_s1 + $0x1d8] sm:$0xff]  }
 0x380   : > { %6300 = vmatprep.subr.bf16.mxu1 %v6784_v1 }
 0x382   : > { %6281 = vmatpush3.bf16.msra.mxu0 %v8136_v2 }
 0x383   : > { %6301 = vmatpush3.bf16.msra.mxu1 %v8136_v2  ;;  %6282 = vmatprep.subr.bf16.mxu0 %v6784_v1  ;;  %v8352_v2 = vld [vmem:[%s8758_s1 + $0x1d0] sm:$0xff]  }
 0x384   : > { %6302 = vmatprep.subr.bf16.mxu1 %v6784_v1 }
 0x386   : > { %6283 = vmatpush3.bf16.msra.mxu0 %v8145_v60 }
 0x387   : > { %6303 = vmatpush3.bf16.msra.mxu1 %v8145_v60  ;;  %6284 = vmatprep.subr.bf16.mxu0 %v6784_v1  ;;  %v8361_v60 = vld [vmem:[%s8758_s1 + $0x1c8] sm:$0xff]  }
 0x388   : > { %6304 = vmatprep.subr.bf16.mxu1 %v6784_v1 }
 0x38a   : > { %6285 = vmatpush3.bf16.msra.mxu0 %v8154_v0 }
 0x38b   : > { %6305 = vmatpush3.bf16.msra.mxu1 %v8154_v0  ;;  %6310 = vmatprep.subr.bf16.mxu0 %v6784_v1  ;;  %v8370_v0 = vld [vmem:[%s8758_s1 + $0x1c0] sm:$0xff]  }
 0x38c   : > { %6330 = vmatprep.subr.bf16.mxu1 %v6784_v1 }
 0x38d   : > { %v2580_v40 = vpop.f32.mrf.mxu0  ;;  %6287 = vmatmul.mubr.bf16.vlgmr.msra.gmra.mxu0 %v6752_v22  ;;  %v6759_v22 = vld [vmem:[%s6933_s24 + $0x80] sm:$0xf] }
 0x38e   : > { %v8303_v56 = vadd.f32 %v2580_v40, %v8087_v53  ;;  %v2636_v58 = vpop.f32.mrf.mxu1  ;;  %6307 = vmatmul.mubr.bf16.vlgmr.msra.gmra.mxu1 %v4455_v19  ;;  %6311 = vmatpush3.bf16.msra.mxu0 %v8295_v52  ;;  %v4480_v19 = vld [vmem:[%s6933_s24 + $0x88] sm:$0xf] }
 0x38f   : > { %v8312_v51 = vadd.f32 %v2636_v58, %v8096_v32  ;;  %6331 = vmatpush3.bf16.msra.mxu1 %v8295_v52  ;;  %v6048_v7 = vpop.f32.mrf.mxu0  ;;  %6312 = vmatprep.subr.bf16.mxu0 %v6784_v1  ;;  %v8325_v32 = vld [vmem:[%s8758_s1 + $0x1e8] sm:$0xff]  }
 0x390   : > { %v6068_v33 = vpop.f32.mrf.mxu1  ;;  %6332 = vmatprep.subr.bf16.mxu1 %v6784_v1  ;;  %6326 = vmatprep.mubr.msk.bf16.mxu0 %vm6785_vm0, %v6784_v1  ;;  %v8525_v7 = vld [vmem:[%s8758_s1 + $0x230] sm:$0xff]  }
 0x391   : > { %v2583_v53 = vpop.f32.mrf.mxu0  ;;  %6346 = vmatprep.mubr.msk.bf16.mxu1 %vm6785_vm0, %v6784_v1 }
 0x392   : > { %v2639_v12 = vpop.f32.mrf.mxu1  ;;  %6313 = vmatpush3.bf16.msra.mxu0 %v8309_v41 }
 0x393   : > { %6333 = vmatpush3.bf16.msra.mxu1 %v8309_v41  ;;  %v6049_v54 = vpop.f32.mrf.mxu0  ;;  %6314 = vmatprep.subr.bf16.mxu0 %v6784_v1 }
 0x394   : > { %v6069_v59 = vpop.f32.mrf.mxu1  ;;  %6334 = vmatprep.subr.bf16.mxu1 %v6784_v1 }
 0x396   : > { %6315 = vmatpush3.bf16.msra.mxu0 %v8325_v32 }
 0x397   : > { %6335 = vmatpush3.bf16.msra.mxu1 %v8325_v32  ;;  %6316 = vmatprep.subr.bf16.mxu0 %v6784_v1 }
 0x398   : > { %6336 = vmatprep.subr.bf16.mxu1 %v6784_v1 }
 0x39a   : > { %6317 = vmatpush3.bf16.msra.mxu0 %v8334_v46 }
 0x39b   : > { %6337 = vmatpush3.bf16.msra.mxu1 %v8334_v46  ;;  %6318 = vmatprep.subr.bf16.mxu0 %v6784_v1 }
 0x39c   : > { %6338 = vmatprep.subr.bf16.mxu1 %v6784_v1 }
 0x39e   : > { %6319 = vmatpush3.bf16.msra.mxu0 %v8343_v61 }
 0x39f   : > { %6339 = vmatpush3.bf16.msra.mxu1 %v8343_v61  ;;  %6320 = vmatprep.subr.bf16.mxu0 %v6784_v1 }
 0x3a0   : > { %6340 = vmatprep.subr.bf16.mxu1 %v6784_v1 }
 0x3a2   : > { %6321 = vmatpush3.bf16.msra.mxu0 %v8352_v2 }
 0x3a3   : > { %6341 = vmatpush3.bf16.msra.mxu1 %v8352_v2  ;;  %6322 = vmatprep.subr.bf16.mxu0 %v6784_v1 }
 0x3a4   : > { %6342 = vmatprep.subr.bf16.mxu1 %v6784_v1 }
 0x3a6   : > { %6323 = vmatpush3.bf16.msra.mxu0 %v8361_v60 }
 0x3a7   : > { %6343 = vmatpush3.bf16.msra.mxu1 %v8361_v60  ;;  %6324 = vmatprep.subr.bf16.mxu0 %v6784_v1 }
 0x3a8   : > { %6344 = vmatprep.subr.bf16.mxu1 %v6784_v1 }
 0x3aa   : > { %6325 = vmatpush3.bf16.msra.mxu0 %v8370_v0 }
 0x3ab   : > { %6345 = vmatpush3.bf16.msra.mxu1 %v8370_v0  ;;  %6350 = vmatprep.subr.bf16.mxu0 %v6784_v1 }
 0x3ac   : > { %6370 = vmatprep.subr.bf16.mxu1 %v6784_v1 }
 0x3ad   : > { %v2692_v39 = vpop.f32.mrf.mxu0  ;;  %6327 = vmatmul.mubr.bf16.vlgmr.msra.gmra.mxu0 %v6753_v8 }
 0x3ae   : > { %v8381_v13 = vadd.f32 %v2692_v39, %v8165_v43  ;;  %v2748_v6 = vpop.f32.mrf.mxu1  ;;  %6347 = vmatmul.mubr.bf16.vlgmr.msra.gmra.mxu1 %v6754_v14  ;;  %6351 = vmatpush3.bf16.msra.mxu0 %v8295_v52 }
 0x3af   : > { %v8386_v15 = vadd.f32 %v2748_v6, %v8170_v27  ;;  %6371 = vmatpush3.bf16.msra.mxu1 %v8295_v52  ;;  %v6088_v37 = vpop.f32.mrf.mxu0  ;;  %6352 = vmatprep.subr.bf16.mxu0 %v6784_v1 }
 0x3b0   : > { %v6108_v18 = vpop.f32.mrf.mxu1  ;;  %6372 = vmatprep.subr.bf16.mxu1 %v6784_v1  ;;  %6366 = vmatprep.mubr.msk.bf16.mxu0 %vm6785_vm0, %v6784_v1 }
 0x3b1   : > { %v2695_v43 = vpop.f32.mrf.mxu0  ;;  %6386 = vmatprep.mubr.msk.bf16.mxu1 %vm6785_vm0, %v6784_v1 }
 0x3b2   : > { %v2751_v42 = vpop.f32.mrf.mxu1  ;;  %6353 = vmatpush3.bf16.msra.mxu0 %v8309_v41 }
 0x3b3   : > { %6373 = vmatpush3.bf16.msra.mxu1 %v8309_v41  ;;  %v6089_v27 = vpop.f32.mrf.mxu0  ;;  %6354 = vmatprep.subr.bf16.mxu0 %v6784_v1 }
 0x3b4   : > { %v6109_v20 = vpop.f32.mrf.mxu1  ;;  %6374 = vmatprep.subr.bf16.mxu1 %v6784_v1 }
 0x3b6   : > { %6355 = vmatpush3.bf16.msra.mxu0 %v8325_v32 }
 0x3b7   : > { %6375 = vmatpush3.bf16.msra.mxu1 %v8325_v32  ;;  %6356 = vmatprep.subr.bf16.mxu0 %v6784_v1 }
 0x3b8   : > { %6376 = vmatprep.subr.bf16.mxu1 %v6784_v1 }
 0x3ba   : > { %6357 = vmatpush3.bf16.msra.mxu0 %v8334_v46 }
 0x3bb   : > { %6377 = vmatpush3.bf16.msra.mxu1 %v8334_v46  ;;  %6358 = vmatprep.subr.bf16.mxu0 %v6784_v1 }
 0x3bc   : > { %6378 = vmatprep.subr.bf16.mxu1 %v6784_v1 }
 0x3be   : > { %6359 = vmatpush3.bf16.msra.mxu0 %v8343_v61 }
 0x3bf   : > { %6379 = vmatpush3.bf16.msra.mxu1 %v8343_v61  ;;  %6360 = vmatprep.subr.bf16.mxu0 %v6784_v1 }
 0x3c0   : > { %6380 = vmatprep.subr.bf16.mxu1 %v6784_v1 }
 0x3c2   : > { %6361 = vmatpush3.bf16.msra.mxu0 %v8352_v2 }
 0x3c3   : > { %6381 = vmatpush3.bf16.msra.mxu1 %v8352_v2  ;;  %6362 = vmatprep.subr.bf16.mxu0 %v6784_v1 }
 0x3c4   : > { %6382 = vmatprep.subr.bf16.mxu1 %v6784_v1 }
 0x3c6   : > { %6363 = vmatpush3.bf16.msra.mxu0 %v8361_v60 }
 0x3c7   : > { %6383 = vmatpush3.bf16.msra.mxu1 %v8361_v60  ;;  %6364 = vmatprep.subr.bf16.mxu0 %v6784_v1 }
 0x3c8   : > { %6384 = vmatprep.subr.bf16.mxu1 %v6784_v1 }
 0x3ca   : > { %6365 = vmatpush3.bf16.msra.mxu0 %v8370_v0 }
 0x3cb   : > { %6385 = vmatpush3.bf16.msra.mxu1 %v8370_v0  ;;  %6390 = vmatprep.subr.bf16.mxu0 %v6784_v1 }
 0x3cc   : > { %6410 = vmatprep.subr.bf16.mxu1 %v6784_v1 }
 0x3cd   : > { %v2804_v21 = vpop.f32.mrf.mxu0  ;;  %6367 = vmatmul.mubr.bf16.vlgmr.msra.gmra.mxu0 %v6755_v25 }
 0x3ce   : > { %v8425_v31 = vadd.f32 %v2804_v21, %v8209_v29  ;;  %v2860_v50 = vpop.f32.mrf.mxu1  ;;  %6387 = vmatmul.mubr.bf16.vlgmr.msra.gmra.mxu1 %v6756_v36  ;;  %6391 = vmatpush3.bf16.msra.mxu0 %v8295_v52 }
 0x3cf   : > { %v8430_v38 = vadd.f32 %v2860_v50, %v8214_v9  ;;  %6411 = vmatpush3.bf16.msra.mxu1 %v8295_v52  ;;  %v6128_v63 = vpop.f32.mrf.mxu0  ;;  %6392 = vmatprep.subr.bf16.mxu0 %v6784_v1 }
 0x3d0   : > { %v6148_v45 = vpop.f32.mrf.mxu1  ;;  %6412 = vmatprep.subr.bf16.mxu1 %v6784_v1  ;;  %6406 = vmatprep.mubr.msk.bf16.mxu0 %vm6785_vm0, %v6784_v1 }
 0x3d1   : > { %v2807_v29 = vpop.f32.mrf.mxu0  ;;  %6426 = vmatprep.mubr.msk.bf16.mxu1 %vm6785_vm0, %v6784_v1 }
 0x3d2   : > { %v2863_v4 = vpop.f32.mrf.mxu1  ;;  %6393 = vmatpush3.bf16.msra.mxu0 %v8309_v41 }
 0x3d3   : > { %6413 = vmatpush3.bf16.msra.mxu1 %v8309_v41  ;;  %v6129_v9 = vpop.f32.mrf.mxu0  ;;  %6394 = vmatprep.subr.bf16.mxu0 %v6784_v1 }
 0x3d4   : > { %v6149_v48 = vpop.f32.mrf.mxu1  ;;  %6414 = vmatprep.subr.bf16.mxu1 %v6784_v1 }
 0x3d6   : > { %6395 = vmatpush3.bf16.msra.mxu0 %v8325_v32 }
 0x3d7   : > { %6415 = vmatpush3.bf16.msra.mxu1 %v8325_v32  ;;  %6396 = vmatprep.subr.bf16.mxu0 %v6784_v1 }
 0x3d8   : > { %6416 = vmatprep.subr.bf16.mxu1 %v6784_v1 }
 0x3da   : > { %6397 = vmatpush3.bf16.msra.mxu0 %v8334_v46 }
 0x3db   : > { %6417 = vmatpush3.bf16.msra.mxu1 %v8334_v46  ;;  %6398 = vmatprep.subr.bf16.mxu0 %v6784_v1 }
 0x3dc   : > { %6418 = vmatprep.subr.bf16.mxu1 %v6784_v1 }
 0x3de   : > { %6399 = vmatpush3.bf16.msra.mxu0 %v8343_v61 }
 0x3df   : > { %6419 = vmatpush3.bf16.msra.mxu1 %v8343_v61  ;;  %6400 = vmatprep.subr.bf16.mxu0 %v6784_v1 }
 0x3e0   : > { %6420 = vmatprep.subr.bf16.mxu1 %v6784_v1 }
 0x3e2   : > { %6401 = vmatpush3.bf16.msra.mxu0 %v8352_v2 }
 0x3e3   : > { %6421 = vmatpush3.bf16.msra.mxu1 %v8352_v2  ;;  %6402 = vmatprep.subr.bf16.mxu0 %v6784_v1 }
 0x3e4   : > { %6422 = vmatprep.subr.bf16.mxu1 %v6784_v1 }
 0x3e6   : > { %6403 = vmatpush3.bf16.msra.mxu0 %v8361_v60 }
 0x3e7   : > { %6423 = vmatpush3.bf16.msra.mxu1 %v8361_v60  ;;  %6404 = vmatprep.subr.bf16.mxu0 %v6784_v1 }
 0x3e8   : > { %6424 = vmatprep.subr.bf16.mxu1 %v6784_v1 }
 0x3ea   : > { %6405 = vmatpush3.bf16.msra.mxu0 %v8370_v0 }
 0x3eb   : > { %6425 = vmatpush3.bf16.msra.mxu1 %v8370_v0  ;;  %6430 = vmatprep.subr.bf16.mxu0 %v6784_v1 }
 0x3ec   : > { %6450 = vmatprep.subr.bf16.mxu1 %v6784_v1 }
 0x3ed   : > { %v2966_v62 = vpop.f32.mrf.mxu0  ;;  %6407 = vmatmul.mubr.bf16.vlgmr.msra.gmra.mxu0 %v6757_v55 }
 0x3ee   : > { %v8469_v49 = vadd.f32 %v2966_v62, %v8253_v11  ;;  %v3007_v10 = vpop.f32.mrf.mxu1  ;;  %6427 = vmatmul.mubr.bf16.vlgmr.msra.gmra.mxu1 %v6758_v16  ;;  %6431 = vmatpush3.bf16.msra.mxu0 %v8295_v52  ;;  %v6745_v62 = vld [vmem:[%s6933_s24 + $0x40] sm:$0x1f]  }
 0x3ef   : > { %v8474_v28 = vadd.f32 %v3007_v10, %v8258_v26  ;;  %6451 = vmatpush3.bf16.msra.mxu1 %v8295_v52  ;;  %v6168_v34 = vpop.f32.mrf.mxu0  ;;  %6432 = vmatprep.subr.bf16.mxu0 %v6784_v1  ;;  %v8511_v52 = vld [vmem:[%s8758_s1 + $0x238] sm:$0xff]   ;;  %v4019_v55 = vshll.u32 %v6745_v62, 16 }
 0x3f0   : > { %v6188_v30 = vpop.f32.mrf.mxu1  ;;  %6452 = vmatprep.subr.bf16.mxu1 %v6784_v1  ;;  %6446 = vmatprep.mubr.msk.bf16.mxu0 %vm6785_vm0, %v6784_v1 }
 0x3f1   : > { %v2969_v11 = vpop.f32.mrf.mxu0  ;;  %6466 = vmatprep.mubr.msk.bf16.mxu1 %vm6785_vm0, %v6784_v1  ;;  %v4021_v10 = vrot.slane %v4019_v55, 1 }
 0x3f2   : > { %v3010_v35 = vpop.f32.mrf.mxu1  ;;  %6433 = vmatpush3.bf16.msra.mxu0 %v8309_v41 }
 0x3f3   : > { %6453 = vmatpush3.bf16.msra.mxu1 %v8309_v41  ;;  %v6169_v26 = vpop.f32.mrf.mxu0  ;;  %6434 = vmatprep.subr.bf16.mxu0 %v6784_v1 }
 0x3f4   : > { %v6189_v17 = vpop.f32.mrf.mxu1  ;;  %6454 = vmatprep.subr.bf16.mxu1 %v6784_v1 }
 0x3f6   : > { %6435 = vmatpush3.bf16.msra.mxu0 %v8325_v32 }
 0x3f7   : > { %6455 = vmatpush3.bf16.msra.mxu1 %v8325_v32  ;;  %6436 = vmatprep.subr.bf16.mxu0 %v6784_v1 }
 0x3f8   : > { %6456 = vmatprep.subr.bf16.mxu1 %v6784_v1 }
 0x3fa   : > { %6437 = vmatpush3.bf16.msra.mxu0 %v8334_v46 }
 0x3fb   : > { %6457 = vmatpush3.bf16.msra.mxu1 %v8334_v46  ;;  %6438 = vmatprep.subr.bf16.mxu0 %v6784_v1  ;;  %v8550_v46 = vld [vmem:[%s8758_s1 + $0x220] sm:$0xff]  }
 0x3fc   : > { %6458 = vmatprep.subr.bf16.mxu1 %v6784_v1 }
 0x3fe   : > { %6439 = vmatpush3.bf16.msra.mxu0 %v8343_v61 }
 0x3ff   : > { %6459 = vmatpush3.bf16.msra.mxu1 %v8343_v61  ;;  %6440 = vmatprep.subr.bf16.mxu0 %v6784_v1  ;;  %v8559_v61 = vld [vmem:[%s8758_s1 + $0x218] sm:$0xff]  }
 0x400   : > { %6460 = vmatprep.subr.bf16.mxu1 %v6784_v1 }
 0x402   : > { %6441 = vmatpush3.bf16.msra.mxu0 %v8352_v2 }
 0x403   : > { %6461 = vmatpush3.bf16.msra.mxu1 %v8352_v2  ;;  %6442 = vmatprep.subr.bf16.mxu0 %v6784_v1  ;;  %v8568_v2 = vld [vmem:[%s8758_s1 + $0x210] sm:$0xff]  }
 0x404   : > { %6462 = vmatprep.subr.bf16.mxu1 %v6784_v1 }
 0x406   : > { %6443 = vmatpush3.bf16.msra.mxu0 %v8361_v60 }
 0x407   : > { %6463 = vmatpush3.bf16.msra.mxu1 %v8361_v60  ;;  %6444 = vmatprep.subr.bf16.mxu0 %v6784_v1  ;;  %v8577_v60 = vld [vmem:[%s8758_s1 + $0x208] sm:$0xff]  }
 0x408   : > { %6464 = vmatprep.subr.bf16.mxu1 %v6784_v1 }
 0x40a   : > { %6445 = vmatpush3.bf16.msra.mxu0 %v8370_v0 }
 0x40b   : > { %6465 = vmatpush3.bf16.msra.mxu1 %v8370_v0  ;;  %6470 = vmatprep.subr.bf16.mxu0 %v6784_v1  ;;  %v8586_v0 = vld [vmem:[%s8758_s1 + $0x200] sm:$0xff]  }
 0x40c   : > { %6490 = vmatprep.subr.bf16.mxu1 %v6784_v1 }
 0x40d   : > { %v3048_v40 = vpop.f32.mrf.mxu0  ;;  %6447 = vmatmul.mubr.bf16.vlgmr.msra.gmra.mxu0 %v6759_v22 }
 0x40e   : > { %v8519_v58 = vadd.f32 %v3048_v40, %v8303_v56  ;;  %v3089_v41 = vpop.f32.mrf.mxu1  ;;  %6467 = vmatmul.mubr.bf16.vlgmr.msra.gmra.mxu1 %v4480_v19  ;;  %6471 = vmatpush3.bf16.msra.mxu0 %v8511_v52 }
 0x40f   : > { %v8528_v33 = vadd.f32 %v3089_v41, %v8312_v51  ;;  %6491 = vmatpush3.bf16.msra.mxu1 %v8511_v52  ;;  %v6208_v53 = vpop.f32.mrf.mxu0  ;;  %6472 = vmatprep.subr.bf16.mxu0 %v6784_v1  ;;  %v8541_v51 = vld [vmem:[%s8758_s1 + $0x228] sm:$0xff]  }
 0x410   : > { %v6228_v12 = vpop.f32.mrf.mxu1  ;;  %6492 = vmatprep.subr.bf16.mxu1 %v6784_v1  ;;  %6486 = vmatprep.mubr.msk.bf16.mxu0 %vm6785_vm0, %v6784_v1 }
 0x411   : > { %v3051_v56 = vpop.f32.mrf.mxu0  ;;  %6506 = vmatprep.mubr.msk.bf16.mxu1 %vm6785_vm0, %v6784_v1 }
 0x412   : > { %v3092_v32 = vpop.f32.mrf.mxu1  ;;  %6473 = vmatpush3.bf16.msra.mxu0 %v8525_v7 }
 0x413   : > { %6493 = vmatpush3.bf16.msra.mxu1 %v8525_v7  ;;  %v6209_v54 = vpop.f32.mrf.mxu0  ;;  %6474 = vmatprep.subr.bf16.mxu0 %v6784_v1 }
 0x414   : > { %v6229_v59 = vpop.f32.mrf.mxu1  ;;  %6494 = vmatprep.subr.bf16.mxu1 %v6784_v1 }
 0x416   : > { %6475 = vmatpush3.bf16.msra.mxu0 %v8541_v51 }
 0x417   : > { %6495 = vmatpush3.bf16.msra.mxu1 %v8541_v51  ;;  %6476 = vmatprep.subr.bf16.mxu0 %v6784_v1 }
 0x418   : > { %6496 = vmatprep.subr.bf16.mxu1 %v6784_v1 }
 0x41a   : > { %6477 = vmatpush3.bf16.msra.mxu0 %v8550_v46 }
 0x41b   : > { %6497 = vmatpush3.bf16.msra.mxu1 %v8550_v46  ;;  %6478 = vmatprep.subr.bf16.mxu0 %v6784_v1 }
 0x41c   : > { %6498 = vmatprep.subr.bf16.mxu1 %v6784_v1 }
 0x41e   : > { %6479 = vmatpush3.bf16.msra.mxu0 %v8559_v61 }
 0x41f   : > { %6499 = vmatpush3.bf16.msra.mxu1 %v8559_v61  ;;  %6480 = vmatprep.subr.bf16.mxu0 %v6784_v1 }
 0x420   : > { %6500 = vmatprep.subr.bf16.mxu1 %v6784_v1 }
 0x422   : > { %6481 = vmatpush3.bf16.msra.mxu0 %v8568_v2 }
 0x423   : > { %6501 = vmatpush3.bf16.msra.mxu1 %v8568_v2  ;;  %6482 = vmatprep.subr.bf16.mxu0 %v6784_v1 }
 0x424   : > { %6502 = vmatprep.subr.bf16.mxu1 %v6784_v1 }
 0x426   : > { %6483 = vmatpush3.bf16.msra.mxu0 %v8577_v60 }
 0x427   : > { %6503 = vmatpush3.bf16.msra.mxu1 %v8577_v60  ;;  %6484 = vmatprep.subr.bf16.mxu0 %v6784_v1 }
 0x428   : > { %6504 = vmatprep.subr.bf16.mxu1 %v6784_v1 }
 0x42a   : > { %6485 = vmatpush3.bf16.msra.mxu0 %v8586_v0 }
 0x42b   : > { %6505 = vmatpush3.bf16.msra.mxu1 %v8586_v0  ;;  %6510 = vmatprep.subr.bf16.mxu0 %v6784_v1 }
 0x42c   : > { %6530 = vmatprep.subr.bf16.mxu1 %v6784_v1 }
 0x42d   : > { %v3130_v39 = vpop.f32.mrf.mxu0  ;;  %6487 = vmatmul.mubr.bf16.vlgmr.msra.gmra.mxu0 %v7301_v5 }
 0x42e   : > { %v8597_v8 = vadd.f32 %v3130_v39, %v8381_v13  ;;  %v3171_v6 = vpop.f32.mrf.mxu1  ;;  %6507 = vmatmul.mubr.bf16.vlgmr.msra.gmra.mxu1 %v7343_v23  ;;  %6511 = vmatpush3.bf16.msra.mxu0 %v8511_v52 }
 0x42f   : > { %v8602_v14 = vadd.f32 %v3171_v6, %v8386_v15  ;;  %6531 = vmatpush3.bf16.msra.mxu1 %v8511_v52  ;;  %v6248_v37 = vpop.f32.mrf.mxu0  ;;  %6512 = vmatprep.subr.bf16.mxu0 %v6784_v1  ;;  %v4508_v6 = vld [vmem:[%s8759_s2] ss:$0 sm:$0xff] }
 0x430   : > { %v6268_v18 = vpop.f32.mrf.mxu1  ;;  %6532 = vmatprep.subr.bf16.mxu1 %v6784_v1  ;;  %6526 = vmatprep.mubr.msk.bf16.mxu0 %vm6785_vm0, %v6784_v1 }
 0x431   : > { %v3133_v5 = vpop.f32.mrf.mxu0  ;;  %6546 = vmatprep.mubr.msk.bf16.mxu1 %vm6785_vm0, %v6784_v1 }
 0x432   : > { %v3174_v23 = vpop.f32.mrf.mxu1  ;;  %6513 = vmatpush3.bf16.msra.mxu0 %v8525_v7 }
 0x433   : > { %6533 = vmatpush3.bf16.msra.mxu1 %v8525_v7  ;;  %v6249_v13 = vpop.f32.mrf.mxu0  ;;  %6514 = vmatprep.subr.bf16.mxu0 %v6784_v1 }
 0x434   : > { %v6269_v15 = vpop.f32.mrf.mxu1  ;;  %6534 = vmatprep.subr.bf16.mxu1 %v6784_v1 }
 0x436   : > { %6515 = vmatpush3.bf16.msra.mxu0 %v8541_v51 }
 0x437   : > { %6535 = vmatpush3.bf16.msra.mxu1 %v8541_v51  ;;  %6516 = vmatprep.subr.bf16.mxu0 %v6784_v1 }
 0x438   : > { %6536 = vmatprep.subr.bf16.mxu1 %v6784_v1 }
 0x43a   : > { %6517 = vmatpush3.bf16.msra.mxu0 %v8550_v46 }
 0x43b   : > { %6537 = vmatpush3.bf16.msra.mxu1 %v8550_v46  ;;  %6518 = vmatprep.subr.bf16.mxu0 %v6784_v1 }
 0x43c   : > { %6538 = vmatprep.subr.bf16.mxu1 %v6784_v1 }
 0x43e   : > { %6519 = vmatpush3.bf16.msra.mxu0 %v8559_v61 }
 0x43f   : > { %6539 = vmatpush3.bf16.msra.mxu1 %v8559_v61  ;;  %6520 = vmatprep.subr.bf16.mxu0 %v6784_v1 }
 0x440   : > { %6540 = vmatprep.subr.bf16.mxu1 %v6784_v1 }
 0x442   : > { %6521 = vmatpush3.bf16.msra.mxu0 %v8568_v2 }
 0x443   : > { %6541 = vmatpush3.bf16.msra.mxu1 %v8568_v2  ;;  %6522 = vmatprep.subr.bf16.mxu0 %v6784_v1 }
 0x444   : > { %6542 = vmatprep.subr.bf16.mxu1 %v6784_v1 }
 0x446   : > { %6523 = vmatpush3.bf16.msra.mxu0 %v8577_v60 }
 0x447   : > { %6543 = vmatpush3.bf16.msra.mxu1 %v8577_v60  ;;  %6524 = vmatprep.subr.bf16.mxu0 %v6784_v1 }
 0x448   : > { %6544 = vmatprep.subr.bf16.mxu1 %v6784_v1 }
 0x44a   : > { %6525 = vmatpush3.bf16.msra.mxu0 %v8586_v0 }
 0x44b   : > { %6545 = vmatpush3.bf16.msra.mxu1 %v8586_v0  ;;  %6550 = vmatprep.subr.bf16.mxu0 %v6784_v1 }
 0x44c   : > { %6570 = vmatprep.subr.bf16.mxu1 %v6784_v1 }
 0x44d   : > { %v3212_v43 = vpop.f32.mrf.mxu0  ;;  %6527 = vmatmul.mubr.bf16.vlgmr.msra.gmra.mxu0 %v7346_v24 }
 0x44e   : > { %v8641_v42 = vadd.f32 %v3212_v43, %v8425_v31  ;;  %v3255_v27 = vpop.f32.mrf.mxu1  ;;  %6547 = vmatmul.mubr.bf16.vlgmr.msra.gmra.mxu1 %v7389_v44  ;;  %6551 = vmatpush3.bf16.msra.mxu0 %v8511_v52 }
 0x44f   : > { %v8646_v20 = vadd.f32 %v3255_v27, %v8430_v38  ;;  %6571 = vmatpush3.bf16.msra.mxu1 %v8511_v52  ;;  %v6288_v21 = vpop.f32.mrf.mxu0  ;;  %6552 = vmatprep.subr.bf16.mxu0 %v6784_v1 }
 0x450   : > { %v6308_v25 = vpop.f32.mrf.mxu1  ;;  %6572 = vmatprep.subr.bf16.mxu1 %v6784_v1  ;;  %6566 = vmatprep.mubr.msk.bf16.mxu0 %vm6785_vm0, %v6784_v1 }
 0x451   : > { %v3215_v24 = vpop.f32.mrf.mxu0  ;;  %6586 = vmatprep.mubr.msk.bf16.mxu1 %vm6785_vm0, %v6784_v1 }
 0x452   : > { %v3258_v44 = vpop.f32.mrf.mxu1  ;;  %6553 = vmatpush3.bf16.msra.mxu0 %v8525_v7 }
 0x453   : > { %6573 = vmatpush3.bf16.msra.mxu1 %v8525_v7  ;;  %v6289_v31 = vpop.f32.mrf.mxu0  ;;  %6554 = vmatprep.subr.bf16.mxu0 %v6784_v1 }
 0x454   : > { %v6309_v50 = vpop.f32.mrf.mxu1  ;;  %6574 = vmatprep.subr.bf16.mxu1 %v6784_v1 }
 0x456   : > { %6555 = vmatpush3.bf16.msra.mxu0 %v8541_v51 }
 0x457   : > { %6575 = vmatpush3.bf16.msra.mxu1 %v8541_v51  ;;  %6556 = vmatprep.subr.bf16.mxu0 %v6784_v1 }
 0x458   : > { %6576 = vmatprep.subr.bf16.mxu1 %v6784_v1 }
 0x45a   : > { %6557 = vmatpush3.bf16.msra.mxu0 %v8550_v46 }
 0x45b   : > { %6577 = vmatpush3.bf16.msra.mxu1 %v8550_v46  ;;  %6558 = vmatprep.subr.bf16.mxu0 %v6784_v1 }
 0x45c   : > { %6578 = vmatprep.subr.bf16.mxu1 %v6784_v1 }
 0x45e   : > { %6559 = vmatpush3.bf16.msra.mxu0 %v8559_v61 }
 0x45f   : > { %6579 = vmatpush3.bf16.msra.mxu1 %v8559_v61  ;;  %6560 = vmatprep.subr.bf16.mxu0 %v6784_v1 }
 0x460   : > { %6580 = vmatprep.subr.bf16.mxu1 %v6784_v1 }
 0x462   : > { %6561 = vmatpush3.bf16.msra.mxu0 %v8568_v2 }
 0x463   : > { %6581 = vmatpush3.bf16.msra.mxu1 %v8568_v2  ;;  %6562 = vmatprep.subr.bf16.mxu0 %v6784_v1 }
 0x464   : > { %6582 = vmatprep.subr.bf16.mxu1 %v6784_v1 }
 0x466   : > { %6563 = vmatpush3.bf16.msra.mxu0 %v8577_v60 }
 0x467   : > { %6583 = vmatpush3.bf16.msra.mxu1 %v8577_v60  ;;  %6564 = vmatprep.subr.bf16.mxu0 %v6784_v1 }
 0x468   : > { %6584 = vmatprep.subr.bf16.mxu1 %v6784_v1 }
 0x46a   : > { %6565 = vmatpush3.bf16.msra.mxu0 %v8586_v0 }
 0x46b   : > { %6585 = vmatpush3.bf16.msra.mxu1 %v8586_v0  ;;  %6590 = vmatprep.subr.bf16.mxu0 %v6784_v1 }
 0x46c   : > { %6610 = vmatprep.subr.bf16.mxu1 %v6784_v1 }
 0x46d   : > { %v3361_v36 = vpop.f32.mrf.mxu0  ;;  %6567 = vmatmul.mubr.bf16.vlgmr.msra.gmra.mxu0 %v7392_v47 }
 0x46e   : > { %v8685_v38 = vadd.f32 %v3361_v36, %v8469_v49  ;;  %v3402_v63 = vpop.f32.mrf.mxu1  ;;  %6587 = vmatmul.mubr.bf16.vlgmr.msra.gmra.mxu1 %v7435_v3  ;;  %6591 = vmatpush3.bf16.msra.mxu0 %v8511_v52  ;;  %v4017_v49 = vshrl.u32 %v6745_v62, 16 }
 0x46f   : > { %v8690_v45 = vadd.f32 %v3402_v63, %v8474_v28  ;;  %6611 = vmatpush3.bf16.msra.mxu1 %v8511_v52  ;;  %v6328_v29 = vpop.f32.mrf.mxu0  ;;  %6592 = vmatprep.subr.bf16.mxu0 %v6784_v1 }
 0x470   : > { %v6348_v4 = vpop.f32.mrf.mxu1  ;;  %6612 = vmatprep.subr.bf16.mxu1 %v6784_v1  ;;  %6606 = vmatprep.mubr.msk.bf16.mxu0 %vm6785_vm0, %v6784_v1  ;;  %v4022_v16 = vor.u32 %v4021_v10, %v4017_v49 }
 0x471   : > { %v3364_v47 = vpop.f32.mrf.mxu0  ;;  %6626 = vmatprep.mubr.msk.bf16.mxu1 %vm6785_vm0, %v6784_v1 }
 0x472   : > { %v3405_v3 = vpop.f32.mrf.mxu1  ;;  %6593 = vmatpush3.bf16.msra.mxu0 %v8525_v7 }
 0x473   : > { %6613 = vmatpush3.bf16.msra.mxu1 %v8525_v7  ;;  %v6329_v9 = vpop.f32.mrf.mxu0  ;;  %6594 = vmatprep.subr.bf16.mxu0 %v6784_v1 }
 0x474   : > { %v6349_v48 = vpop.f32.mrf.mxu1  ;;  %6614 = vmatprep.subr.bf16.mxu1 %v6784_v1 }
 0x476   : > { %6595 = vmatpush3.bf16.msra.mxu0 %v8541_v51 }
 0x477   : > { %6615 = vmatpush3.bf16.msra.mxu1 %v8541_v51  ;;  %6596 = vmatprep.subr.bf16.mxu0 %v6784_v1 }
 0x478   : > { %6616 = vmatprep.subr.bf16.mxu1 %v6784_v1 }
 0x47a   : > { %6597 = vmatpush3.bf16.msra.mxu0 %v8550_v46 }
 0x47b   : > { %6617 = vmatpush3.bf16.msra.mxu1 %v8550_v46  ;;  %6598 = vmatprep.subr.bf16.mxu0 %v6784_v1 }
 0x47c   : > { %6618 = vmatprep.subr.bf16.mxu1 %v6784_v1 }
 0x47e   : > { %6599 = vmatpush3.bf16.msra.mxu0 %v8559_v61 }
 0x47f   : > { %6619 = vmatpush3.bf16.msra.mxu1 %v8559_v61  ;;  %6600 = vmatprep.subr.bf16.mxu0 %v6784_v1 }
 0x480   : > { %6620 = vmatprep.subr.bf16.mxu1 %v6784_v1 }
 0x482   : > { %6601 = vmatpush3.bf16.msra.mxu0 %v8568_v2 }
 0x483   : > { %6621 = vmatpush3.bf16.msra.mxu1 %v8568_v2  ;;  %6602 = vmatprep.subr.bf16.mxu0 %v6784_v1 }
 0x484   : > { %6622 = vmatprep.subr.bf16.mxu1 %v6784_v1 }
 0x486   : > { %6603 = vmatpush3.bf16.msra.mxu0 %v8577_v60 }
 0x487   : > { %6623 = vmatpush3.bf16.msra.mxu1 %v8577_v60  ;;  %6604 = vmatprep.subr.bf16.mxu0 %v6784_v1 }
 0x488   : > { %6624 = vmatprep.subr.bf16.mxu1 %v6784_v1 }
 0x48a   : > { %6605 = vmatpush3.bf16.msra.mxu0 %v8586_v0 }
 0x48b   : > { %6625 = vmatpush3.bf16.msra.mxu1 %v8586_v0 }
 0x48d   : > { %v3443_v28 = vpop.f32.mrf.mxu0  ;;  %6607 = vmatmul.mubr.bf16.vlgmr.msra.gmra.mxu0 %v7438_v57 }
 0x48e   : > { %v3449_v34 = vadd.f32 %v3443_v28, %v8519_v58  ;;  %v3484_v30 = vpop.f32.mrf.mxu1  ;;  %6627 = vmatmul.mubr.bf16.vlgmr.msra.gmra.mxu1 %v4022_v16 }
 0x48f   : > { %v3490_v11 = vadd.f32 %v3484_v30, %v8528_v33  ;;  %v6368_v35 = vpop.f32.mrf.mxu0 }
 0x490   : > { %v6388_v26 = vpop.f32.mrf.mxu1 }
 0x491   : > { %v3446_v17 = vpop.f32.mrf.mxu0 }
 0x492   : > { %v3487_v52 = vpop.f32.mrf.mxu1 }
 0x493   : > { %v6369_v19 = vpop.f32.mrf.mxu0 }
 0x494   : > { %v6389_v1 = vpop.f32.mrf.mxu1 }
 0x4ad   : > { %v3525_v40 = vpop.f32.mrf.mxu0 }
 0x4ae   : > { %v3531_v22 = vadd.f32 %v3525_v40, %v8597_v8  ;;  %v3566_v41 = vpop.f32.mrf.mxu1 }
 0x4af   : > { %v3572_v7 = vadd.f32 %v3566_v41, %v8602_v14  ;;  %v6408_v53 = vpop.f32.mrf.mxu0 }
 0x4b0   : > { %v6428_v57 = vpop.f32.mrf.mxu1 }
 0x4b1   : > { %v3528_v12 = vpop.f32.mrf.mxu0 }
 0x4b2   : > { %v3569_v58 = vpop.f32.mrf.mxu1 }
 0x4b3   : > { %v6409_v56 = vpop.f32.mrf.mxu0 }
 0x4b4   : > { %v6429_v32 = vpop.f32.mrf.mxu1 }
 0x4cd   : > { %v3607_v51 = vpop.f32.mrf.mxu0 }
 0x4ce   : > { %v3613_v33 = vadd.f32 %v3607_v51, %v8641_v42  ;;  %v3650_v54 = vpop.f32.mrf.mxu1 }
 0x4cf   : > { %v3656_v59 = vadd.f32 %v3650_v54, %v8646_v20  ;;  %v6448_v46 = vpop.f32.mrf.mxu0 }
 0x4d0   : > { %v6468_v61 = vpop.f32.mrf.mxu1 }
 0x4d1   : > { %v3610_v2 = vpop.f32.mrf.mxu0 }
 0x4d2   : > { %v3653_v60 = vpop.f32.mrf.mxu1 }
 0x4d3   : > { %v6449_v0 = vpop.f32.mrf.mxu0 }
 0x4d4   : > { %v6469_v39 = vpop.f32.mrf.mxu1 }
 0x4ed   : > { %v3756_v8 = vpop.f32.mrf.mxu0 }
 0x4ee   : > { %v3762_v14 = vadd.f32 %v3756_v8, %v8685_v38  ;;  %v3797_v37 = vpop.f32.mrf.mxu1 }
 0x4ef   : > { %v3803_v18 = vadd.f32 %v3797_v37, %v8690_v45  ;;  %v6488_v5 = vpop.f32.mrf.mxu0 }
 0x4f0   : > { %v4072_v23 = vadd.f32 %v4508_v6, %v3762_v14  ;;  %v6508_v13 = vpop.f32.mrf.mxu1 }
 0x4f1   : > { %v4076_v15 = vadd.f32 %v4508_v6, %v3803_v18  ;;  %v3759_v43 = vpop.f32.mrf.mxu0 }
 0x4f2   : > { %v4073_v42 = vmax.f32 %v4072_v23, 0.0  ;;  %v3800_v27 = vpop.f32.mrf.mxu1 }
 0x4f3   : > { %v4077_v20 = vmax.f32 %v4076_v15, 0.0  ;;  %v6489_v21 = vpop.f32.mrf.mxu0 }
 0x4f4   : > { %v6509_v25 = vpop.f32.mrf.mxu1 }
 0x4f5   : > { %v4522_v24 = vpack.c.bf16 %v4077_v20, %v4073_v42 }
 0x4f7   : > { %4523 = vst [vmem:[%s8742_s8] sm:$0xff] %v4522_v24  }
 0x50d   : > { %v3838_v44 = vpop.f32.mrf.mxu0 }
 0x50e   : > { %v3844_v31 = vadd.f32 %v3838_v44, %v3449_v34  ;;  %v3879_v50 = vpop.f32.mrf.mxu1 }
 0x50f   : > { %v3885_v36 = vadd.f32 %v3879_v50, %v3490_v11  ;;  %v6528_v38 = vpop.f32.mrf.mxu0 }
 0x510   : > { %v4081_v63 = vadd.f32 %v4508_v6, %v3844_v31  ;;  %v6548_v45 = vpop.f32.mrf.mxu1 }
 0x511   : > { %v4086_v29 = vadd.f32 %v4508_v6, %v3885_v36  ;;  %v3841_v4 = vpop.f32.mrf.mxu0 }
 0x512   : > { %v4082_v47 = vmax.f32 %v4081_v63, 0.0  ;;  %v3882_v3 = vpop.f32.mrf.mxu1 }
 0x513   : > { %v4087_v9 = vmax.f32 %v4086_v29, 0.0  ;;  %v6529_v48 = vpop.f32.mrf.mxu0 }
 0x514   : > { %v6549_v62 = vpop.f32.mrf.mxu1 }
 0x515   : > { %v4527_v55 = vpack.c.bf16 %v4087_v9, %v4082_v47 }
 0x517   : > { %4539 = vst [vmem:[%s8742_s8 + $0x8] sm:$0xff] %v4527_v55  }
 0x52d   : > { %v3920_v49 = vpop.f32.mrf.mxu0 }
 0x52e   : > { %v3926_v10 = vadd.f32 %v3920_v49, %v3531_v22  ;;  %v3961_v16 = vpop.f32.mrf.mxu1 }
 0x52f   : > { %v3967_v28 = vadd.f32 %v3961_v16, %v3572_v7  ;;  %v6568_v34 = vpop.f32.mrf.mxu0 }
 0x530   : > { %v4091_v30 = vadd.f32 %v4508_v6, %v3926_v10  ;;  %v6588_v11 = vpop.f32.mrf.mxu1 }
 0x531   : > { %v4096_v35 = vadd.f32 %v4508_v6, %v3967_v28  ;;  %v3923_v26 = vpop.f32.mrf.mxu0 }
 0x532   : > { %v4092_v17 = vmax.f32 %v4091_v30, 0.0  ;;  %v3964_v52 = vpop.f32.mrf.mxu1 }
 0x533   : > { %v4097_v19 = vmax.f32 %v4096_v35, 0.0  ;;  %v6569_v1 = vpop.f32.mrf.mxu0 }
 0x534   : > { %v6589_v40 = vpop.f32.mrf.mxu1 }
 0x535   : > { %v4532_v41 = vpack.c.bf16 %v4097_v19, %v4092_v17 }
 0x537   : > { %4540 = vst [vmem:[%s8742_s8 + $0x10] sm:$0xff] %v4532_v41  }
 0x54d   : > { %v4002_v53 = vpop.f32.mrf.mxu0 }
 0x54e   : > { %v4008_v57 = vadd.f32 %v4002_v53, %v3613_v33  ;;  %v4058_v12 = vpop.f32.mrf.mxu1 }
 0x54f   : > { %v4064_v58 = vadd.f32 %v4058_v12, %v3656_v59  ;;  %v6608_v22 = vpop.f32.mrf.mxu0 }
 0x550   : > { %v4101_v56 = vadd.f32 %v4508_v6, %v4008_v57  ;;  %v6628_v7 = vpop.f32.mrf.mxu1 }
 0x551   : > { %v4106_v32 = vadd.f32 %v4508_v6, %v4064_v58  ;;  %v4005_v51 = vpop.f32.mrf.mxu0 }
 0x552   : > { %v4102_v54 = vmax.f32 %v4101_v56, 0.0  ;;  %v4061_v46 = vpop.f32.mrf.mxu1 }
 0x553   : > { %v4107_v61 = vmax.f32 %v4106_v32, 0.0  ;;  %v6609_v2 = vpop.f32.mrf.mxu0 }
 0x554   : > { %v6629_v60 = vpop.f32.mrf.mxu1 }
 0x555   : > { %v4537_v0 = vpack.c.bf16 %v4107_v61, %v4102_v54 }
 0x557   : > { %4541 = vst [vmem:[%s8742_s8 + $0x18] sm:$0xff] %v4537_v0  }
 0x558 PF: > { %s13_s14 = sadd.s32 1, %s6782_s14   ;;  %s8761_s12 = smov %s6778_s13 }
 0x559   : > { %p10_p5 = scmp.ge.s32.totalorder %s13_s14, 4   ;;  %s8762_s13 = smov %s8764_s15 }
 0x55b   :  { %12 = sbr.rel (!%p10_p5) target bundleno = 2 (0x2), region = 116 }

</bundles_post_ra>
